<compile_context>
chip_gen: v7x
topology: tpu7x:2x2x1
jax: 0.10.0
libtpu: 0.0.40
codegen_flags: <defaults>
</compile_context>

<pallas_src>
import functools

import jax
import jax.numpy as jnp
from jax.experimental import pallas as pl
from jax.experimental.pallas import tpu as pltpu


def _rup(x, m):
    return ((x + m - 1) // m) * m


def _pad2d(a, dr, dc):
    if dr == 0 and dc == 0:
        return a
    return jnp.pad(a, ((0, dr), (0, dc)))


# ----------------------------------------------------------------------------
# Pallas kernels
# ----------------------------------------------------------------------------
def _mm_fused_nk1_kernel(x_ref, w_ref, b_ref, *refs, relu, has_residual):
    """Single-K-step fused matmul: out = act(x @ w + bias [+ residual]).

    No accumulator scratch, no init/finalize -- the whole K is resident in
    VMEM (always true for this network), per perf review."""
    if has_residual:
        r_ref, o_ref = refs
    else:
        (o_ref,) = refs
    out = jnp.dot(x_ref[...], w_ref[...], preferred_element_type=jnp.float32)
    out = out + b_ref[...]
    if has_residual:
        out = out + r_ref[...].astype(jnp.float32)
    if relu:
        out = jnp.maximum(out, 0.0)
    o_ref[...] = out.astype(o_ref.dtype)


def _mm_fused_acc_kernel(x_ref, w_ref, b_ref, *refs, relu, has_residual):
    """Multi-K fallback with f32 VMEM accumulator (not used at these shapes)."""
    if has_residual:
        r_ref, o_ref, acc_ref = refs
    else:
        r_ref = None
        o_ref, acc_ref = refs

    k = pl.program_id(2)

    @pl.when(k == 0)
    def _init():
        acc_ref[...] = jnp.zeros_like(acc_ref)

    acc_ref[...] += jnp.dot(x_ref[...], w_ref[...],
                            preferred_element_type=jnp.float32)

    @pl.when(k == pl.num_programs(2) - 1)
    def _finalize():
        out = acc_ref[...] + b_ref[...]
        if has_residual:
            out = out + r_ref[...].astype(jnp.float32)
        if relu:
            out = jnp.maximum(out, 0.0)
        o_ref[...] = out.astype(o_ref.dtype)


def _maxpool_kernel(x_ref, o_ref, *, oh, ow, ksize, stride):
    # x_ref: [Hp, Wp, N*C] (-inf padded), N*C on the 128-lane axis (full,
    # unmasked vregs per perf review).  o_ref: [oh, ow, N*C].
    # Row maxima are computed once per output row; the remaining per-(r, c)
    # stores are full-lane [128] slabs on ~2 KB of total output.
    for r in range(oh):
        rows = x_ref[stride * r]                        # [Wp, NC]
        for i in range(1, ksize):
            rows = jnp.maximum(rows, x_ref[stride * r + i])
        for c in range(ow):
            m = rows[stride * c]                        # [NC]
            for j in range(1, ksize):
                m = jnp.maximum(m, rows[stride * c + j])
            o_ref[r, c] = m


# ----------------------------------------------------------------------------
# Pallas wrappers
# ----------------------------------------------------------------------------
_TM, _TN, _TK = 256, 256, 512        # nominal tiles (clamped to the problem)
_SINGLE_K_VMEM_BUDGET = 12 * 1024 * 1024


def matmul_fused(x, w, bias, residual=None, relu=False):
    """act(x @ w + bias [+ residual]); bf16 operands, f32 acc, bf16 output.

    BN scale is already folded into `w` (host side); `bias` is f32."""
    M, K = x.shape
    Kw, N = w.shape
    assert K == Kw

    x = x.astype(jnp.bfloat16)           # no-op when already bf16
    w = w.astype(jnp.bfloat16)

    Mp = _rup(M, 16)                     # bf16 sublane packing
    tm = min(_TM, Mp)
    Mp = _rup(Mp, tm)
    Np = _rup(N, 128)
    tn = min(_TN, Np)
    Np = _rup(Np, tn)

    has_residual = residual is not None

    # Single K step whenever the whole (16-aligned) K fits VMEM comfortably.
    # Always true for this network (max K = 2304 -> ~2.5 MB double-buffered).
    Kp1 = _rup(K, 16)
    work_bytes = 2 * (tm * Kp1 + Kp1 * tn) + 4 * tn + 4 * tm * tn
    single_k = 2 * work_bytes <= _SINGLE_K_VMEM_BUDGET

    if single_k:
        Kp = Kp1
    else:
        Kp = _rup(K, 128)
        nk = -(-Kp // _TK)
        tk = _rup(-(-Kp // nk), 128)
        Kp = tk * nk

    xp = _pad2d(x, Mp - M, Kp - K)
    wp = _pad2d(w, Kp - K, Np - N)
    bp = _pad2d(bias.reshape(1, -1).astype(jnp.float32), 0, Np - N)
    args = [xp, wp, bp]
    if has_residual:
        args.append(_pad2d(residual, Mp - M, Np - N))   # native dtype, no cast

    cparams = pltpu.CompilerParams(
        dimension_semantics=(("parallel", "parallel") if single_k
                             else ("parallel", "parallel", "arbitrary")),
        vmem_limit_bytes=32 * 1024 * 1024)

    if single_k:
        in_specs = [
            pl.BlockSpec((tm, Kp), lambda i, j: (i, 0)),
            pl.BlockSpec((Kp, tn), lambda i, j: (0, j)),
            pl.BlockSpec((1, tn), lambda i, j: (0, j)),
        ]
        if has_residual:
            in_specs.append(pl.BlockSpec((tm, tn), lambda i, j: (i, j)))
        out = pl.pallas_call(
            functools.partial(_mm_fused_nk1_kernel, relu=relu,
                              has_residual=has_residual),
            out_shape=jax.ShapeDtypeStruct((Mp, Np), jnp.bfloat16),
            grid=(Mp // tm, Np // tn),
            in_specs=in_specs,
            out_specs=pl.BlockSpec((tm, tn), lambda i, j: (i, j)),
            compiler_params=cparams,
        )(*args)
    else:
        in_specs = [
            pl.BlockSpec((tm, tk), lambda i, j, k: (i, k)),
            pl.BlockSpec((tk, tn), lambda i, j, k: (k, j)),
            pl.BlockSpec((1, tn), lambda i, j, k: (0, j)),
        ]
        if has_residual:
            in_specs.append(pl.BlockSpec((tm, tn), lambda i, j, k: (i, j)))
        out = pl.pallas_call(
            functools.partial(_mm_fused_acc_kernel, relu=relu,
                              has_residual=has_residual),
            out_shape=jax.ShapeDtypeStruct((Mp, Np), jnp.bfloat16),
            grid=(Mp // tm, Np // tn, nk),
            in_specs=in_specs,
            out_specs=pl.BlockSpec((tm, tn), lambda i, j, k: (i, j)),
            scratch_shapes=[pltpu.VMEM((tm, tn), jnp.float32)],
            compiler_params=cparams,
        )(*args)

    if Mp != M or Np != N:
        out = out[:M, :N]
    return out


def _im2col(x, kh, kw, stride, pad):
    """NHWC -> patches [N*OH*OW, kh*kw*C] (tap-major, C-minor). Plain-JAX glue."""
    N, H, W, C = x.shape
    oh = (H + 2 * pad - kh) // stride + 1
    ow = (W + 2 * pad - kw) // stride + 1
    if kh == 1 and kw == 1 and pad == 0:
        patches = x[:, ::stride, ::stride, :]
        return patches.reshape(N * oh * ow, C), (N, oh, ow)
    xp = jnp.pad(x, ((0, 0), (pad, pad), (pad, pad), (0, 0)))
    taps = [xp[:, i:i + stride * (oh - 1) + 1:stride,
                  j:j + stride * (ow - 1) + 1:stride, :]
            for i in range(kh) for j in range(kw)]
    patches = jnp.concatenate(taps, axis=-1)            # [N,OH,OW,kh*kw*C]
    return patches.reshape(N * oh * ow, kh * kw * C), (N, oh, ow)


def conv2d_fused(x, w_kn, bias, kh, kw, stride, pad, residual=None, relu=True):
    """x: NHWC bf16; w_kn: [kh*kw*Cin, Cout] bf16 (BN scale folded); NHWC out."""
    patches, (n, oh, ow) = _im2col(x, kh, kw, stride, pad)
    cout = w_kn.shape[1]
    res2d = residual.reshape(n * oh * ow, cout) if residual is not None else None
    out = matmul_fused(patches, w_kn, bias, residual=res2d, relu=relu)
    return out.reshape(n, oh, ow, cout)


def maxpool_3x3_s2_p1(x):
    """x: NHWC, kernel 3, stride 2, padding 1 (PyTorch semantics)."""
    N, H, W, C = x.shape
    oh = (H + 2 - 3) // 2 + 1
    ow = (W + 2 - 3) // 2 + 1
    xp = jnp.pad(x, ((0, 0), (1, 1), (1, 1), (0, 0)),
                 constant_values=-jnp.inf)
    # [Hp, Wp, N*C]: N*C = 128 here -> full-lane slabs inside the kernel.
    xt = jnp.transpose(xp, (1, 2, 0, 3)).reshape(H + 2, W + 2, N * C)
    out = pl.pallas_call(
        functools.partial(_maxpool_kernel, oh=oh, ow=ow, ksize=3, stride=2),
        out_shape=jax.ShapeDtypeStruct((oh, ow, N * C), x.dtype),
        grid=(1,),
        in_specs=[pl.BlockSpec((H + 2, W + 2, N * C), lambda i: (0, 0, 0))],
        out_specs=pl.BlockSpec((oh, ow, N * C), lambda i: (0, 0, 0)),
    )(xt)
    return jnp.transpose(out.reshape(oh, ow, N, C), (2, 0, 1, 3))   # NHWC


def avgpool_fc(x, fc_w, fc_b):
    """AdaptiveAvgPool2d((1,1)) + flatten + Linear(C,1).

    Plain JAX per perf review: ~512 MACs on a (2,1,1,256) tensor; a dedicated
    pallas_call launch would dwarf the op and XLA fuses the reduction."""
    pooled = jnp.mean(x.astype(jnp.float32), axis=(1, 2))           # [N, C]
    return pooled @ fc_w.astype(jnp.float32).T + fc_b.astype(jnp.float32)


# ----------------------------------------------------------------------------
# Deterministic parameter initialization (synthetic, not a checkpoint)
# ----------------------------------------------------------------------------
def _conv_w(key, cout, cin, k):
    fan = cin * k * k
    return (jax.random.normal(key, (cout, cin, k, k), jnp.float32)
            / jnp.sqrt(jnp.float32(fan)))


def _bn_fold(key, c, eps=1e-5):
    k1, k2, k3, k4 = jax.random.split(key, 4)
    gamma = 1.0 + 0.1 * jax.random.normal(k1, (c,), jnp.float32)
    beta = 0.1 * jax.random.normal(k2, (c,), jnp.float32)
    mean = 0.1 * jax.random.normal(k3, (c,), jnp.float32)
    var = 1.0 + 0.1 * jax.random.uniform(k4, (c,), jnp.float32)
    scale = gamma / jnp.sqrt(var + eps)
    bias = beta - mean * scale
    return scale, bias


def _init_block(key, cin, cout, stride):
    ks = jax.random.split(key, 6)
    p = {
        "conv1_w": _conv_w(ks[0], cout, cin, 3),
        "bn1": _bn_fold(ks[1], cout),
        "conv2_w": _conv_w(ks[2], cout, cout, 3),
        "bn2": _bn_fold(ks[3], cout),
    }
    if stride != 1 or cin != cout:
        p["down_w"] = _conv_w(ks[4], cout, cin, 1)
        p["dbn"] = _bn_fold(ks[5], cout)
    return p


# (cin, cout, per-block strides) for layer1..layer3 of ResNet-18
LAYER_CFG = [(64, 64, (1, 1)), (64, 128, (2, 1)), (128, 256, (2, 1))]


def init_params(key):
    keys = jax.random.split(key, 16)
    params = {
        "conv_stem": _conv_w(keys[0], 64, 1, 3),
        "bn_stem": _bn_fold(keys[1], 64),
        "fc_w": jax.random.normal(keys[2], (1, 256), jnp.float32) / jnp.sqrt(256.0),
        "fc_b": 0.1 * jax.random.normal(keys[3], (1,), jnp.float32),
    }
    ki = 4
    for li, (cin, cout, strides) in enumerate(LAYER_CFG):
        blocks = []
        c_in = cin
        for s in strides:
            blocks.append(_init_block(keys[ki], c_in, cout, s))
            ki += 1
            c_in = cout
        params[f"layer{li + 1}"] = blocks
    return params


# ----------------------------------------------------------------------------
# Host-side BN folding (once, outside jit): conv OIHW + BN -> matmul-ready
# [K, N] bf16 weight (scale folded in f32 before the cast) + f32 bias.
# ----------------------------------------------------------------------------
def _fold_conv(w_oihw, bn):
    scale, bias = bn
    cout, cin, kh, kw = w_oihw.shape
    wm = jnp.transpose(w_oihw, (2, 3, 1, 0)).reshape(kh * kw * cin, cout)
    wm = (wm * scale[None, :]).astype(jnp.bfloat16)
    return wm, bias.astype(jnp.float32)


def fold_params(params):
    f = {
        "stem": _fold_conv(params["conv_stem"], params["bn_stem"]),
        "fc_w": params["fc_w"].astype(jnp.float32),
        "fc_b": params["fc_b"].astype(jnp.float32),
    }
    for li, (_, _, strides) in enumerate(LAYER_CFG):
        blocks = []
        for bi, _ in enumerate(strides):
            p = params[f"layer{li + 1}"][bi]
            fb = {
                "conv1": _fold_conv(p["conv1_w"], p["bn1"]),
                "conv2": _fold_conv(p["conv2_w"], p["bn2"]),
            }
            if "down_w" in p:
                fb["down"] = _fold_conv(p["down_w"], p["dbn"])
            blocks.append(fb)
        f[f"layer{li + 1}"] = blocks
    return f


# ----------------------------------------------------------------------------
# Forward pass (matches newResNet18_Simplified.forward, eval-mode semantics)
# ----------------------------------------------------------------------------
def _basic_block(x, fp, stride):
    w1, b1 = fp["conv1"]
    out = conv2d_fused(x, w1, b1, 3, 3, stride, 1, relu=True)
    if "down" in fp:
        wd, bd = fp["down"]
        identity = conv2d_fused(x, wd, bd, 1, 1, stride, 0, relu=False)
    else:
        identity = x
    # conv2 + folded-BN bias + residual add + ReLU fused in one Pallas kernel
    w2, b2 = fp["conv2"]
    return conv2d_fused(out, w2, b2, 3, 3, 1, 1, residual=identity, relu=True)


def forward(fparams, x_nchw):
    # NCHW (PyTorch) -> NHWC bf16 once; activations stay bf16 end-to-end.
    x = jnp.transpose(x_nchw, (0, 2, 3, 1)).astype(jnp.bfloat16)
    # stem: conv(1->64, k3, s2, p1, no bias) + BN + ReLU
    ws, bs = fparams["stem"]
    x = conv2d_fused(x, ws, bs, 3, 3, 2, 1, relu=True)
    # TODO(synk): nn.Dropout is modeled in eval mode (identity), no RNG masking.
    x = maxpool_3x3_s2_p1(x)
    for li, (_, _, strides) in enumerate(LAYER_CFG):
        for bi, s in enumerate(strides):
            x = _basic_block(x, fparams[f"layer{li + 1}"][bi], s)
    # global avgpool + flatten + fc (plain JAX, see avgpool_fc docstring)
    return avgpool_fc(x, fparams["fc_w"], fparams["fc_b"])          # [N, 1]


if __name__ == "__main__":
    key = jax.random.PRNGKey(0)
    kp, kx = jax.random.split(key)
    params = init_params(kp)
    fparams = fold_params(params)        # BN folded into weights, host side
    # small input consistent with the module: batch=2, 1 channel, 16x16 spatial
    x = jax.random.normal(kx, (2, 1, 16, 16), jnp.float32)

    fwd = jax.jit(forward)
    out = jax.block_until_ready(fwd(fparams, x))
    assert out.shape == (2, 1), out.shape
    assert bool(jnp.all(jnp.isfinite(out)))
    print("KERNEL_OK")
</pallas_src>

<mosaic_0001>
module attributes {stable_mosaic.version = 11 : i64} {
  func.func @_mm_fused_nk1_kernel(%arg0: i32, %arg1: i32, %arg2: memref<128x16xbf16, #tpu.memory_space<vmem>>, %arg3: memref<16x128xbf16, #tpu.memory_space<vmem>>, %arg4: memref<1x128xf32, #tpu.memory_space<vmem>>, %arg5: memref<128x128xbf16, #tpu.memory_space<vmem>>) attributes {dimension_semantics = [#tpu.dimension_semantics<parallel>, #tpu.dimension_semantics<parallel>], iteration_bounds = array<i64: 1, 1>, scalar_prefetch = 0 : i64, scratch_operands = 0 : i64, tpu.core_type = #tpu.core_type<tc>, window_params = [{transform_indices = @transform_0, window_bounds = array<i64: 128, 16>}, {transform_indices = @transform_1, window_bounds = array<i64: 16, 128>}, {transform_indices = @transform_2, window_bounds = array<i64: 1, 128>}, {transform_indices = @transform_3, window_bounds = array<i64: 128, 128>}]} {
    %c0 = arith.constant 0 : index
    %c0_0 = arith.constant 0 : index
    %0 = vector.load %arg2[%c0, %c0_0] : memref<128x16xbf16, #tpu.memory_space<vmem>>, vector<128x16xbf16>
    %c0_1 = arith.constant 0 : index
    %c0_2 = arith.constant 0 : index
    %1 = vector.load %arg3[%c0_1, %c0_2] : memref<16x128xbf16, #tpu.memory_space<vmem>>, vector<16x128xbf16>
    %cst = arith.constant dense<0.000000e+00> : vector<128x128xf32>
    %2 = tpu.matmul %0, %1, %cst {dimension_numbers = #tpu.dot_dimension_numbers<[1], [0], [0], [1], [0, 0, 1, 1], [], []>} : vector<128x16xbf16>, vector<16x128xbf16>, vector<128x128xf32> -> vector<128x128xf32>
    %c0_3 = arith.constant 0 : index
    %c0_4 = arith.constant 0 : index
    %3 = vector.load %arg4[%c0_3, %c0_4] : memref<1x128xf32, #tpu.memory_space<vmem>>, vector<1x128xf32>
    %4 = vector.broadcast %3 : vector<1x128xf32> to vector<128x128xf32>
    %5 = arith.addf %2, %4 : vector<128x128xf32>
    %cst_5 = arith.constant 0.000000e+00 : f32
    %6 = vector.broadcast %cst_5 : f32 to vector<128x128xf32>
    %7 = arith.maximumf %5, %6 : vector<128x128xf32>
    %8 = arith.truncf %7 : vector<128x128xf32> to vector<128x128xbf16>
    %c0_6 = arith.constant 0 : index
    %c0_7 = arith.constant 0 : index
    %9 = vector.load %arg5[%c0_6, %c0_7] : memref<128x128xbf16, #tpu.memory_space<vmem>>, vector<128x128xbf16>
    tpu.vector_store %arg5[%c0_6, %c0_7], %8 {strides = array<i32>} : memref<128x128xbf16, #tpu.memory_space<vmem>>, vector<128x128xbf16>,
    return
  }
  func.func @transform_0(%arg0: i32, %arg1: i32) -> (i32, i32) {
    %c0_i32 = arith.constant 0 : i32
    %c0_i32_0 = arith.constant 0 : i32
    return %arg0, %c0_i32 : i32, i32
  }
  func.func @transform_1(%arg0: i32, %arg1: i32) -> (i32, i32) {
    %c0_i32 = arith.constant 0 : i32
    %c0_i32_0 = arith.constant 0 : i32
    return %c0_i32, %arg1 : i32, i32
  }
  func.func @transform_2(%arg0: i32, %arg1: i32) -> (i32, i32) {
    %c0_i32 = arith.constant 0 : i32
    %c0_i32_0 = arith.constant 0 : i32
    return %c0_i32, %arg1 : i32, i32
  }
  func.func @transform_3(%arg0: i32, %arg1: i32) -> (i32, i32) {
    %c0_i32 = arith.constant 0 : i32
    return %arg0, %arg1 : i32, i32
  }
}

module attributes {stable_mosaic.version = 11 : i64} {
  func.func @_maxpool_kernel(%arg0: i32, %arg1: memref<10x10x128xbf16, #tpu.memory_space<vmem>>, %arg2: memref<4x4x128xbf16, #tpu.memory_space<vmem>>) attributes {dimension_semantics = [#tpu.dimension_semantics<arbitrary>], iteration_bounds = array<i64: 1>, scalar_prefetch = 0 : i64, scratch_operands = 0 : i64, tpu.core_type = #tpu.core_type<tc>, window_params = [{pipeline_mode = #tpu.pipeline_mode<synchronous>, transform_indices = @transform_0, window_bounds = array<i64: 10, 10, 128>}, {pipeline_mode = #tpu.pipeline_mode<synchronous>, transform_indices = @transform_1, window_bounds = array<i64: 4, 4, 128>}]} {
    %c0 = arith.constant 0 : index
    %c0_0 = arith.constant 0 : index
    %c0_1 = arith.constant 0 : index
    %0 = vector.load %arg1[%c0, %c0_0, %c0_1] : memref<10x10x128xbf16, #tpu.memory_space<vmem>>, vector<1x10x128xbf16>
    %1 = vector.shape_cast %0 : vector<1x10x128xbf16> to vector<10x128xbf16>
    %c1 = arith.constant 1 : index
    %c0_2 = arith.constant 0 : index
    %c0_3 = arith.constant 0 : index
    %2 = vector.load %arg1[%c1, %c0_2, %c0_3] : memref<10x10x128xbf16, #tpu.memory_space<vmem>>, vector<1x10x128xbf16>
    %3 = vector.shape_cast %2 : vector<1x10x128xbf16> to vector<10x128xbf16>
    %4 = arith.maximumf %1, %3 : vector<10x128xbf16>
    %c2 = arith.constant 2 : index
    %c0_4 = arith.constant 0 : index
    %c0_5 = arith.constant 0 : index
    %5 = vector.load %arg1[%c2, %c0_4, %c0_5] : memref<10x10x128xbf16, #tpu.memory_space<vmem>>, vector<1x10x128xbf16>
    %6 = vector.shape_cast %5 : vector<1x10x128xbf16> to vector<10x128xbf16>
    %7 = arith.maximumf %4, %6 : vector<10x128xbf16>
    %8 = vector.extract_strided_slice %7 {offsets = [0, 0], sizes = [1, 128], strides = [1, 1]} : vector<10x128xbf16> to vector<1x128xbf16>
    %9 = vector.shape_cast %8 : vector<1x128xbf16> to vector<128xbf16>
    %10 = vector.extract_strided_slice %7 {offsets = [1, 0], sizes = [1, 128], strides = [1, 1]} : vector<10x128xbf16> to vector<1x128xbf16>
    %11 = vector.shape_cast %10 : vector<1x128xbf16> to vector<128xbf16>
    %12 = arith.maximumf %9, %11 : vector<128xbf16>
    %13 = vector.extract_strided_slice %7 {offsets = [2, 0], sizes = [1, 128], strides = [1, 1]} : vector<10x128xbf16> to vector<1x128xbf16>
    %14 = vector.shape_cast %13 : vector<1x128xbf16> to vector<128xbf16>
    %15 = arith.maximumf %12, %14 : vector<128xbf16>
    %c0_6 = arith.constant 0 : index
    %c0_7 = arith.constant 0 : index
    %c0_8 = arith.constant 0 : index
    %16 = vector.load %arg2[%c0_6, %c0_7, %c0_8] : memref<4x4x128xbf16, #tpu.memory_space<vmem>>, vector<1x1x128xbf16>
    %17 = vector.shape_cast %16 : vector<1x1x128xbf16> to vector<128xbf16>
    %18 = vector.shape_cast %15 : vector<128xbf16> to vector<1x1x128xbf16>
    tpu.vector_store %arg2[%c0_6, %c0_7, %c0_8], %18 {strides = array<i32>} : memref<4x4x128xbf16, #tpu.memory_space<vmem>>, vector<1x1x128xbf16>,
    %19 = vector.extract_strided_slice %7 {offsets = [2, 0], sizes = [1, 128], strides = [1, 1]} : vector<10x128xbf16> to vector<1x128xbf16>
    %20 = vector.shape_cast %19 : vector<1x128xbf16> to vector<128xbf16>
    %21 = vector.extract_strided_slice %7 {offsets = [3, 0], sizes = [1, 128], strides = [1, 1]} : vector<10x128xbf16> to vector<1x128xbf16>
    %22 = vector.shape_cast %21 : vector<1x128xbf16> to vector<128xbf16>
    %23 = arith.maximumf %20, %22 : vector<128xbf16>
    %24 = vector.extract_strided_slice %7 {offsets = [4, 0], sizes = [1, 128], strides = [1, 1]} : vector<10x128xbf16> to vector<1x128xbf16>
    %25 = vector.shape_cast %24 : vector<1x128xbf16> to vector<128xbf16>
    %26 = arith.maximumf %23, %25 : vector<128xbf16>
    %c0_9 = arith.constant 0 : index
    %c1_10 = arith.constant 1 : index
    %c0_11 = arith.constant 0 : index
    %27 = vector.load %arg2[%c0_9, %c1_10, %c0_11] : memref<4x4x128xbf16, #tpu.memory_space<vmem>>, vector<1x1x128xbf16>
    %28 = vector.shape_cast %27 : vector<1x1x128xbf16> to vector<128xbf16>
    %29 = vector.shape_cast %26 : vector<128xbf16> to vector<1x1x128xbf16>
    tpu.vector_store %arg2[%c0_9, %c1_10, %c0_11], %29 {strides = array<i32>} : memref<4x4x128xbf16, #tpu.memory_space<vmem>>, vector<1x1x128xbf16>,
    %30 = vector.extract_strided_slice %7 {offsets = [4, 0], sizes = [1, 128], strides = [1, 1]} : vector<10x128xbf16> to vector<1x128xbf16>
    %31 = vector.shape_cast %30 : vector<1x128xbf16> to vector<128xbf16>
    %32 = vector.extract_strided_slice %7 {offsets = [5, 0], sizes = [1, 128], strides = [1, 1]} : vector<10x128xbf16> to vector<1x128xbf16>
    %33 = vector.shape_cast %32 : vector<1x128xbf16> to vector<128xbf16>
    %34 = arith.maximumf %31, %33 : vector<128xbf16>
    %35 = vector.extract_strided_slice %7 {offsets = [6, 0], sizes = [1, 128], strides = [1, 1]} : vector<10x128xbf16> to vector<1x128xbf16>
    %36 = vector.shape_cast %35 : vector<1x128xbf16> to vector<128xbf16>
    %37 = arith.maximumf %34, %36 : vector<128xbf16>
    %c0_12 = arith.constant 0 : index
    %c2_13 = arith.constant 2 : index
    %c0_14 = arith.constant 0 : index
    %38 = vector.load %arg2[%c0_12, %c2_13, %c0_14] : memref<4x4x128xbf16, #tpu.memory_space<vmem>>, vector<1x1x128xbf16>
    %39 = vector.shape_cast %38 : vector<1x1x128xbf16> to vector<128xbf16>
    %40 = vector.shape_cast %37 : vector<128xbf16> to vector<1x1x128xbf16>
    tpu.vector_store %arg2[%c0_12, %c2_13, %c0_14], %40 {strides = array<i32>} : memref<4x4x128xbf16, #tpu.memory_space<vmem>>, vector<1x1x128xbf16>,
    %41 = vector.extract_strided_slice %7 {offsets = [6, 0], sizes = [1, 128], strides = [1, 1]} : vector<10x128xbf16> to vector<1x128xbf16>
    %42 = vector.shape_cast %41 : vector<1x128xbf16> to vector<128xbf16>
    %43 = vector.extract_strided_slice %7 {offsets = [7, 0], sizes = [1, 128], strides = [1, 1]} : vector<10x128xbf16> to vector<1x128xbf16>
    %44 = vector.shape_cast %43 : vector<1x128xbf16> to vector<128xbf16>
    %45 = arith.maximumf %42, %44 : vector<128xbf16>
    %46 = vector.extract_strided_slice %7 {offsets = [8, 0], sizes = [1, 128], strides = [1, 1]} : vector<10x128xbf16> to vector<1x128xbf16>
    %47 = vector.shape_cast %46 : vector<1x128xbf16> to vector<128xbf16>
    %48 = arith.maximumf %45, %47 : vector<128xbf16>
    %c0_15 = arith.constant 0 : index
    %c3 = arith.constant 3 : index
    %c0_16 = arith.constant 0 : index
    %49 = vector.load %arg2[%c0_15, %c3, %c0_16] : memref<4x4x128xbf16, #tpu.memory_space<vmem>>, vector<1x1x128xbf16>
    %50 = vector.shape_cast %49 : vector<1x1x128xbf16> to vector<128xbf16>
    %51 = vector.shape_cast %48 : vector<128xbf16> to vector<1x1x128xbf16>
    tpu.vector_store %arg2[%c0_15, %c3, %c0_16], %51 {strides = array<i32>} : memref<4x4x128xbf16, #tpu.memory_space<vmem>>, vector<1x1x128xbf16>,
    %c2_17 = arith.constant 2 : index
    %c0_18 = arith.constant 0 : index
    %c0_19 = arith.constant 0 : index
    %52 = vector.load %arg1[%c2_17, %c0_18, %c0_19] : memref<10x10x128xbf16, #tpu.memory_space<vmem>>, vector<1x10x128xbf16>
    %53 = vector.shape_cast %52 : vector<1x10x128xbf16> to vector<10x128xbf16>
    %c3_20 = arith.constant 3 : index
    %c0_21 = arith.constant 0 : index
    %c0_22 = arith.constant 0 : index
    %54 = vector.load %arg1[%c3_20, %c0_21, %c0_22] : memref<10x10x128xbf16, #tpu.memory_space<vmem>>, vector<1x10x128xbf16>
    %55 = vector.shape_cast %54 : vector<1x10x128xbf16> to vector<10x128xbf16>
    %56 = arith.maximumf %53, %55 : vector<10x128xbf16>
    %c4 = arith.constant 4 : index
    %c0_23 = arith.constant 0 : index
    %c0_24 = arith.constant 0 : index
    %57 = vector.load %arg1[%c4, %c0_23, %c0_24] : memref<10x10x128xbf16, #tpu.memory_space<vmem>>, vector<1x10x128xbf16>
    %58 = vector.shape_cast %57 : vector<1x10x128xbf16> to vector<10x128xbf16>
    %59 = arith.maximumf %56, %58 : vector<10x128xbf16>
    %60 = vector.extract_strided_slice %59 {offsets = [0, 0], sizes = [1, 128], strides = [1, 1]} : vector<10x128xbf16> to vector<1x128xbf16>
    %61 = vector.shape_cast %60 : vector<1x128xbf16> to vector<128xbf16>
    %62 = vector.extract_strided_slice %59 {offsets = [1, 0], sizes = [1, 128], strides = [1, 1]} : vector<10x128xbf16> to vector<1x128xbf16>
    %63 = vector.shape_cast %62 : vector<1x128xbf16> to vector<128xbf16>
    %64 = arith.maximumf %61, %63 : vector<128xbf16>
    %65 = vector.extract_strided_slice %59 {offsets = [2, 0], sizes = [1, 128], strides = [1, 1]} : vector<10x128xbf16> to vector<1x128xbf16>
    %66 = vector.shape_cast %65 : vector<1x128xbf16> to vector<128xbf16>
    %67 = arith.maximumf %64, %66 : vector<128xbf16>
    %c1_25 = arith.constant 1 : index
    %c0_26 = arith.constant 0 : index
    %c0_27 = arith.constant 0 : index
    %68 = vector.load %arg2[%c1_25, %c0_26, %c0_27] : memref<4x4x128xbf16, #tpu.memory_space<vmem>>, vector<1x1x128xbf16>
    %69 = vector.shape_cast %68 : vector<1x1x128xbf16> to vector<128xbf16>
    %70 = vector.shape_cast %67 : vector<128xbf16> to vector<1x1x128xbf16>
    tpu.vector_store %arg2[%c1_25, %c0_26, %c0_27], %70 {strides = array<i32>} : memref<4x4x128xbf16, #tpu.memory_space<vmem>>, vector<1x1x128xbf16>,
    %71 = vector.extract_strided_slice %59 {offsets = [2, 0], sizes = [1, 128], strides = [1, 1]} : vector<10x128xbf16> to vector<1x128xbf16>
    %72 = vector.shape_cast %71 : vector<1x128xbf16> to vector<128xbf16>
    %73 = vector.extract_strided_slice %59 {offsets = [3, 0], sizes = [1, 128], strides = [1, 1]} : vector<10x128xbf16> to vector<1x128xbf16>
    %74 = vector.shape_cast %73 : vector<1x128xbf16> to vector<128xbf16>
    %75 = arith.maximumf %72, %74 : vector<128xbf16>
    %76 = vector.extract_strided_slice %59 {offsets = [4, 0], sizes = [1, 128], strides = [1, 1]} : vector<10x128xbf16> to vector<1x128xbf16>
    %77 = vector.shape_cast %76 : vector<1x128xbf16> to vector<128xbf16>
    %78 = arith.maximumf %75, %77 : vector<128xbf16>
    %c1_28 = arith.constant 1 : index
    %c1_29 = arith.constant 1 : index
    %c0_30 = arith.constant 0 : index
    %79 = vector.load %arg2[%c1_28, %c1_29, %c0_30] : memref<4x4x128xbf16, #tpu.memory_space<vmem>>, vector<1x1x128xbf16>
    %80 = vector.shape_cast %79 : vector<1x1x128xbf16> to vector<128xbf16>
    %81 = vector.shape_cast %78 : vector<128xbf16> to vector<1x1x128xbf16>
    tpu.vector_store %arg2[%c1_28, %c1_29, %c0_30], %81 {strides = array<i32>} : memref<4x4x128xbf16, #tpu.memory_space<vmem>>, vector<1x1x128xbf16>,
    %82 = vector.extract_strided_slice %59 {offsets = [4, 0], sizes = [1, 128], strides = [1, 1]} : vector<10x128xbf16> to vector<1x128xbf16>
    %83 = vector.shape_cast %82 : vector<1x128xbf16> to vector<128xbf16>
    %84 = vector.extract_strided_slice %59 {offsets = [5, 0], sizes = [1, 128], strides = [1, 1]} : vector<10x128xbf16> to vector<1x128xbf16>
    %85 = vector.shape_cast %84 : vector<1x128xbf16> to vector<128xbf16>
    %86 = arith.maximumf %83, %85 : vector<128xbf16>
    %87 = vector.extract_strided_slice %59 {offsets = [6, 0], sizes = [1, 128], strides = [1, 1]} : vector<10x128xbf16> to vector<1x128xbf16>
    %88 = vector.shape_cast %87 : vector<1x128xbf16> to vector<128xbf16>
    %89 = arith.maximumf %86, %88 : vector<128xbf16>
    %c1_31 = arith.constant 1 : index
    %c2_32 = arith.constant 2 : index
    %c0_33 = arith.constant 0 : index
    %90 = vector.load %arg2[%c1_31, %c2_32, %c0_33] : memref<4x4x128xbf16, #tpu.memory_space<vmem>>, vector<1x1x128xbf16>
    %91 = vector.shape_cast %90 : vector<1x1x128xbf16> to vector<128xbf16>
    %92 = vector.shape_cast %89 : vector<128xbf16> to vector<1x1x128xbf16>
    tpu.vector_store %arg2[%c1_31, %c2_32, %c0_33], %92 {strides = array<i32>} : memref<4x4x128xbf16, #tpu.memory_space<vmem>>, vector<1x1x128xbf16>,
    %93 = vector.extract_strided_slice %59 {offsets = [6, 0], sizes = [1, 128], strides = [1, 1]} : vector<10x128xbf16> to vector<1x128xbf16>
    %94 = vector.shape_cast %93 : vector<1x128xbf16> to vector<128xbf16>
    %95 = vector.extract_strided_slice %59 {offsets = [7, 0], sizes = [1, 128], strides = [1, 1]} : vector<10x128xbf16> to vector<1x128xbf16>
    %96 = vector.shape_cast %95 : vector<1x128xbf16> to vector<128xbf16>
    %97 = arith.maximumf %94, %96 : vector<128xbf16>
    %98 = vector.extract_strided_slice %59 {offsets = [8, 0], sizes = [1, 128], strides = [1, 1]} : vector<10x128xbf16> to vector<1x128xbf16>
    %99 = vector.shape_cast %98 : vector<1x128xbf16> to vector<128xbf16>
    %100 = arith.maximumf %97, %99 : vector<128xbf16>
    %c1_34 = arith.constant 1 : index
    %c3_35 = arith.constant 3 : index
    %c0_36 = arith.constant 0 : index
    %101 = vector.load %arg2[%c1_34, %c3_35, %c0_36] : memref<4x4x128xbf16, #tpu.memory_space<vmem>>, vector<1x1x128xbf16>
    %102 = vector.shape_cast %101 : vector<1x1x128xbf16> to vector<128xbf16>
    %103 = vector.shape_cast %100 : vector<128xbf16> to vector<1x1x128xbf16>
    tpu.vector_store %arg2[%c1_34, %c3_35, %c0_36], %103 {strides = array<i32>} : memref<4x4x128xbf16, #tpu.memory_space<vmem>>, vector<1x1x128xbf16>,
    %c4_37 = arith.constant 4 : index
    %c0_38 = arith.constant 0 : index
    %c0_39 = arith.constant 0 : index
    %104 = vector.load %arg1[%c4_37, %c0_38, %c0_39] : memref<10x10x128xbf16, #tpu.memory_space<vmem>>, vector<1x10x128xbf16>
    %105 = vector.shape_cast %104 : vector<1x10x128xbf16> to vector<10x128xbf16>
    %c5 = arith.constant 5 : index
    %c0_40 = arith.constant 0 : index
    %c0_41 = arith.constant 0 : index
    %106 = vector.load %arg1[%c5, %c0_40, %c0_41] : memref<10x10x128xbf16, #tpu.memory_space<vmem>>, vector<1x10x128xbf16>
    %107 = vector.shape_cast %106 : vector<1x10x128xbf16> to vector<10x128xbf16>
    %108 = arith.maximumf %105, %107 : vector<10x128xbf16>
    %c6 = arith.constant 6 : index
    %c0_42 = arith.constant 0 : index
    %c0_43 = arith.constant 0 : index
    %109 = vector.load %arg1[%c6, %c0_42, %c0_43] : memref<10x10x128xbf16, #tpu.memory_space<vmem>>, vector<1x10x128xbf16>
    %110 = vector.shape_cast %109 : vector<1x10x128xbf16> to vector<10x128xbf16>
    %111 = arith.maximumf %108, %110 : vector<10x128xbf16>
    %112 = vector.extract_strided_slice %111 {offsets = [0, 0], sizes = [1, 128], strides = [1, 1]} : vector<10x128xbf16> to vector<1x128xbf16>
    %113 = vector.shape_cast %112 : vector<1x128xbf16> to vector<128xbf16>
    %114 = vector.extract_strided_slice %111 {offsets = [1, 0], sizes = [1, 128], strides = [1, 1]} : vector<10x128xbf16> to vector<1x128xbf16>
    %115 = vector.shape_cast %114 : vector<1x128xbf16> to vector<128xbf16>
    %116 = arith.maximumf %113, %115 : vector<128xbf16>
    %117 = vector.extract_strided_slice %111 {offsets = [2, 0], sizes = [1, 128], strides = [1, 1]} : vector<10x128xbf16> to vector<1x128xbf16>
    %118 = vector.shape_cast %117 : vector<1x128xbf16> to vector<128xbf16>
    %119 = arith.maximumf %116, %118 : vector<128xbf16>
    %c2_44 = arith.constant 2 : index
    %c0_45 = arith.constant 0 : index
    %c0_46 = arith.constant 0 : index
    %120 = vector.load %arg2[%c2_44, %c0_45, %c0_46] : memref<4x4x128xbf16, #tpu.memory_space<vmem>>, vector<1x1x128xbf16>
    %121 = vector.shape_cast %120 : vector<1x1x128xbf16> to vector<128xbf16>
    %122 = vector.shape_cast %119 : vector<128xbf16> to vector<1x1x128xbf16>
    tpu.vector_store %arg2[%c2_44, %c0_45, %c0_46], %122 {strides = array<i32>} : memref<4x4x128xbf16, #tpu.memory_space<vmem>>, vector<1x1x128xbf16>,
    %123 = vector.extract_strided_slice %111 {offsets = [2, 0], sizes = [1, 128], strides = [1, 1]} : vector<10x128xbf16> to vector<1x128xbf16>
    %124 = vector.shape_cast %123 : vector<1x128xbf16> to vector<128xbf16>
    %125 = vector.extract_strided_slice %111 {offsets = [3, 0], sizes = [1, 128], strides = [1, 1]} : vector<10x128xbf16> to vector<1x128xbf16>
    %126 = vector.shape_cast %125 : vector<1x128xbf16> to vector<128xbf16>
    %127 = arith.maximumf %124, %126 : vector<128xbf16>
    %128 = vector.extract_strided_slice %111 {offsets = [4, 0], sizes = [1, 128], strides = [1, 1]} : vector<10x128xbf16> to vector<1x128xbf16>
    %129 = vector.shape_cast %128 : vector<1x128xbf16> to vector<128xbf16>
    %130 = arith.maximumf %127, %129 : vector<128xbf16>
    %c2_47 = arith.constant 2 : index
    %c1_48 = arith.constant 1 : index
    %c0_49 = arith.constant 0 : index
    %131 = vector.load %arg2[%c2_47, %c1_48, %c0_49] : memref<4x4x128xbf16, #tpu.memory_space<vmem>>, vector<1x1x128xbf16>
    %132 = vector.shape_cast %131 : vector<1x1x128xbf16> to vector<128xbf16>
    %133 = vector.shape_cast %130 : vector<128xbf16> to vector<1x1x128xbf16>
    tpu.vector_store %arg2[%c2_47, %c1_48, %c0_49], %133 {strides = array<i32>} : memref<4x4x128xbf16, #tpu.memory_space<vmem>>, vector<1x1x128xbf16>,
    %134 = vector.extract_strided_slice %111 {offsets = [4, 0], sizes = [1, 128], strides = [1, 1]} : vector<10x128xbf16> to vector<1x128xbf16>
    %135 = vector.shape_cast %134 : vector<1x128xbf16> to vector<128xbf16>
    %136 = vector.extract_strided_slice %111 {offsets = [5, 0], sizes = [1, 128], strides = [1, 1]} : vector<10x128xbf16> to vector<1x128xbf16>
    %137 = vector.shape_cast %136 : vector<1x128xbf16> to vector<128xbf16>
    %138 = arith.maximumf %135, %137 : vector<128xbf16>
    %139 = vector.extract_strided_slice %111 {offsets = [6, 0], sizes = [1, 128], strides = [1, 1]} : vector<10x128xbf16> to vector<1x128xbf16>
    %140 = vector.shape_cast %139 : vector<1x128xbf16> to vector<128xbf16>
    %141 = arith.maximumf %138, %140 : vector<128xbf16>
    %c2_50 = arith.constant 2 : index
    %c2_51 = arith.constant 2 : index
    %c0_52 = arith.constant 0 : index
    %142 = vector.load %arg2[%c2_50, %c2_51, %c0_52] : memref<4x4x128xbf16, #tpu.memory_space<vmem>>, vector<1x1x128xbf16>
    %143 = vector.shape_cast %142 : vector<1x1x128xbf16> to vector<128xbf16>
    %144 = vector.shape_cast %141 : vector<128xbf16> to vector<1x1x128xbf16>
    tpu.vector_store %arg2[%c2_50, %c2_51, %c0_52], %144 {strides = array<i32>} : memref<4x4x128xbf16, #tpu.memory_space<vmem>>, vector<1x1x128xbf16>,
    %145 = vector.extract_strided_slice %111 {offsets = [6, 0], sizes = [1, 128], strides = [1, 1]} : vector<10x128xbf16> to vector<1x128xbf16>
    %146 = vector.shape_cast %145 : vector<1x128xbf16> to vector<128xbf16>
    %147 = vector.extract_strided_slice %111 {offsets = [7, 0], sizes = [1, 128], strides = [1, 1]} : vector<10x128xbf16> to vector<1x128xbf16>
    %148 = vector.shape_cast %147 : vector<1x128xbf16> to vector<128xbf16>
    %149 = arith.maximumf %146, %148 : vector<128xbf16>
    %150 = vector.extract_strided_slice %111 {offsets = [8, 0], sizes = [1, 128], strides = [1, 1]} : vector<10x128xbf16> to vector<1x128xbf16>
    %151 = vector.shape_cast %150 : vector<1x128xbf16> to vector<128xbf16>
    %152 = arith.maximumf %149, %151 : vector<128xbf16>
    %c2_53 = arith.constant 2 : index
    %c3_54 = arith.constant 3 : index
    %c0_55 = arith.constant 0 : index
    %153 = vector.load %arg2[%c2_53, %c3_54, %c0_55] : memref<4x4x128xbf16, #tpu.memory_space<vmem>>, vector<1x1x128xbf16>
    %154 = vector.shape_cast %153 : vector<1x1x128xbf16> to vector<128xbf16>
    %155 = vector.shape_cast %152 : vector<128xbf16> to vector<1x1x128xbf16>
    tpu.vector_store %arg2[%c2_53, %c3_54, %c0_55], %155 {strides = array<i32>} : memref<4x4x128xbf16, #tpu.memory_space<vmem>>, vector<1x1x128xbf16>,
    %c6_56 = arith.constant 6 : index
    %c0_57 = arith.constant 0 : index
    %c0_58 = arith.constant 0 : index
    %156 = vector.load %arg1[%c6_56, %c0_57, %c0_58] : memref<10x10x128xbf16, #tpu.memory_space<vmem>>, vector<1x10x128xbf16>
    %157 = vector.shape_cast %156 : vector<1x10x128xbf16> to vector<10x128xbf16>
    %c7 = arith.constant 7 : index
    %c0_59 = arith.constant 0 : index
    %c0_60 = arith.constant 0 : index
    %158 = vector.load %arg1[%c7, %c0_59, %c0_60] : memref<10x10x128xbf16, #tpu.memory_space<vmem>>, vector<1x10x128xbf16>
    %159 = vector.shape_cast %158 : vector<1x10x128xbf16> to vector<10x128xbf16>
    %160 = arith.maximumf %157, %159 : vector<10x128xbf16>
    %c8 = arith.constant 8 : index
    %c0_61 = arith.constant 0 : index
    %c0_62 = arith.constant 0 : index
    %161 = vector.load %arg1[%c8, %c0_61, %c0_62] : memref<10x10x128xbf16, #tpu.memory_space<vmem>>, vector<1x10x128xbf16>
    %162 = vector.shape_cast %161 : vector<1x10x128xbf16> to vector<10x128xbf16>
    %163 = arith.maximumf %160, %162 : vector<10x128xbf16>
    %164 = vector.extract_strided_slice %163 {offsets = [0, 0], sizes = [1, 128], strides = [1, 1]} : vector<10x128xbf16> to vector<1x128xbf16>
    %165 = vector.shape_cast %164 : vector<1x128xbf16> to vector<128xbf16>
    %166 = vector.extract_strided_slice %163 {offsets = [1, 0], sizes = [1, 128], strides = [1, 1]} : vector<10x128xbf16> to vector<1x128xbf16>
    %167 = vector.shape_cast %166 : vector<1x128xbf16> to vector<128xbf16>
    %168 = arith.maximumf %165, %167 : vector<128xbf16>
    %169 = vector.extract_strided_slice %163 {offsets = [2, 0], sizes = [1, 128], strides = [1, 1]} : vector<10x128xbf16> to vector<1x128xbf16>
    %170 = vector.shape_cast %169 : vector<1x128xbf16> to vector<128xbf16>
    %171 = arith.maximumf %168, %170 : vector<128xbf16>
    %c3_63 = arith.constant 3 : index
    %c0_64 = arith.constant 0 : index
    %c0_65 = arith.constant 0 : index
    %172 = vector.load %arg2[%c3_63, %c0_64, %c0_65] : memref<4x4x128xbf16, #tpu.memory_space<vmem>>, vector<1x1x128xbf16>
    %173 = vector.shape_cast %172 : vector<1x1x128xbf16> to vector<128xbf16>
    %174 = vector.shape_cast %171 : vector<128xbf16> to vector<1x1x128xbf16>
    tpu.vector_store %arg2[%c3_63, %c0_64, %c0_65], %174 {strides = array<i32>} : memref<4x4x128xbf16, #tpu.memory_space<vmem>>, vector<1x1x128xbf16>,
    %175 = vector.extract_strided_slice %163 {offsets = [2, 0], sizes = [1, 128], strides = [1, 1]} : vector<10x128xbf16> to vector<1x128xbf16>
    %176 = vector.shape_cast %175 : vector<1x128xbf16> to vector<128xbf16>
    %177 = vector.extract_strided_slice %163 {offsets = [3, 0], sizes = [1, 128], strides = [1, 1]} : vector<10x128xbf16> to vector<1x128xbf16>
    %178 = vector.shape_cast %177 : vector<1x128xbf16> to vector<128xbf16>
    %179 = arith.maximumf %176, %178 : vector<128xbf16>
    %180 = vector.extract_strided_slice %163 {offsets = [4, 0], sizes = [1, 128], strides = [1, 1]} : vector<10x128xbf16> to vector<1x128xbf16>
    %181 = vector.shape_cast %180 : vector<1x128xbf16> to vector<128xbf16>
    %182 = arith.maximumf %179, %181 : vector<128xbf16>
    %c3_66 = arith.constant 3 : index
    %c1_67 = arith.constant 1 : index
    %c0_68 = arith.constant 0 : index
    %183 = vector.load %arg2[%c3_66, %c1_67, %c0_68] : memref<4x4x128xbf16, #tpu.memory_space<vmem>>, vector<1x1x128xbf16>
    %184 = vector.shape_cast %183 : vector<1x1x128xbf16> to vector<128xbf16>
    %185 = vector.shape_cast %182 : vector<128xbf16> to vector<1x1x128xbf16>
    tpu.vector_store %arg2[%c3_66, %c1_67, %c0_68], %185 {strides = array<i32>} : memref<4x4x128xbf16, #tpu.memory_space<vmem>>, vector<1x1x128xbf16>,
    %186 = vector.extract_strided_slice %163 {offsets = [4, 0], sizes = [1, 128], strides = [1, 1]} : vector<10x128xbf16> to vector<1x128xbf16>
    %187 = vector.shape_cast %186 : vector<1x128xbf16> to vector<128xbf16>
    %188 = vector.extract_strided_slice %163 {offsets = [5, 0], sizes = [1, 128], strides = [1, 1]} : vector<10x128xbf16> to vector<1x128xbf16>
    %189 = vector.shape_cast %188 : vector<1x128xbf16> to vector<128xbf16>
    %190 = arith.maximumf %187, %189 : vector<128xbf16>
    %191 = vector.extract_strided_slice %163 {offsets = [6, 0], sizes = [1, 128], strides = [1, 1]} : vector<10x128xbf16> to vector<1x128xbf16>
    %192 = vector.shape_cast %191 : vector<1x128xbf16> to vector<128xbf16>
    %193 = arith.maximumf %190, %192 : vector<128xbf16>
    %c3_69 = arith.constant 3 : index
    %c2_70 = arith.constant 2 : index
    %c0_71 = arith.constant 0 : index
    %194 = vector.load %arg2[%c3_69, %c2_70, %c0_71] : memref<4x4x128xbf16, #tpu.memory_space<vmem>>, vector<1x1x128xbf16>
    %195 = vector.shape_cast %194 : vector<1x1x128xbf16> to vector<128xbf16>
    %196 = vector.shape_cast %193 : vector<128xbf16> to vector<1x1x128xbf16>
    tpu.vector_store %arg2[%c3_69, %c2_70, %c0_71], %196 {strides = array<i32>} : memref<4x4x128xbf16, #tpu.memory_space<vmem>>, vector<1x1x128xbf16>,
    %197 = vector.extract_strided_slice %163 {offsets = [6, 0], sizes = [1, 128], strides = [1, 1]} : vector<10x128xbf16> to vector<1x128xbf16>
    %198 = vector.shape_cast %197 : vector<1x128xbf16> to vector<128xbf16>
    %199 = vector.extract_strided_slice %163 {offsets = [7, 0], sizes = [1, 128], strides = [1, 1]} : vector<10x128xbf16> to vector<1x128xbf16>
    %200 = vector.shape_cast %199 : vector<1x128xbf16> to vector<128xbf16>
    %201 = arith.maximumf %198, %200 : vector<128xbf16>
    %202 = vector.extract_strided_slice %163 {offsets = [8, 0], sizes = [1, 128], strides = [1, 1]} : vector<10x128xbf16> to vector<1x128xbf16>
    %203 = vector.shape_cast %202 : vector<1x128xbf16> to vector<128xbf16>
    %204 = arith.maximumf %201, %203 : vector<128xbf16>
    %c3_72 = arith.constant 3 : index
    %c3_73 = arith.constant 3 : index
    %c0_74 = arith.constant 0 : index
    %205 = vector.load %arg2[%c3_72, %c3_73, %c0_74] : memref<4x4x128xbf16, #tpu.memory_space<vmem>>, vector<1x1x128xbf16>
    %206 = vector.shape_cast %205 : vector<1x1x128xbf16> to vector<128xbf16>
    %207 = vector.shape_cast %204 : vector<128xbf16> to vector<1x1x128xbf16>
    tpu.vector_store %arg2[%c3_72, %c3_73, %c0_74], %207 {strides = array<i32>} : memref<4x4x128xbf16, #tpu.memory_space<vmem>>, vector<1x1x128xbf16>,
    return
  }
  func.func @transform_0(%arg0: i32) -> (i32, i32, i32) {
    %c0_i32 = arith.constant 0 : i32
    %c0_i32_0 = arith.constant 0 : i32
    %c0_i32_1 = arith.constant 0 : i32
    %c0_i32_2 = arith.constant 0 : i32
    return %c0_i32, %c0_i32_0, %c0_i32_1 : i32, i32, i32
  }
  func.func @transform_1(%arg0: i32) -> (i32, i32, i32) {
    %c0_i32 = arith.constant 0 : i32
    %c0_i32_0 = arith.constant 0 : i32
    %c0_i32_1 = arith.constant 0 : i32
    %c0_i32_2 = arith.constant 0 : i32
    return %c0_i32, %c0_i32_0, %c0_i32_1 : i32, i32, i32
  }
}

module attributes {stable_mosaic.version = 11 : i64} {
  func.func @_mm_fused_nk1_kernel(%arg0: i32, %arg1: i32, %arg2: memref<32x576xbf16, #tpu.memory_space<vmem>>, %arg3: memref<576x128xbf16, #tpu.memory_space<vmem>>, %arg4: memref<1x128xf32, #tpu.memory_space<vmem>>, %arg5: memref<32x128xbf16, #tpu.memory_space<vmem>>) attributes {dimension_semantics = [#tpu.dimension_semantics<parallel>, #tpu.dimension_semantics<parallel>], iteration_bounds = array<i64: 1, 1>, scalar_prefetch = 0 : i64, scratch_operands = 0 : i64, tpu.core_type = #tpu.core_type<tc>, window_params = [{transform_indices = @transform_0, window_bounds = array<i64: 32, 576>}, {transform_indices = @transform_1, window_bounds = array<i64: 576, 128>}, {transform_indices = @transform_2, window_bounds = array<i64: 1, 128>}, {transform_indices = @transform_3, window_bounds = array<i64: 32, 128>}]} {
    %c0 = arith.constant 0 : index
    %c0_0 = arith.constant 0 : index
    %0 = vector.load %arg2[%c0, %c0_0] : memref<32x576xbf16, #tpu.memory_space<vmem>>, vector<32x576xbf16>
    %c0_1 = arith.constant 0 : index
    %c0_2 = arith.constant 0 : index
    %1 = vector.load %arg3[%c0_1, %c0_2] : memref<576x128xbf16, #tpu.memory_space<vmem>>, vector<576x128xbf16>
    %cst = arith.constant dense<0.000000e+00> : vector<32x128xf32>
    %2 = tpu.matmul %0, %1, %cst {dimension_numbers = #tpu.dot_dimension_numbers<[1], [0], [0], [1], [0, 0, 1, 1], [], []>} : vector<32x576xbf16>, vector<576x128xbf16>, vector<32x128xf32> -> vector<32x128xf32>
    %c0_3 = arith.constant 0 : index
    %c0_4 = arith.constant 0 : index
    %3 = vector.load %arg4[%c0_3, %c0_4] : memref<1x128xf32, #tpu.memory_space<vmem>>, vector<1x128xf32>
    %4 = vector.broadcast %3 : vector<1x128xf32> to vector<32x128xf32>
    %5 = arith.addf %2, %4 : vector<32x128xf32>
    %cst_5 = arith.constant 0.000000e+00 : f32
    %6 = vector.broadcast %cst_5 : f32 to vector<32x128xf32>
    %7 = arith.maximumf %5, %6 : vector<32x128xf32>
    %8 = arith.truncf %7 : vector<32x128xf32> to vector<32x128xbf16>
    %c0_6 = arith.constant 0 : index
    %c0_7 = arith.constant 0 : index
    %9 = vector.load %arg5[%c0_6, %c0_7] : memref<32x128xbf16, #tpu.memory_space<vmem>>, vector<32x128xbf16>
    tpu.vector_store %arg5[%c0_6, %c0_7], %8 {strides = array<i32>} : memref<32x128xbf16, #tpu.memory_space<vmem>>, vector<32x128xbf16>,
    return
  }
  func.func @transform_0(%arg0: i32, %arg1: i32) -> (i32, i32) {
    %c0_i32 = arith.constant 0 : i32
    %c0_i32_0 = arith.constant 0 : i32
    return %arg0, %c0_i32 : i32, i32
  }
  func.func @transform_1(%arg0: i32, %arg1: i32) -> (i32, i32) {
    %c0_i32 = arith.constant 0 : i32
    %c0_i32_0 = arith.constant 0 : i32
    return %c0_i32, %arg1 : i32, i32
  }
  func.func @transform_2(%arg0: i32, %arg1: i32) -> (i32, i32) {
    %c0_i32 = arith.constant 0 : i32
    %c0_i32_0 = arith.constant 0 : i32
    return %c0_i32, %arg1 : i32, i32
  }
  func.func @transform_3(%arg0: i32, %arg1: i32) -> (i32, i32) {
    %c0_i32 = arith.constant 0 : i32
    return %arg0, %arg1 : i32, i32
  }
}

module attributes {stable_mosaic.version = 11 : i64} {
  func.func @_mm_fused_nk1_kernel(%arg0: i32, %arg1: i32, %arg2: memref<32x576xbf16, #tpu.memory_space<vmem>>, %arg3: memref<576x128xbf16, #tpu.memory_space<vmem>>, %arg4: memref<1x128xf32, #tpu.memory_space<vmem>>, %arg5: memref<32x128xbf16, #tpu.memory_space<vmem>>, %arg6: memref<32x128xbf16, #tpu.memory_space<vmem>>) attributes {dimension_semantics = [#tpu.dimension_semantics<parallel>, #tpu.dimension_semantics<parallel>], iteration_bounds = array<i64: 1, 1>, scalar_prefetch = 0 : i64, scratch_operands = 0 : i64, tpu.core_type = #tpu.core_type<tc>, window_params = [{transform_indices = @transform_0, window_bounds = array<i64: 32, 576>}, {transform_indices = @transform_1, window_bounds = array<i64: 576, 128>}, {transform_indices = @transform_2, window_bounds = array<i64: 1, 128>}, {transform_indices = @transform_3, window_bounds = array<i64: 32, 128>}, {transform_indices = @transform_4, window_bounds = array<i64: 32, 128>}]} {
    %c0 = arith.constant 0 : index
    %c0_0 = arith.constant 0 : index
    %0 = vector.load %arg2[%c0, %c0_0] : memref<32x576xbf16, #tpu.memory_space<vmem>>, vector<32x576xbf16>
    %c0_1 = arith.constant 0 : index
    %c0_2 = arith.constant 0 : index
    %1 = vector.load %arg3[%c0_1, %c0_2] : memref<576x128xbf16, #tpu.memory_space<vmem>>, vector<576x128xbf16>
    %cst = arith.constant dense<0.000000e+00> : vector<32x128xf32>
    %2 = tpu.matmul %0, %1, %cst {dimension_numbers = #tpu.dot_dimension_numbers<[1], [0], [0], [1], [0, 0, 1, 1], [], []>} : vector<32x576xbf16>, vector<576x128xbf16>, vector<32x128xf32> -> vector<32x128xf32>
    %c0_3 = arith.constant 0 : index
    %c0_4 = arith.constant 0 : index
    %3 = vector.load %arg4[%c0_3, %c0_4] : memref<1x128xf32, #tpu.memory_space<vmem>>, vector<1x128xf32>
    %4 = vector.broadcast %3 : vector<1x128xf32> to vector<32x128xf32>
    %5 = arith.addf %2, %4 : vector<32x128xf32>
    %c0_5 = arith.constant 0 : index
    %c0_6 = arith.constant 0 : index
    %6 = vector.load %arg5[%c0_5, %c0_6] : memref<32x128xbf16, #tpu.memory_space<vmem>>, vector<32x128xbf16>
    %7 = arith.extf %6 : vector<32x128xbf16> to vector<32x128xf32>
    %8 = arith.addf %5, %7 : vector<32x128xf32>
    %cst_7 = arith.constant 0.000000e+00 : f32
    %9 = vector.broadcast %cst_7 : f32 to vector<32x128xf32>
    %10 = arith.maximumf %8, %9 : vector<32x128xf32>
    %11 = arith.truncf %10 : vector<32x128xf32> to vector<32x128xbf16>
    %c0_8 = arith.constant 0 : index
    %c0_9 = arith.constant 0 : index
    %12 = vector.load %arg6[%c0_8, %c0_9] : memref<32x128xbf16, #tpu.memory_space<vmem>>, vector<32x128xbf16>
    tpu.vector_store %arg6[%c0_8, %c0_9], %11 {strides = array<i32>} : memref<32x128xbf16, #tpu.memory_space<vmem>>, vector<32x128xbf16>,
    return
  }
  func.func @transform_0(%arg0: i32, %arg1: i32) -> (i32, i32) {
    %c0_i32 = arith.constant 0 : i32
    %c0_i32_0 = arith.constant 0 : i32
    return %arg0, %c0_i32 : i32, i32
  }
  func.func @transform_1(%arg0: i32, %arg1: i32) -> (i32, i32) {
    %c0_i32 = arith.constant 0 : i32
    %c0_i32_0 = arith.constant 0 : i32
    return %c0_i32, %arg1 : i32, i32
  }
  func.func @transform_2(%arg0: i32, %arg1: i32) -> (i32, i32) {
    %c0_i32 = arith.constant 0 : i32
    %c0_i32_0 = arith.constant 0 : i32
    return %c0_i32, %arg1 : i32, i32
  }
  func.func @transform_3(%arg0: i32, %arg1: i32) -> (i32, i32) {
    %c0_i32 = arith.constant 0 : i32
    return %arg0, %arg1 : i32, i32
  }
  func.func @transform_4(%arg0: i32, %arg1: i32) -> (i32, i32) {
    %c0_i32 = arith.constant 0 : i32
    return %arg0, %arg1 : i32, i32
  }
}

module attributes {stable_mosaic.version = 11 : i64} {
  func.func @_mm_fused_nk1_kernel(%arg0: i32, %arg1: i32, %arg2: memref<16x576xbf16, #tpu.memory_space<vmem>>, %arg3: memref<576x128xbf16, #tpu.memory_space<vmem>>, %arg4: memref<1x128xf32, #tpu.memory_space<vmem>>, %arg5: memref<16x128xbf16, #tpu.memory_space<vmem>>) attributes {dimension_semantics = [#tpu.dimension_semantics<parallel>, #tpu.dimension_semantics<parallel>], iteration_bounds = array<i64: 1, 1>, scalar_prefetch = 0 : i64, scratch_operands = 0 : i64, tpu.core_type = #tpu.core_type<tc>, window_params = [{transform_indices = @transform_0, window_bounds = array<i64: 16, 576>}, {transform_indices = @transform_1, window_bounds = array<i64: 576, 128>}, {transform_indices = @transform_2, window_bounds = array<i64: 1, 128>}, {transform_indices = @transform_3, window_bounds = array<i64: 16, 128>}]} {
    %c0 = arith.constant 0 : index
    %c0_0 = arith.constant 0 : index
    %0 = vector.load %arg2[%c0, %c0_0] : memref<16x576xbf16, #tpu.memory_space<vmem>>, vector<16x576xbf16>
    %c0_1 = arith.constant 0 : index
    %c0_2 = arith.constant 0 : index
    %1 = vector.load %arg3[%c0_1, %c0_2] : memref<576x128xbf16, #tpu.memory_space<vmem>>, vector<576x128xbf16>
    %cst = arith.constant dense<0.000000e+00> : vector<16x128xf32>
    %2 = tpu.matmul %0, %1, %cst {dimension_numbers = #tpu.dot_dimension_numbers<[1], [0], [0], [1], [0, 0, 1, 1], [], []>} : vector<16x576xbf16>, vector<576x128xbf16>, vector<16x128xf32> -> vector<16x128xf32>
    %c0_3 = arith.constant 0 : index
    %c0_4 = arith.constant 0 : index
    %3 = vector.load %arg4[%c0_3, %c0_4] : memref<1x128xf32, #tpu.memory_space<vmem>>, vector<1x128xf32>
    %4 = vector.broadcast %3 : vector<1x128xf32> to vector<16x128xf32>
    %5 = arith.addf %2, %4 : vector<16x128xf32>
    %cst_5 = arith.constant 0.000000e+00 : f32
    %6 = vector.broadcast %cst_5 : f32 to vector<16x128xf32>
    %7 = arith.maximumf %5, %6 : vector<16x128xf32>
    %8 = arith.truncf %7 : vector<16x128xf32> to vector<16x128xbf16>
    %c0_6 = arith.constant 0 : index
    %c0_7 = arith.constant 0 : index
    %9 = vector.load %arg5[%c0_6, %c0_7] : memref<16x128xbf16, #tpu.memory_space<vmem>>, vector<16x128xbf16>
    tpu.vector_store %arg5[%c0_6, %c0_7], %8 {strides = array<i32>} : memref<16x128xbf16, #tpu.memory_space<vmem>>, vector<16x128xbf16>,
    return
  }
  func.func @transform_0(%arg0: i32, %arg1: i32) -> (i32, i32) {
    %c0_i32 = arith.constant 0 : i32
    %c0_i32_0 = arith.constant 0 : i32
    return %arg0, %c0_i32 : i32, i32
  }
  func.func @transform_1(%arg0: i32, %arg1: i32) -> (i32, i32) {
    %c0_i32 = arith.constant 0 : i32
    %c0_i32_0 = arith.constant 0 : i32
    return %c0_i32, %arg1 : i32, i32
  }
  func.func @transform_2(%arg0: i32, %arg1: i32) -> (i32, i32) {
    %c0_i32 = arith.constant 0 : i32
    %c0_i32_0 = arith.constant 0 : i32
    return %c0_i32, %arg1 : i32, i32
  }
  func.func @transform_3(%arg0: i32, %arg1: i32) -> (i32, i32) {
    %c0_i32 = arith.constant 0 : i32
    return %arg0, %arg1 : i32, i32
  }
}

module attributes {stable_mosaic.version = 11 : i64} {
  func.func @_mm_fused_nk1_kernel(%arg0: i32, %arg1: i32, %arg2: memref<16x64xbf16, #tpu.memory_space<vmem>>, %arg3: memref<64x128xbf16, #tpu.memory_space<vmem>>, %arg4: memref<1x128xf32, #tpu.memory_space<vmem>>, %arg5: memref<16x128xbf16, #tpu.memory_space<vmem>>) attributes {dimension_semantics = [#tpu.dimension_semantics<parallel>, #tpu.dimension_semantics<parallel>], iteration_bounds = array<i64: 1, 1>, scalar_prefetch = 0 : i64, scratch_operands = 0 : i64, tpu.core_type = #tpu.core_type<tc>, window_params = [{transform_indices = @transform_0, window_bounds = array<i64: 16, 64>}, {transform_indices = @transform_1, window_bounds = array<i64: 64, 128>}, {transform_indices = @transform_2, window_bounds = array<i64: 1, 128>}, {transform_indices = @transform_3, window_bounds = array<i64: 16, 128>}]} {
    %c0 = arith.constant 0 : index
    %c0_0 = arith.constant 0 : index
    %0 = vector.load %arg2[%c0, %c0_0] : memref<16x64xbf16, #tpu.memory_space<vmem>>, vector<16x64xbf16>
    %c0_1 = arith.constant 0 : index
    %c0_2 = arith.constant 0 : index
    %1 = vector.load %arg3[%c0_1, %c0_2] : memref<64x128xbf16, #tpu.memory_space<vmem>>, vector<64x128xbf16>
    %cst = arith.constant dense<0.000000e+00> : vector<16x128xf32>
    %2 = tpu.matmul %0, %1, %cst {dimension_numbers = #tpu.dot_dimension_numbers<[1], [0], [0], [1], [0, 0, 1, 1], [], []>} : vector<16x64xbf16>, vector<64x128xbf16>, vector<16x128xf32> -> vector<16x128xf32>
    %c0_3 = arith.constant 0 : index
    %c0_4 = arith.constant 0 : index
    %3 = vector.load %arg4[%c0_3, %c0_4] : memref<1x128xf32, #tpu.memory_space<vmem>>, vector<1x128xf32>
    %4 = vector.broadcast %3 : vector<1x128xf32> to vector<16x128xf32>
    %5 = arith.addf %2, %4 : vector<16x128xf32>
    %6 = arith.truncf %5 : vector<16x128xf32> to vector<16x128xbf16>
    %c0_5 = arith.constant 0 : index
    %c0_6 = arith.constant 0 : index
    %7 = vector.load %arg5[%c0_5, %c0_6] : memref<16x128xbf16, #tpu.memory_space<vmem>>, vector<16x128xbf16>
    tpu.vector_store %arg5[%c0_5, %c0_6], %6 {strides = array<i32>} : memref<16x128xbf16, #tpu.memory_space<vmem>>, vector<16x128xbf16>,
    return
  }
  func.func @transform_0(%arg0: i32, %arg1: i32) -> (i32, i32) {
    %c0_i32 = arith.constant 0 : i32
    %c0_i32_0 = arith.constant 0 : i32
    return %arg0, %c0_i32 : i32, i32
  }
  func.func @transform_1(%arg0: i32, %arg1: i32) -> (i32, i32) {
    %c0_i32 = arith.constant 0 : i32
    %c0_i32_0 = arith.constant 0 : i32
    return %c0_i32, %arg1 : i32, i32
  }
  func.func @transform_2(%arg0: i32, %arg1: i32) -> (i32, i32) {
    %c0_i32 = arith.constant 0 : i32
    %c0_i32_0 = arith.constant 0 : i32
    return %c0_i32, %arg1 : i32, i32
  }
  func.func @transform_3(%arg0: i32, %arg1: i32) -> (i32, i32) {
    %c0_i32 = arith.constant 0 : i32
    return %arg0, %arg1 : i32, i32
  }
}

module attributes {stable_mosaic.version = 11 : i64} {
  func.func @_mm_fused_nk1_kernel(%arg0: i32, %arg1: i32, %arg2: memref<16x1152xbf16, #tpu.memory_space<vmem>>, %arg3: memref<1152x128xbf16, #tpu.memory_space<vmem>>, %arg4: memref<1x128xf32, #tpu.memory_space<vmem>>, %arg5: memref<16x128xbf16, #tpu.memory_space<vmem>>, %arg6: memref<16x128xbf16, #tpu.memory_space<vmem>>) attributes {dimension_semantics = [#tpu.dimension_semantics<parallel>, #tpu.dimension_semantics<parallel>], iteration_bounds = array<i64: 1, 1>, scalar_prefetch = 0 : i64, scratch_operands = 0 : i64, tpu.core_type = #tpu.core_type<tc>, window_params = [{transform_indices = @transform_0, window_bounds = array<i64: 16, 1152>}, {transform_indices = @transform_1, window_bounds = array<i64: 1152, 128>}, {transform_indices = @transform_2, window_bounds = array<i64: 1, 128>}, {transform_indices = @transform_3, window_bounds = array<i64: 16, 128>}, {transform_indices = @transform_4, window_bounds = array<i64: 16, 128>}]} {
    %c0 = arith.constant 0 : index
    %c0_0 = arith.constant 0 : index
    %0 = vector.load %arg2[%c0, %c0_0] : memref<16x1152xbf16, #tpu.memory_space<vmem>>, vector<16x1152xbf16>
    %c0_1 = arith.constant 0 : index
    %c0_2 = arith.constant 0 : index
    %1 = vector.load %arg3[%c0_1, %c0_2] : memref<1152x128xbf16, #tpu.memory_space<vmem>>, vector<1152x128xbf16>
    %cst = arith.constant dense<0.000000e+00> : vector<16x128xf32>
    %2 = tpu.matmul %0, %1, %cst {dimension_numbers = #tpu.dot_dimension_numbers<[1], [0], [0], [1], [0, 0, 1, 1], [], []>} : vector<16x1152xbf16>, vector<1152x128xbf16>, vector<16x128xf32> -> vector<16x128xf32>
    %c0_3 = arith.constant 0 : index
    %c0_4 = arith.constant 0 : index
    %3 = vector.load %arg4[%c0_3, %c0_4] : memref<1x128xf32, #tpu.memory_space<vmem>>, vector<1x128xf32>
    %4 = vector.broadcast %3 : vector<1x128xf32> to vector<16x128xf32>
    %5 = arith.addf %2, %4 : vector<16x128xf32>
    %c0_5 = arith.constant 0 : index
    %c0_6 = arith.constant 0 : index
    %6 = vector.load %arg5[%c0_5, %c0_6] : memref<16x128xbf16, #tpu.memory_space<vmem>>, vector<16x128xbf16>
    %7 = arith.extf %6 : vector<16x128xbf16> to vector<16x128xf32>
    %8 = arith.addf %5, %7 : vector<16x128xf32>
    %cst_7 = arith.constant 0.000000e+00 : f32
    %9 = vector.broadcast %cst_7 : f32 to vector<16x128xf32>
    %10 = arith.maximumf %8, %9 : vector<16x128xf32>
    %11 = arith.truncf %10 : vector<16x128xf32> to vector<16x128xbf16>
    %c0_8 = arith.constant 0 : index
    %c0_9 = arith.constant 0 : index
    %12 = vector.load %arg6[%c0_8, %c0_9] : memref<16x128xbf16, #tpu.memory_space<vmem>>, vector<16x128xbf16>
    tpu.vector_store %arg6[%c0_8, %c0_9], %11 {strides = array<i32>} : memref<16x128xbf16, #tpu.memory_space<vmem>>, vector<16x128xbf16>,
    return
  }
  func.func @transform_0(%arg0: i32, %arg1: i32) -> (i32, i32) {
    %c0_i32 = arith.constant 0 : i32
    %c0_i32_0 = arith.constant 0 : i32
    return %arg0, %c0_i32 : i32, i32
  }
  func.func @transform_1(%arg0: i32, %arg1: i32) -> (i32, i32) {
    %c0_i32 = arith.constant 0 : i32
    %c0_i32_0 = arith.constant 0 : i32
    return %c0_i32, %arg1 : i32, i32
  }
  func.func @transform_2(%arg0: i32, %arg1: i32) -> (i32, i32) {
    %c0_i32 = arith.constant 0 : i32
    %c0_i32_0 = arith.constant 0 : i32
    return %c0_i32, %arg1 : i32, i32
  }
  func.func @transform_3(%arg0: i32, %arg1: i32) -> (i32, i32) {
    %c0_i32 = arith.constant 0 : i32
    return %arg0, %arg1 : i32, i32
  }
  func.func @transform_4(%arg0: i32, %arg1: i32) -> (i32, i32) {
    %c0_i32 = arith.constant 0 : i32
    return %arg0, %arg1 : i32, i32
  }
}

module attributes {stable_mosaic.version = 11 : i64} {
  func.func @_mm_fused_nk1_kernel(%arg0: i32, %arg1: i32, %arg2: memref<16x1152xbf16, #tpu.memory_space<vmem>>, %arg3: memref<1152x128xbf16, #tpu.memory_space<vmem>>, %arg4: memref<1x128xf32, #tpu.memory_space<vmem>>, %arg5: memref<16x128xbf16, #tpu.memory_space<vmem>>) attributes {dimension_semantics = [#tpu.dimension_semantics<parallel>, #tpu.dimension_semantics<parallel>], iteration_bounds = array<i64: 1, 1>, scalar_prefetch = 0 : i64, scratch_operands = 0 : i64, tpu.core_type = #tpu.core_type<tc>, window_params = [{transform_indices = @transform_0, window_bounds = array<i64: 16, 1152>}, {transform_indices = @transform_1, window_bounds = array<i64: 1152, 128>}, {transform_indices = @transform_2, window_bounds = array<i64: 1, 128>}, {transform_indices = @transform_3, window_bounds = array<i64: 16, 128>}]} {
    %c0 = arith.constant 0 : index
    %c0_0 = arith.constant 0 : index
    %0 = vector.load %arg2[%c0, %c0_0] : memref<16x1152xbf16, #tpu.memory_space<vmem>>, vector<16x1152xbf16>
    %c0_1 = arith.constant 0 : index
    %c0_2 = arith.constant 0 : index
    %1 = vector.load %arg3[%c0_1, %c0_2] : memref<1152x128xbf16, #tpu.memory_space<vmem>>, vector<1152x128xbf16>
    %cst = arith.constant dense<0.000000e+00> : vector<16x128xf32>
    %2 = tpu.matmul %0, %1, %cst {dimension_numbers = #tpu.dot_dimension_numbers<[1], [0], [0], [1], [0, 0, 1, 1], [], []>} : vector<16x1152xbf16>, vector<1152x128xbf16>, vector<16x128xf32> -> vector<16x128xf32>
    %c0_3 = arith.constant 0 : index
    %c0_4 = arith.constant 0 : index
    %3 = vector.load %arg4[%c0_3, %c0_4] : memref<1x128xf32, #tpu.memory_space<vmem>>, vector<1x128xf32>
    %4 = vector.broadcast %3 : vector<1x128xf32> to vector<16x128xf32>
    %5 = arith.addf %2, %4 : vector<16x128xf32>
    %cst_5 = arith.constant 0.000000e+00 : f32
    %6 = vector.broadcast %cst_5 : f32 to vector<16x128xf32>
    %7 = arith.maximumf %5, %6 : vector<16x128xf32>
    %8 = arith.truncf %7 : vector<16x128xf32> to vector<16x128xbf16>
    %c0_6 = arith.constant 0 : index
    %c0_7 = arith.constant 0 : index
    %9 = vector.load %arg5[%c0_6, %c0_7] : memref<16x128xbf16, #tpu.memory_space<vmem>>, vector<16x128xbf16>
    tpu.vector_store %arg5[%c0_6, %c0_7], %8 {strides = array<i32>} : memref<16x128xbf16, #tpu.memory_space<vmem>>, vector<16x128xbf16>,
    return
  }
  func.func @transform_0(%arg0: i32, %arg1: i32) -> (i32, i32) {
    %c0_i32 = arith.constant 0 : i32
    %c0_i32_0 = arith.constant 0 : i32
    return %arg0, %c0_i32 : i32, i32
  }
  func.func @transform_1(%arg0: i32, %arg1: i32) -> (i32, i32) {
    %c0_i32 = arith.constant 0 : i32
    %c0_i32_0 = arith.constant 0 : i32
    return %c0_i32, %arg1 : i32, i32
  }
  func.func @transform_2(%arg0: i32, %arg1: i32) -> (i32, i32) {
    %c0_i32 = arith.constant 0 : i32
    %c0_i32_0 = arith.constant 0 : i32
    return %c0_i32, %arg1 : i32, i32
  }
  func.func @transform_3(%arg0: i32, %arg1: i32) -> (i32, i32) {
    %c0_i32 = arith.constant 0 : i32
    return %arg0, %arg1 : i32, i32
  }
}

module attributes {stable_mosaic.version = 11 : i64} {
  func.func @_mm_fused_nk1_kernel(%arg0: i32, %arg1: i32, %arg2: memref<16x1152xbf16, #tpu.memory_space<vmem>>, %arg3: memref<1152x256xbf16, #tpu.memory_space<vmem>>, %arg4: memref<1x256xf32, #tpu.memory_space<vmem>>, %arg5: memref<16x256xbf16, #tpu.memory_space<vmem>>) attributes {dimension_semantics = [#tpu.dimension_semantics<parallel>, #tpu.dimension_semantics<parallel>], iteration_bounds = array<i64: 1, 1>, scalar_prefetch = 0 : i64, scratch_operands = 0 : i64, tpu.core_type = #tpu.core_type<tc>, window_params = [{transform_indices = @transform_0, window_bounds = array<i64: 16, 1152>}, {transform_indices = @transform_1, window_bounds = array<i64: 1152, 256>}, {transform_indices = @transform_2, window_bounds = array<i64: 1, 256>}, {transform_indices = @transform_3, window_bounds = array<i64: 16, 256>}]} {
    %c0 = arith.constant 0 : index
    %c0_0 = arith.constant 0 : index
    %0 = vector.load %arg2[%c0, %c0_0] : memref<16x1152xbf16, #tpu.memory_space<vmem>>, vector<16x1152xbf16>
    %c0_1 = arith.constant 0 : index
    %c0_2 = arith.constant 0 : index
    %1 = vector.load %arg3[%c0_1, %c0_2] : memref<1152x256xbf16, #tpu.memory_space<vmem>>, vector<1152x256xbf16>
    %cst = arith.constant dense<0.000000e+00> : vector<16x256xf32>
    %2 = tpu.matmul %0, %1, %cst {dimension_numbers = #tpu.dot_dimension_numbers<[1], [0], [0], [1], [0, 0, 1, 1], [], []>} : vector<16x1152xbf16>, vector<1152x256xbf16>, vector<16x256xf32> -> vector<16x256xf32>
    %c0_3 = arith.constant 0 : index
    %c0_4 = arith.constant 0 : index
    %3 = vector.load %arg4[%c0_3, %c0_4] : memref<1x256xf32, #tpu.memory_space<vmem>>, vector<1x256xf32>
    %4 = vector.broadcast %3 : vector<1x256xf32> to vector<16x256xf32>
    %5 = arith.addf %2, %4 : vector<16x256xf32>
    %cst_5 = arith.constant 0.000000e+00 : f32
    %6 = vector.broadcast %cst_5 : f32 to vector<16x256xf32>
    %7 = arith.maximumf %5, %6 : vector<16x256xf32>
    %8 = arith.truncf %7 : vector<16x256xf32> to vector<16x256xbf16>
    %c0_6 = arith.constant 0 : index
    %c0_7 = arith.constant 0 : index
    %9 = vector.load %arg5[%c0_6, %c0_7] : memref<16x256xbf16, #tpu.memory_space<vmem>>, vector<16x256xbf16>
    tpu.vector_store %arg5[%c0_6, %c0_7], %8 {strides = array<i32>} : memref<16x256xbf16, #tpu.memory_space<vmem>>, vector<16x256xbf16>,
    return
  }
  func.func @transform_0(%arg0: i32, %arg1: i32) -> (i32, i32) {
    %c0_i32 = arith.constant 0 : i32
    %c0_i32_0 = arith.constant 0 : i32
    return %arg0, %c0_i32 : i32, i32
  }
  func.func @transform_1(%arg0: i32, %arg1: i32) -> (i32, i32) {
    %c0_i32 = arith.constant 0 : i32
    %c0_i32_0 = arith.constant 0 : i32
    return %c0_i32, %arg1 : i32, i32
  }
  func.func @transform_2(%arg0: i32, %arg1: i32) -> (i32, i32) {
    %c0_i32 = arith.constant 0 : i32
    %c0_i32_0 = arith.constant 0 : i32
    return %c0_i32, %arg1 : i32, i32
  }
  func.func @transform_3(%arg0: i32, %arg1: i32) -> (i32, i32) {
    %c0_i32 = arith.constant 0 : i32
    return %arg0, %arg1 : i32, i32
  }
}

module attributes {stable_mosaic.version = 11 : i64} {
  func.func @_mm_fused_nk1_kernel(%arg0: i32, %arg1: i32, %arg2: memref<16x2304xbf16, #tpu.memory_space<vmem>>, %arg3: memref<2304x256xbf16, #tpu.memory_space<vmem>>, %arg4: memref<1x256xf32, #tpu.memory_space<vmem>>, %arg5: memref<16x256xbf16, #tpu.memory_space<vmem>>, %arg6: memref<16x256xbf16, #tpu.memory_space<vmem>>) attributes {dimension_semantics = [#tpu.dimension_semantics<parallel>, #tpu.dimension_semantics<parallel>], iteration_bounds = array<i64: 1, 1>, scalar_prefetch = 0 : i64, scratch_operands = 0 : i64, tpu.core_type = #tpu.core_type<tc>, window_params = [{transform_indices = @transform_0, window_bounds = array<i64: 16, 2304>}, {transform_indices = @transform_1, window_bounds = array<i64: 2304, 256>}, {transform_indices = @transform_2, window_bounds = array<i64: 1, 256>}, {transform_indices = @transform_3, window_bounds = array<i64: 16, 256>}, {transform_indices = @transform_4, window_bounds = array<i64: 16, 256>}]} {
    %c0 = arith.constant 0 : index
    %c0_0 = arith.constant 0 : index
    %0 = vector.load %arg2[%c0, %c0_0] : memref<16x2304xbf16, #tpu.memory_space<vmem>>, vector<16x2304xbf16>
    %c0_1 = arith.constant 0 : index
    %c0_2 = arith.constant 0 : index
    %1 = vector.load %arg3[%c0_1, %c0_2] : memref<2304x256xbf16, #tpu.memory_space<vmem>>, vector<2304x256xbf16>
    %cst = arith.constant dense<0.000000e+00> : vector<16x256xf32>
    %2 = tpu.matmul %0, %1, %cst {dimension_numbers = #tpu.dot_dimension_numbers<[1], [0], [0], [1], [0, 0, 1, 1], [], []>} : vector<16x2304xbf16>, vector<2304x256xbf16>, vector<16x256xf32> -> vector<16x256xf32>
    %c0_3 = arith.constant 0 : index
    %c0_4 = arith.constant 0 : index
    %3 = vector.load %arg4[%c0_3, %c0_4] : memref<1x256xf32, #tpu.memory_space<vmem>>, vector<1x256xf32>
    %4 = vector.broadcast %3 : vector<1x256xf32> to vector<16x256xf32>
    %5 = arith.addf %2, %4 : vector<16x256xf32>
    %c0_5 = arith.constant 0 : index
    %c0_6 = arith.constant 0 : index
    %6 = vector.load %arg5[%c0_5, %c0_6] : memref<16x256xbf16, #tpu.memory_space<vmem>>, vector<16x256xbf16>
    %7 = arith.extf %6 : vector<16x256xbf16> to vector<16x256xf32>
    %8 = arith.addf %5, %7 : vector<16x256xf32>
    %cst_7 = arith.constant 0.000000e+00 : f32
    %9 = vector.broadcast %cst_7 : f32 to vector<16x256xf32>
    %10 = arith.maximumf %8, %9 : vector<16x256xf32>
    %11 = arith.truncf %10 : vector<16x256xf32> to vector<16x256xbf16>
    %c0_8 = arith.constant 0 : index
    %c0_9 = arith.constant 0 : index
    %12 = vector.load %arg6[%c0_8, %c0_9] : memref<16x256xbf16, #tpu.memory_space<vmem>>, vector<16x256xbf16>
    tpu.vector_store %arg6[%c0_8, %c0_9], %11 {strides = array<i32>} : memref<16x256xbf16, #tpu.memory_space<vmem>>, vector<16x256xbf16>,
    return
  }
  func.func @transform_0(%arg0: i32, %arg1: i32) -> (i32, i32) {
    %c0_i32 = arith.constant 0 : i32
    %c0_i32_0 = arith.constant 0 : i32
    return %arg0, %c0_i32 : i32, i32
  }
  func.func @transform_1(%arg0: i32, %arg1: i32) -> (i32, i32) {
    %c0_i32 = arith.constant 0 : i32
    %c0_i32_0 = arith.constant 0 : i32
    return %c0_i32, %arg1 : i32, i32
  }
  func.func @transform_2(%arg0: i32, %arg1: i32) -> (i32, i32) {
    %c0_i32 = arith.constant 0 : i32
    %c0_i32_0 = arith.constant 0 : i32
    return %c0_i32, %arg1 : i32, i32
  }
  func.func @transform_3(%arg0: i32, %arg1: i32) -> (i32, i32) {
    %c0_i32 = arith.constant 0 : i32
    return %arg0, %arg1 : i32, i32
  }
  func.func @transform_4(%arg0: i32, %arg1: i32) -> (i32, i32) {
    %c0_i32 = arith.constant 0 : i32
    return %arg0, %arg1 : i32, i32
  }
}

module attributes {stable_mosaic.version = 11 : i64} {
  func.func @_mm_fused_nk1_kernel(%arg0: i32, %arg1: i32, %arg2: memref<16x128xbf16, #tpu.memory_space<vmem>>, %arg3: memref<128x256xbf16, #tpu.memory_space<vmem>>, %arg4: memref<1x256xf32, #tpu.memory_space<vmem>>, %arg5: memref<16x256xbf16, #tpu.memory_space<vmem>>) attributes {dimension_semantics = [#tpu.dimension_semantics<parallel>, #tpu.dimension_semantics<parallel>], iteration_bounds = array<i64: 1, 1>, scalar_prefetch = 0 : i64, scratch_operands = 0 : i64, tpu.core_type = #tpu.core_type<tc>, window_params = [{transform_indices = @transform_0, window_bounds = array<i64: 16, 128>}, {transform_indices = @transform_1, window_bounds = array<i64: 128, 256>}, {transform_indices = @transform_2, window_bounds = array<i64: 1, 256>}, {transform_indices = @transform_3, window_bounds = array<i64: 16, 256>}]} {
    %c0 = arith.constant 0 : index
    %c0_0 = arith.constant 0 : index
    %0 = vector.load %arg2[%c0, %c0_0] : memref<16x128xbf16, #tpu.memory_space<vmem>>, vector<16x128xbf16>
    %c0_1 = arith.constant 0 : index
    %c0_2 = arith.constant 0 : index
    %1 = vector.load %arg3[%c0_1, %c0_2] : memref<128x256xbf16, #tpu.memory_space<vmem>>, vector<128x256xbf16>
    %cst = arith.constant dense<0.000000e+00> : vector<16x256xf32>
    %2 = tpu.matmul %0, %1, %cst {dimension_numbers = #tpu.dot_dimension_numbers<[1], [0], [0], [1], [0, 0, 1, 1], [], []>} : vector<16x128xbf16>, vector<128x256xbf16>, vector<16x256xf32> -> vector<16x256xf32>
    %c0_3 = arith.constant 0 : index
    %c0_4 = arith.constant 0 : index
    %3 = vector.load %arg4[%c0_3, %c0_4] : memref<1x256xf32, #tpu.memory_space<vmem>>, vector<1x256xf32>
    %4 = vector.broadcast %3 : vector<1x256xf32> to vector<16x256xf32>
    %5 = arith.addf %2, %4 : vector<16x256xf32>
    %6 = arith.truncf %5 : vector<16x256xf32> to vector<16x256xbf16>
    %c0_5 = arith.constant 0 : index
    %c0_6 = arith.constant 0 : index
    %7 = vector.load %arg5[%c0_5, %c0_6] : memref<16x256xbf16, #tpu.memory_space<vmem>>, vector<16x256xbf16>
    tpu.vector_store %arg5[%c0_5, %c0_6], %6 {strides = array<i32>} : memref<16x256xbf16, #tpu.memory_space<vmem>>, vector<16x256xbf16>,
    return
  }
  func.func @transform_0(%arg0: i32, %arg1: i32) -> (i32, i32) {
    %c0_i32 = arith.constant 0 : i32
    %c0_i32_0 = arith.constant 0 : i32
    return %arg0, %c0_i32 : i32, i32
  }
  func.func @transform_1(%arg0: i32, %arg1: i32) -> (i32, i32) {
    %c0_i32 = arith.constant 0 : i32
    %c0_i32_0 = arith.constant 0 : i32
    return %c0_i32, %arg1 : i32, i32
  }
  func.func @transform_2(%arg0: i32, %arg1: i32) -> (i32, i32) {
    %c0_i32 = arith.constant 0 : i32
    %c0_i32_0 = arith.constant 0 : i32
    return %c0_i32, %arg1 : i32, i32
  }
  func.func @transform_3(%arg0: i32, %arg1: i32) -> (i32, i32) {
    %c0_i32 = arith.constant 0 : i32
    return %arg0, %arg1 : i32, i32
  }
}

module attributes {stable_mosaic.version = 11 : i64} {
  func.func @_mm_fused_nk1_kernel(%arg0: i32, %arg1: i32, %arg2: memref<16x2304xbf16, #tpu.memory_space<vmem>>, %arg3: memref<2304x256xbf16, #tpu.memory_space<vmem>>, %arg4: memref<1x256xf32, #tpu.memory_space<vmem>>, %arg5: memref<16x256xbf16, #tpu.memory_space<vmem>>) attributes {dimension_semantics = [#tpu.dimension_semantics<parallel>, #tpu.dimension_semantics<parallel>], iteration_bounds = array<i64: 1, 1>, scalar_prefetch = 0 : i64, scratch_operands = 0 : i64, tpu.core_type = #tpu.core_type<tc>, window_params = [{transform_indices = @transform_0, window_bounds = array<i64: 16, 2304>}, {transform_indices = @transform_1, window_bounds = array<i64: 2304, 256>}, {transform_indices = @transform_2, window_bounds = array<i64: 1, 256>}, {transform_indices = @transform_3, window_bounds = array<i64: 16, 256>}]} {
    %c0 = arith.constant 0 : index
    %c0_0 = arith.constant 0 : index
    %0 = vector.load %arg2[%c0, %c0_0] : memref<16x2304xbf16, #tpu.memory_space<vmem>>, vector<16x2304xbf16>
    %c0_1 = arith.constant 0 : index
    %c0_2 = arith.constant 0 : index
    %1 = vector.load %arg3[%c0_1, %c0_2] : memref<2304x256xbf16, #tpu.memory_space<vmem>>, vector<2304x256xbf16>
    %cst = arith.constant dense<0.000000e+00> : vector<16x256xf32>
    %2 = tpu.matmul %0, %1, %cst {dimension_numbers = #tpu.dot_dimension_numbers<[1], [0], [0], [1], [0, 0, 1, 1], [], []>} : vector<16x2304xbf16>, vector<2304x256xbf16>, vector<16x256xf32> -> vector<16x256xf32>
    %c0_3 = arith.constant 0 : index
    %c0_4 = arith.constant 0 : index
    %3 = vector.load %arg4[%c0_3, %c0_4] : memref<1x256xf32, #tpu.memory_space<vmem>>, vector<1x256xf32>
    %4 = vector.broadcast %3 : vector<1x256xf32> to vector<16x256xf32>
    %5 = arith.addf %2, %4 : vector<16x256xf32>
    %cst_5 = arith.constant 0.000000e+00 : f32
    %6 = vector.broadcast %cst_5 : f32 to vector<16x256xf32>
    %7 = arith.maximumf %5, %6 : vector<16x256xf32>
    %8 = arith.truncf %7 : vector<16x256xf32> to vector<16x256xbf16>
    %c0_6 = arith.constant 0 : index
    %c0_7 = arith.constant 0 : index
    %9 = vector.load %arg5[%c0_6, %c0_7] : memref<16x256xbf16, #tpu.memory_space<vmem>>, vector<16x256xbf16>
    tpu.vector_store %arg5[%c0_6, %c0_7], %8 {strides = array<i32>} : memref<16x256xbf16, #tpu.memory_space<vmem>>, vector<16x256xbf16>,
    return
  }
  func.func @transform_0(%arg0: i32, %arg1: i32) -> (i32, i32) {
    %c0_i32 = arith.constant 0 : i32
    %c0_i32_0 = arith.constant 0 : i32
    return %arg0, %c0_i32 : i32, i32
  }
  func.func @transform_1(%arg0: i32, %arg1: i32) -> (i32, i32) {
    %c0_i32 = arith.constant 0 : i32
    %c0_i32_0 = arith.constant 0 : i32
    return %c0_i32, %arg1 : i32, i32
  }
  func.func @transform_2(%arg0: i32, %arg1: i32) -> (i32, i32) {
    %c0_i32 = arith.constant 0 : i32
    %c0_i32_0 = arith.constant 0 : i32
    return %c0_i32, %arg1 : i32, i32
  }
  func.func @transform_3(%arg0: i32, %arg1: i32) -> (i32, i32) {
    %c0_i32 = arith.constant 0 : i32
    return %arg0, %arg1 : i32, i32
  }
}

</mosaic_0001>

<bundles_post_ra>
// kernel: forward.16
= control target key start
LH: loop header
LB: loop body
LE: loop exit
PB: predicated region body
PF: predicated region fallthrough
CT: control target
= control target key end

     0   :  { %vm86_vm0 = vcmask 130048   ;;  %s525_s1 = inlined_call_operand.vmem [shape: bf16[16,128], index: 1, kind: input, shape index: {}]   ;;  %s526_s0 = inlined_call_operand.vmem [shape: bf16[128,16], index: 0, kind: input, shape index: {}]   ;;  %s527_s2 = inlined_call_operand.vmem [shape: f32[1,128], index: 2, kind: input, shape index: {}]   ;;  %s528_s3 = inlined_call_operand.vmem [shape: bf16[128,128], index: 3, kind: output, shape index: {}]  }
   0x1   :  { %v434_v0 = vld [vmem:[%s525_s1] sm:$0xff]   ;;  %v437_v3 = vld [vmem:[%s526_s0 + $0x8] sm:$0xff]   ;;  %v439_v5 = vld [vmem:[%s526_s0 + $0x10] sm:$0xff]  }
   0x2   :  { %v435_v1 = vld [vmem:[%s526_s0] sm:$0xff]   ;;  %414 = vmatprep.subr.bf16.mxu0 %v434_v0  ;;  %432 = vmatprep.subr.bf16.mxu1 %v434_v0  ;;  %v438_v4 = vld [vmem:[%s526_s0 + $0x28] sm:$0xff]   ;;  %v440_v6 = vld [vmem:[%s526_s0 + $0x30] sm:$0xff]  }
   0x3   :  { %v436_v2 = vld [vmem:[%s526_s0 + $0x20] sm:$0xff]   ;;  %415 = vmatpush3.bf16.msra.mxu0 %v434_v0  ;;  %433 = vmatpush3.bf16.msra.mxu1 %v434_v0  ;;  %v441_v7 = vld [vmem:[%s526_s0 + $0x18] sm:$0xff]  }
   0x4   :  { %416 = vmatprep.mubr.msk.bf16.mxu0 %vm86_vm0, %v435_v1  ;;  %424 = vmatprep.mubr.msk.bf16.mxu1 %vm86_vm0, %v436_v2  ;;  %v442_v8 = vld [vmem:[%s526_s0 + $0x38] sm:$0xff]   ;;  %v308_v9 = vld [vmem:[%s527_s2] ss:$0 sm:$0xff] }
   0x6   :  { %417 = vmatmul.mubr.msk.bf16.vlgmr.msra.gmra.mrb[0].mxu0 %vm86_vm0, %v437_v3  ;;  %425 = vmatmul.mubr.msk.bf16.vlgmr.msra.gmra.mrb[0].mxu1 %vm86_vm0, %v438_v4 }
   0x7   :  { %420 = vmatprep.mubr.msk.bf16.mxu0 %vm86_vm0, %v439_v5  ;;  %428 = vmatprep.mubr.msk.bf16.mxu1 %vm86_vm0, %v440_v6 }
   0xe   :  { %421 = vmatmul.mubr.msk.bf16.gmra.mrb[4].mxu0 %vm86_vm0, %v441_v7  ;;  %429 = vmatmul.mubr.msk.bf16.gmra.mrb[4].mxu1 %vm86_vm0, %v442_v8 }
  0xd9   :  { %v418_v10 = vpop.f32.mrb[0].mxu0  ;;  %v426_v11 = vpop.f32.mrb[0].mxu1 }
  0xda   :  { %v154_v12 = vadd.f32 %v418_v10, %v308_v9  ;;  %v186_v13 = vadd.f32 %v426_v11, %v308_v9  ;;  %v145_v14 = vpop.f32.mrb[1].mxu0  ;;  %v177_v15 = vpop.f32.mrb[1].mxu1 }
  0xdb   :  { %v146_v16 = vadd.f32 %v308_v9, %v145_v14  ;;  %v178_v17 = vadd.f32 %v308_v9, %v177_v15  ;;  %v419_v18 = vpop.f32.mrb[2].mxu0  ;;  %v427_v19 = vpop.f32.mrb[2].mxu1 }
  0xdc   :  { %v157_v20 = vadd.f32 %v419_v18, %v308_v9  ;;  %v189_v21 = vadd.f32 %v427_v19, %v308_v9  ;;  %v148_v22 = vpop.f32.mrb[3].mxu0  ;;  %v180_v23 = vpop.f32.mrb[3].mxu1  ;;  %v210_v26 = vmax.f32 %v154_v12, 0.0  ;;  %v218_v27 = vmax.f32 %v186_v13, 0.0 }
  0xdd   :  { %v149_v24 = vadd.f32 %v308_v9, %v148_v22  ;;  %v181_v25 = vadd.f32 %v308_v9, %v180_v23  ;;  %v208_v30 = vmax.f32 %v146_v16, 0.0  ;;  %v216_v31 = vmax.f32 %v178_v17, 0.0 }
  0xde   :  { %v211_v28 = vmax.f32 %v157_v20, 0.0  ;;  %v219_v29 = vmax.f32 %v189_v21, 0.0 }
  0xdf   :  { %v209_v32 = vmax.f32 %v149_v24, 0.0  ;;  %v217_v33 = vmax.f32 %v181_v25, 0.0 }
  0xe0   :  { %v366_v34 = vpack.c.bf16 %v211_v28, %v210_v26  ;;  %v386_v35 = vpack.c.bf16 %v219_v29, %v218_v27 }
  0xe1   :  { %v361_v36 = vpack.c.bf16 %v209_v32, %v208_v30  ;;  %v381_v37 = vpack.c.bf16 %v217_v33, %v216_v31  ;;  %v422_v38 = vpop.f32.mrb[4].mxu0  ;;  %v430_v39 = vpop.f32.mrb[4].mxu1 }
  0xe2   :  { %398 = vst [vmem:[%s528_s3 + $0x8] sm:$0xff] %v366_v34   ;;  %402 = vst [vmem:[%s528_s3 + $0x28] sm:$0xff] %v386_v35   ;;  %v170_v40 = vadd.f32 %v422_v38, %v308_v9  ;;  %v202_v41 = vadd.f32 %v430_v39, %v308_v9  ;;  %v161_v42 = vpop.f32.mrb[5].mxu0  ;;  %v193_v43 = vpop.f32.mrb[5].mxu1 }
  0xe3   :  { %362 = vst [vmem:[%s528_s3] sm:$0xff] %v361_v36   ;;  %401 = vst [vmem:[%s528_s3 + $0x20] sm:$0xff] %v381_v37   ;;  %v162_v44 = vadd.f32 %v308_v9, %v161_v42  ;;  %v194_v45 = vadd.f32 %v308_v9, %v193_v43  ;;  %v423_v46 = vpop.f32.mrb[6].mxu0  ;;  %v431_v47 = vpop.f32.mrb[6].mxu1 }
  0xe4   :  { %v173_v48 = vadd.f32 %v423_v46, %v308_v9  ;;  %v205_v49 = vadd.f32 %v431_v47, %v308_v9  ;;  %v164_v50 = vpop.f32.mrb[7].mxu0  ;;  %v196_v51 = vpop.f32.mrb[7].mxu1  ;;  %v214_v54 = vmax.f32 %v170_v40, 0.0  ;;  %v222_v55 = vmax.f32 %v202_v41, 0.0 }
  0xe5   :  { %v165_v52 = vadd.f32 %v308_v9, %v164_v50  ;;  %v197_v53 = vadd.f32 %v308_v9, %v196_v51  ;;  %v212_v58 = vmax.f32 %v162_v44, 0.0  ;;  %v220_v59 = vmax.f32 %v194_v45, 0.0 }
  0xe6   :  { %v215_v56 = vmax.f32 %v173_v48, 0.0  ;;  %v223_v57 = vmax.f32 %v205_v49, 0.0 }
  0xe7   :  { %v213_v60 = vmax.f32 %v165_v52, 0.0  ;;  %v221_v61 = vmax.f32 %v197_v53, 0.0 }
  0xe8   :  { %v376_v62 = vpack.c.bf16 %v215_v56, %v214_v54  ;;  %v396_v63 = vpack.c.bf16 %v223_v57, %v222_v55 }
  0xe9   :  { %v371_v0 = vpack.c.bf16 %v213_v60, %v212_v58  ;;  %v391_v1 = vpack.c.bf16 %v221_v61, %v220_v59 }
  0xea   :  { %400 = vst [vmem:[%s528_s3 + $0x18] sm:$0xff] %v376_v62   ;;  %404 = vst [vmem:[%s528_s3 + $0x38] sm:$0xff] %v396_v63  }
  0xeb   :  { %399 = vst [vmem:[%s528_s3 + $0x10] sm:$0xff] %v371_v0   ;;  %403 = vst [vmem:[%s528_s3 + $0x30] sm:$0xff] %v391_v1  }

// kernel: forward.17
= control target key start
LH: loop header
LB: loop body
LE: loop exit
PB: predicated region body
PF: predicated region fallthrough
CT: control target
= control target key end

     0   :  { %v42_v0 = vlaneseq  ;;  %v364_v4 = vmov 1983009808   ;;  %vm32_vm0 = vcmask 1040384   ;;  %vm33_vm1 = vsmask.f32 256  ;;  %s608_s0 = inlined_call_operand.vmem [shape: bf16[10,10,128], index: 0, kind: input, shape index: {}]   ;;  %s609_s1 = inlined_call_operand.vmem [shape: bf16[4,4,128], index: 1, kind: output, shape index: {}]  }
   0x1   :  { %v8_v1 = vld [vmem:[%s608_s0] sm:$0xf]  ;;  %v9_v2 = vld [vmem:[%s608_s0 + $0x4] sm:$0x1]  ;;  %v305_v3 = vld [vmem:[%s608_s0 + $0x8] sm:$0xf]  ;;  %v40_v5 = vunpack.c.l.s4 %v364_v4 }
   0x2   :  { %v306_v6 = vld [vmem:[%s608_s0 + $0xc] sm:$0x1]  ;;  %v13_v7 = vmax.bf16 %v305_v3, %v8_v1  ;;  %v307_v8 = vld [vmem:[%s608_s0 + $0x10] sm:$0xf]  ;;  %v308_v9 = vld [vmem:[%s608_s0 + $0x14] sm:$0x1] }
   0x3   :  { %v14_v10 = vmax.bf16 %v306_v6, %v9_v2  ;;  %v41_v12 = vunpack.c.0.s8 %v40_v5  ;;  %v43_v13 = vshrl.u32 %v42_v0, 7  ;;  %v312_v15 = vld [vmem:[%s608_s0 + $0x10] sm:$0xf]  ;;  %v313_v16 = vld [vmem:[%s608_s0 + $0x14] sm:$0x1]  ;;  %vm415_vm2 = vmand %vm32_vm0, %vm33_vm1  ;;  %vm60_vm4 = vcmask 1041409  }
   0x4   :  { %v18_v11 = vmax.bf16 %v307_v8, %v13_v7  ;;  %v314_v19 = vld [vmem:[%s608_s0 + $0x18] sm:$0xf]  ;;  %v315_v20 = vld [vmem:[%s608_s0 + $0x1c] sm:$0x1]  ;;  %v35_v21 = vld [vmem:[%s609_s1] sm:$0x1] }
   0x5   :  { %v19_v14 = vmax.bf16 %v308_v9, %v14_v10  ;;  %v93_v23 = vmax.bf16 %v314_v19, %v312_v15  ;;  %v94_v24 = vmax.bf16 %v315_v20, %v313_v16  ;;  %v316_v25 = vld [vmem:[%s608_s0 + $0x20] sm:$0xf]  ;;  %v317_v26 = vld [vmem:[%s608_s0 + $0x24] sm:$0x1]  ;;  %v419_v29 = vsub.s32 %v41_v12, %v43_v13  ;;  %v331_v34 = vld [vmem:[%s608_s0 + $0x28] sm:$0xf] }
   0x6   :  { %v21_v17 = vshrl.u32 %v18_v11, 16  ;;  %v310_v18 = vrot.slane %v18_v11, 9  ;;  %vm52_vm3 = vsmask.f32 7938  ;;  %v329_v30 = vld [vmem:[%s608_s0 + $0x20] sm:$0xf] }
   0x7   :  { %v67_v22 = vrot.slane %v19_v14, 5  ;;  %v98_v31 = vmax.bf16 %v316_v25, %v93_v23  ;;  %v99_v32 = vmax.bf16 %v317_v26, %v94_v24  ;;  %v330_v33 = vld [vmem:[%s608_s0 + $0x24] sm:$0x1]  ;;  %v332_v35 = vld [vmem:[%s608_s0 + $0x2c] sm:$0x1]  ;;  %v164_v38 = vmax.bf16 %v331_v34, %v329_v30  ;;  %vm484_vm7 = vmand %vm32_vm0, %vm52_vm3 }
   0x8   :  { %v26_v27 = vmax.bf16 %v21_v17, %v18_v11  ;;  %v165_v39 = vmax.bf16 %v332_v35, %v330_v33  ;;  %v333_v40 = vld [vmem:[%s608_s0 + $0x30] sm:$0xf]  ;;  %v334_v41 = vld [vmem:[%s608_s0 + $0x34] sm:$0x1]  ;;  %vm61_vm5 = vsmask.f32 1280 }
   0x9   :  { %v101_v42 = vshrl.u32 %v98_v31, 16  ;;  %v319_v43 = vrot.slane %v98_v31, 9  ;;  %v140_v44 = vrot.slane %v99_v32, 5  ;;  %v169_v47 = vmax.bf16 %v333_v40, %v164_v38  ;;  %v346_v49 = vld [vmem:[%s608_s0 + $0x30] sm:$0xf]  ;;  %vm469_vm6 = vmand %vm60_vm4, %vm61_vm5 }
   0xa   :  { %v31_v36 = vmax.bf16 %v310_v18, %v26_v27  ;;  %v69_v37 = vmax.bf16 %v67_v22, %v26_v27  ;;  %v170_v48 = vmax.bf16 %v334_v41, %v165_v39  ;;  %v347_v50 = vld [vmem:[%s608_s0 + $0x34] sm:$0x1]  ;;  %v348_v51 = vld [vmem:[%s608_s0 + $0x38] sm:$0xf]  ;;  %v320_v53 = vld [vmem:[%s609_s1 + $0x2] sm:$0x1] }
   0xb   :  { %v106_v52 = vmax.bf16 %v101_v42, %v98_v31  ;;  %v349_v54 = vld [vmem:[%s608_s0 + $0x3c] sm:$0x1]  ;;  %v235_v55 = vmax.bf16 %v348_v51, %v346_v49  ;;  %v350_v56 = vld [vmem:[%s608_s0 + $0x40] sm:$0xf]  ;;  %v172_v60 = vshrl.u32 %v169_v47, 16  ;;  %v336_v61 = vrot.slane %v169_v47, 9 }
   0xc   :  { %v36_v45 = vsel %vm415_vm2, %v31_v36, %v35_v21  ;;  %v45_v46 = vrot.slane %v31_v36, %v419_v29  ;;  %v77_v57 = vrot.slane %v69_v37, %v419_v29  ;;  %v351_v62 = vld [vmem:[%s608_s0 + $0x44] sm:$0x1]  ;;  %v63_v0 = vld [vmem:[%s609_s1] sm:$0x2]  ;;  %v211_v3 = vrot.slane %v170_v48, 5 }
   0xd   :  { %37 = vst [vmem:[%s609_s1] sm:$0x1] %v36_v45  ;;  %v111_v1 = vmax.bf16 %v319_v43, %v106_v52  ;;  %v142_v2 = vmax.bf16 %v140_v44, %v106_v52  ;;  %v236_v4 = vmax.bf16 %v349_v54, %v347_v50  ;;  %v177_v6 = vmax.bf16 %v172_v60, %v169_v47  ;;  %v337_v11 = vld [vmem:[%s609_s1 + $0x4] sm:$0x1]  ;;  %v325_v23 = vld [vmem:[%s609_s1 + $0x2] sm:$0x2] }
   0xe   :  { %v47_v58 = vshll.u32 %v45_v46, 16  ;;  %v57_v59 = vcombine.high %v45_v46, %v45_v46  ;;  %v240_v7 = vmax.bf16 %v350_v56, %v235_v55  ;;  %v78_v13 = vcombine.high %v77_v57, %v77_v57  ;;  %v354_v31 = vld [vmem:[%s609_s1 + $0x6] sm:$0x1]  ;;  %v342_v39 = vld [vmem:[%s609_s1 + $0x4] sm:$0x2] }
   0xf   :  { %v114_v9 = vsel %vm415_vm2, %v111_v1, %v320_v53  ;;  %v123_v10 = vrot.slane %v111_v1, %v419_v29  ;;  %v241_v12 = vmax.bf16 %v351_v62, %v236_v4  ;;  %v182_v16 = vmax.bf16 %v336_v61, %v177_v6  ;;  %v359_v54 = vld [vmem:[%s609_s1 + $0x6] sm:$0x2] }
  0x10   :  { %v58_v5 = vrot.slane %v57_v59, 7  ;;  %v311_v8 = vrot.slane %v47_v58, 9  ;;  %321 = vst [vmem:[%s609_s1 + $0x2] sm:$0x1] %v114_v9  ;;  %v213_v17 = vmax.bf16 %v211_v3, %v177_v6  ;;  %v243_v18 = vshrl.u32 %v240_v7, 16 }
  0x11   :  { %v125_v19 = vshll.u32 %v123_v10, 16  ;;  %v133_v20 = vcombine.high %v123_v10, %v123_v10  ;;  %v353_v21 = vrot.slane %v240_v7, 9  ;;  %v282_v22 = vrot.slane %v241_v12, 5 }
  0x12   :  { %v64_v15 = vsel %vm469_vm6, %v58_v5, %v63_v0  ;;  %v185_v24 = vsel %vm415_vm2, %v182_v16, %v337_v11  ;;  %v194_v25 = vrot.slane %v182_v16, %v419_v29  ;;  %v248_v26 = vmax.bf16 %v243_v18, %v240_v7 }
  0x13   :  { %65 = vst [vmem:[%s609_s1] sm:$0x2] %v64_v15  ;;  %vm83_vm8 = vsmask.f32 7942  ;;  %v134_v30 = vrot.slane %v133_v20, 7  ;;  %338 = vst [vmem:[%s609_s1 + $0x4] sm:$0x1] %v185_v24  ;;  %v150_v33 = vrot.slane %v142_v2, %v419_v29  ;;  %v221_v42 = vrot.slane %v213_v17, %v419_v29 }
  0x14   :  { %v54_v27 = vld [vmem:[%s609_s1] sm:$0x1]  ;;  %v196_v34 = vshll.u32 %v194_v25, 16  ;;  %v204_v35 = vcombine.high %v194_v25, %v194_v25  ;;  %v253_v36 = vmax.bf16 %v353_v21, %v248_v26  ;;  %v322_v37 = vrot.slane %v125_v19, 9  ;;  %vm525_vm9 = vmand %vm60_vm4, %vm83_vm8 }
  0x15   :  { %v55_v32 = vsel %vm484_vm7, %v311_v8, %v54_v27  ;;  %v137_v38 = vsel %vm469_vm6, %v134_v30, %v325_v23  ;;  %v284_v40 = vmax.bf16 %v282_v22, %v248_v26  ;;  %v80_v41 = vshll.u32 %v78_v13, 16 }
  0x16   :  { %56 = vst [vmem:[%s609_s1] sm:$0x1] %v55_v32  ;;  %326 = vst [vmem:[%s609_s1 + $0x2] sm:$0x2] %v137_v38  ;;  %v205_v44 = vrot.slane %v204_v35, 7  ;;  %v256_v45 = vsel %vm415_vm2, %v253_v36, %v354_v31  ;;  %v265_v46 = vrot.slane %v253_v36, %v419_v29  ;;  %v151_v47 = vcombine.high %v150_v33, %v150_v33 }
  0x17   :  { %355 = vst [vmem:[%s609_s1 + $0x6] sm:$0x1] %v256_v45  ;;  %v323_v48 = vld [vmem:[%s609_s1 + $0x2] sm:$0x1]  ;;  %v339_v49 = vrot.slane %v196_v34, 9  ;;  %v222_v56 = vcombine.high %v221_v42, %v221_v42  ;;  %v292_v57 = vrot.slane %v284_v40, %v419_v29 }
  0x18   :  { %v208_v50 = vsel %vm469_vm6, %v205_v44, %v342_v39  ;;  %v267_v51 = vshll.u32 %v265_v46, 16  ;;  %v275_v52 = vcombine.high %v265_v46, %v265_v46  ;;  %v131_v53 = vsel %vm484_vm7, %v322_v37, %v323_v48 }
  0x19   :  { %343 = vst [vmem:[%s609_s1 + $0x4] sm:$0x2] %v208_v50  ;;  %324 = vst [vmem:[%s609_s1 + $0x2] sm:$0x1] %v131_v53  ;;  %v153_v59 = vshll.u32 %v151_v47, 16  ;;  %v224_v1 = vshll.u32 %v222_v56, 16  ;;  %v293_v2 = vcombine.high %v292_v57, %v292_v57 }
  0x1a   :  { %v85_v28 = vld [vmem:[%s609_s1] sm:$0x2]  ;;  %v276_v58 = vrot.slane %v275_v52, 7  ;;  %v340_v60 = vld [vmem:[%s609_s1 + $0x4] sm:$0x1]  ;;  %v356_v62 = vrot.slane %v267_v51, 9 }
  0x1b   :  { %v86_v55 = vsel %vm525_vm9, %v80_v41, %v85_v28  ;;  %v202_v61 = vsel %vm484_vm7, %v339_v49, %v340_v60  ;;  %v295_v7 = vshll.u32 %v293_v2, 16 }
  0x1c   :  { %87 = vst [vmem:[%s609_s1] sm:$0x2] %v86_v55  ;;  %v279_v0 = vsel %vm469_vm6, %v276_v58, %v359_v54  ;;  %341 = vst [vmem:[%s609_s1 + $0x4] sm:$0x1] %v202_v61 }
  0x1d   :  { %360 = vst [vmem:[%s609_s1 + $0x6] sm:$0x2] %v279_v0  ;;  %v327_v29 = vld [vmem:[%s609_s1 + $0x2] sm:$0x2] }
  0x1e   :  { %v157_v3 = vsel %vm525_vm9, %v153_v59, %v327_v29  ;;  %v357_v63 = vld [vmem:[%s609_s1 + $0x6] sm:$0x1] }
  0x1f   :  { %328 = vst [vmem:[%s609_s1 + $0x2] sm:$0x2] %v157_v3  ;;  %v273_v4 = vsel %vm484_vm7, %v356_v62, %v357_v63 }
  0x20   :  { %v344_v5 = vld [vmem:[%s609_s1 + $0x4] sm:$0x2]  ;;  %358 = vst [vmem:[%s609_s1 + $0x6] sm:$0x1] %v273_v4 }
  0x21   :  { %v228_v6 = vsel %vm525_vm9, %v224_v1, %v344_v5 }
  0x22   :  { %345 = vst [vmem:[%s609_s1 + $0x4] sm:$0x2] %v228_v6 }
  0x24   :  { %v361_v8 = vld [vmem:[%s609_s1 + $0x6] sm:$0x2] }
  0x25   :  { %v299_v9 = vsel %vm525_vm9, %v295_v7, %v361_v8 }
  0x26   :  { %362 = vst [vmem:[%s609_s1 + $0x6] sm:$0x2] %v299_v9 }

// kernel: forward.18
= control target key start
LH: loop header
LB: loop body
LE: loop exit
PB: predicated region body
PF: predicated region fallthrough
CT: control target
= control target key end

     0   :  { %vm372_vm0 = vcmask 523264   ;;  %s913_s1 = inlined_call_operand.vmem [shape: bf16[576,128], index: 1, kind: input, shape index: {}]   ;;  %s914_s0 = inlined_call_operand.vmem [shape: bf16[32,576], index: 0, kind: input, shape index: {}]   ;;  %s915_s2 = inlined_call_operand.vmem [shape: f32[1,128], index: 2, kind: input, shape index: {}]   ;;  %s916_s3 = inlined_call_operand.vmem [shape: bf16[32,128], index: 3, kind: output, shape index: {}]  }
   0x1   :  { %v696_v0 = vld [vmem:[%s913_s1 + $0x40] sm:$0xff]   ;;  %v700_v4 = vld [vmem:[%s913_s1 + $0x48] sm:$0xff]   ;;  %v704_v8 = vld [vmem:[%s913_s1 + $0x50] sm:$0xff]  }
   0x2   :  { %v697_v1 = vld [vmem:[%s913_s1] sm:$0xff]   ;;  %622 = vmatprep.subr.bf16.mxu0 %v696_v0  ;;  %v701_v5 = vld [vmem:[%s913_s1 + $0x8] sm:$0xff]   ;;  %v705_v9 = vld [vmem:[%s913_s1 + $0x10] sm:$0xff]  }
   0x3   :  { %v698_v2 = vld [vmem:[%s913_s1 + $0xc0] sm:$0xff]   ;;  %623 = vmatpush3.bf16.msra.mxu0 %v697_v1  ;;  %v702_v6 = vld [vmem:[%s913_s1 + $0xc8] sm:$0xff]   ;;  %v706_v10 = vld [vmem:[%s913_s1 + $0xd0] sm:$0xff]  }
   0x4   :  { %v699_v3 = vld [vmem:[%s913_s1 + $0x80] sm:$0xff]   ;;  %650 = vmatprep.subr.bf16.mxu1 %v698_v2  ;;  %624 = vmatprep.subr.bf16.mxu0 %v700_v4  ;;  %v703_v7 = vld [vmem:[%s913_s1 + $0x88] sm:$0xff]   ;;  %v707_v11 = vld [vmem:[%s913_s1 + $0x90] sm:$0xff]  }
   0x5   :  { %651 = vmatpush3.bf16.msra.mxu1 %v699_v3  ;;  %v708_v12 = vld [vmem:[%s913_s1 + $0x58] sm:$0xff]   ;;  %v712_v16 = vld [vmem:[%s913_s1 + $0x60] sm:$0xff]   ;;  %v716_v20 = vld [vmem:[%s913_s1 + $0x68] sm:$0xff]  }
   0x6   :  { %652 = vmatprep.subr.bf16.mxu1 %v702_v6  ;;  %v709_v13 = vld [vmem:[%s913_s1 + $0x18] sm:$0xff]   ;;  %v713_v17 = vld [vmem:[%s913_s1 + $0x20] sm:$0xff]   ;;  %v717_v21 = vld [vmem:[%s913_s1 + $0x28] sm:$0xff]  }
   0x7   :  { %625 = vmatpush3.bf16.msra.mxu0 %v701_v5  ;;  %v710_v14 = vld [vmem:[%s913_s1 + $0xd8] sm:$0xff]   ;;  %v714_v18 = vld [vmem:[%s913_s1 + $0xe0] sm:$0xff]   ;;  %v718_v22 = vld [vmem:[%s913_s1 + $0xe8] sm:$0xff]  }
   0x8   :  { %626 = vmatprep.subr.bf16.mxu0 %v704_v8  ;;  %v711_v15 = vld [vmem:[%s913_s1 + $0x98] sm:$0xff]   ;;  %v715_v19 = vld [vmem:[%s913_s1 + $0xa0] sm:$0xff]   ;;  %v719_v23 = vld [vmem:[%s913_s1 + $0xa8] sm:$0xff]  }
   0x9   :  { %653 = vmatpush3.bf16.msra.mxu1 %v703_v7  ;;  %v720_v24 = vld [vmem:[%s913_s1 + $0x70] sm:$0xff]   ;;  %v724_v28 = vld [vmem:[%s913_s1 + $0x78] sm:$0xff]   ;;  %v731_v34 = vld [vmem:[%s913_s1 + $0x100] sm:$0xff]  }
   0xa   :  { %654 = vmatprep.subr.bf16.mxu1 %v706_v10  ;;  %v721_v25 = vld [vmem:[%s913_s1 + $0x30] sm:$0xff]   ;;  %v725_v29 = vld [vmem:[%s913_s1 + $0x38] sm:$0xff]   ;;  %v734_v36 = vld [vmem:[%s914_s0 + $0xc] ss:$20 sps:$4 sm:$0xff]  }
   0xb   :  { %627 = vmatpush3.bf16.msra.mxu0 %v705_v9  ;;  %v722_v26 = vld [vmem:[%s913_s1 + $0xf0] sm:$0xff]   ;;  %v726_v30 = vld [vmem:[%s913_s1 + $0xf8] sm:$0xff]   ;;  %v735_v37 = vld [vmem:[%s913_s1 + $0x108] sm:$0xff]   ;;  %460 = vmatprep.mubr.bf16.mxu1 %v734_v36 }
   0xc   :  { %628 = vmatprep.subr.bf16.mxu0 %v708_v12  ;;  %v723_v27 = vld [vmem:[%s913_s1 + $0xb0] sm:$0xff]   ;;  %v729_v32 = vld [vmem:[%s914_s0 + $0x4] ss:$20 sps:$4 sm:$0xff]   ;;  %v732_v35 = vld [vmem:[%s914_s0 + $0x8] ss:$20 sps:$4 sm:$0xff]  }
   0xd   :  { %655 = vmatpush3.bf16.msra.mxu1 %v707_v11  ;;  %v727_v31 = vld [vmem:[%s914_s0] ss:$20 sps:$4 sm:$0xff]   ;;  %v730_v33 = vld [vmem:[%s913_s1 + $0xb8] sm:$0xff]   ;;  %411 = vmatprep.mubr.bf16.mxu0 %v729_v32  ;;  %v742_v42 = vld [vmem:[%s914_s0 + $0x30] ss:$20 sps:$4 sm:$0xff]  }
   0xe   :  { %656 = vmatprep.subr.bf16.mxu1 %v710_v14  ;;  %v736_v38 = vld [vmem:[%s914_s0 + $0x2c] ss:$20 sps:$4 sm:$0xff]   ;;  %v738_v39 = vld [vmem:[%s914_s0 + $0x28] ss:$20 sps:$4 sm:$0xff]   ;;  %v739_v40 = vld [vmem:[%s913_s1 + $0x110] sm:$0xff]  }
   0xf   :  { %629 = vmatpush3.bf16.msra.mxu0 %v709_v13  ;;  %v740_v41 = vld [vmem:[%s914_s0 + $0x34] ss:$20 sps:$4 sm:$0xff]   ;;  %v743_v43 = vld [vmem:[%s913_s1 + $0x118] sm:$0xff]   ;;  %v744_v44 = vld [vmem:[%s914_s0 + $0x10] ss:$20 sps:$4 sm:$0xff]  }
  0x10   :  { %630 = vmatprep.subr.bf16.mxu0 %v712_v16  ;;  %v745_v45 = vld [vmem:[%s914_s0 + $0x38] ss:$20 sps:$4 sm:$0xff]   ;;  %v554_v47 = vld [vmem:[%s915_s2] ss:$0 sm:$0xff] }
  0x11   :  { %657 = vmatpush3.bf16.msra.mxu1 %v711_v15 }
  0x12   :  { %658 = vmatprep.subr.bf16.mxu1 %v714_v18 }
  0x13   :  { %631 = vmatpush3.bf16.msra.mxu0 %v713_v17 }
  0x14   :  { %632 = vmatprep.subr.bf16.mxu0 %v716_v20 }
  0x15   :  { %659 = vmatpush3.bf16.msra.mxu1 %v715_v19 }
  0x16   :  { %660 = vmatprep.subr.bf16.mxu1 %v718_v22 }
  0x17   :  { %633 = vmatpush3.bf16.msra.mxu0 %v717_v21 }
  0x18   :  { %634 = vmatprep.subr.bf16.mxu0 %v720_v24 }
  0x19   :  { %661 = vmatpush3.bf16.msra.mxu1 %v719_v23 }
  0x1a   :  { %662 = vmatprep.subr.bf16.mxu1 %v722_v26 }
  0x1b   :  { %635 = vmatpush3.bf16.msra.mxu0 %v721_v25 }
  0x1c   :  { %636 = vmatprep.subr.bf16.mxu0 %v724_v28 }
  0x1d   :  { %663 = vmatpush3.bf16.msra.mxu1 %v723_v27 }
  0x1e   :  { %664 = vmatprep.subr.bf16.mxu1 %v726_v30 }
  0x1f   :  { %637 = vmatpush3.bf16.msra.mxu0 %v725_v29 }
  0x20   :  { %684 = vmatprep.subr.bf16.mxu0 %v731_v34 }
  0x21   :  { %665 = vmatpush3.bf16.msra.mxu1 %v730_v33 }
  0x22   :  { %412 = vmatmul.mubr.bf16.vlgmr.msra.gmra.mrb[0].mxu0 %v727_v31 }
  0x23   :  { %685 = vmatpush3.bf16.msra.mxu0 %v731_v34  ;;  %419 = vmatprep.mubr.bf16.mxu0 %v736_v38 }
  0x24   :  { %461 = vmatmul.mubr.bf16.vlgmr.msra.gmra.mrb[0].mxu1 %v732_v35  ;;  %686 = vmatprep.subr.bf16.mxu0 %v735_v37 }
  0x25   :  { %468 = vmatprep.mubr.bf16.mxu1 %v740_v41 }
  0x27   :  { %687 = vmatpush3.bf16.msra.mxu0 %v735_v37 }
  0x28   :  { %688 = vmatprep.subr.bf16.mxu0 %v739_v40 }
  0x2a   :  { %420 = vmatmul.mubr.bf16.gmra.mrb[4].mxu0 %v738_v39 }
  0x2b   :  { %692 = vmatprep.mubr.msk.bf16.mxu0 %vm372_vm0, %v744_v44  ;;  %689 = vmatpush3.bf16.msra.mxu0 %v739_v40 }
  0x2c   :  { %469 = vmatmul.mubr.bf16.gmra.mrb[4].mxu1 %v742_v42  ;;  %690 = vmatprep.subr.bf16.mxu0 %v743_v43 }
  0x2f   :  { %691 = vmatpush3.bf16.msra.mxu0 %v743_v43 }
  0x32   :  { %693 = vmatmul.mubr.msk.bf16.vlgmr.msra.gmra.mrb[8].mxu0 %vm372_vm0, %v745_v45 }
  0xf5   :  { %v638_v46 = vpop.f32.mrb[0].mxu0 }
  0xf6   :  { %v639_v48 = vpop.f32.mrb[1].mxu0 }
  0xf7   :  { %v640_v49 = vadd.f32 %v639_v48, %v638_v46  ;;  %v641_v50 = vpop.f32.mrb[2].mxu0  ;;  %v666_v51 = vpop.f32.mrb[0].mxu1 }
  0xf8   :  { %v642_v52 = vpop.f32.mrb[3].mxu0  ;;  %v667_v55 = vpop.f32.mrb[1].mxu1 }
  0xf9   :  { %v414_v53 = vadd.f32 %v640_v49, %v554_v47  ;;  %v643_v54 = vadd.f32 %v642_v52, %v641_v50  ;;  %v668_v56 = vadd.f32 %v667_v55, %v666_v51  ;;  %v669_v57 = vpop.f32.mrb[2].mxu1 }
  0xfa   :  { %v670_v59 = vpop.f32.mrb[3].mxu1 }
  0xfb   :  { %v417_v58 = vadd.f32 %v643_v54, %v554_v47  ;;  %v671_v60 = vadd.f32 %v670_v59, %v669_v57  ;;  %v463_v61 = vadd.f32 %v668_v56, %v414_v53 }
  0xfd   :  { %v644_v62 = vpop.f32.mrb[4].mxu0  ;;  %v466_v0 = vadd.f32 %v671_v60, %v417_v58 }
  0xfe   :  { %v645_v63 = vpop.f32.mrb[5].mxu0 }
  0xff   :  { %v646_v1 = vadd.f32 %v645_v63, %v644_v62  ;;  %v647_v2 = vpop.f32.mrb[6].mxu0  ;;  %v672_v3 = vpop.f32.mrb[4].mxu1 }
 0x100   :  { %v648_v4 = vpop.f32.mrb[7].mxu0  ;;  %v673_v7 = vpop.f32.mrb[5].mxu1 }
 0x101   :  { %v422_v5 = vadd.f32 %v646_v1, %v554_v47  ;;  %v649_v6 = vadd.f32 %v648_v4, %v647_v2  ;;  %v674_v8 = vadd.f32 %v673_v7, %v672_v3  ;;  %v675_v9 = vpop.f32.mrb[6].mxu1 }
 0x102   :  { %v676_v11 = vpop.f32.mrb[7].mxu1 }
 0x103   :  { %v425_v10 = vadd.f32 %v649_v6, %v554_v47  ;;  %v677_v12 = vadd.f32 %v676_v11, %v675_v9  ;;  %v471_v13 = vadd.f32 %v674_v8, %v422_v5 }
 0x105   :  { %v694_v14 = vpop.f32.mrb[8].mxu0  ;;  %v474_v15 = vadd.f32 %v677_v12, %v425_v10 }
 0x106   :  { %v520_v16 = vadd.f32 %v694_v14, %v471_v13  ;;  %v511_v17 = vpop.f32.mrb[9].mxu0 }
 0x107   :  { %v512_v18 = vadd.f32 %v511_v17, %v463_v61  ;;  %v695_v19 = vpop.f32.mrb[10].mxu0 }
 0x108   :  { %v523_v20 = vadd.f32 %v695_v19, %v474_v15  ;;  %v514_v21 = vpop.f32.mrb[11].mxu0  ;;  %v528_v23 = vmax.f32 %v520_v16, 0.0 }
 0x109   :  { %v515_v22 = vadd.f32 %v514_v21, %v466_v0  ;;  %v526_v25 = vmax.f32 %v512_v18, 0.0 }
 0x10a   :  { %v529_v24 = vmax.f32 %v523_v20, 0.0 }
 0x10b   :  { %v527_v26 = vmax.f32 %v515_v22, 0.0 }
 0x10c   :  { %v619_v27 = vpack.c.bf16 %v529_v24, %v528_v23 }
 0x10d   :  { %v614_v28 = vpack.c.bf16 %v527_v26, %v526_v25 }
 0x10e   :  { %621 = vst [vmem:[%s916_s3 + $0x8] sm:$0xff] %v619_v27  }
 0x10f   :  { %615 = vst [vmem:[%s916_s3] sm:$0xff] %v614_v28  }

// kernel: forward.19
= control target key start
LH: loop header
LB: loop body
LE: loop exit
PB: predicated region body
PF: predicated region fallthrough
CT: control target
= control target key end

     0   :  { %vm375_vm0 = vcmask 523264   ;;  %s948_s1 = inlined_call_operand.vmem [shape: bf16[576,128], index: 1, kind: input, shape index: {}]   ;;  %s949_s0 = inlined_call_operand.vmem [shape: bf16[32,576], index: 0, kind: input, shape index: {}]   ;;  %s950_s2 = inlined_call_operand.vmem [shape: f32[1,128], index: 2, kind: input, shape index: {}]   ;;  %s951_s3 = inlined_call_operand.vmem [shape: bf16[32,128], index: 3, kind: input, shape index: {}]   ;;  %s952_s4 = inlined_call_operand.vmem [shape: bf16[32,128], index: 4, kind: output, shape index: {}]  }
   0x1   :  { %v720_v0 = vld [vmem:[%s948_s1 + $0x40] sm:$0xff]   ;;  %v724_v4 = vld [vmem:[%s948_s1 + $0x48] sm:$0xff]   ;;  %v728_v8 = vld [vmem:[%s948_s1 + $0x50] sm:$0xff]  }
   0x2   :  { %v721_v1 = vld [vmem:[%s948_s1] sm:$0xff]   ;;  %646 = vmatprep.subr.bf16.mxu0 %v720_v0  ;;  %v725_v5 = vld [vmem:[%s948_s1 + $0x8] sm:$0xff]   ;;  %v729_v9 = vld [vmem:[%s948_s1 + $0x10] sm:$0xff]  }
   0x3   :  { %v722_v2 = vld [vmem:[%s948_s1 + $0xc0] sm:$0xff]   ;;  %647 = vmatpush3.bf16.msra.mxu0 %v721_v1  ;;  %v726_v6 = vld [vmem:[%s948_s1 + $0xc8] sm:$0xff]   ;;  %v730_v10 = vld [vmem:[%s948_s1 + $0xd0] sm:$0xff]  }
   0x4   :  { %v723_v3 = vld [vmem:[%s948_s1 + $0x80] sm:$0xff]   ;;  %674 = vmatprep.subr.bf16.mxu1 %v722_v2  ;;  %648 = vmatprep.subr.bf16.mxu0 %v724_v4  ;;  %v727_v7 = vld [vmem:[%s948_s1 + $0x88] sm:$0xff]   ;;  %v731_v11 = vld [vmem:[%s948_s1 + $0x90] sm:$0xff]  }
   0x5   :  { %675 = vmatpush3.bf16.msra.mxu1 %v723_v3  ;;  %v732_v12 = vld [vmem:[%s948_s1 + $0x58] sm:$0xff]   ;;  %v736_v16 = vld [vmem:[%s948_s1 + $0x60] sm:$0xff]   ;;  %v740_v20 = vld [vmem:[%s948_s1 + $0x68] sm:$0xff]  }
   0x6   :  { %676 = vmatprep.subr.bf16.mxu1 %v726_v6  ;;  %v733_v13 = vld [vmem:[%s948_s1 + $0x18] sm:$0xff]   ;;  %v737_v17 = vld [vmem:[%s948_s1 + $0x20] sm:$0xff]   ;;  %v741_v21 = vld [vmem:[%s948_s1 + $0x28] sm:$0xff]  }
   0x7   :  { %649 = vmatpush3.bf16.msra.mxu0 %v725_v5  ;;  %v734_v14 = vld [vmem:[%s948_s1 + $0xd8] sm:$0xff]   ;;  %v738_v18 = vld [vmem:[%s948_s1 + $0xe0] sm:$0xff]   ;;  %v742_v22 = vld [vmem:[%s948_s1 + $0xe8] sm:$0xff]  }
   0x8   :  { %650 = vmatprep.subr.bf16.mxu0 %v728_v8  ;;  %v735_v15 = vld [vmem:[%s948_s1 + $0x98] sm:$0xff]   ;;  %v739_v19 = vld [vmem:[%s948_s1 + $0xa0] sm:$0xff]   ;;  %v743_v23 = vld [vmem:[%s948_s1 + $0xa8] sm:$0xff]  }
   0x9   :  { %677 = vmatpush3.bf16.msra.mxu1 %v727_v7  ;;  %v744_v24 = vld [vmem:[%s948_s1 + $0x70] sm:$0xff]   ;;  %v748_v28 = vld [vmem:[%s948_s1 + $0x78] sm:$0xff]   ;;  %v755_v34 = vld [vmem:[%s948_s1 + $0x100] sm:$0xff]  }
   0xa   :  { %678 = vmatprep.subr.bf16.mxu1 %v730_v10  ;;  %v745_v25 = vld [vmem:[%s948_s1 + $0x30] sm:$0xff]   ;;  %v749_v29 = vld [vmem:[%s948_s1 + $0x38] sm:$0xff]   ;;  %v758_v36 = vld [vmem:[%s949_s0 + $0xc] ss:$20 sps:$4 sm:$0xff]  }
   0xb   :  { %651 = vmatpush3.bf16.msra.mxu0 %v729_v9  ;;  %v746_v26 = vld [vmem:[%s948_s1 + $0xf0] sm:$0xff]   ;;  %v750_v30 = vld [vmem:[%s948_s1 + $0xf8] sm:$0xff]   ;;  %v759_v37 = vld [vmem:[%s948_s1 + $0x108] sm:$0xff]   ;;  %463 = vmatprep.mubr.bf16.mxu1 %v758_v36 }
   0xc   :  { %652 = vmatprep.subr.bf16.mxu0 %v732_v12  ;;  %v747_v27 = vld [vmem:[%s948_s1 + $0xb0] sm:$0xff]   ;;  %v753_v32 = vld [vmem:[%s949_s0 + $0x4] ss:$20 sps:$4 sm:$0xff]   ;;  %v756_v35 = vld [vmem:[%s949_s0 + $0x8] ss:$20 sps:$4 sm:$0xff]  }
   0xd   :  { %679 = vmatpush3.bf16.msra.mxu1 %v731_v11  ;;  %v751_v31 = vld [vmem:[%s949_s0] ss:$20 sps:$4 sm:$0xff]   ;;  %v754_v33 = vld [vmem:[%s948_s1 + $0xb8] sm:$0xff]   ;;  %414 = vmatprep.mubr.bf16.mxu0 %v753_v32  ;;  %v766_v42 = vld [vmem:[%s949_s0 + $0x30] ss:$20 sps:$4 sm:$0xff]  }
   0xe   :  { %680 = vmatprep.subr.bf16.mxu1 %v734_v14  ;;  %v760_v38 = vld [vmem:[%s949_s0 + $0x2c] ss:$20 sps:$4 sm:$0xff]   ;;  %v762_v39 = vld [vmem:[%s949_s0 + $0x28] ss:$20 sps:$4 sm:$0xff]   ;;  %v763_v40 = vld [vmem:[%s948_s1 + $0x110] sm:$0xff]  }
   0xf   :  { %653 = vmatpush3.bf16.msra.mxu0 %v733_v13  ;;  %v764_v41 = vld [vmem:[%s949_s0 + $0x34] ss:$20 sps:$4 sm:$0xff]   ;;  %v767_v43 = vld [vmem:[%s948_s1 + $0x118] sm:$0xff]   ;;  %v768_v44 = vld [vmem:[%s949_s0 + $0x10] ss:$20 sps:$4 sm:$0xff]  }
  0x10   :  { %654 = vmatprep.subr.bf16.mxu0 %v736_v16  ;;  %v769_v45 = vld [vmem:[%s949_s0 + $0x38] ss:$20 sps:$4 sm:$0xff]   ;;  %v569_v47 = vld [vmem:[%s950_s2] ss:$0 sm:$0xff] }
  0x11   :  { %681 = vmatpush3.bf16.msra.mxu1 %v735_v15  ;;  %v644_v10 = vld [vmem:[%s951_s3 + $0x8] sm:$0xff]   ;;  %v627_v13 = vld [vmem:[%s951_s3] sm:$0xff]  }
  0x12   :  { %682 = vmatprep.subr.bf16.mxu1 %v738_v18  ;;  %v632_v16 = vunpack.c.l.bf16 %v644_v10  ;;  %v628_v18 = vunpack.c.l.bf16 %v627_v13 }
  0x13   :  { %655 = vmatpush3.bf16.msra.mxu0 %v737_v17 }
  0x14   :  { %656 = vmatprep.subr.bf16.mxu0 %v740_v20 }
  0x15   :  { %683 = vmatpush3.bf16.msra.mxu1 %v739_v19 }
  0x16   :  { %684 = vmatprep.subr.bf16.mxu1 %v742_v22  ;;  %v633_v22 = vunpack.c.h.bf16 %v644_v10 }
  0x17   :  { %657 = vmatpush3.bf16.msra.mxu0 %v741_v21 }
  0x18   :  { %658 = vmatprep.subr.bf16.mxu0 %v744_v24 }
  0x19   :  { %685 = vmatpush3.bf16.msra.mxu1 %v743_v23 }
  0x1a   :  { %686 = vmatprep.subr.bf16.mxu1 %v746_v26 }
  0x1b   :  { %659 = vmatpush3.bf16.msra.mxu0 %v745_v25  ;;  %v629_v25 = vunpack.c.h.bf16 %v627_v13 }
  0x1c   :  { %660 = vmatprep.subr.bf16.mxu0 %v748_v28 }
  0x1d   :  { %687 = vmatpush3.bf16.msra.mxu1 %v747_v27 }
  0x1e   :  { %688 = vmatprep.subr.bf16.mxu1 %v750_v30 }
  0x1f   :  { %661 = vmatpush3.bf16.msra.mxu0 %v749_v29 }
  0x20   :  { %708 = vmatprep.subr.bf16.mxu0 %v755_v34 }
  0x21   :  { %689 = vmatpush3.bf16.msra.mxu1 %v754_v33 }
  0x22   :  { %415 = vmatmul.mubr.bf16.vlgmr.msra.gmra.mrb[0].mxu0 %v751_v31 }
  0x23   :  { %709 = vmatpush3.bf16.msra.mxu0 %v755_v34  ;;  %422 = vmatprep.mubr.bf16.mxu0 %v760_v38 }
  0x24   :  { %464 = vmatmul.mubr.bf16.vlgmr.msra.gmra.mrb[0].mxu1 %v756_v35  ;;  %710 = vmatprep.subr.bf16.mxu0 %v759_v37 }
  0x25   :  { %471 = vmatprep.mubr.bf16.mxu1 %v764_v41 }
  0x27   :  { %711 = vmatpush3.bf16.msra.mxu0 %v759_v37 }
  0x28   :  { %712 = vmatprep.subr.bf16.mxu0 %v763_v40 }
  0x2a   :  { %423 = vmatmul.mubr.bf16.gmra.mrb[4].mxu0 %v762_v39 }
  0x2b   :  { %716 = vmatprep.mubr.msk.bf16.mxu0 %vm375_vm0, %v768_v44  ;;  %713 = vmatpush3.bf16.msra.mxu0 %v763_v40 }
  0x2c   :  { %472 = vmatmul.mubr.bf16.gmra.mrb[4].mxu1 %v766_v42  ;;  %714 = vmatprep.subr.bf16.mxu0 %v767_v43 }
  0x2f   :  { %715 = vmatpush3.bf16.msra.mxu0 %v767_v43 }
  0x32   :  { %717 = vmatmul.mubr.msk.bf16.vlgmr.msra.gmra.mrb[8].mxu0 %vm375_vm0, %v769_v45 }
  0xf5   :  { %v662_v46 = vpop.f32.mrb[0].mxu0 }
  0xf6   :  { %v663_v48 = vpop.f32.mrb[1].mxu0 }
  0xf7   :  { %v664_v49 = vadd.f32 %v663_v48, %v662_v46  ;;  %v665_v50 = vpop.f32.mrb[2].mxu0  ;;  %v690_v51 = vpop.f32.mrb[0].mxu1 }
  0xf8   :  { %v666_v52 = vpop.f32.mrb[3].mxu0  ;;  %v691_v55 = vpop.f32.mrb[1].mxu1 }
  0xf9   :  { %v417_v53 = vadd.f32 %v664_v49, %v569_v47  ;;  %v667_v54 = vadd.f32 %v666_v52, %v665_v50  ;;  %v692_v56 = vadd.f32 %v691_v55, %v690_v51  ;;  %v693_v57 = vpop.f32.mrb[2].mxu1 }
  0xfa   :  { %v694_v59 = vpop.f32.mrb[3].mxu1 }
  0xfb   :  { %v420_v58 = vadd.f32 %v667_v54, %v569_v47  ;;  %v695_v60 = vadd.f32 %v694_v59, %v693_v57  ;;  %v466_v61 = vadd.f32 %v692_v56, %v417_v53 }
  0xfd   :  { %v668_v62 = vpop.f32.mrb[4].mxu0  ;;  %v469_v0 = vadd.f32 %v695_v60, %v420_v58 }
  0xfe   :  { %v669_v63 = vpop.f32.mrb[5].mxu0 }
  0xff   :  { %v670_v1 = vadd.f32 %v669_v63, %v668_v62  ;;  %v671_v2 = vpop.f32.mrb[6].mxu0  ;;  %v696_v3 = vpop.f32.mrb[4].mxu1 }
 0x100   :  { %v672_v4 = vpop.f32.mrb[7].mxu0  ;;  %v697_v7 = vpop.f32.mrb[5].mxu1 }
 0x101   :  { %v425_v5 = vadd.f32 %v670_v1, %v569_v47  ;;  %v673_v6 = vadd.f32 %v672_v4, %v671_v2  ;;  %v698_v8 = vadd.f32 %v697_v7, %v696_v3  ;;  %v699_v9 = vpop.f32.mrb[6].mxu1 }
 0x102   :  { %v700_v12 = vpop.f32.mrb[7].mxu1 }
 0x103   :  { %v428_v11 = vadd.f32 %v673_v6, %v569_v47  ;;  %v701_v14 = vadd.f32 %v700_v12, %v699_v9  ;;  %v474_v15 = vadd.f32 %v698_v8, %v425_v5 }
 0x105   :  { %v718_v17 = vpop.f32.mrb[8].mxu0  ;;  %v477_v19 = vadd.f32 %v701_v14, %v428_v11 }
 0x106   :  { %v523_v20 = vadd.f32 %v718_v17, %v474_v15  ;;  %v514_v21 = vpop.f32.mrb[9].mxu0 }
 0x107   :  { %v515_v23 = vadd.f32 %v514_v21, %v466_v61  ;;  %v719_v24 = vpop.f32.mrb[10].mxu0 }
 0x108   :  { %v539_v26 = vadd.f32 %v632_v16, %v523_v20  ;;  %v526_v27 = vadd.f32 %v719_v24, %v477_v19  ;;  %v517_v28 = vpop.f32.mrb[11].mxu0 }
 0x109   :  { %v537_v29 = vadd.f32 %v628_v18, %v515_v23  ;;  %v518_v30 = vadd.f32 %v517_v28, %v469_v0 }
 0x10a   :  { %v540_v31 = vadd.f32 %v633_v22, %v526_v27  ;;  %v543_v33 = vmax.f32 %v539_v26, 0.0 }
 0x10b   :  { %v538_v32 = vadd.f32 %v629_v25, %v518_v30  ;;  %v541_v35 = vmax.f32 %v537_v29, 0.0 }
 0x10c   :  { %v544_v34 = vmax.f32 %v540_v31, 0.0 }
 0x10d   :  { %v542_v36 = vmax.f32 %v538_v32, 0.0 }
 0x10e   :  { %v642_v37 = vpack.c.bf16 %v544_v34, %v543_v33 }
 0x10f   :  { %v637_v38 = vpack.c.bf16 %v542_v36, %v541_v35 }
 0x110   :  { %645 = vst [vmem:[%s952_s4 + $0x8] sm:$0xff] %v642_v37  }
 0x111   :  { %638 = vst [vmem:[%s952_s4] sm:$0xff] %v637_v38  }

// kernel: forward.23
= control target key start
LH: loop header
LB: loop body
LE: loop exit
PB: predicated region body
PF: predicated region fallthrough
CT: control target
= control target key end

     0   :  { %v160_v0 = vmov 0.0   ;;  %vm161_vm0 = vmmov 0   ;;  %vm61_vm1 = vcmask 523264   ;;  %s203_s1 = inlined_call_operand.vmem [shape: bf16[64,128], index: 1, kind: input, shape index: {}]   ;;  %s204_s0 = inlined_call_operand.vmem [shape: bf16[16,64], index: 0, kind: input, shape index: {}]   ;;  %s205_s2 = inlined_call_operand.vmem [shape: f32[1,128], index: 2, kind: input, shape index: {}]   ;;  %s206_s3 = inlined_call_operand.vmem [shape: bf16[16,128], index: 3, kind: output, shape index: {}]  }
   0x1   :  { %141 = vmatprep.subr.bf16.mxu0 %v160_v0  ;;  %v155_v1 = vld [vmem:[%s203_s1] sm:$0xff]   ;;  %149 = vmatprep.mubr.msk.bf16.mxu0 %vm161_vm0, %v160_v0  ;;  %v156_v2 = vld [vmem:[%s203_s1 + $0x8] sm:$0xff]   ;;  %v157_v3 = vld [vmem:[%s203_s1 + $0x10] sm:$0xff]  }
   0x2   :  { %142 = vmatpush3.bf16.msra.mxu0 %v155_v1  ;;  %v158_v4 = vld [vmem:[%s203_s1 + $0x18] sm:$0xff]   ;;  %v159_v5 = vld [vmem:[%s204_s0] sm:$0xff]  }
   0x3   :  { %143 = vmatprep.subr.bf16.mxu0 %v160_v0  ;;  %v120_v6 = vld [vmem:[%s205_s2] ss:$0 sm:$0xff] }
   0x6   :  { %144 = vmatpush3.bf16.msra.mxu0 %v156_v2 }
   0x7   :  { %145 = vmatprep.subr.bf16.mxu0 %v160_v0 }
   0xa   :  { %146 = vmatpush3.bf16.msra.mxu0 %v157_v3 }
   0xb   :  { %147 = vmatprep.subr.bf16.mxu0 %v160_v0 }
   0xe   :  { %148 = vmatpush3.bf16.msra.mxu0 %v158_v4 }
  0x11   :  { %150 = vmatmul.mubr.msk.bf16.vlgmr.msra.gmra.mrb[0].mxu0 %vm61_vm1, %v159_v5 }
  0xe4   :  { %v99_v7 = vpop.f32.mrb[0].mxu0 }
  0xe5   :  { %v151_v8 = vpop.f32.mrb[1].mxu0  ;;  %v100_v10 = vadd.f32 %v120_v6, %v99_v7 }
  0xe6   :  { %v102_v9 = vpop.f32.mrb[2].mxu0 }
  0xe7   :  { %v103_v11 = vadd.f32 %v120_v6, %v102_v9  ;;  %v152_v12 = vpop.f32.mrb[3].mxu0 }
  0xe9   :  { %v134_v13 = vpack.c.bf16 %v103_v11, %v100_v10 }
  0xeb   :  { %135 = vst [vmem:[%s206_s3] sm:$0xff] %v134_v13  }

// kernel: forward.22
= control target key start
LH: loop header
LB: loop body
LE: loop exit
PB: predicated region body
PF: predicated region fallthrough
CT: control target
= control target key end

     0   :  { %v642_v33 = vmov 0.0   ;;  %vm643_vm0 = vmmov 0   ;;  %vm341_vm1 = vcmask 523264   ;;  %s793_s1 = inlined_call_operand.vmem [shape: bf16[576,128], index: 1, kind: input, shape index: {}]   ;;  %s794_s0 = inlined_call_operand.vmem [shape: bf16[16,576], index: 0, kind: input, shape index: {}]   ;;  %s795_s2 = inlined_call_operand.vmem [shape: f32[1,128], index: 2, kind: input, shape index: {}]   ;;  %s796_s3 = inlined_call_operand.vmem [shape: bf16[16,128], index: 3, kind: output, shape index: {}]  }
   0x1   :  { %v599_v0 = vld [vmem:[%s793_s1 + $0x40] sm:$0xff]   ;;  %v603_v4 = vld [vmem:[%s793_s1 + $0x48] sm:$0xff]   ;;  %v607_v8 = vld [vmem:[%s793_s1 + $0x50] sm:$0xff]  }
   0x2   :  { %v600_v1 = vld [vmem:[%s793_s1] sm:$0xff]   ;;  %536 = vmatprep.subr.bf16.mxu0 %v599_v0  ;;  %v604_v5 = vld [vmem:[%s793_s1 + $0x8] sm:$0xff]   ;;  %v608_v9 = vld [vmem:[%s793_s1 + $0x10] sm:$0xff]  }
   0x3   :  { %v601_v2 = vld [vmem:[%s793_s1 + $0xc0] sm:$0xff]   ;;  %537 = vmatpush3.bf16.msra.mxu0 %v600_v1  ;;  %v605_v6 = vld [vmem:[%s793_s1 + $0xc8] sm:$0xff]   ;;  %v609_v10 = vld [vmem:[%s793_s1 + $0xd0] sm:$0xff]  }
   0x4   :  { %v602_v3 = vld [vmem:[%s793_s1 + $0x80] sm:$0xff]   ;;  %558 = vmatprep.subr.bf16.mxu1 %v601_v2  ;;  %538 = vmatprep.subr.bf16.mxu0 %v603_v4  ;;  %v606_v7 = vld [vmem:[%s793_s1 + $0x88] sm:$0xff]   ;;  %v610_v11 = vld [vmem:[%s793_s1 + $0x90] sm:$0xff]  }
   0x5   :  { %559 = vmatpush3.bf16.msra.mxu1 %v602_v3  ;;  %v611_v12 = vld [vmem:[%s793_s1 + $0x58] sm:$0xff]   ;;  %v615_v16 = vld [vmem:[%s793_s1 + $0x60] sm:$0xff]   ;;  %v619_v20 = vld [vmem:[%s793_s1 + $0x68] sm:$0xff]  }
   0x6   :  { %560 = vmatprep.subr.bf16.mxu1 %v605_v6  ;;  %v612_v13 = vld [vmem:[%s793_s1 + $0x18] sm:$0xff]   ;;  %v616_v17 = vld [vmem:[%s793_s1 + $0x20] sm:$0xff]   ;;  %v620_v21 = vld [vmem:[%s793_s1 + $0x28] sm:$0xff]  }
   0x7   :  { %539 = vmatpush3.bf16.msra.mxu0 %v604_v5  ;;  %v613_v14 = vld [vmem:[%s793_s1 + $0xd8] sm:$0xff]   ;;  %v617_v18 = vld [vmem:[%s793_s1 + $0xe0] sm:$0xff]   ;;  %v621_v22 = vld [vmem:[%s793_s1 + $0xe8] sm:$0xff]  }
   0x8   :  { %540 = vmatprep.subr.bf16.mxu0 %v607_v8  ;;  %v614_v15 = vld [vmem:[%s793_s1 + $0x98] sm:$0xff]   ;;  %v618_v19 = vld [vmem:[%s793_s1 + $0xa0] sm:$0xff]   ;;  %v622_v23 = vld [vmem:[%s793_s1 + $0xa8] sm:$0xff]  }
   0x9   :  { %561 = vmatpush3.bf16.msra.mxu1 %v606_v7  ;;  %v623_v24 = vld [vmem:[%s793_s1 + $0x70] sm:$0xff]   ;;  %v627_v28 = vld [vmem:[%s793_s1 + $0x78] sm:$0xff]   ;;  %v636_v36 = vld [vmem:[%s794_s0 + $0xc] ss:$20 sps:$4 sm:$0xff]  }
   0xa   :  { %562 = vmatprep.subr.bf16.mxu1 %v609_v10  ;;  %v624_v25 = vld [vmem:[%s793_s1 + $0x30] sm:$0xff]   ;;  %v628_v29 = vld [vmem:[%s793_s1 + $0x38] sm:$0xff]   ;;  %v637_v37 = vld [vmem:[%s793_s1 + $0x100] sm:$0xff]   ;;  %418 = vmatprep.mubr.bf16.mxu1 %v636_v36 }
   0xb   :  { %541 = vmatpush3.bf16.msra.mxu0 %v608_v9  ;;  %v625_v26 = vld [vmem:[%s793_s1 + $0xf0] sm:$0xff]   ;;  %v629_v30 = vld [vmem:[%s793_s1 + $0xf8] sm:$0xff]   ;;  %v638_v38 = vld [vmem:[%s793_s1 + $0x108] sm:$0xff]  }
   0xc   :  { %542 = vmatprep.subr.bf16.mxu0 %v611_v12  ;;  %v626_v27 = vld [vmem:[%s793_s1 + $0xb0] sm:$0xff]   ;;  %v632_v32 = vld [vmem:[%s794_s0 + $0x4] ss:$20 sps:$4 sm:$0xff]   ;;  %v634_v35 = vld [vmem:[%s794_s0 + $0x8] ss:$20 sps:$4 sm:$0xff]  }
   0xd   :  { %563 = vmatpush3.bf16.msra.mxu1 %v610_v11  ;;  %v630_v31 = vld [vmem:[%s794_s0] ss:$20 sps:$4 sm:$0xff]   ;;  %v633_v34 = vld [vmem:[%s793_s1 + $0xb8] sm:$0xff]   ;;  %377 = vmatprep.mubr.bf16.mxu0 %v632_v32  ;;  %v641_v41 = vld [vmem:[%s794_s0 + $0x10] ss:$20 sps:$4 sm:$0xff]  }
   0xe   :  { %564 = vmatprep.subr.bf16.mxu1 %v613_v14  ;;  %v639_v39 = vld [vmem:[%s793_s1 + $0x110] sm:$0xff]   ;;  %v640_v40 = vld [vmem:[%s793_s1 + $0x118] sm:$0xff]   ;;  %v484_v43 = vld [vmem:[%s795_s2] ss:$0 sm:$0xff] }
   0xf   :  { %543 = vmatpush3.bf16.msra.mxu0 %v612_v13 }
  0x10   :  { %544 = vmatprep.subr.bf16.mxu0 %v615_v16 }
  0x11   :  { %565 = vmatpush3.bf16.msra.mxu1 %v614_v15 }
  0x12   :  { %566 = vmatprep.subr.bf16.mxu1 %v617_v18 }
  0x13   :  { %545 = vmatpush3.bf16.msra.mxu0 %v616_v17 }
  0x14   :  { %546 = vmatprep.subr.bf16.mxu0 %v619_v20 }
  0x15   :  { %567 = vmatpush3.bf16.msra.mxu1 %v618_v19 }
  0x16   :  { %568 = vmatprep.subr.bf16.mxu1 %v621_v22 }
  0x17   :  { %547 = vmatpush3.bf16.msra.mxu0 %v620_v21 }
  0x18   :  { %548 = vmatprep.subr.bf16.mxu0 %v623_v24 }
  0x19   :  { %569 = vmatpush3.bf16.msra.mxu1 %v622_v23 }
  0x1a   :  { %570 = vmatprep.subr.bf16.mxu1 %v625_v26 }
  0x1b   :  { %549 = vmatpush3.bf16.msra.mxu0 %v624_v25 }
  0x1c   :  { %550 = vmatprep.subr.bf16.mxu0 %v627_v28 }
  0x1d   :  { %571 = vmatpush3.bf16.msra.mxu1 %v626_v27 }
  0x1e   :  { %572 = vmatprep.subr.bf16.mxu1 %v629_v30 }
  0x1f   :  { %551 = vmatpush3.bf16.msra.mxu0 %v628_v29 }
  0x20   :  { %585 = vmatprep.subr.bf16.mxu0 %v642_v33 }
  0x21   :  { %573 = vmatpush3.bf16.msra.mxu1 %v633_v34 }
  0x22   :  { %378 = vmatmul.mubr.bf16.vlgmr.msra.gmra.mrb[0].mxu0 %v630_v31 }
  0x23   :  { %593 = vmatprep.mubr.msk.bf16.mxu0 %vm643_vm0, %v642_v33  ;;  %586 = vmatpush3.bf16.msra.mxu0 %v637_v37 }
  0x24   :  { %419 = vmatmul.mubr.bf16.vlgmr.msra.gmra.mrb[0].mxu1 %v634_v35  ;;  %587 = vmatprep.subr.bf16.mxu0 %v642_v33 }
  0x27   :  { %588 = vmatpush3.bf16.msra.mxu0 %v638_v38 }
  0x28   :  { %589 = vmatprep.subr.bf16.mxu0 %v642_v33 }
  0x2b   :  { %590 = vmatpush3.bf16.msra.mxu0 %v639_v39 }
  0x2c   :  { %591 = vmatprep.subr.bf16.mxu0 %v642_v33 }
  0x2f   :  { %592 = vmatpush3.bf16.msra.mxu0 %v640_v40 }
  0x32   :  { %594 = vmatmul.mubr.msk.bf16.vlgmr.msra.gmra.mrb[4].mxu0 %vm341_vm1, %v641_v41 }
  0xf5   :  { %v552_v42 = vpop.f32.mrb[0].mxu0 }
  0xf6   :  { %v553_v44 = vpop.f32.mrb[1].mxu0 }
  0xf7   :  { %v554_v45 = vadd.f32 %v553_v44, %v552_v42  ;;  %v555_v46 = vpop.f32.mrb[2].mxu0  ;;  %v574_v47 = vpop.f32.mrb[0].mxu1 }
  0xf8   :  { %v556_v48 = vpop.f32.mrb[3].mxu0  ;;  %v575_v51 = vpop.f32.mrb[1].mxu1 }
  0xf9   :  { %v380_v49 = vadd.f32 %v554_v45, %v484_v43  ;;  %v557_v50 = vadd.f32 %v556_v48, %v555_v46  ;;  %v576_v52 = vadd.f32 %v575_v51, %v574_v47  ;;  %v577_v53 = vpop.f32.mrb[2].mxu1 }
  0xfa   :  { %v578_v55 = vpop.f32.mrb[3].mxu1 }
  0xfb   :  { %v383_v54 = vadd.f32 %v557_v50, %v484_v43  ;;  %v579_v56 = vadd.f32 %v578_v55, %v577_v53  ;;  %v421_v57 = vadd.f32 %v576_v52, %v380_v49 }
  0xfd   :  { %v424_v58 = vadd.f32 %v579_v56, %v383_v54 }
 0x105   :  { %v461_v59 = vpop.f32.mrb[4].mxu0 }
 0x106   :  { %v462_v60 = vadd.f32 %v461_v59, %v421_v57  ;;  %v595_v61 = vpop.f32.mrb[5].mxu0 }
 0x107   :  { %v464_v62 = vpop.f32.mrb[6].mxu0 }
 0x108   :  { %v465_v63 = vadd.f32 %v464_v62, %v424_v58  ;;  %v596_v0 = vpop.f32.mrb[7].mxu0  ;;  %v468_v1 = vmax.f32 %v462_v60, 0.0 }
 0x10a   :  { %v469_v2 = vmax.f32 %v465_v63, 0.0 }
 0x10c   :  { %v534_v3 = vpack.c.bf16 %v469_v2, %v468_v1 }
 0x10e   :  { %535 = vst [vmem:[%s796_s3] sm:$0xff] %v534_v3  }

// kernel: forward.24
= control target key start
LH: loop header
LB: loop body
LE: loop exit
PB: predicated region body
PF: predicated region fallthrough
CT: control target
= control target key end

     0   :  { %vm1184_vm0 = vmmov 0   ;;  %s1462_s1 = inlined_call_operand.vmem [shape: bf16[1152,128], index: 1, kind: input, shape index: {}]   ;;  %s1463_s0 = inlined_call_operand.vmem [shape: bf16[16,1152], index: 0, kind: input, shape index: {}]   ;;  %s1464_s2 = inlined_call_operand.vmem [shape: f32[1,128], index: 2, kind: input, shape index: {}]   ;;  %s1465_s3 = inlined_call_operand.vmem [shape: bf16[16,128], index: 3, kind: input, shape index: {}]   ;;  %s1466_s4 = inlined_call_operand.vmem [shape: bf16[16,128], index: 4, kind: output, shape index: {}]  }
   0x1   :  { %v1098_v0 = vld [vmem:[%s1462_s1 + $0x40] sm:$0xff]   ;;  %v1102_v4 = vld [vmem:[%s1462_s1 + $0x48] sm:$0xff]   ;;  %v1106_v8 = vld [vmem:[%s1462_s1 + $0x50] sm:$0xff]  }
   0x2   :  { %v1099_v1 = vld [vmem:[%s1462_s1] sm:$0xff]   ;;  %979 = vmatprep.subr.bf16.mxu0 %v1098_v0  ;;  %v1103_v5 = vld [vmem:[%s1462_s1 + $0x8] sm:$0xff]   ;;  %v1107_v9 = vld [vmem:[%s1462_s1 + $0x10] sm:$0xff]  }
   0x3   :  { %v1100_v2 = vld [vmem:[%s1462_s1 + $0xc0] sm:$0xff]   ;;  %980 = vmatpush3.bf16.msra.mxu0 %v1099_v1  ;;  %v1104_v6 = vld [vmem:[%s1462_s1 + $0xc8] sm:$0xff]   ;;  %v1108_v10 = vld [vmem:[%s1462_s1 + $0xd0] sm:$0xff]  }
   0x4   :  { %v1101_v3 = vld [vmem:[%s1462_s1 + $0x80] sm:$0xff]   ;;  %1001 = vmatprep.subr.bf16.mxu1 %v1100_v2  ;;  %981 = vmatprep.subr.bf16.mxu0 %v1102_v4  ;;  %v1105_v7 = vld [vmem:[%s1462_s1 + $0x88] sm:$0xff]   ;;  %v1109_v11 = vld [vmem:[%s1462_s1 + $0x90] sm:$0xff]  }
   0x5   :  { %1002 = vmatpush3.bf16.msra.mxu1 %v1101_v3  ;;  %v1110_v12 = vld [vmem:[%s1462_s1 + $0x58] sm:$0xff]   ;;  %v1114_v16 = vld [vmem:[%s1462_s1 + $0x60] sm:$0xff]   ;;  %v1118_v20 = vld [vmem:[%s1462_s1 + $0x68] sm:$0xff]  }
   0x6   :  { %1003 = vmatprep.subr.bf16.mxu1 %v1104_v6  ;;  %v1111_v13 = vld [vmem:[%s1462_s1 + $0x18] sm:$0xff]   ;;  %v1115_v17 = vld [vmem:[%s1462_s1 + $0x20] sm:$0xff]   ;;  %v1119_v21 = vld [vmem:[%s1462_s1 + $0x28] sm:$0xff]   ;;  %v1183_v6 = vmov 0.0  }
   0x7   :  { %982 = vmatpush3.bf16.msra.mxu0 %v1103_v5  ;;  %v1112_v14 = vld [vmem:[%s1462_s1 + $0xd8] sm:$0xff]   ;;  %v1116_v18 = vld [vmem:[%s1462_s1 + $0xe0] sm:$0xff]   ;;  %v1120_v22 = vld [vmem:[%s1462_s1 + $0xe8] sm:$0xff]  }
   0x8   :  { %983 = vmatprep.subr.bf16.mxu0 %v1106_v8  ;;  %v1113_v15 = vld [vmem:[%s1462_s1 + $0x98] sm:$0xff]   ;;  %v1117_v19 = vld [vmem:[%s1462_s1 + $0xa0] sm:$0xff]   ;;  %v1121_v23 = vld [vmem:[%s1462_s1 + $0xa8] sm:$0xff]  }
   0x9   :  { %1004 = vmatpush3.bf16.msra.mxu1 %v1105_v7  ;;  %v1122_v24 = vld [vmem:[%s1462_s1 + $0x70] sm:$0xff]   ;;  %v1126_v28 = vld [vmem:[%s1462_s1 + $0x78] sm:$0xff]   ;;  %v1129_v31 = vld [vmem:[%s1463_s0] ss:$36 sps:$4 sm:$0xff]  }
   0xa   :  { %1005 = vmatprep.subr.bf16.mxu1 %v1108_v10  ;;  %v1123_v25 = vld [vmem:[%s1462_s1 + $0x30] sm:$0xff]   ;;  %v1127_v29 = vld [vmem:[%s1462_s1 + $0x38] sm:$0xff]   ;;  %v1131_v32 = vld [vmem:[%s1463_s0 + $0x4] ss:$36 sps:$4 sm:$0xff]  }
   0xb   :  { %984 = vmatpush3.bf16.msra.mxu0 %v1107_v9  ;;  %v1124_v26 = vld [vmem:[%s1462_s1 + $0xf0] sm:$0xff]   ;;  %v1128_v30 = vld [vmem:[%s1462_s1 + $0xf8] sm:$0xff]   ;;  %689 = vmatprep.mubr.bf16.mxu0 %v1131_v32  ;;  %v1133_v34 = vld [vmem:[%s1462_s1 + $0x140] sm:$0xff]  }
   0xc   :  { %985 = vmatprep.subr.bf16.mxu0 %v1110_v12  ;;  %v1125_v27 = vld [vmem:[%s1462_s1 + $0xb0] sm:$0xff]   ;;  %v1132_v33 = vld [vmem:[%s1462_s1 + $0xb8] sm:$0xff]   ;;  %v1134_v35 = vld [vmem:[%s1463_s0 + $0x8] ss:$36 sps:$4 sm:$0xff]  }
   0xd   :  { %1006 = vmatpush3.bf16.msra.mxu1 %v1109_v11  ;;  %v1136_v36 = vld [vmem:[%s1463_s0 + $0xc] ss:$36 sps:$4 sm:$0xff]   ;;  %v1137_v37 = vld [vmem:[%s1462_s1 + $0x100] sm:$0xff]   ;;  %v1148_v48 = vld [vmem:[%s1462_s1 + $0x158] sm:$0xff]  }
   0xe   :  { %1007 = vmatprep.subr.bf16.mxu1 %v1112_v14  ;;  %730 = vmatprep.mubr.bf16.mxu1 %v1136_v36  ;;  %v1138_v38 = vld [vmem:[%s1462_s1 + $0x1c0] sm:$0xff]   ;;  %v1140_v40 = vld [vmem:[%s1462_s1 + $0x148] sm:$0xff]   ;;  %v1144_v44 = vld [vmem:[%s1462_s1 + $0x150] sm:$0xff]  }
   0xf   :  { %986 = vmatpush3.bf16.msra.mxu0 %v1111_v13  ;;  %v1139_v39 = vld [vmem:[%s1462_s1 + $0x180] sm:$0xff]   ;;  %v1141_v41 = vld [vmem:[%s1462_s1 + $0x108] sm:$0xff]   ;;  %v1145_v45 = vld [vmem:[%s1462_s1 + $0x110] sm:$0xff]  }
  0x10   :  { %987 = vmatprep.subr.bf16.mxu0 %v1114_v16  ;;  %v1142_v42 = vld [vmem:[%s1462_s1 + $0x1c8] sm:$0xff]   ;;  %v1146_v46 = vld [vmem:[%s1462_s1 + $0x1d0] sm:$0xff]   ;;  %v1149_v49 = vld [vmem:[%s1462_s1 + $0x118] sm:$0xff]  }
  0x11   :  { %1008 = vmatpush3.bf16.msra.mxu1 %v1113_v15  ;;  %v1143_v43 = vld [vmem:[%s1462_s1 + $0x188] sm:$0xff]   ;;  %v1147_v47 = vld [vmem:[%s1462_s1 + $0x190] sm:$0xff]   ;;  %v1150_v50 = vld [vmem:[%s1462_s1 + $0x1d8] sm:$0xff]  }
  0x12   :  { %1009 = vmatprep.subr.bf16.mxu1 %v1116_v18  ;;  %v1151_v51 = vld [vmem:[%s1462_s1 + $0x198] sm:$0xff]   ;;  %v1152_v52 = vld [vmem:[%s1462_s1 + $0x160] sm:$0xff]   ;;  %v1156_v56 = vld [vmem:[%s1462_s1 + $0x168] sm:$0xff]  }
  0x13   :  { %988 = vmatpush3.bf16.msra.mxu0 %v1115_v17  ;;  %v1153_v53 = vld [vmem:[%s1462_s1 + $0x120] sm:$0xff]   ;;  %v1157_v57 = vld [vmem:[%s1462_s1 + $0x128] sm:$0xff]   ;;  %v1160_v60 = vld [vmem:[%s1462_s1 + $0x170] sm:$0xff]  }
  0x14   :  { %989 = vmatprep.subr.bf16.mxu0 %v1118_v20  ;;  %v1154_v54 = vld [vmem:[%s1462_s1 + $0x1e0] sm:$0xff]   ;;  %v1158_v58 = vld [vmem:[%s1462_s1 + $0x1e8] sm:$0xff]   ;;  %v1161_v61 = vld [vmem:[%s1462_s1 + $0x130] sm:$0xff]  }
  0x15   :  { %1010 = vmatpush3.bf16.msra.mxu1 %v1117_v19  ;;  %v1155_v55 = vld [vmem:[%s1462_s1 + $0x1a0] sm:$0xff]   ;;  %v1159_v59 = vld [vmem:[%s1462_s1 + $0x1a8] sm:$0xff]   ;;  %v1162_v62 = vld [vmem:[%s1462_s1 + $0x1f0] sm:$0xff]  }
  0x16   :  { %1011 = vmatprep.subr.bf16.mxu1 %v1120_v22  ;;  %v1163_v63 = vld [vmem:[%s1462_s1 + $0x1b0] sm:$0xff]   ;;  %v1164_v0 = vld [vmem:[%s1462_s1 + $0x178] sm:$0xff]   ;;  %v1174_v9 = vld [vmem:[%s1462_s1 + $0x200] sm:$0xff]  }
  0x17   :  { %990 = vmatpush3.bf16.msra.mxu0 %v1119_v21  ;;  %v1165_v1 = vld [vmem:[%s1462_s1 + $0x138] sm:$0xff]   ;;  %v1167_v3 = vld [vmem:[%s1463_s0 + $0x10] ss:$36 sps:$4 sm:$0xff]   ;;  %v1175_v10 = vld [vmem:[%s1462_s1 + $0x208] sm:$0xff]  }
  0x18   :  { %991 = vmatprep.subr.bf16.mxu0 %v1122_v24  ;;  %v1166_v2 = vld [vmem:[%s1462_s1 + $0x1f8] sm:$0xff]   ;;  %v1176_v11 = vld [vmem:[%s1462_s1 + $0x210] sm:$0xff]   ;;  %v1178_v13 = vld [vmem:[%s1462_s1 + $0x220] sm:$0xff]  }
  0x19   :  { %1012 = vmatpush3.bf16.msra.mxu1 %v1121_v23  ;;  %v1169_v4 = vld [vmem:[%s1463_s0 + $0x14] ss:$36 sps:$4 sm:$0xff]   ;;  %v1173_v8 = vld [vmem:[%s1463_s0 + $0x1c] ss:$36 sps:$4 sm:$0xff]   ;;  %v1179_v14 = vld [vmem:[%s1462_s1 + $0x228] sm:$0xff]  }
  0x1a   :  { %1013 = vmatprep.subr.bf16.mxu1 %v1124_v26  ;;  %v1170_v5 = vld [vmem:[%s1462_s1 + $0x1b8] sm:$0xff]   ;;  %v1180_v15 = vld [vmem:[%s1462_s1 + $0x230] sm:$0xff]   ;;  %v1182_v17 = vld [vmem:[%s1463_s0 + $0x20] ss:$36 sps:$4 sm:$0xff]  }
  0x1b   :  { %992 = vmatpush3.bf16.msra.mxu0 %v1123_v25  ;;  %v1171_v7 = vld [vmem:[%s1463_s0 + $0x18] ss:$36 sps:$4 sm:$0xff]   ;;  %v884_v19 = vld [vmem:[%s1464_s2] ss:$0 sm:$0xff] }
  0x1c   :  { %993 = vmatprep.subr.bf16.mxu0 %v1126_v28  ;;  %v1177_v12 = vld [vmem:[%s1462_s1 + $0x218] sm:$0xff]  }
  0x1d   :  { %1014 = vmatpush3.bf16.msra.mxu1 %v1125_v27  ;;  %v1181_v16 = vld [vmem:[%s1462_s1 + $0x238] sm:$0xff]  }
  0x1e   :  { %1015 = vmatprep.subr.bf16.mxu1 %v1128_v30 }
  0x1f   :  { %994 = vmatpush3.bf16.msra.mxu0 %v1127_v29 }
  0x20   :  { %1023 = vmatprep.subr.bf16.mxu0 %v1133_v34 }
  0x21   :  { %1016 = vmatpush3.bf16.msra.mxu1 %v1132_v33 }
  0x22   :  { %690 = vmatmul.mubr.bf16.vlgmr.msra.gmra.mrb[0].mxu0 %v1129_v31  ;;  %1045 = vmatprep.subr.bf16.mxu1 %v1138_v38 }
  0x23   :  { %1024 = vmatpush3.bf16.msra.mxu0 %v1137_v37  ;;  %771 = vmatprep.mubr.bf16.mxu0 %v1169_v4 }
  0x24   :  { %731 = vmatmul.mubr.bf16.vlgmr.msra.gmra.mrb[0].mxu1 %v1134_v35  ;;  %1025 = vmatprep.subr.bf16.mxu0 %v1140_v40 }
  0x25   :  { %1046 = vmatpush3.bf16.msra.mxu1 %v1139_v39  ;;  %812 = vmatprep.mubr.bf16.mxu1 %v1173_v8 }
  0x26   :  { %1047 = vmatprep.subr.bf16.mxu1 %v1142_v42 }
  0x27   :  { %1026 = vmatpush3.bf16.msra.mxu0 %v1141_v41 }
  0x28   :  { %1027 = vmatprep.subr.bf16.mxu0 %v1144_v44 }
  0x29   :  { %1048 = vmatpush3.bf16.msra.mxu1 %v1143_v43 }
  0x2a   :  { %1049 = vmatprep.subr.bf16.mxu1 %v1146_v46 }
  0x2b   :  { %1028 = vmatpush3.bf16.msra.mxu0 %v1145_v45 }
  0x2c   :  { %1029 = vmatprep.subr.bf16.mxu0 %v1148_v48 }
  0x2d   :  { %1050 = vmatpush3.bf16.msra.mxu1 %v1147_v47 }
  0x2e   :  { %1051 = vmatprep.subr.bf16.mxu1 %v1150_v50 }
  0x2f   :  { %1030 = vmatpush3.bf16.msra.mxu0 %v1149_v49 }
  0x30   :  { %1031 = vmatprep.subr.bf16.mxu0 %v1152_v52 }
  0x31   :  { %1052 = vmatpush3.bf16.msra.mxu1 %v1151_v51  ;;  %v971_v51 = vld [vmem:[%s1465_s3] sm:$0xff]  }
  0x32   :  { %1053 = vmatprep.subr.bf16.mxu1 %v1154_v54  ;;  %v972_v52 = vunpack.c.l.bf16 %v971_v51 }
  0x33   :  { %1032 = vmatpush3.bf16.msra.mxu0 %v1153_v53 }
  0x34   :  { %1033 = vmatprep.subr.bf16.mxu0 %v1156_v56  ;;  %v973_v56 = vunpack.c.h.bf16 %v971_v51 }
  0x35   :  { %1054 = vmatpush3.bf16.msra.mxu1 %v1155_v55 }
  0x36   :  { %1055 = vmatprep.subr.bf16.mxu1 %v1158_v58 }
  0x37   :  { %1034 = vmatpush3.bf16.msra.mxu0 %v1157_v57 }
  0x38   :  { %1035 = vmatprep.subr.bf16.mxu0 %v1160_v60 }
  0x39   :  { %1056 = vmatpush3.bf16.msra.mxu1 %v1159_v59 }
  0x3a   :  { %1057 = vmatprep.subr.bf16.mxu1 %v1162_v62 }
  0x3b   :  { %1036 = vmatpush3.bf16.msra.mxu0 %v1161_v61 }
  0x3c   :  { %1037 = vmatprep.subr.bf16.mxu0 %v1164_v0 }
  0x3d   :  { %1058 = vmatpush3.bf16.msra.mxu1 %v1163_v63 }
  0x3e   :  { %1059 = vmatprep.subr.bf16.mxu1 %v1166_v2 }
  0x3f   :  { %1038 = vmatpush3.bf16.msra.mxu0 %v1165_v1 }
  0x40   :  { %1076 = vmatprep.subr.bf16.mxu0 %v1183_v6 }
  0x41   :  { %1060 = vmatpush3.bf16.msra.mxu1 %v1170_v5 }
  0x42   :  { %772 = vmatmul.mubr.bf16.vlgmr.msra.gmra.mrb[4].mxu0 %v1167_v3 }
  0x43   :  { %1092 = vmatprep.mubr.msk.bf16.mxu0 %vm1184_vm0, %v1183_v6  ;;  %1077 = vmatpush3.bf16.msra.mxu0 %v1174_v9 }
  0x44   :  { %813 = vmatmul.mubr.bf16.vlgmr.msra.gmra.mrb[4].mxu1 %v1171_v7  ;;  %1078 = vmatprep.subr.bf16.mxu0 %v1183_v6 }
  0x47   :  { %1079 = vmatpush3.bf16.msra.mxu0 %v1175_v10 }
  0x48   :  { %1080 = vmatprep.subr.bf16.mxu0 %v1183_v6 }
  0x4b   :  { %1081 = vmatpush3.bf16.msra.mxu0 %v1176_v11 }
  0x4c   :  { %1082 = vmatprep.subr.bf16.mxu0 %v1183_v6 }
  0x4f   :  { %1083 = vmatpush3.bf16.msra.mxu0 %v1177_v12 }
  0x50   :  { %1084 = vmatprep.subr.bf16.mxu0 %v1183_v6 }
  0x53   :  { %1085 = vmatpush3.bf16.msra.mxu0 %v1178_v13 }
  0x54   :  { %1086 = vmatprep.subr.bf16.mxu0 %v1183_v6 }
  0x57   :  { %1087 = vmatpush3.bf16.msra.mxu0 %v1179_v14 }
  0x58   :  { %1088 = vmatprep.subr.bf16.mxu0 %v1183_v6 }
  0x5b   :  { %1089 = vmatpush3.bf16.msra.mxu0 %v1180_v15 }
  0x5c   :  { %1090 = vmatprep.subr.bf16.mxu0 %v1183_v6 }
  0x5f   :  { %1091 = vmatpush3.bf16.msra.mxu0 %v1181_v16 }
  0x62   :  { %1093 = vmatmul.mubr.bf16.vlgmr.msra.gmra.mrb[8].mxu0 %v1182_v17 }
  0xf5   :  { %v995_v18 = vpop.f32.mrb[0].mxu0 }
  0xf6   :  { %v996_v20 = vpop.f32.mrb[1].mxu0 }
  0xf7   :  { %v997_v21 = vadd.f32 %v996_v20, %v995_v18  ;;  %v998_v22 = vpop.f32.mrb[2].mxu0  ;;  %v1017_v23 = vpop.f32.mrb[0].mxu1 }
  0xf8   :  { %v999_v24 = vpop.f32.mrb[3].mxu0  ;;  %v1018_v27 = vpop.f32.mrb[1].mxu1 }
  0xf9   :  { %v692_v25 = vadd.f32 %v997_v21, %v884_v19  ;;  %v1000_v26 = vadd.f32 %v999_v24, %v998_v22  ;;  %v1019_v28 = vadd.f32 %v1018_v27, %v1017_v23  ;;  %v1020_v29 = vpop.f32.mrb[2].mxu1 }
  0xfa   :  { %v1021_v31 = vpop.f32.mrb[3].mxu1 }
  0xfb   :  { %v695_v30 = vadd.f32 %v1000_v26, %v884_v19  ;;  %v733_v32 = vadd.f32 %v1019_v28, %v692_v25  ;;  %v1022_v33 = vadd.f32 %v1021_v31, %v1020_v29 }
  0xfd   :  { %v736_v34 = vadd.f32 %v1022_v33, %v695_v30 }
 0x115   :  { %v1039_v35 = vpop.f32.mrb[4].mxu0 }
 0x116   :  { %v1040_v36 = vpop.f32.mrb[5].mxu0 }
 0x117   :  { %v1041_v37 = vadd.f32 %v1040_v36, %v1039_v35  ;;  %v1042_v38 = vpop.f32.mrb[6].mxu0  ;;  %v1061_v39 = vpop.f32.mrb[4].mxu1 }
 0x118   :  { %v1043_v40 = vpop.f32.mrb[7].mxu0  ;;  %v1062_v43 = vpop.f32.mrb[5].mxu1 }
 0x119   :  { %v774_v41 = vadd.f32 %v1041_v37, %v733_v32  ;;  %v1044_v42 = vadd.f32 %v1043_v40, %v1042_v38  ;;  %v1063_v44 = vadd.f32 %v1062_v43, %v1061_v39  ;;  %v1064_v45 = vpop.f32.mrb[6].mxu1 }
 0x11a   :  { %v1065_v47 = vpop.f32.mrb[7].mxu1 }
 0x11b   :  { %v777_v46 = vadd.f32 %v1044_v42, %v736_v34  ;;  %v1066_v48 = vadd.f32 %v1065_v47, %v1064_v45  ;;  %v815_v49 = vadd.f32 %v1063_v44, %v774_v41 }
 0x11d   :  { %v818_v50 = vadd.f32 %v1066_v48, %v777_v46 }
 0x135   :  { %v855_v53 = vpop.f32.mrb[8].mxu0 }
 0x136   :  { %v856_v54 = vadd.f32 %v855_v53, %v815_v49  ;;  %v1094_v55 = vpop.f32.mrb[9].mxu0 }
 0x137   :  { %v858_v57 = vpop.f32.mrb[10].mxu0 }
 0x138   :  { %v866_v58 = vadd.f32 %v972_v52, %v856_v54  ;;  %v859_v59 = vadd.f32 %v858_v57, %v818_v50  ;;  %v1095_v60 = vpop.f32.mrb[11].mxu0 }
 0x13a   :  { %v867_v61 = vadd.f32 %v973_v56, %v859_v59  ;;  %v868_v62 = vmax.f32 %v866_v58, 0.0 }
 0x13c   :  { %v869_v63 = vmax.f32 %v867_v61, 0.0 }
 0x13e   :  { %v977_v0 = vpack.c.bf16 %v869_v63, %v868_v62 }
 0x140   :  { %978 = vst [vmem:[%s1466_s4] sm:$0xff] %v977_v0  }

// kernel: forward.25
= control target key start
LH: loop header
LB: loop body
LE: loop exit
PB: predicated region body
PF: predicated region fallthrough
CT: control target
= control target key end

     0   :  { %vm1171_vm0 = vmmov 0   ;;  %s1441_s1 = inlined_call_operand.vmem [shape: bf16[1152,128], index: 1, kind: input, shape index: {}]   ;;  %s1442_s0 = inlined_call_operand.vmem [shape: bf16[16,1152], index: 0, kind: input, shape index: {}]   ;;  %s1443_s2 = inlined_call_operand.vmem [shape: f32[1,128], index: 2, kind: input, shape index: {}]   ;;  %s1444_s3 = inlined_call_operand.vmem [shape: bf16[16,128], index: 3, kind: output, shape index: {}]  }
   0x1   :  { %v1085_v0 = vld [vmem:[%s1441_s1 + $0x40] sm:$0xff]   ;;  %v1089_v4 = vld [vmem:[%s1441_s1 + $0x48] sm:$0xff]   ;;  %v1093_v8 = vld [vmem:[%s1441_s1 + $0x50] sm:$0xff]  }
   0x2   :  { %v1086_v1 = vld [vmem:[%s1441_s1] sm:$0xff]   ;;  %966 = vmatprep.subr.bf16.mxu0 %v1085_v0  ;;  %v1090_v5 = vld [vmem:[%s1441_s1 + $0x8] sm:$0xff]   ;;  %v1094_v9 = vld [vmem:[%s1441_s1 + $0x10] sm:$0xff]  }
   0x3   :  { %v1087_v2 = vld [vmem:[%s1441_s1 + $0xc0] sm:$0xff]   ;;  %967 = vmatpush3.bf16.msra.mxu0 %v1086_v1  ;;  %v1091_v6 = vld [vmem:[%s1441_s1 + $0xc8] sm:$0xff]   ;;  %v1095_v10 = vld [vmem:[%s1441_s1 + $0xd0] sm:$0xff]  }
   0x4   :  { %v1088_v3 = vld [vmem:[%s1441_s1 + $0x80] sm:$0xff]   ;;  %988 = vmatprep.subr.bf16.mxu1 %v1087_v2  ;;  %968 = vmatprep.subr.bf16.mxu0 %v1089_v4  ;;  %v1092_v7 = vld [vmem:[%s1441_s1 + $0x88] sm:$0xff]   ;;  %v1096_v11 = vld [vmem:[%s1441_s1 + $0x90] sm:$0xff]  }
   0x5   :  { %989 = vmatpush3.bf16.msra.mxu1 %v1088_v3  ;;  %v1097_v12 = vld [vmem:[%s1441_s1 + $0x58] sm:$0xff]   ;;  %v1101_v16 = vld [vmem:[%s1441_s1 + $0x60] sm:$0xff]   ;;  %v1105_v20 = vld [vmem:[%s1441_s1 + $0x68] sm:$0xff]  }
   0x6   :  { %990 = vmatprep.subr.bf16.mxu1 %v1091_v6  ;;  %v1098_v13 = vld [vmem:[%s1441_s1 + $0x18] sm:$0xff]   ;;  %v1102_v17 = vld [vmem:[%s1441_s1 + $0x20] sm:$0xff]   ;;  %v1106_v21 = vld [vmem:[%s1441_s1 + $0x28] sm:$0xff]   ;;  %v1170_v6 = vmov 0.0  }
   0x7   :  { %969 = vmatpush3.bf16.msra.mxu0 %v1090_v5  ;;  %v1099_v14 = vld [vmem:[%s1441_s1 + $0xd8] sm:$0xff]   ;;  %v1103_v18 = vld [vmem:[%s1441_s1 + $0xe0] sm:$0xff]   ;;  %v1107_v22 = vld [vmem:[%s1441_s1 + $0xe8] sm:$0xff]  }
   0x8   :  { %970 = vmatprep.subr.bf16.mxu0 %v1093_v8  ;;  %v1100_v15 = vld [vmem:[%s1441_s1 + $0x98] sm:$0xff]   ;;  %v1104_v19 = vld [vmem:[%s1441_s1 + $0xa0] sm:$0xff]   ;;  %v1108_v23 = vld [vmem:[%s1441_s1 + $0xa8] sm:$0xff]  }
   0x9   :  { %991 = vmatpush3.bf16.msra.mxu1 %v1092_v7  ;;  %v1109_v24 = vld [vmem:[%s1441_s1 + $0x70] sm:$0xff]   ;;  %v1113_v28 = vld [vmem:[%s1441_s1 + $0x78] sm:$0xff]   ;;  %v1116_v31 = vld [vmem:[%s1442_s0] ss:$36 sps:$4 sm:$0xff]  }
   0xa   :  { %992 = vmatprep.subr.bf16.mxu1 %v1095_v10  ;;  %v1110_v25 = vld [vmem:[%s1441_s1 + $0x30] sm:$0xff]   ;;  %v1114_v29 = vld [vmem:[%s1441_s1 + $0x38] sm:$0xff]   ;;  %v1118_v32 = vld [vmem:[%s1442_s0 + $0x4] ss:$36 sps:$4 sm:$0xff]  }
   0xb   :  { %971 = vmatpush3.bf16.msra.mxu0 %v1094_v9  ;;  %v1111_v26 = vld [vmem:[%s1441_s1 + $0xf0] sm:$0xff]   ;;  %v1115_v30 = vld [vmem:[%s1441_s1 + $0xf8] sm:$0xff]   ;;  %686 = vmatprep.mubr.bf16.mxu0 %v1118_v32  ;;  %v1120_v34 = vld [vmem:[%s1441_s1 + $0x140] sm:$0xff]  }
   0xc   :  { %972 = vmatprep.subr.bf16.mxu0 %v1097_v12  ;;  %v1112_v27 = vld [vmem:[%s1441_s1 + $0xb0] sm:$0xff]   ;;  %v1119_v33 = vld [vmem:[%s1441_s1 + $0xb8] sm:$0xff]   ;;  %v1121_v35 = vld [vmem:[%s1442_s0 + $0x8] ss:$36 sps:$4 sm:$0xff]  }
   0xd   :  { %993 = vmatpush3.bf16.msra.mxu1 %v1096_v11  ;;  %v1123_v36 = vld [vmem:[%s1442_s0 + $0xc] ss:$36 sps:$4 sm:$0xff]   ;;  %v1124_v37 = vld [vmem:[%s1441_s1 + $0x100] sm:$0xff]   ;;  %v1135_v48 = vld [vmem:[%s1441_s1 + $0x158] sm:$0xff]  }
   0xe   :  { %994 = vmatprep.subr.bf16.mxu1 %v1099_v14  ;;  %727 = vmatprep.mubr.bf16.mxu1 %v1123_v36  ;;  %v1125_v38 = vld [vmem:[%s1441_s1 + $0x1c0] sm:$0xff]   ;;  %v1127_v40 = vld [vmem:[%s1441_s1 + $0x148] sm:$0xff]   ;;  %v1131_v44 = vld [vmem:[%s1441_s1 + $0x150] sm:$0xff]  }
   0xf   :  { %973 = vmatpush3.bf16.msra.mxu0 %v1098_v13  ;;  %v1126_v39 = vld [vmem:[%s1441_s1 + $0x180] sm:$0xff]   ;;  %v1128_v41 = vld [vmem:[%s1441_s1 + $0x108] sm:$0xff]   ;;  %v1132_v45 = vld [vmem:[%s1441_s1 + $0x110] sm:$0xff]  }
  0x10   :  { %974 = vmatprep.subr.bf16.mxu0 %v1101_v16  ;;  %v1129_v42 = vld [vmem:[%s1441_s1 + $0x1c8] sm:$0xff]   ;;  %v1133_v46 = vld [vmem:[%s1441_s1 + $0x1d0] sm:$0xff]   ;;  %v1136_v49 = vld [vmem:[%s1441_s1 + $0x118] sm:$0xff]  }
  0x11   :  { %995 = vmatpush3.bf16.msra.mxu1 %v1100_v15  ;;  %v1130_v43 = vld [vmem:[%s1441_s1 + $0x188] sm:$0xff]   ;;  %v1134_v47 = vld [vmem:[%s1441_s1 + $0x190] sm:$0xff]   ;;  %v1137_v50 = vld [vmem:[%s1441_s1 + $0x1d8] sm:$0xff]  }
  0x12   :  { %996 = vmatprep.subr.bf16.mxu1 %v1103_v18  ;;  %v1138_v51 = vld [vmem:[%s1441_s1 + $0x198] sm:$0xff]   ;;  %v1139_v52 = vld [vmem:[%s1441_s1 + $0x160] sm:$0xff]   ;;  %v1143_v56 = vld [vmem:[%s1441_s1 + $0x168] sm:$0xff]  }
  0x13   :  { %975 = vmatpush3.bf16.msra.mxu0 %v1102_v17  ;;  %v1140_v53 = vld [vmem:[%s1441_s1 + $0x120] sm:$0xff]   ;;  %v1144_v57 = vld [vmem:[%s1441_s1 + $0x128] sm:$0xff]   ;;  %v1147_v60 = vld [vmem:[%s1441_s1 + $0x170] sm:$0xff]  }
  0x14   :  { %976 = vmatprep.subr.bf16.mxu0 %v1105_v20  ;;  %v1141_v54 = vld [vmem:[%s1441_s1 + $0x1e0] sm:$0xff]   ;;  %v1145_v58 = vld [vmem:[%s1441_s1 + $0x1e8] sm:$0xff]   ;;  %v1148_v61 = vld [vmem:[%s1441_s1 + $0x130] sm:$0xff]  }
  0x15   :  { %997 = vmatpush3.bf16.msra.mxu1 %v1104_v19  ;;  %v1142_v55 = vld [vmem:[%s1441_s1 + $0x1a0] sm:$0xff]   ;;  %v1146_v59 = vld [vmem:[%s1441_s1 + $0x1a8] sm:$0xff]   ;;  %v1149_v62 = vld [vmem:[%s1441_s1 + $0x1f0] sm:$0xff]  }
  0x16   :  { %998 = vmatprep.subr.bf16.mxu1 %v1107_v22  ;;  %v1150_v63 = vld [vmem:[%s1441_s1 + $0x1b0] sm:$0xff]   ;;  %v1151_v0 = vld [vmem:[%s1441_s1 + $0x178] sm:$0xff]   ;;  %v1161_v9 = vld [vmem:[%s1441_s1 + $0x200] sm:$0xff]  }
  0x17   :  { %977 = vmatpush3.bf16.msra.mxu0 %v1106_v21  ;;  %v1152_v1 = vld [vmem:[%s1441_s1 + $0x138] sm:$0xff]   ;;  %v1154_v3 = vld [vmem:[%s1442_s0 + $0x10] ss:$36 sps:$4 sm:$0xff]   ;;  %v1162_v10 = vld [vmem:[%s1441_s1 + $0x208] sm:$0xff]  }
  0x18   :  { %978 = vmatprep.subr.bf16.mxu0 %v1109_v24  ;;  %v1153_v2 = vld [vmem:[%s1441_s1 + $0x1f8] sm:$0xff]   ;;  %v1163_v11 = vld [vmem:[%s1441_s1 + $0x210] sm:$0xff]   ;;  %v1165_v13 = vld [vmem:[%s1441_s1 + $0x220] sm:$0xff]  }
  0x19   :  { %999 = vmatpush3.bf16.msra.mxu1 %v1108_v23  ;;  %v1156_v4 = vld [vmem:[%s1442_s0 + $0x14] ss:$36 sps:$4 sm:$0xff]   ;;  %v1160_v8 = vld [vmem:[%s1442_s0 + $0x1c] ss:$36 sps:$4 sm:$0xff]   ;;  %v1166_v14 = vld [vmem:[%s1441_s1 + $0x228] sm:$0xff]  }
  0x1a   :  { %1000 = vmatprep.subr.bf16.mxu1 %v1111_v26  ;;  %v1157_v5 = vld [vmem:[%s1441_s1 + $0x1b8] sm:$0xff]   ;;  %v1167_v15 = vld [vmem:[%s1441_s1 + $0x230] sm:$0xff]   ;;  %v1169_v17 = vld [vmem:[%s1442_s0 + $0x20] ss:$36 sps:$4 sm:$0xff]  }
  0x1b   :  { %979 = vmatpush3.bf16.msra.mxu0 %v1110_v25  ;;  %v1158_v7 = vld [vmem:[%s1442_s0 + $0x18] ss:$36 sps:$4 sm:$0xff]   ;;  %v875_v19 = vld [vmem:[%s1443_s2] ss:$0 sm:$0xff] }
  0x1c   :  { %980 = vmatprep.subr.bf16.mxu0 %v1113_v28  ;;  %v1164_v12 = vld [vmem:[%s1441_s1 + $0x218] sm:$0xff]  }
  0x1d   :  { %1001 = vmatpush3.bf16.msra.mxu1 %v1112_v27  ;;  %v1168_v16 = vld [vmem:[%s1441_s1 + $0x238] sm:$0xff]  }
  0x1e   :  { %1002 = vmatprep.subr.bf16.mxu1 %v1115_v30 }
  0x1f   :  { %981 = vmatpush3.bf16.msra.mxu0 %v1114_v29 }
  0x20   :  { %1010 = vmatprep.subr.bf16.mxu0 %v1120_v34 }
  0x21   :  { %1003 = vmatpush3.bf16.msra.mxu1 %v1119_v33 }
  0x22   :  { %687 = vmatmul.mubr.bf16.vlgmr.msra.gmra.mrb[0].mxu0 %v1116_v31  ;;  %1032 = vmatprep.subr.bf16.mxu1 %v1125_v38 }
  0x23   :  { %1011 = vmatpush3.bf16.msra.mxu0 %v1124_v37  ;;  %768 = vmatprep.mubr.bf16.mxu0 %v1156_v4 }
  0x24   :  { %728 = vmatmul.mubr.bf16.vlgmr.msra.gmra.mrb[0].mxu1 %v1121_v35  ;;  %1012 = vmatprep.subr.bf16.mxu0 %v1127_v40 }
  0x25   :  { %1033 = vmatpush3.bf16.msra.mxu1 %v1126_v39  ;;  %809 = vmatprep.mubr.bf16.mxu1 %v1160_v8 }
  0x26   :  { %1034 = vmatprep.subr.bf16.mxu1 %v1129_v42 }
  0x27   :  { %1013 = vmatpush3.bf16.msra.mxu0 %v1128_v41 }
  0x28   :  { %1014 = vmatprep.subr.bf16.mxu0 %v1131_v44 }
  0x29   :  { %1035 = vmatpush3.bf16.msra.mxu1 %v1130_v43 }
  0x2a   :  { %1036 = vmatprep.subr.bf16.mxu1 %v1133_v46 }
  0x2b   :  { %1015 = vmatpush3.bf16.msra.mxu0 %v1132_v45 }
  0x2c   :  { %1016 = vmatprep.subr.bf16.mxu0 %v1135_v48 }
  0x2d   :  { %1037 = vmatpush3.bf16.msra.mxu1 %v1134_v47 }
  0x2e   :  { %1038 = vmatprep.subr.bf16.mxu1 %v1137_v50 }
  0x2f   :  { %1017 = vmatpush3.bf16.msra.mxu0 %v1136_v49 }
  0x30   :  { %1018 = vmatprep.subr.bf16.mxu0 %v1139_v52 }
  0x31   :  { %1039 = vmatpush3.bf16.msra.mxu1 %v1138_v51 }
  0x32   :  { %1040 = vmatprep.subr.bf16.mxu1 %v1141_v54 }
  0x33   :  { %1019 = vmatpush3.bf16.msra.mxu0 %v1140_v53 }
  0x34   :  { %1020 = vmatprep.subr.bf16.mxu0 %v1143_v56 }
  0x35   :  { %1041 = vmatpush3.bf16.msra.mxu1 %v1142_v55 }
  0x36   :  { %1042 = vmatprep.subr.bf16.mxu1 %v1145_v58 }
  0x37   :  { %1021 = vmatpush3.bf16.msra.mxu0 %v1144_v57 }
  0x38   :  { %1022 = vmatprep.subr.bf16.mxu0 %v1147_v60 }
  0x39   :  { %1043 = vmatpush3.bf16.msra.mxu1 %v1146_v59 }
  0x3a   :  { %1044 = vmatprep.subr.bf16.mxu1 %v1149_v62 }
  0x3b   :  { %1023 = vmatpush3.bf16.msra.mxu0 %v1148_v61 }
  0x3c   :  { %1024 = vmatprep.subr.bf16.mxu0 %v1151_v0 }
  0x3d   :  { %1045 = vmatpush3.bf16.msra.mxu1 %v1150_v63 }
  0x3e   :  { %1046 = vmatprep.subr.bf16.mxu1 %v1153_v2 }
  0x3f   :  { %1025 = vmatpush3.bf16.msra.mxu0 %v1152_v1 }
  0x40   :  { %1063 = vmatprep.subr.bf16.mxu0 %v1170_v6 }
  0x41   :  { %1047 = vmatpush3.bf16.msra.mxu1 %v1157_v5 }
  0x42   :  { %769 = vmatmul.mubr.bf16.vlgmr.msra.gmra.mrb[4].mxu0 %v1154_v3 }
  0x43   :  { %1079 = vmatprep.mubr.msk.bf16.mxu0 %vm1171_vm0, %v1170_v6  ;;  %1064 = vmatpush3.bf16.msra.mxu0 %v1161_v9 }
  0x44   :  { %810 = vmatmul.mubr.bf16.vlgmr.msra.gmra.mrb[4].mxu1 %v1158_v7  ;;  %1065 = vmatprep.subr.bf16.mxu0 %v1170_v6 }
  0x47   :  { %1066 = vmatpush3.bf16.msra.mxu0 %v1162_v10 }
  0x48   :  { %1067 = vmatprep.subr.bf16.mxu0 %v1170_v6 }
  0x4b   :  { %1068 = vmatpush3.bf16.msra.mxu0 %v1163_v11 }
  0x4c   :  { %1069 = vmatprep.subr.bf16.mxu0 %v1170_v6 }
  0x4f   :  { %1070 = vmatpush3.bf16.msra.mxu0 %v1164_v12 }
  0x50   :  { %1071 = vmatprep.subr.bf16.mxu0 %v1170_v6 }
  0x53   :  { %1072 = vmatpush3.bf16.msra.mxu0 %v1165_v13 }
  0x54   :  { %1073 = vmatprep.subr.bf16.mxu0 %v1170_v6 }
  0x57   :  { %1074 = vmatpush3.bf16.msra.mxu0 %v1166_v14 }
  0x58   :  { %1075 = vmatprep.subr.bf16.mxu0 %v1170_v6 }
  0x5b   :  { %1076 = vmatpush3.bf16.msra.mxu0 %v1167_v15 }
  0x5c   :  { %1077 = vmatprep.subr.bf16.mxu0 %v1170_v6 }
  0x5f   :  { %1078 = vmatpush3.bf16.msra.mxu0 %v1168_v16 }
  0x62   :  { %1080 = vmatmul.mubr.bf16.vlgmr.msra.gmra.mrb[8].mxu0 %v1169_v17 }
  0xf5   :  { %v982_v18 = vpop.f32.mrb[0].mxu0 }
  0xf6   :  { %v983_v20 = vpop.f32.mrb[1].mxu0 }
  0xf7   :  { %v984_v21 = vadd.f32 %v983_v20, %v982_v18  ;;  %v985_v22 = vpop.f32.mrb[2].mxu0  ;;  %v1004_v23 = vpop.f32.mrb[0].mxu1 }
  0xf8   :  { %v986_v24 = vpop.f32.mrb[3].mxu0  ;;  %v1005_v27 = vpop.f32.mrb[1].mxu1 }
  0xf9   :  { %v689_v25 = vadd.f32 %v984_v21, %v875_v19  ;;  %v987_v26 = vadd.f32 %v986_v24, %v985_v22  ;;  %v1006_v28 = vadd.f32 %v1005_v27, %v1004_v23  ;;  %v1007_v29 = vpop.f32.mrb[2].mxu1 }
  0xfa   :  { %v1008_v31 = vpop.f32.mrb[3].mxu1 }
  0xfb   :  { %v692_v30 = vadd.f32 %v987_v26, %v875_v19  ;;  %v730_v32 = vadd.f32 %v1006_v28, %v689_v25  ;;  %v1009_v33 = vadd.f32 %v1008_v31, %v1007_v29 }
  0xfd   :  { %v733_v34 = vadd.f32 %v1009_v33, %v692_v30 }
 0x115   :  { %v1026_v35 = vpop.f32.mrb[4].mxu0 }
 0x116   :  { %v1027_v36 = vpop.f32.mrb[5].mxu0 }
 0x117   :  { %v1028_v37 = vadd.f32 %v1027_v36, %v1026_v35  ;;  %v1029_v38 = vpop.f32.mrb[6].mxu0  ;;  %v1048_v39 = vpop.f32.mrb[4].mxu1 }
 0x118   :  { %v1030_v40 = vpop.f32.mrb[7].mxu0  ;;  %v1049_v43 = vpop.f32.mrb[5].mxu1 }
 0x119   :  { %v771_v41 = vadd.f32 %v1028_v37, %v730_v32  ;;  %v1031_v42 = vadd.f32 %v1030_v40, %v1029_v38  ;;  %v1050_v44 = vadd.f32 %v1049_v43, %v1048_v39  ;;  %v1051_v45 = vpop.f32.mrb[6].mxu1 }
 0x11a   :  { %v1052_v47 = vpop.f32.mrb[7].mxu1 }
 0x11b   :  { %v774_v46 = vadd.f32 %v1031_v42, %v733_v34  ;;  %v1053_v48 = vadd.f32 %v1052_v47, %v1051_v45  ;;  %v812_v49 = vadd.f32 %v1050_v44, %v771_v41 }
 0x11d   :  { %v815_v50 = vadd.f32 %v1053_v48, %v774_v46 }
 0x135   :  { %v852_v51 = vpop.f32.mrb[8].mxu0 }
 0x136   :  { %v853_v52 = vadd.f32 %v852_v51, %v812_v49  ;;  %v1081_v53 = vpop.f32.mrb[9].mxu0 }
 0x137   :  { %v855_v54 = vpop.f32.mrb[10].mxu0 }
 0x138   :  { %v856_v55 = vadd.f32 %v855_v54, %v815_v50  ;;  %v1082_v56 = vpop.f32.mrb[11].mxu0  ;;  %v859_v57 = vmax.f32 %v853_v52, 0.0 }
 0x13a   :  { %v860_v58 = vmax.f32 %v856_v55, 0.0 }
 0x13c   :  { %v964_v59 = vpack.c.bf16 %v860_v58, %v859_v57 }
 0x13e   :  { %965 = vst [vmem:[%s1444_s3] sm:$0xff] %v964_v59  }

// kernel: forward.28
= control target key start
LH: loop header
LB: loop body
LE: loop exit
PB: predicated region body
PF: predicated region fallthrough
CT: control target
= control target key end

     0   :  { %v239_v1 = vmov 0   ;;  %v35_v18 = vlaneseq  ;;  %s320_s1 = inlined_call_operand.vmem [shape: bf16[128,256], index: 1, kind: input, shape index: {}]   ;;  %s321_s0 = inlined_call_operand.vmem [shape: bf16[16,128], index: 0, kind: input, shape index: {}]   ;;  %s322_s2 = inlined_call_operand.vmem [shape: f32[1,256], index: 2, kind: input, shape index: {}]   ;;  %s323_s3 = inlined_call_operand.vmem [shape: bf16[16,256], index: 3, kind: output, shape index: {}]  }
   0x1   :  { %v214_v0 = vld [vmem:[%s320_s1 + $0x4] ss:$8 sps:$4 sm:$0xff]   ;;  %163 = vmatprep.mubr.bf16.mxu0 %v239_v1  ;;  %v216_v2 = vld [vmem:[%s320_s1] ss:$8 sps:$4 sm:$0xff]   ;;  %v217_v3 = vld [vmem:[%s320_s1 + $0x14] ss:$8 sps:$4 sm:$0xff]  }
   0x2   :  { %131 = vmatprep.subr.bf16.mxu0 %v214_v0  ;;  %v219_v4 = vld [vmem:[%s320_s1 + $0x10] ss:$8 sps:$4 sm:$0xff]   ;;  %v220_v5 = vld [vmem:[%s320_s1 + $0x24] ss:$8 sps:$4 sm:$0xff]   ;;  %v222_v6 = vld [vmem:[%s320_s1 + $0x20] ss:$8 sps:$4 sm:$0xff]  }
   0x3   :  { %132 = vmatpush1.bf16.msra.mxu0 %v216_v2  ;;  %v223_v7 = vld [vmem:[%s320_s1 + $0x34] ss:$8 sps:$4 sm:$0xff]   ;;  %v225_v8 = vld [vmem:[%s320_s1 + $0x30] ss:$8 sps:$4 sm:$0xff]   ;;  %v226_v9 = vld [vmem:[%s320_s1 + $0x44] ss:$8 sps:$4 sm:$0xff]  }
   0x4   :  { %133 = vmatprep.subr.bf16.mxu0 %v217_v3  ;;  %v228_v10 = vld [vmem:[%s320_s1 + $0x40] ss:$8 sps:$4 sm:$0xff]   ;;  %v229_v11 = vld [vmem:[%s320_s1 + $0x54] ss:$8 sps:$4 sm:$0xff]   ;;  %v231_v12 = vld [vmem:[%s320_s1 + $0x50] ss:$8 sps:$4 sm:$0xff]  }
   0x5   :  { %v232_v13 = vld [vmem:[%s320_s1 + $0x64] ss:$8 sps:$4 sm:$0xff]   ;;  %v234_v14 = vld [vmem:[%s320_s1 + $0x60] ss:$8 sps:$4 sm:$0xff]   ;;  %v235_v15 = vld [vmem:[%s320_s1 + $0x74] ss:$8 sps:$4 sm:$0xff]  }
   0x6   :  { %v237_v16 = vld [vmem:[%s320_s1 + $0x70] ss:$8 sps:$4 sm:$0xff]   ;;  %v238_v17 = vld [vmem:[%s321_s0] sm:$0xff]   ;;  %v36_v19 = vshrl.u32 %v35_v18, 7 }
   0x7   :  { %134 = vmatpush1.bf16.msra.mxu0 %v219_v4  ;;  %v33_v21 = vld [vmem:[%s322_s2] sm:$0x3] }
   0x8   :  { %135 = vmatprep.subr.bf16.mxu0 %v220_v5  ;;  %v37_v20 = vsub.s32 0, %v36_v19  ;;  %v41_v22 = vsub.s32 1, %v36_v19 }
   0xa   :  { %v38_v23 = vrot.slane %v33_v21, %v37_v20  ;;  %v42_v24 = vrot.slane %v33_v21, %v41_v22 }
   0xb   :  { %136 = vmatpush1.bf16.msra.mxu0 %v222_v6 }
   0xc   :  { %137 = vmatprep.subr.bf16.mxu0 %v223_v7 }
   0xf   :  { %138 = vmatpush1.bf16.msra.mxu0 %v225_v8 }
  0x10   :  { %139 = vmatprep.subr.bf16.mxu0 %v226_v9 }
  0x13   :  { %140 = vmatpush1.bf16.msra.mxu0 %v228_v10 }
  0x14   :  { %141 = vmatprep.subr.bf16.mxu0 %v229_v11 }
  0x17   :  { %142 = vmatpush1.bf16.msra.mxu0 %v231_v12 }
  0x18   :  { %143 = vmatprep.subr.bf16.mxu0 %v232_v13 }
  0x1b   :  { %144 = vmatpush1.bf16.msra.mxu0 %v234_v14 }
  0x1c   :  { %145 = vmatprep.subr.bf16.mxu0 %v235_v15 }
  0x1f   :  { %146 = vmatpush1.bf16.msra.mxu0 %v237_v16 }
  0x22   :  { %164 = vmatmul.mubr.bf16.vlgmr.msra.gmra.mrb[0].mxu0 %v238_v17 }
  0xf5   :  { %v165_v25 = vpop.f32.mrb[0].mxu0 }
  0xf6   :  { %v166_v26 = vadd.f32 %v165_v25, %v38_v23  ;;  %v167_v27 = vpop.f32.mrb[1].mxu0 }
  0xf7   :  { %v168_v28 = vadd.f32 %v167_v27, %v42_v24  ;;  %v169_v29 = vpop.f32.mrb[2].mxu0 }
  0xf8   :  { %v170_v30 = vadd.f32 %v169_v29, %v38_v23  ;;  %v171_v31 = vpop.f32.mrb[3].mxu0 }
  0xf9   :  { %v211_v32 = vpack.c.bf16 %v168_v28, %v166_v26  ;;  %v172_v33 = vadd.f32 %v171_v31, %v42_v24 }
  0xfb   :  { %186 = vst [vmem:[%s323_s3] sm:$0xff] %v211_v32  ;;  %v212_v34 = vpack.c.bf16 %v172_v33, %v170_v30 }
  0xfd   :  { %187 = vst [vmem:[%s323_s3 + $0x8] sm:$0xff] %v212_v34 }

// kernel: forward.27
= control target key start
LH: loop header
LB: loop body
LE: loop exit
PB: predicated region body
PF: predicated region fallthrough
CT: control target
= control target key end

     0   :  { %s2080_s1 = inlined_call_operand.vmem [shape: bf16[1152,256], index: 1, kind: input, shape index: {}]   ;;  %s2081_s0 = inlined_call_operand.vmem [shape: bf16[16,1152], index: 0, kind: input, shape index: {}]   ;;  %s2082_s2 = inlined_call_operand.vmem [shape: f32[1,256], index: 2, kind: input, shape index: {}]   ;;  %s2083_s3 = inlined_call_operand.vmem [shape: bf16[16,256], index: 3, kind: output, shape index: {}]  }
   0x1   :  { %v1362_v0 = vld [vmem:[%s2080_s1 + $0x4] ss:$8 sps:$4 sm:$0xff]   ;;  %v1366_v2 = vld [vmem:[%s2080_s1] ss:$8 sps:$4 sm:$0xff]   ;;  %v1368_v4 = vld [vmem:[%s2080_s1 + $0x14] ss:$8 sps:$4 sm:$0xff]  }
   0x2   :  { %v1364_v1 = vld [vmem:[%s2080_s1 + $0x204] ss:$8 sps:$4 sm:$0xff]   ;;  %947 = vmatprep.subr.bf16.mxu1 %v1362_v0  ;;  %v1367_v3 = vld [vmem:[%s2080_s1 + $0x200] ss:$8 sps:$4 sm:$0xff]   ;;  %v1370_v5 = vld [vmem:[%s2080_s1 + $0x214] ss:$8 sps:$4 sm:$0xff]  }
   0x3   :  { %1033 = vmatprep.subr.bf16.mxu0 %v1364_v1  ;;  %948 = vmatpush1.bf16.msra.mxu1 %v1366_v2  ;;  %v1372_v6 = vld [vmem:[%s2080_s1 + $0x10] ss:$8 sps:$4 sm:$0xff]   ;;  %v1374_v8 = vld [vmem:[%s2080_s1 + $0x24] ss:$8 sps:$4 sm:$0xff]   ;;  %v1378_v10 = vld [vmem:[%s2080_s1 + $0x20] ss:$8 sps:$4 sm:$0xff]  }
   0x4   :  { %1034 = vmatpush1.bf16.msra.mxu0 %v1367_v3  ;;  %949 = vmatprep.subr.bf16.mxu1 %v1368_v4  ;;  %v1373_v7 = vld [vmem:[%s2080_s1 + $0x210] ss:$8 sps:$4 sm:$0xff]   ;;  %v1376_v9 = vld [vmem:[%s2080_s1 + $0x224] ss:$8 sps:$4 sm:$0xff]   ;;  %v1379_v11 = vld [vmem:[%s2080_s1 + $0x220] ss:$8 sps:$4 sm:$0xff]  }
   0x5   :  { %1035 = vmatprep.subr.bf16.mxu0 %v1370_v5  ;;  %v1380_v12 = vld [vmem:[%s2080_s1 + $0x34] ss:$8 sps:$4 sm:$0xff]   ;;  %v1384_v14 = vld [vmem:[%s2080_s1 + $0x30] ss:$8 sps:$4 sm:$0xff]   ;;  %v1386_v16 = vld [vmem:[%s2080_s1 + $0x44] ss:$8 sps:$4 sm:$0xff]  }
   0x6   :  { %v1382_v13 = vld [vmem:[%s2080_s1 + $0x234] ss:$8 sps:$4 sm:$0xff]   ;;  %v1385_v15 = vld [vmem:[%s2080_s1 + $0x230] ss:$8 sps:$4 sm:$0xff]   ;;  %v1388_v17 = vld [vmem:[%s2080_s1 + $0x244] ss:$8 sps:$4 sm:$0xff]  }
   0x7   :  { %950 = vmatpush1.bf16.msra.mxu1 %v1372_v6  ;;  %v1390_v18 = vld [vmem:[%s2080_s1 + $0x40] ss:$8 sps:$4 sm:$0xff]   ;;  %v1392_v20 = vld [vmem:[%s2080_s1 + $0x54] ss:$8 sps:$4 sm:$0xff]   ;;  %v1396_v22 = vld [vmem:[%s2080_s1 + $0x50] ss:$8 sps:$4 sm:$0xff]  }
   0x8   :  { %1036 = vmatpush1.bf16.msra.mxu0 %v1373_v7  ;;  %951 = vmatprep.subr.bf16.mxu1 %v1374_v8  ;;  %v1391_v19 = vld [vmem:[%s2080_s1 + $0x240] ss:$8 sps:$4 sm:$0xff]   ;;  %v1394_v21 = vld [vmem:[%s2080_s1 + $0x254] ss:$8 sps:$4 sm:$0xff]   ;;  %v1397_v23 = vld [vmem:[%s2080_s1 + $0x250] ss:$8 sps:$4 sm:$0xff]  }
   0x9   :  { %1037 = vmatprep.subr.bf16.mxu0 %v1376_v9  ;;  %v1398_v24 = vld [vmem:[%s2080_s1 + $0x64] ss:$8 sps:$4 sm:$0xff]   ;;  %v1402_v26 = vld [vmem:[%s2080_s1 + $0x60] ss:$8 sps:$4 sm:$0xff]   ;;  %v1404_v28 = vld [vmem:[%s2080_s1 + $0x74] ss:$8 sps:$4 sm:$0xff]  }
   0xa   :  { %v1400_v25 = vld [vmem:[%s2080_s1 + $0x264] ss:$8 sps:$4 sm:$0xff]   ;;  %v1403_v27 = vld [vmem:[%s2080_s1 + $0x260] ss:$8 sps:$4 sm:$0xff]   ;;  %v1406_v29 = vld [vmem:[%s2080_s1 + $0x274] ss:$8 sps:$4 sm:$0xff]  }
   0xb   :  { %952 = vmatpush1.bf16.msra.mxu1 %v1378_v10  ;;  %v1408_v30 = vld [vmem:[%s2080_s1 + $0x70] ss:$8 sps:$4 sm:$0xff]   ;;  %v1410_v32 = vld [vmem:[%s2080_s1 + $0x84] ss:$8 sps:$4 sm:$0xff]   ;;  %v1414_v34 = vld [vmem:[%s2080_s1 + $0x80] ss:$8 sps:$4 sm:$0xff]  }
   0xc   :  { %1038 = vmatpush1.bf16.msra.mxu0 %v1379_v11  ;;  %953 = vmatprep.subr.bf16.mxu1 %v1380_v12  ;;  %v1409_v31 = vld [vmem:[%s2080_s1 + $0x270] ss:$8 sps:$4 sm:$0xff]   ;;  %v1412_v33 = vld [vmem:[%s2080_s1 + $0x284] ss:$8 sps:$4 sm:$0xff]   ;;  %v1415_v35 = vld [vmem:[%s2080_s1 + $0x280] ss:$8 sps:$4 sm:$0xff]  }
   0xd   :  { %1039 = vmatprep.subr.bf16.mxu0 %v1382_v13  ;;  %v1416_v36 = vld [vmem:[%s2080_s1 + $0x94] ss:$8 sps:$4 sm:$0xff]   ;;  %v1420_v38 = vld [vmem:[%s2080_s1 + $0x90] ss:$8 sps:$4 sm:$0xff]   ;;  %v1422_v40 = vld [vmem:[%s2080_s1 + $0xa4] ss:$8 sps:$4 sm:$0xff]  }
   0xe   :  { %v1418_v37 = vld [vmem:[%s2080_s1 + $0x294] ss:$8 sps:$4 sm:$0xff]   ;;  %v1421_v39 = vld [vmem:[%s2080_s1 + $0x290] ss:$8 sps:$4 sm:$0xff]   ;;  %v1424_v41 = vld [vmem:[%s2080_s1 + $0x2a4] ss:$8 sps:$4 sm:$0xff]  }
   0xf   :  { %954 = vmatpush1.bf16.msra.mxu1 %v1384_v14  ;;  %v1426_v42 = vld [vmem:[%s2080_s1 + $0xa0] ss:$8 sps:$4 sm:$0xff]   ;;  %v1428_v44 = vld [vmem:[%s2080_s1 + $0xb4] ss:$8 sps:$4 sm:$0xff]   ;;  %v1432_v46 = vld [vmem:[%s2080_s1 + $0xb0] ss:$8 sps:$4 sm:$0xff]  }
  0x10   :  { %1040 = vmatpush1.bf16.msra.mxu0 %v1385_v15  ;;  %955 = vmatprep.subr.bf16.mxu1 %v1386_v16  ;;  %v1427_v43 = vld [vmem:[%s2080_s1 + $0x2a0] ss:$8 sps:$4 sm:$0xff]   ;;  %v1430_v45 = vld [vmem:[%s2080_s1 + $0x2b4] ss:$8 sps:$4 sm:$0xff]   ;;  %v1433_v47 = vld [vmem:[%s2080_s1 + $0x2b0] ss:$8 sps:$4 sm:$0xff]  }
  0x11   :  { %1041 = vmatprep.subr.bf16.mxu0 %v1388_v17  ;;  %v1460_v48 = vld [vmem:[%s2081_s0 + $0x4] ss:$36 sps:$4 sm:$0xff]   ;;  %v1466_v51 = vld [vmem:[%s2081_s0 + $0x14] ss:$36 sps:$4 sm:$0xff]  }
  0x12   :  { %v1434_v49 = vld [vmem:[%s2080_s1 + $0xc4] ss:$8 sps:$4 sm:$0xff]   ;;  %979 = vmatprep.mubr.bf16.mxu1 %v1460_v48  ;;  %v1438_v52 = vld [vmem:[%s2080_s1 + $0xc0] ss:$8 sps:$4 sm:$0xff]   ;;  %v1440_v54 = vld [vmem:[%s2080_s1 + $0xd4] ss:$8 sps:$4 sm:$0xff]   ;;  %1065 = vmatprep.mubr.bf16.mxu0 %v1466_v51 }
  0x13   :  { %956 = vmatpush1.bf16.msra.mxu1 %v1390_v18  ;;  %v1436_v50 = vld [vmem:[%s2080_s1 + $0x2c4] ss:$8 sps:$4 sm:$0xff]   ;;  %v1439_v53 = vld [vmem:[%s2080_s1 + $0x2c0] ss:$8 sps:$4 sm:$0xff]   ;;  %v1442_v55 = vld [vmem:[%s2080_s1 + $0x2d4] ss:$8 sps:$4 sm:$0xff]  }
  0x14   :  { %1042 = vmatpush1.bf16.msra.mxu0 %v1391_v19  ;;  %957 = vmatprep.subr.bf16.mxu1 %v1392_v20  ;;  %v1444_v56 = vld [vmem:[%s2080_s1 + $0xd0] ss:$8 sps:$4 sm:$0xff]   ;;  %v1446_v58 = vld [vmem:[%s2080_s1 + $0xe4] ss:$8 sps:$4 sm:$0xff]   ;;  %v1450_v60 = vld [vmem:[%s2080_s1 + $0xe0] ss:$8 sps:$4 sm:$0xff]  }
  0x15   :  { %1043 = vmatprep.subr.bf16.mxu0 %v1394_v21  ;;  %v1445_v57 = vld [vmem:[%s2080_s1 + $0x2d0] ss:$8 sps:$4 sm:$0xff]   ;;  %v1448_v59 = vld [vmem:[%s2080_s1 + $0x2e4] ss:$8 sps:$4 sm:$0xff]   ;;  %v1451_v61 = vld [vmem:[%s2080_s1 + $0x2e0] ss:$8 sps:$4 sm:$0xff]  }
  0x16   :  { %v1452_v62 = vld [vmem:[%s2080_s1 + $0xf4] ss:$8 sps:$4 sm:$0xff]   ;;  %v1456_v0 = vld [vmem:[%s2080_s1 + $0xf0] ss:$8 sps:$4 sm:$0xff]   ;;  %v1463_v2 = vld [vmem:[%s2080_s1 + $0x104] ss:$8 sps:$4 sm:$0xff]  }
  0x17   :  { %958 = vmatpush1.bf16.msra.mxu1 %v1396_v22  ;;  %v1454_v63 = vld [vmem:[%s2080_s1 + $0x2f4] ss:$8 sps:$4 sm:$0xff]   ;;  %v1457_v1 = vld [vmem:[%s2080_s1 + $0x2f0] ss:$8 sps:$4 sm:$0xff]   ;;  %v1469_v3 = vld [vmem:[%s2080_s1 + $0x304] ss:$8 sps:$4 sm:$0xff]  }
  0x18   :  { %1044 = vmatpush1.bf16.msra.mxu0 %v1397_v23  ;;  %959 = vmatprep.subr.bf16.mxu1 %v1398_v24  ;;  %v1458_v4 = vld [vmem:[%s2081_s0] ss:$36 sps:$4 sm:$0xff]   ;;  %v1464_v6 = vld [vmem:[%s2081_s0 + $0x10] ss:$36 sps:$4 sm:$0xff]  }
  0x19   :  { %1045 = vmatprep.subr.bf16.mxu0 %v1400_v25  ;;  %v1461_v5 = vld [vmem:[%s2080_s1 + $0x100] ss:$8 sps:$4 sm:$0xff]   ;;  %v1472_v8 = vld [vmem:[%s2080_s1 + $0x114] ss:$8 sps:$4 sm:$0xff]   ;;  %v1470_v10 = vld [vmem:[%s2080_s1 + $0x110] ss:$8 sps:$4 sm:$0xff]  }
  0x1a   :  { %v1467_v7 = vld [vmem:[%s2080_s1 + $0x300] ss:$8 sps:$4 sm:$0xff]   ;;  %v1475_v9 = vld [vmem:[%s2080_s1 + $0x314] ss:$8 sps:$4 sm:$0xff]   ;;  %v1473_v11 = vld [vmem:[%s2080_s1 + $0x310] ss:$8 sps:$4 sm:$0xff]  }
  0x1b   :  { %960 = vmatpush1.bf16.msra.mxu1 %v1402_v26  ;;  %v1478_v12 = vld [vmem:[%s2080_s1 + $0x124] ss:$8 sps:$4 sm:$0xff]   ;;  %v1476_v14 = vld [vmem:[%s2080_s1 + $0x120] ss:$8 sps:$4 sm:$0xff]   ;;  %v1484_v16 = vld [vmem:[%s2080_s1 + $0x134] ss:$8 sps:$4 sm:$0xff]  }
  0x1c   :  { %1046 = vmatpush1.bf16.msra.mxu0 %v1403_v27  ;;  %961 = vmatprep.subr.bf16.mxu1 %v1404_v28  ;;  %v1481_v13 = vld [vmem:[%s2080_s1 + $0x324] ss:$8 sps:$4 sm:$0xff]   ;;  %v1479_v15 = vld [vmem:[%s2080_s1 + $0x320] ss:$8 sps:$4 sm:$0xff]   ;;  %v1487_v17 = vld [vmem:[%s2080_s1 + $0x334] ss:$8 sps:$4 sm:$0xff]  }
  0x1d   :  { %1047 = vmatprep.subr.bf16.mxu0 %v1406_v29  ;;  %v1482_v18 = vld [vmem:[%s2080_s1 + $0x130] ss:$8 sps:$4 sm:$0xff]   ;;  %v1490_v20 = vld [vmem:[%s2080_s1 + $0x144] ss:$8 sps:$4 sm:$0xff]   ;;  %v1488_v22 = vld [vmem:[%s2080_s1 + $0x140] ss:$8 sps:$4 sm:$0xff]  }
  0x1e   :  { %v1485_v19 = vld [vmem:[%s2080_s1 + $0x330] ss:$8 sps:$4 sm:$0xff]   ;;  %v1493_v21 = vld [vmem:[%s2080_s1 + $0x344] ss:$8 sps:$4 sm:$0xff]   ;;  %v1491_v23 = vld [vmem:[%s2080_s1 + $0x340] ss:$8 sps:$4 sm:$0xff]  }
  0x1f   :  { %962 = vmatpush1.bf16.msra.mxu1 %v1408_v30  ;;  %v1496_v24 = vld [vmem:[%s2080_s1 + $0x154] ss:$8 sps:$4 sm:$0xff]   ;;  %v1494_v26 = vld [vmem:[%s2080_s1 + $0x150] ss:$8 sps:$4 sm:$0xff]   ;;  %v1502_v28 = vld [vmem:[%s2080_s1 + $0x164] ss:$8 sps:$4 sm:$0xff]  }
  0x20   :  { %1048 = vmatpush1.bf16.msra.mxu0 %v1409_v31  ;;  %963 = vmatprep.subr.bf16.mxu1 %v1410_v32  ;;  %v1499_v25 = vld [vmem:[%s2080_s1 + $0x354] ss:$8 sps:$4 sm:$0xff]   ;;  %v1497_v27 = vld [vmem:[%s2080_s1 + $0x350] ss:$8 sps:$4 sm:$0xff]   ;;  %v1505_v29 = vld [vmem:[%s2080_s1 + $0x364] ss:$8 sps:$4 sm:$0xff]  }
  0x21   :  { %1049 = vmatprep.subr.bf16.mxu0 %v1412_v33  ;;  %v1500_v30 = vld [vmem:[%s2080_s1 + $0x160] ss:$8 sps:$4 sm:$0xff]   ;;  %v1508_v32 = vld [vmem:[%s2080_s1 + $0x174] ss:$8 sps:$4 sm:$0xff]  }
  0x22   :  { %v1503_v31 = vld [vmem:[%s2080_s1 + $0x360] ss:$8 sps:$4 sm:$0xff]   ;;  %v1511_v33 = vld [vmem:[%s2080_s1 + $0x374] ss:$8 sps:$4 sm:$0xff]  }
  0x23   :  { %964 = vmatpush1.bf16.msra.mxu1 %v1414_v34  ;;  %v1562_v34 = vld [vmem:[%s2081_s0 + $0xc] ss:$36 sps:$4 sm:$0xff]   ;;  %v1524_v48 = vld [vmem:[%s2080_s1 + $0x1a0] ss:$8 sps:$4 sm:$0xff]   ;;  %v1535_v51 = vld [vmem:[%s2080_s1 + $0x3b4] ss:$8 sps:$4 sm:$0xff]  }
  0x24   :  { %1050 = vmatpush1.bf16.msra.mxu0 %v1415_v35  ;;  %965 = vmatprep.subr.bf16.mxu1 %v1416_v36  ;;  %v1565_v35 = vld [vmem:[%s2081_s0 + $0x1c] ss:$36 sps:$4 sm:$0xff]   ;;  %v1506_v36 = vld [vmem:[%s2080_s1 + $0x170] ss:$8 sps:$4 sm:$0xff]  }
  0x25   :  { %1051 = vmatprep.subr.bf16.mxu0 %v1418_v37  ;;  %v1509_v37 = vld [vmem:[%s2080_s1 + $0x370] ss:$8 sps:$4 sm:$0xff]  }
  0x27   :  { %966 = vmatpush1.bf16.msra.mxu1 %v1420_v38  ;;  %v1514_v38 = vld [vmem:[%s2080_s1 + $0x184] ss:$8 sps:$4 sm:$0xff]  }
  0x28   :  { %1052 = vmatpush1.bf16.msra.mxu0 %v1421_v39  ;;  %967 = vmatprep.subr.bf16.mxu1 %v1422_v40  ;;  %v1517_v39 = vld [vmem:[%s2080_s1 + $0x384] ss:$8 sps:$4 sm:$0xff]   ;;  %v1512_v40 = vld [vmem:[%s2080_s1 + $0x180] ss:$8 sps:$4 sm:$0xff]  }
  0x29   :  { %1053 = vmatprep.subr.bf16.mxu0 %v1424_v41  ;;  %v1515_v41 = vld [vmem:[%s2080_s1 + $0x380] ss:$8 sps:$4 sm:$0xff]  }
  0x2b   :  { %968 = vmatpush1.bf16.msra.mxu1 %v1426_v42  ;;  %v1520_v42 = vld [vmem:[%s2080_s1 + $0x194] ss:$8 sps:$4 sm:$0xff]  }
  0x2c   :  { %1054 = vmatpush1.bf16.msra.mxu0 %v1427_v43  ;;  %969 = vmatprep.subr.bf16.mxu1 %v1428_v44  ;;  %v1523_v43 = vld [vmem:[%s2080_s1 + $0x394] ss:$8 sps:$4 sm:$0xff]   ;;  %v1518_v44 = vld [vmem:[%s2080_s1 + $0x190] ss:$8 sps:$4 sm:$0xff]  }
  0x2d   :  { %1055 = vmatprep.subr.bf16.mxu0 %v1430_v45  ;;  %v1521_v45 = vld [vmem:[%s2080_s1 + $0x390] ss:$8 sps:$4 sm:$0xff]  }
  0x2f   :  { %970 = vmatpush1.bf16.msra.mxu1 %v1432_v46  ;;  %v1526_v46 = vld [vmem:[%s2080_s1 + $0x1a4] ss:$8 sps:$4 sm:$0xff]  }
  0x30   :  { %1056 = vmatpush1.bf16.msra.mxu0 %v1433_v47  ;;  %971 = vmatprep.subr.bf16.mxu1 %v1434_v49  ;;  %v1529_v47 = vld [vmem:[%s2080_s1 + $0x3a4] ss:$8 sps:$4 sm:$0xff]   ;;  %v1527_v49 = vld [vmem:[%s2080_s1 + $0x3a0] ss:$8 sps:$4 sm:$0xff]  }
  0x31   :  { %1057 = vmatprep.subr.bf16.mxu0 %v1436_v50  ;;  %v1532_v50 = vld [vmem:[%s2080_s1 + $0x1b4] ss:$8 sps:$4 sm:$0xff]  }
  0x33   :  { %972 = vmatpush1.bf16.msra.mxu1 %v1438_v52  ;;  %v1530_v52 = vld [vmem:[%s2080_s1 + $0x1b0] ss:$8 sps:$4 sm:$0xff]  }
  0x34   :  { %1058 = vmatpush1.bf16.msra.mxu0 %v1439_v53  ;;  %973 = vmatprep.subr.bf16.mxu1 %v1440_v54  ;;  %v1533_v53 = vld [vmem:[%s2080_s1 + $0x3b0] ss:$8 sps:$4 sm:$0xff]   ;;  %v1538_v54 = vld [vmem:[%s2080_s1 + $0x1c4] ss:$8 sps:$4 sm:$0xff]  }
  0x35   :  { %1059 = vmatprep.subr.bf16.mxu0 %v1442_v55  ;;  %v1541_v55 = vld [vmem:[%s2080_s1 + $0x3c4] ss:$8 sps:$4 sm:$0xff]  }
  0x37   :  { %974 = vmatpush1.bf16.msra.mxu1 %v1444_v56  ;;  %v1536_v56 = vld [vmem:[%s2080_s1 + $0x1c0] ss:$8 sps:$4 sm:$0xff]  }
  0x38   :  { %1060 = vmatpush1.bf16.msra.mxu0 %v1445_v57  ;;  %975 = vmatprep.subr.bf16.mxu1 %v1446_v58  ;;  %v1539_v57 = vld [vmem:[%s2080_s1 + $0x3c0] ss:$8 sps:$4 sm:$0xff]   ;;  %v1544_v58 = vld [vmem:[%s2080_s1 + $0x1d4] ss:$8 sps:$4 sm:$0xff]  }
  0x39   :  { %1061 = vmatprep.subr.bf16.mxu0 %v1448_v59  ;;  %v1547_v59 = vld [vmem:[%s2080_s1 + $0x3d4] ss:$8 sps:$4 sm:$0xff]  }
  0x3b   :  { %976 = vmatpush1.bf16.msra.mxu1 %v1450_v60  ;;  %v1542_v60 = vld [vmem:[%s2080_s1 + $0x1d0] ss:$8 sps:$4 sm:$0xff]  }
  0x3c   :  { %1062 = vmatpush1.bf16.msra.mxu0 %v1451_v61  ;;  %977 = vmatprep.subr.bf16.mxu1 %v1452_v62  ;;  %v1545_v61 = vld [vmem:[%s2080_s1 + $0x3d0] ss:$8 sps:$4 sm:$0xff]   ;;  %v1550_v62 = vld [vmem:[%s2080_s1 + $0x1e4] ss:$8 sps:$4 sm:$0xff]  }
  0x3d   :  { %1063 = vmatprep.subr.bf16.mxu0 %v1454_v63  ;;  %v1553_v63 = vld [vmem:[%s2080_s1 + $0x3e4] ss:$8 sps:$4 sm:$0xff]  }
  0x3f   :  { %978 = vmatpush1.bf16.msra.mxu1 %v1456_v0  ;;  %v1548_v0 = vld [vmem:[%s2080_s1 + $0x1e0] ss:$8 sps:$4 sm:$0xff]  }
  0x40   :  { %1064 = vmatpush1.bf16.msra.mxu0 %v1457_v1  ;;  %990 = vmatprep.subr.bf16.mxu1 %v1463_v2  ;;  %v1551_v1 = vld [vmem:[%s2080_s1 + $0x3e0] ss:$8 sps:$4 sm:$0xff]   ;;  %v1556_v2 = vld [vmem:[%s2080_s1 + $0x1f4] ss:$8 sps:$4 sm:$0xff]  }
  0x41   :  { %1076 = vmatprep.subr.bf16.mxu0 %v1469_v3  ;;  %v1559_v3 = vld [vmem:[%s2080_s1 + $0x3f4] ss:$8 sps:$4 sm:$0xff]  }
  0x42   :  { %980 = vmatmul.mubr.bf16.vlgmr.msra.gmra.mrb[0].mxu1 %v1458_v4  ;;  %v1554_v4 = vld [vmem:[%s2080_s1 + $0x1f0] ss:$8 sps:$4 sm:$0xff]  }
  0x43   :  { %1066 = vmatmul.mubr.bf16.vlgmr.msra.gmra.mrb[0].mxu0 %v1464_v6  ;;  %991 = vmatpush1.bf16.msra.mxu1 %v1461_v5  ;;  %v1557_v5 = vld [vmem:[%s2080_s1 + $0x3f0] ss:$8 sps:$4 sm:$0xff]   ;;  %v1568_v6 = vld [vmem:[%s2080_s1 + $0x404] ss:$8 sps:$4 sm:$0xff]  }
  0x44   :  { %1077 = vmatpush1.bf16.msra.mxu0 %v1467_v7  ;;  %992 = vmatprep.subr.bf16.mxu1 %v1472_v8  ;;  %v1560_v7 = vld [vmem:[%s2081_s0 + $0x8] ss:$36 sps:$4 sm:$0xff]   ;;  %v1563_v8 = vld [vmem:[%s2081_s0 + $0x18] ss:$36 sps:$4 sm:$0xff]  }
  0x45   :  { %1078 = vmatprep.subr.bf16.mxu0 %v1475_v9  ;;  %1022 = vmatprep.mubr.bf16.mxu1 %v1562_v34  ;;  %v1566_v9 = vld [vmem:[%s2080_s1 + $0x400] ss:$8 sps:$4 sm:$0xff]  }
  0x46   :  { %1108 = vmatprep.mubr.bf16.mxu0 %v1565_v35 }
  0x47   :  { %993 = vmatpush1.bf16.msra.mxu1 %v1470_v10  ;;  %v1571_v10 = vld [vmem:[%s2080_s1 + $0x414] ss:$8 sps:$4 sm:$0xff]  }
  0x48   :  { %1079 = vmatpush1.bf16.msra.mxu0 %v1473_v11  ;;  %994 = vmatprep.subr.bf16.mxu1 %v1478_v12  ;;  %v1569_v11 = vld [vmem:[%s2080_s1 + $0x410] ss:$8 sps:$4 sm:$0xff]   ;;  %v1591_v12 = vmov 0  }
  0x49   :  { %1080 = vmatprep.subr.bf16.mxu0 %v1481_v13  ;;  %v1574_v13 = vld [vmem:[%s2080_s1 + $0x424] ss:$8 sps:$4 sm:$0xff]  }
  0x4b   :  { %995 = vmatpush1.bf16.msra.mxu1 %v1476_v14  ;;  %v1572_v14 = vld [vmem:[%s2080_s1 + $0x420] ss:$8 sps:$4 sm:$0xff]  }
  0x4c   :  { %1081 = vmatpush1.bf16.msra.mxu0 %v1479_v15  ;;  %996 = vmatprep.subr.bf16.mxu1 %v1484_v16  ;;  %v1577_v15 = vld [vmem:[%s2080_s1 + $0x434] ss:$8 sps:$4 sm:$0xff]   ;;  %v1575_v16 = vld [vmem:[%s2080_s1 + $0x430] ss:$8 sps:$4 sm:$0xff]  }
  0x4d   :  { %1082 = vmatprep.subr.bf16.mxu0 %v1487_v17  ;;  %v1580_v17 = vld [vmem:[%s2080_s1 + $0x444] ss:$8 sps:$4 sm:$0xff]  }
  0x4f   :  { %997 = vmatpush1.bf16.msra.mxu1 %v1482_v18  ;;  %v1578_v18 = vld [vmem:[%s2080_s1 + $0x440] ss:$8 sps:$4 sm:$0xff]  }
  0x50   :  { %1083 = vmatpush1.bf16.msra.mxu0 %v1485_v19  ;;  %998 = vmatprep.subr.bf16.mxu1 %v1490_v20  ;;  %v1583_v19 = vld [vmem:[%s2080_s1 + $0x454] ss:$8 sps:$4 sm:$0xff]   ;;  %v1581_v20 = vld [vmem:[%s2080_s1 + $0x450] ss:$8 sps:$4 sm:$0xff]  }
  0x51   :  { %1084 = vmatprep.subr.bf16.mxu0 %v1493_v21  ;;  %v1586_v21 = vld [vmem:[%s2080_s1 + $0x464] ss:$8 sps:$4 sm:$0xff]  }
  0x53   :  { %999 = vmatpush1.bf16.msra.mxu1 %v1488_v22  ;;  %v1584_v22 = vld [vmem:[%s2080_s1 + $0x460] ss:$8 sps:$4 sm:$0xff]  }
  0x54   :  { %1085 = vmatpush1.bf16.msra.mxu0 %v1491_v23  ;;  %1000 = vmatprep.subr.bf16.mxu1 %v1496_v24  ;;  %v1589_v23 = vld [vmem:[%s2080_s1 + $0x474] ss:$8 sps:$4 sm:$0xff]   ;;  %v1587_v24 = vld [vmem:[%s2080_s1 + $0x470] ss:$8 sps:$4 sm:$0xff]  }
  0x55   :  { %1086 = vmatprep.subr.bf16.mxu0 %v1499_v25  ;;  %v1590_v25 = vld [vmem:[%s2081_s0 + $0x20] ss:$36 sps:$4 sm:$0xff]  }
  0x57   :  { %1001 = vmatpush1.bf16.msra.mxu1 %v1494_v26 }
  0x58   :  { %1087 = vmatpush1.bf16.msra.mxu0 %v1497_v27  ;;  %1002 = vmatprep.subr.bf16.mxu1 %v1502_v28 }
  0x59   :  { %1088 = vmatprep.subr.bf16.mxu0 %v1505_v29 }
  0x5b   :  { %1003 = vmatpush1.bf16.msra.mxu1 %v1500_v30  ;;  %v171_v30 = vlaneseq }
  0x5c   :  { %1089 = vmatpush1.bf16.msra.mxu0 %v1503_v31  ;;  %1004 = vmatprep.subr.bf16.mxu1 %v1508_v32 }
  0x5d   :  { %1090 = vmatprep.subr.bf16.mxu0 %v1511_v33  ;;  %v172_v31 = vshrl.u32 %v171_v30, 7  ;;  %v169_v33 = vld [vmem:[%s2082_s2] sm:$0x3] }
  0x5f   :  { %1005 = vmatpush1.bf16.msra.mxu1 %v1506_v36  ;;  %v173_v32 = vsub.s32 0, %v172_v31  ;;  %v177_v34 = vsub.s32 1, %v172_v31 }
  0x60   :  { %1091 = vmatpush1.bf16.msra.mxu0 %v1509_v37  ;;  %1006 = vmatprep.subr.bf16.mxu1 %v1514_v38 }
  0x61   :  { %1092 = vmatprep.subr.bf16.mxu0 %v1517_v39  ;;  %v174_v35 = vrot.slane %v169_v33, %v173_v32  ;;  %v178_v36 = vrot.slane %v169_v33, %v177_v34 }
  0x63   :  { %1007 = vmatpush1.bf16.msra.mxu1 %v1512_v40 }
  0x64   :  { %1093 = vmatpush1.bf16.msra.mxu0 %v1515_v41  ;;  %1008 = vmatprep.subr.bf16.mxu1 %v1520_v42 }
  0x65   :  { %1094 = vmatprep.subr.bf16.mxu0 %v1523_v43 }
  0x67   :  { %1009 = vmatpush1.bf16.msra.mxu1 %v1518_v44 }
  0x68   :  { %1095 = vmatpush1.bf16.msra.mxu0 %v1521_v45  ;;  %1010 = vmatprep.subr.bf16.mxu1 %v1526_v46 }
  0x69   :  { %1096 = vmatprep.subr.bf16.mxu0 %v1529_v47 }
  0x6b   :  { %1011 = vmatpush1.bf16.msra.mxu1 %v1524_v48 }
  0x6c   :  { %1097 = vmatpush1.bf16.msra.mxu0 %v1527_v49  ;;  %1012 = vmatprep.subr.bf16.mxu1 %v1532_v50 }
  0x6d   :  { %1098 = vmatprep.subr.bf16.mxu0 %v1535_v51 }
  0x6f   :  { %1013 = vmatpush1.bf16.msra.mxu1 %v1530_v52 }
  0x70   :  { %1099 = vmatpush1.bf16.msra.mxu0 %v1533_v53  ;;  %1014 = vmatprep.subr.bf16.mxu1 %v1538_v54 }
  0x71   :  { %1100 = vmatprep.subr.bf16.mxu0 %v1541_v55 }
  0x73   :  { %1015 = vmatpush1.bf16.msra.mxu1 %v1536_v56 }
  0x74   :  { %1101 = vmatpush1.bf16.msra.mxu0 %v1539_v57  ;;  %1016 = vmatprep.subr.bf16.mxu1 %v1544_v58 }
  0x75   :  { %1102 = vmatprep.subr.bf16.mxu0 %v1547_v59 }
  0x77   :  { %1017 = vmatpush1.bf16.msra.mxu1 %v1542_v60 }
  0x78   :  { %1103 = vmatpush1.bf16.msra.mxu0 %v1545_v61  ;;  %1018 = vmatprep.subr.bf16.mxu1 %v1550_v62 }
  0x79   :  { %1104 = vmatprep.subr.bf16.mxu0 %v1553_v63 }
  0x7b   :  { %1019 = vmatpush1.bf16.msra.mxu1 %v1548_v0 }
  0x7c   :  { %1105 = vmatpush1.bf16.msra.mxu0 %v1551_v1  ;;  %1020 = vmatprep.subr.bf16.mxu1 %v1556_v2 }
  0x7d   :  { %1106 = vmatprep.subr.bf16.mxu0 %v1559_v3 }
  0x7f   :  { %1021 = vmatpush1.bf16.msra.mxu1 %v1554_v4 }
  0x80   :  { %1107 = vmatpush1.bf16.msra.mxu0 %v1557_v5 }
  0x81   :  { %1119 = vmatprep.subr.bf16.mxu0 %v1568_v6 }
  0x82   :  { %1023 = vmatmul.mubr.bf16.vlgmr.msra.gmra.mrb[0].mxu1 %v1560_v7 }
  0x83   :  { %1109 = vmatmul.mubr.bf16.vlgmr.msra.gmra.mrb[0].mxu0 %v1563_v8 }
  0x84   :  { %1120 = vmatpush1.bf16.msra.mxu0 %v1566_v9  ;;  %1151 = vmatprep.mubr.bf16.mxu0 %v1591_v12 }
  0x85   :  { %1121 = vmatprep.subr.bf16.mxu0 %v1571_v10 }
  0x88   :  { %1122 = vmatpush1.bf16.msra.mxu0 %v1569_v11 }
  0x89   :  { %1123 = vmatprep.subr.bf16.mxu0 %v1574_v13 }
  0x8c   :  { %1124 = vmatpush1.bf16.msra.mxu0 %v1572_v14 }
  0x8d   :  { %1125 = vmatprep.subr.bf16.mxu0 %v1577_v15 }
  0x90   :  { %1126 = vmatpush1.bf16.msra.mxu0 %v1575_v16 }
  0x91   :  { %1127 = vmatprep.subr.bf16.mxu0 %v1580_v17 }
  0x94   :  { %1128 = vmatpush1.bf16.msra.mxu0 %v1578_v18 }
  0x95   :  { %1129 = vmatprep.subr.bf16.mxu0 %v1583_v19 }
  0x98   :  { %1130 = vmatpush1.bf16.msra.mxu0 %v1581_v20 }
  0x99   :  { %1131 = vmatprep.subr.bf16.mxu0 %v1586_v21 }
  0x9c   :  { %1132 = vmatpush1.bf16.msra.mxu0 %v1584_v22 }
  0x9d   :  { %1133 = vmatprep.subr.bf16.mxu0 %v1589_v23 }
  0xa0   :  { %1134 = vmatpush1.bf16.msra.mxu0 %v1587_v24 }
  0xa3   :  { %1152 = vmatmul.mubr.bf16.vlgmr.msra.gmra.mrb[0].mxu0 %v1590_v25 }
 0x155   :  { %v1024_v26 = vpop.f32.mrb[0].mxu1 }
 0x156   :  { %v1026_v27 = vpop.f32.mrb[1].mxu1  ;;  %v1341_v37 = vadd.f32 %v1024_v26, %v174_v35 }
 0x157   :  { %v1028_v28 = vpop.f32.mrb[2].mxu1  ;;  %v1343_v38 = vadd.f32 %v1026_v27, %v178_v36 }
 0x158   :  { %v1030_v29 = vpop.f32.mrb[3].mxu1  ;;  %v1345_v40 = vadd.f32 %v1028_v28, %v174_v35 }
 0x159   :  { %v1347_v43 = vadd.f32 %v1030_v29, %v178_v36 }
 0x176   :  { %v1153_v39 = vpop.f32.mrb[0].mxu0 }
 0x177   :  { %v1342_v41 = vadd.f32 %v1341_v37, %v1153_v39  ;;  %v1155_v42 = vpop.f32.mrb[1].mxu0 }
 0x178   :  { %v1344_v44 = vadd.f32 %v1343_v38, %v1155_v42  ;;  %v1157_v45 = vpop.f32.mrb[2].mxu0 }
 0x179   :  { %v1162_v46 = vmax.f32 %v1342_v41, 0.0  ;;  %v1346_v47 = vadd.f32 %v1345_v40, %v1157_v45  ;;  %v1159_v48 = vpop.f32.mrb[3].mxu0 }
 0x17a   :  { %v1163_v49 = vmax.f32 %v1344_v44, 0.0  ;;  %v1348_v50 = vadd.f32 %v1347_v43, %v1159_v48 }
 0x17b   :  { %v1164_v51 = vmax.f32 %v1346_v47, 0.0 }
 0x17c   :  { %v1339_v52 = vpack.c.bf16 %v1163_v49, %v1162_v46  ;;  %v1165_v53 = vmax.f32 %v1348_v50, 0.0 }
 0x17e   :  { %1178 = vst [vmem:[%s2083_s3] sm:$0xff] %v1339_v52  ;;  %v1340_v54 = vpack.c.bf16 %v1165_v53, %v1164_v51 }
 0x180   :  { %1179 = vst [vmem:[%s2083_s3 + $0x8] sm:$0xff] %v1340_v54 }

// kernel: forward.29
= control target key start
LH: loop header
LB: loop body
LE: loop exit
PB: predicated region body
PF: predicated region fallthrough
CT: control target
= control target key end

     0   :  { %s4047_s1 = inlined_call_operand.vmem [shape: bf16[2304,256], index: 1, kind: input, shape index: {}]   ;;  %s4048_s0 = inlined_call_operand.vmem [shape: bf16[16,2304], index: 0, kind: input, shape index: {}]   ;;  %s4049_s2 = inlined_call_operand.vmem [shape: f32[1,256], index: 2, kind: input, shape index: {}]   ;;  %s4050_s3 = inlined_call_operand.vmem [shape: bf16[16,256], index: 3, kind: input, shape index: {}]   ;;  %s4051_s4 = inlined_call_operand.vmem [shape: bf16[16,256], index: 4, kind: output, shape index: {}]  }
   0x1   :  { %v2630_v0 = vld [vmem:[%s4047_s1 + $0x4] ss:$8 sps:$4 sm:$0xff]   ;;  %v2634_v2 = vld [vmem:[%s4047_s1] ss:$8 sps:$4 sm:$0xff]   ;;  %v2636_v4 = vld [vmem:[%s4047_s1 + $0x14] ss:$8 sps:$4 sm:$0xff]  }
   0x2   :  { %v2632_v1 = vld [vmem:[%s4047_s1 + $0x404] ss:$8 sps:$4 sm:$0xff]   ;;  %1865 = vmatprep.subr.bf16.mxu1 %v2630_v0  ;;  %v2635_v3 = vld [vmem:[%s4047_s1 + $0x400] ss:$8 sps:$4 sm:$0xff]   ;;  %v2638_v5 = vld [vmem:[%s4047_s1 + $0x414] ss:$8 sps:$4 sm:$0xff]  }
   0x3   :  { %2037 = vmatprep.subr.bf16.mxu0 %v2632_v1  ;;  %1866 = vmatpush1.bf16.msra.mxu1 %v2634_v2  ;;  %v2640_v6 = vld [vmem:[%s4047_s1 + $0x10] ss:$8 sps:$4 sm:$0xff]   ;;  %v2642_v8 = vld [vmem:[%s4047_s1 + $0x24] ss:$8 sps:$4 sm:$0xff]   ;;  %v2646_v10 = vld [vmem:[%s4047_s1 + $0x20] ss:$8 sps:$4 sm:$0xff]  }
   0x4   :  { %2038 = vmatpush1.bf16.msra.mxu0 %v2635_v3  ;;  %1867 = vmatprep.subr.bf16.mxu1 %v2636_v4  ;;  %v2641_v7 = vld [vmem:[%s4047_s1 + $0x410] ss:$8 sps:$4 sm:$0xff]   ;;  %v2644_v9 = vld [vmem:[%s4047_s1 + $0x424] ss:$8 sps:$4 sm:$0xff]   ;;  %v2647_v11 = vld [vmem:[%s4047_s1 + $0x420] ss:$8 sps:$4 sm:$0xff]  }
   0x5   :  { %2039 = vmatprep.subr.bf16.mxu0 %v2638_v5  ;;  %v2648_v12 = vld [vmem:[%s4047_s1 + $0x34] ss:$8 sps:$4 sm:$0xff]   ;;  %v2652_v14 = vld [vmem:[%s4047_s1 + $0x30] ss:$8 sps:$4 sm:$0xff]   ;;  %v2654_v16 = vld [vmem:[%s4047_s1 + $0x44] ss:$8 sps:$4 sm:$0xff]  }
   0x6   :  { %v2650_v13 = vld [vmem:[%s4047_s1 + $0x434] ss:$8 sps:$4 sm:$0xff]   ;;  %v2653_v15 = vld [vmem:[%s4047_s1 + $0x430] ss:$8 sps:$4 sm:$0xff]   ;;  %v2656_v17 = vld [vmem:[%s4047_s1 + $0x444] ss:$8 sps:$4 sm:$0xff]  }
   0x7   :  { %1868 = vmatpush1.bf16.msra.mxu1 %v2640_v6  ;;  %v2658_v18 = vld [vmem:[%s4047_s1 + $0x40] ss:$8 sps:$4 sm:$0xff]   ;;  %v2660_v20 = vld [vmem:[%s4047_s1 + $0x54] ss:$8 sps:$4 sm:$0xff]   ;;  %v2664_v22 = vld [vmem:[%s4047_s1 + $0x50] ss:$8 sps:$4 sm:$0xff]  }
   0x8   :  { %2040 = vmatpush1.bf16.msra.mxu0 %v2641_v7  ;;  %1869 = vmatprep.subr.bf16.mxu1 %v2642_v8  ;;  %v2659_v19 = vld [vmem:[%s4047_s1 + $0x440] ss:$8 sps:$4 sm:$0xff]   ;;  %v2662_v21 = vld [vmem:[%s4047_s1 + $0x454] ss:$8 sps:$4 sm:$0xff]   ;;  %v2665_v23 = vld [vmem:[%s4047_s1 + $0x450] ss:$8 sps:$4 sm:$0xff]  }
   0x9   :  { %2041 = vmatprep.subr.bf16.mxu0 %v2644_v9  ;;  %v2666_v24 = vld [vmem:[%s4047_s1 + $0x64] ss:$8 sps:$4 sm:$0xff]   ;;  %v2670_v26 = vld [vmem:[%s4047_s1 + $0x60] ss:$8 sps:$4 sm:$0xff]   ;;  %v2672_v28 = vld [vmem:[%s4047_s1 + $0x74] ss:$8 sps:$4 sm:$0xff]  }
   0xa   :  { %v2668_v25 = vld [vmem:[%s4047_s1 + $0x464] ss:$8 sps:$4 sm:$0xff]   ;;  %v2671_v27 = vld [vmem:[%s4047_s1 + $0x460] ss:$8 sps:$4 sm:$0xff]   ;;  %v2674_v29 = vld [vmem:[%s4047_s1 + $0x474] ss:$8 sps:$4 sm:$0xff]  }
   0xb   :  { %1870 = vmatpush1.bf16.msra.mxu1 %v2646_v10  ;;  %v2676_v30 = vld [vmem:[%s4047_s1 + $0x70] ss:$8 sps:$4 sm:$0xff]   ;;  %v2678_v32 = vld [vmem:[%s4047_s1 + $0x84] ss:$8 sps:$4 sm:$0xff]   ;;  %v2682_v34 = vld [vmem:[%s4047_s1 + $0x80] ss:$8 sps:$4 sm:$0xff]  }
   0xc   :  { %2042 = vmatpush1.bf16.msra.mxu0 %v2647_v11  ;;  %1871 = vmatprep.subr.bf16.mxu1 %v2648_v12  ;;  %v2677_v31 = vld [vmem:[%s4047_s1 + $0x470] ss:$8 sps:$4 sm:$0xff]   ;;  %v2680_v33 = vld [vmem:[%s4047_s1 + $0x484] ss:$8 sps:$4 sm:$0xff]   ;;  %v2683_v35 = vld [vmem:[%s4047_s1 + $0x480] ss:$8 sps:$4 sm:$0xff]  }
   0xd   :  { %2043 = vmatprep.subr.bf16.mxu0 %v2650_v13  ;;  %v2684_v36 = vld [vmem:[%s4047_s1 + $0x94] ss:$8 sps:$4 sm:$0xff]   ;;  %v2688_v38 = vld [vmem:[%s4047_s1 + $0x90] ss:$8 sps:$4 sm:$0xff]   ;;  %v2690_v40 = vld [vmem:[%s4047_s1 + $0xa4] ss:$8 sps:$4 sm:$0xff]  }
   0xe   :  { %v2686_v37 = vld [vmem:[%s4047_s1 + $0x494] ss:$8 sps:$4 sm:$0xff]   ;;  %v2689_v39 = vld [vmem:[%s4047_s1 + $0x490] ss:$8 sps:$4 sm:$0xff]   ;;  %v2692_v41 = vld [vmem:[%s4047_s1 + $0x4a4] ss:$8 sps:$4 sm:$0xff]  }
   0xf   :  { %1872 = vmatpush1.bf16.msra.mxu1 %v2652_v14  ;;  %v2694_v42 = vld [vmem:[%s4047_s1 + $0xa0] ss:$8 sps:$4 sm:$0xff]   ;;  %v2696_v44 = vld [vmem:[%s4047_s1 + $0xb4] ss:$8 sps:$4 sm:$0xff]   ;;  %v2700_v46 = vld [vmem:[%s4047_s1 + $0xb0] ss:$8 sps:$4 sm:$0xff]  }
  0x10   :  { %2044 = vmatpush1.bf16.msra.mxu0 %v2653_v15  ;;  %1873 = vmatprep.subr.bf16.mxu1 %v2654_v16  ;;  %v2695_v43 = vld [vmem:[%s4047_s1 + $0x4a0] ss:$8 sps:$4 sm:$0xff]   ;;  %v2698_v45 = vld [vmem:[%s4047_s1 + $0x4b4] ss:$8 sps:$4 sm:$0xff]   ;;  %v2701_v47 = vld [vmem:[%s4047_s1 + $0x4b0] ss:$8 sps:$4 sm:$0xff]  }
  0x11   :  { %2045 = vmatprep.subr.bf16.mxu0 %v2656_v17  ;;  %v2728_v48 = vld [vmem:[%s4048_s0 + $0x4] ss:$72 sps:$4 sm:$0xff]   ;;  %v2706_v52 = vld [vmem:[%s4047_s1 + $0xc0] ss:$8 sps:$4 sm:$0xff]   ;;  %v2708_v54 = vld [vmem:[%s4047_s1 + $0xd4] ss:$8 sps:$4 sm:$0xff]  }
  0x12   :  { %v2702_v49 = vld [vmem:[%s4047_s1 + $0xc4] ss:$8 sps:$4 sm:$0xff]   ;;  %1897 = vmatprep.mubr.bf16.mxu1 %v2728_v48  ;;  %v2707_v53 = vld [vmem:[%s4047_s1 + $0x4c0] ss:$8 sps:$4 sm:$0xff]   ;;  %v2710_v55 = vld [vmem:[%s4047_s1 + $0x4d4] ss:$8 sps:$4 sm:$0xff]  }
  0x13   :  { %1874 = vmatpush1.bf16.msra.mxu1 %v2658_v18  ;;  %v2704_v50 = vld [vmem:[%s4047_s1 + $0x4c4] ss:$8 sps:$4 sm:$0xff]   ;;  %v2712_v56 = vld [vmem:[%s4047_s1 + $0xd0] ss:$8 sps:$4 sm:$0xff]   ;;  %v2718_v60 = vld [vmem:[%s4047_s1 + $0xe0] ss:$8 sps:$4 sm:$0xff]  }
  0x14   :  { %2046 = vmatpush1.bf16.msra.mxu0 %v2659_v19  ;;  %1875 = vmatprep.subr.bf16.mxu1 %v2660_v20  ;;  %v2734_v51 = vld [vmem:[%s4048_s0 + $0x24] ss:$72 sps:$4 sm:$0xff]   ;;  %v2713_v57 = vld [vmem:[%s4047_s1 + $0x4d0] ss:$8 sps:$4 sm:$0xff]   ;;  %v2719_v61 = vld [vmem:[%s4047_s1 + $0x4e0] ss:$8 sps:$4 sm:$0xff]  }
  0x15   :  { %2047 = vmatprep.subr.bf16.mxu0 %v2662_v21  ;;  %2069 = vmatprep.mubr.bf16.mxu0 %v2734_v51  ;;  %v2714_v58 = vld [vmem:[%s4047_s1 + $0xe4] ss:$8 sps:$4 sm:$0xff]   ;;  %v2720_v62 = vld [vmem:[%s4047_s1 + $0xf4] ss:$8 sps:$4 sm:$0xff]   ;;  %v2724_v0 = vld [vmem:[%s4047_s1 + $0xf0] ss:$8 sps:$4 sm:$0xff]  }
  0x16   :  { %v2716_v59 = vld [vmem:[%s4047_s1 + $0x4e4] ss:$8 sps:$4 sm:$0xff]   ;;  %v2722_v63 = vld [vmem:[%s4047_s1 + $0x4f4] ss:$8 sps:$4 sm:$0xff]   ;;  %v2725_v1 = vld [vmem:[%s4047_s1 + $0x4f0] ss:$8 sps:$4 sm:$0xff]  }
  0x17   :  { %1876 = vmatpush1.bf16.msra.mxu1 %v2664_v22  ;;  %v2731_v2 = vld [vmem:[%s4047_s1 + $0x104] ss:$8 sps:$4 sm:$0xff]   ;;  %v2726_v4 = vld [vmem:[%s4048_s0] ss:$72 sps:$4 sm:$0xff]   ;;  %v2740_v8 = vld [vmem:[%s4047_s1 + $0x114] ss:$8 sps:$4 sm:$0xff]  }
  0x18   :  { %2048 = vmatpush1.bf16.msra.mxu0 %v2665_v23  ;;  %1877 = vmatprep.subr.bf16.mxu1 %v2666_v24  ;;  %v2737_v3 = vld [vmem:[%s4047_s1 + $0x504] ss:$8 sps:$4 sm:$0xff]   ;;  %v2729_v5 = vld [vmem:[%s4047_s1 + $0x100] ss:$8 sps:$4 sm:$0xff]   ;;  %v2743_v9 = vld [vmem:[%s4047_s1 + $0x514] ss:$8 sps:$4 sm:$0xff]  }
  0x19   :  { %2049 = vmatprep.subr.bf16.mxu0 %v2668_v25  ;;  %v2732_v6 = vld [vmem:[%s4048_s0 + $0x20] ss:$72 sps:$4 sm:$0xff]   ;;  %v2738_v10 = vld [vmem:[%s4047_s1 + $0x110] ss:$8 sps:$4 sm:$0xff]   ;;  %v2746_v12 = vld [vmem:[%s4047_s1 + $0x124] ss:$8 sps:$4 sm:$0xff]  }
  0x1a   :  { %v2735_v7 = vld [vmem:[%s4047_s1 + $0x500] ss:$8 sps:$4 sm:$0xff]   ;;  %v2741_v11 = vld [vmem:[%s4047_s1 + $0x510] ss:$8 sps:$4 sm:$0xff]   ;;  %v2749_v13 = vld [vmem:[%s4047_s1 + $0x524] ss:$8 sps:$4 sm:$0xff]  }
  0x1b   :  { %1878 = vmatpush1.bf16.msra.mxu1 %v2670_v26  ;;  %v2744_v14 = vld [vmem:[%s4047_s1 + $0x120] ss:$8 sps:$4 sm:$0xff]   ;;  %v2752_v16 = vld [vmem:[%s4047_s1 + $0x134] ss:$8 sps:$4 sm:$0xff]   ;;  %v2750_v18 = vld [vmem:[%s4047_s1 + $0x130] ss:$8 sps:$4 sm:$0xff]  }
  0x1c   :  { %2050 = vmatpush1.bf16.msra.mxu0 %v2671_v27  ;;  %1879 = vmatprep.subr.bf16.mxu1 %v2672_v28  ;;  %v2747_v15 = vld [vmem:[%s4047_s1 + $0x520] ss:$8 sps:$4 sm:$0xff]   ;;  %v2755_v17 = vld [vmem:[%s4047_s1 + $0x534] ss:$8 sps:$4 sm:$0xff]   ;;  %v2753_v19 = vld [vmem:[%s4047_s1 + $0x530] ss:$8 sps:$4 sm:$0xff]  }
  0x1d   :  { %2051 = vmatprep.subr.bf16.mxu0 %v2674_v29  ;;  %v2758_v20 = vld [vmem:[%s4047_s1 + $0x144] ss:$8 sps:$4 sm:$0xff]   ;;  %v2756_v22 = vld [vmem:[%s4047_s1 + $0x140] ss:$8 sps:$4 sm:$0xff]   ;;  %v2764_v24 = vld [vmem:[%s4047_s1 + $0x154] ss:$8 sps:$4 sm:$0xff]  }
  0x1e   :  { %v2761_v21 = vld [vmem:[%s4047_s1 + $0x544] ss:$8 sps:$4 sm:$0xff]   ;;  %v2759_v23 = vld [vmem:[%s4047_s1 + $0x540] ss:$8 sps:$4 sm:$0xff]   ;;  %v2767_v25 = vld [vmem:[%s4047_s1 + $0x554] ss:$8 sps:$4 sm:$0xff]  }
  0x1f   :  { %1880 = vmatpush1.bf16.msra.mxu1 %v2676_v30  ;;  %v2762_v26 = vld [vmem:[%s4047_s1 + $0x150] ss:$8 sps:$4 sm:$0xff]   ;;  %v2770_v28 = vld [vmem:[%s4047_s1 + $0x164] ss:$8 sps:$4 sm:$0xff]   ;;  %v2768_v30 = vld [vmem:[%s4047_s1 + $0x160] ss:$8 sps:$4 sm:$0xff]  }
  0x20   :  { %2052 = vmatpush1.bf16.msra.mxu0 %v2677_v31  ;;  %1881 = vmatprep.subr.bf16.mxu1 %v2678_v32  ;;  %v2765_v27 = vld [vmem:[%s4047_s1 + $0x550] ss:$8 sps:$4 sm:$0xff]   ;;  %v2773_v29 = vld [vmem:[%s4047_s1 + $0x564] ss:$8 sps:$4 sm:$0xff]   ;;  %v2771_v31 = vld [vmem:[%s4047_s1 + $0x560] ss:$8 sps:$4 sm:$0xff]  }
  0x21   :  { %2053 = vmatprep.subr.bf16.mxu0 %v2680_v33  ;;  %v2776_v32 = vld [vmem:[%s4047_s1 + $0x174] ss:$8 sps:$4 sm:$0xff]   ;;  %v2792_v48 = vld [vmem:[%s4047_s1 + $0x1a0] ss:$8 sps:$4 sm:$0xff]  }
  0x22   :  { %v2779_v33 = vld [vmem:[%s4047_s1 + $0x574] ss:$8 sps:$4 sm:$0xff]  }
  0x23   :  { %1882 = vmatpush1.bf16.msra.mxu1 %v2682_v34  ;;  %v2830_v34 = vld [vmem:[%s4048_s0 + $0xc] ss:$72 sps:$4 sm:$0xff]  }
  0x24   :  { %2054 = vmatpush1.bf16.msra.mxu0 %v2683_v35  ;;  %1883 = vmatprep.subr.bf16.mxu1 %v2684_v36  ;;  %v2774_v35 = vld [vmem:[%s4047_s1 + $0x170] ss:$8 sps:$4 sm:$0xff]   ;;  %v2803_v51 = vld [vmem:[%s4047_s1 + $0x5b4] ss:$8 sps:$4 sm:$0xff]  }
  0x25   :  { %2055 = vmatprep.subr.bf16.mxu0 %v2686_v37  ;;  %v2777_v36 = vld [vmem:[%s4047_s1 + $0x570] ss:$8 sps:$4 sm:$0xff]   ;;  %v2836_v37 = vld [vmem:[%s4048_s0 + $0x2c] ss:$72 sps:$4 sm:$0xff]  }
  0x27   :  { %1884 = vmatpush1.bf16.msra.mxu1 %v2688_v38  ;;  %v2782_v38 = vld [vmem:[%s4047_s1 + $0x184] ss:$8 sps:$4 sm:$0xff]  }
  0x28   :  { %2056 = vmatpush1.bf16.msra.mxu0 %v2689_v39  ;;  %1885 = vmatprep.subr.bf16.mxu1 %v2690_v40  ;;  %v2785_v39 = vld [vmem:[%s4047_s1 + $0x584] ss:$8 sps:$4 sm:$0xff]   ;;  %v2780_v40 = vld [vmem:[%s4047_s1 + $0x180] ss:$8 sps:$4 sm:$0xff]  }
  0x29   :  { %2057 = vmatprep.subr.bf16.mxu0 %v2692_v41  ;;  %v2783_v41 = vld [vmem:[%s4047_s1 + $0x580] ss:$8 sps:$4 sm:$0xff]  }
  0x2b   :  { %1886 = vmatpush1.bf16.msra.mxu1 %v2694_v42  ;;  %v2788_v42 = vld [vmem:[%s4047_s1 + $0x194] ss:$8 sps:$4 sm:$0xff]  }
  0x2c   :  { %2058 = vmatpush1.bf16.msra.mxu0 %v2695_v43  ;;  %1887 = vmatprep.subr.bf16.mxu1 %v2696_v44  ;;  %v2791_v43 = vld [vmem:[%s4047_s1 + $0x594] ss:$8 sps:$4 sm:$0xff]   ;;  %v2786_v44 = vld [vmem:[%s4047_s1 + $0x190] ss:$8 sps:$4 sm:$0xff]  }
  0x2d   :  { %2059 = vmatprep.subr.bf16.mxu0 %v2698_v45  ;;  %v2789_v45 = vld [vmem:[%s4047_s1 + $0x590] ss:$8 sps:$4 sm:$0xff]  }
  0x2f   :  { %1888 = vmatpush1.bf16.msra.mxu1 %v2700_v46  ;;  %v2794_v46 = vld [vmem:[%s4047_s1 + $0x1a4] ss:$8 sps:$4 sm:$0xff]  }
  0x30   :  { %2060 = vmatpush1.bf16.msra.mxu0 %v2701_v47  ;;  %1889 = vmatprep.subr.bf16.mxu1 %v2702_v49  ;;  %v2797_v47 = vld [vmem:[%s4047_s1 + $0x5a4] ss:$8 sps:$4 sm:$0xff]   ;;  %v2795_v49 = vld [vmem:[%s4047_s1 + $0x5a0] ss:$8 sps:$4 sm:$0xff]  }
  0x31   :  { %2061 = vmatprep.subr.bf16.mxu0 %v2704_v50  ;;  %v2800_v50 = vld [vmem:[%s4047_s1 + $0x1b4] ss:$8 sps:$4 sm:$0xff]  }
  0x33   :  { %1890 = vmatpush1.bf16.msra.mxu1 %v2706_v52  ;;  %v2798_v52 = vld [vmem:[%s4047_s1 + $0x1b0] ss:$8 sps:$4 sm:$0xff]  }
  0x34   :  { %2062 = vmatpush1.bf16.msra.mxu0 %v2707_v53  ;;  %1891 = vmatprep.subr.bf16.mxu1 %v2708_v54  ;;  %v2801_v53 = vld [vmem:[%s4047_s1 + $0x5b0] ss:$8 sps:$4 sm:$0xff]   ;;  %v2806_v54 = vld [vmem:[%s4047_s1 + $0x1c4] ss:$8 sps:$4 sm:$0xff]  }
  0x35   :  { %2063 = vmatprep.subr.bf16.mxu0 %v2710_v55  ;;  %v2809_v55 = vld [vmem:[%s4047_s1 + $0x5c4] ss:$8 sps:$4 sm:$0xff]  }
  0x37   :  { %1892 = vmatpush1.bf16.msra.mxu1 %v2712_v56  ;;  %v2804_v56 = vld [vmem:[%s4047_s1 + $0x1c0] ss:$8 sps:$4 sm:$0xff]  }
  0x38   :  { %2064 = vmatpush1.bf16.msra.mxu0 %v2713_v57  ;;  %1893 = vmatprep.subr.bf16.mxu1 %v2714_v58  ;;  %v2807_v57 = vld [vmem:[%s4047_s1 + $0x5c0] ss:$8 sps:$4 sm:$0xff]   ;;  %v2812_v58 = vld [vmem:[%s4047_s1 + $0x1d4] ss:$8 sps:$4 sm:$0xff]  }
  0x39   :  { %2065 = vmatprep.subr.bf16.mxu0 %v2716_v59  ;;  %v2815_v59 = vld [vmem:[%s4047_s1 + $0x5d4] ss:$8 sps:$4 sm:$0xff]  }
  0x3b   :  { %1894 = vmatpush1.bf16.msra.mxu1 %v2718_v60  ;;  %v2810_v60 = vld [vmem:[%s4047_s1 + $0x1d0] ss:$8 sps:$4 sm:$0xff]  }
  0x3c   :  { %2066 = vmatpush1.bf16.msra.mxu0 %v2719_v61  ;;  %1895 = vmatprep.subr.bf16.mxu1 %v2720_v62  ;;  %v2813_v61 = vld [vmem:[%s4047_s1 + $0x5d0] ss:$8 sps:$4 sm:$0xff]   ;;  %v2818_v62 = vld [vmem:[%s4047_s1 + $0x1e4] ss:$8 sps:$4 sm:$0xff]  }
  0x3d   :  { %2067 = vmatprep.subr.bf16.mxu0 %v2722_v63  ;;  %v2821_v63 = vld [vmem:[%s4047_s1 + $0x5e4] ss:$8 sps:$4 sm:$0xff]  }
  0x3f   :  { %1896 = vmatpush1.bf16.msra.mxu1 %v2724_v0  ;;  %v2816_v0 = vld [vmem:[%s4047_s1 + $0x1e0] ss:$8 sps:$4 sm:$0xff]  }
  0x40   :  { %2068 = vmatpush1.bf16.msra.mxu0 %v2725_v1  ;;  %1908 = vmatprep.subr.bf16.mxu1 %v2731_v2  ;;  %v2819_v1 = vld [vmem:[%s4047_s1 + $0x5e0] ss:$8 sps:$4 sm:$0xff]   ;;  %v2824_v2 = vld [vmem:[%s4047_s1 + $0x1f4] ss:$8 sps:$4 sm:$0xff]  }
  0x41   :  { %2080 = vmatprep.subr.bf16.mxu0 %v2737_v3  ;;  %v2827_v3 = vld [vmem:[%s4047_s1 + $0x5f4] ss:$8 sps:$4 sm:$0xff]  }
  0x42   :  { %1898 = vmatmul.mubr.bf16.vlgmr.msra.gmra.mrb[0].mxu1 %v2726_v4  ;;  %v2822_v4 = vld [vmem:[%s4047_s1 + $0x1f0] ss:$8 sps:$4 sm:$0xff]  }
  0x43   :  { %2070 = vmatmul.mubr.bf16.vlgmr.msra.gmra.mrb[0].mxu0 %v2732_v6  ;;  %1909 = vmatpush1.bf16.msra.mxu1 %v2729_v5  ;;  %v2825_v5 = vld [vmem:[%s4047_s1 + $0x5f0] ss:$8 sps:$4 sm:$0xff]   ;;  %v2833_v6 = vld [vmem:[%s4047_s1 + $0x204] ss:$8 sps:$4 sm:$0xff]  }
  0x44   :  { %2081 = vmatpush1.bf16.msra.mxu0 %v2735_v7  ;;  %1910 = vmatprep.subr.bf16.mxu1 %v2740_v8  ;;  %v2839_v7 = vld [vmem:[%s4047_s1 + $0x604] ss:$8 sps:$4 sm:$0xff]   ;;  %v2828_v8 = vld [vmem:[%s4048_s0 + $0x8] ss:$72 sps:$4 sm:$0xff]  }
  0x45   :  { %2082 = vmatprep.subr.bf16.mxu0 %v2743_v9  ;;  %1940 = vmatprep.mubr.bf16.mxu1 %v2830_v34  ;;  %v2831_v9 = vld [vmem:[%s4047_s1 + $0x200] ss:$8 sps:$4 sm:$0xff]   ;;  %v2872_v34 = vld [vmem:[%s4047_s1 + $0x264] ss:$8 sps:$4 sm:$0xff]  }
  0x46   :  { %2112 = vmatprep.mubr.bf16.mxu0 %v2836_v37  ;;  %v2873_v37 = vld [vmem:[%s4047_s1 + $0x660] ss:$8 sps:$4 sm:$0xff]  }
  0x47   :  { %1911 = vmatpush1.bf16.msra.mxu1 %v2738_v10  ;;  %v2834_v10 = vld [vmem:[%s4048_s0 + $0x28] ss:$72 sps:$4 sm:$0xff]  }
  0x48   :  { %2083 = vmatpush1.bf16.msra.mxu0 %v2741_v11  ;;  %1912 = vmatprep.subr.bf16.mxu1 %v2746_v12  ;;  %v2837_v11 = vld [vmem:[%s4047_s1 + $0x600] ss:$8 sps:$4 sm:$0xff]   ;;  %v2842_v12 = vld [vmem:[%s4047_s1 + $0x214] ss:$8 sps:$4 sm:$0xff]  }
  0x49   :  { %2084 = vmatprep.subr.bf16.mxu0 %v2749_v13  ;;  %v2845_v13 = vld [vmem:[%s4047_s1 + $0x614] ss:$8 sps:$4 sm:$0xff]  }
  0x4b   :  { %1913 = vmatpush1.bf16.msra.mxu1 %v2744_v14  ;;  %v2840_v14 = vld [vmem:[%s4047_s1 + $0x210] ss:$8 sps:$4 sm:$0xff]  }
  0x4c   :  { %2085 = vmatpush1.bf16.msra.mxu0 %v2747_v15  ;;  %1914 = vmatprep.subr.bf16.mxu1 %v2752_v16  ;;  %v2843_v15 = vld [vmem:[%s4047_s1 + $0x610] ss:$8 sps:$4 sm:$0xff]   ;;  %v2848_v16 = vld [vmem:[%s4047_s1 + $0x224] ss:$8 sps:$4 sm:$0xff]  }
  0x4d   :  { %2086 = vmatprep.subr.bf16.mxu0 %v2755_v17  ;;  %v2851_v17 = vld [vmem:[%s4047_s1 + $0x624] ss:$8 sps:$4 sm:$0xff]  }
  0x4f   :  { %1915 = vmatpush1.bf16.msra.mxu1 %v2750_v18  ;;  %v2846_v18 = vld [vmem:[%s4047_s1 + $0x220] ss:$8 sps:$4 sm:$0xff]  }
  0x50   :  { %2087 = vmatpush1.bf16.msra.mxu0 %v2753_v19  ;;  %1916 = vmatprep.subr.bf16.mxu1 %v2758_v20  ;;  %v2932_v19 = vld [vmem:[%s4048_s0 + $0x14] ss:$72 sps:$4 sm:$0xff]   ;;  %v2849_v20 = vld [vmem:[%s4047_s1 + $0x620] ss:$8 sps:$4 sm:$0xff]  }
  0x51   :  { %2088 = vmatprep.subr.bf16.mxu0 %v2761_v21  ;;  %v2854_v21 = vld [vmem:[%s4047_s1 + $0x234] ss:$8 sps:$4 sm:$0xff]  }
  0x53   :  { %1917 = vmatpush1.bf16.msra.mxu1 %v2756_v22  ;;  %v2857_v22 = vld [vmem:[%s4047_s1 + $0x634] ss:$8 sps:$4 sm:$0xff]  }
  0x54   :  { %2089 = vmatpush1.bf16.msra.mxu0 %v2759_v23  ;;  %1918 = vmatprep.subr.bf16.mxu1 %v2764_v24  ;;  %v2938_v23 = vld [vmem:[%s4048_s0 + $0x34] ss:$72 sps:$4 sm:$0xff]   ;;  %v2852_v24 = vld [vmem:[%s4047_s1 + $0x230] ss:$8 sps:$4 sm:$0xff]  }
  0x55   :  { %2090 = vmatprep.subr.bf16.mxu0 %v2767_v25  ;;  %v2855_v25 = vld [vmem:[%s4047_s1 + $0x630] ss:$8 sps:$4 sm:$0xff]  }
  0x57   :  { %1919 = vmatpush1.bf16.msra.mxu1 %v2762_v26  ;;  %v2860_v26 = vld [vmem:[%s4047_s1 + $0x244] ss:$8 sps:$4 sm:$0xff]  }
  0x58   :  { %2091 = vmatpush1.bf16.msra.mxu0 %v2765_v27  ;;  %1920 = vmatprep.subr.bf16.mxu1 %v2770_v28  ;;  %v2863_v27 = vld [vmem:[%s4047_s1 + $0x644] ss:$8 sps:$4 sm:$0xff]   ;;  %v2858_v28 = vld [vmem:[%s4047_s1 + $0x240] ss:$8 sps:$4 sm:$0xff]  }
  0x59   :  { %2092 = vmatprep.subr.bf16.mxu0 %v2773_v29  ;;  %v2861_v29 = vld [vmem:[%s4047_s1 + $0x640] ss:$8 sps:$4 sm:$0xff]  }
  0x5b   :  { %1921 = vmatpush1.bf16.msra.mxu1 %v2768_v30  ;;  %v2866_v30 = vld [vmem:[%s4047_s1 + $0x254] ss:$8 sps:$4 sm:$0xff]  }
  0x5c   :  { %2093 = vmatpush1.bf16.msra.mxu0 %v2771_v31  ;;  %1922 = vmatprep.subr.bf16.mxu1 %v2776_v32  ;;  %v2869_v31 = vld [vmem:[%s4047_s1 + $0x654] ss:$8 sps:$4 sm:$0xff]   ;;  %v2864_v32 = vld [vmem:[%s4047_s1 + $0x250] ss:$8 sps:$4 sm:$0xff]  }
  0x5d   :  { %2094 = vmatprep.subr.bf16.mxu0 %v2779_v33  ;;  %v2867_v33 = vld [vmem:[%s4047_s1 + $0x650] ss:$8 sps:$4 sm:$0xff]  }
  0x5f   :  { %1923 = vmatpush1.bf16.msra.mxu1 %v2774_v35  ;;  %v2875_v35 = vld [vmem:[%s4047_s1 + $0x664] ss:$8 sps:$4 sm:$0xff]  }
  0x60   :  { %2095 = vmatpush1.bf16.msra.mxu0 %v2777_v36  ;;  %1924 = vmatprep.subr.bf16.mxu1 %v2782_v38  ;;  %v2870_v36 = vld [vmem:[%s4047_s1 + $0x260] ss:$8 sps:$4 sm:$0xff]   ;;  %v2878_v38 = vld [vmem:[%s4047_s1 + $0x274] ss:$8 sps:$4 sm:$0xff]  }
  0x61   :  { %2096 = vmatprep.subr.bf16.mxu0 %v2785_v39  ;;  %v2881_v39 = vld [vmem:[%s4047_s1 + $0x674] ss:$8 sps:$4 sm:$0xff]  }
  0x63   :  { %1925 = vmatpush1.bf16.msra.mxu1 %v2780_v40  ;;  %v2876_v40 = vld [vmem:[%s4047_s1 + $0x270] ss:$8 sps:$4 sm:$0xff]  }
  0x64   :  { %2097 = vmatpush1.bf16.msra.mxu0 %v2783_v41  ;;  %1926 = vmatprep.subr.bf16.mxu1 %v2788_v42  ;;  %v2879_v41 = vld [vmem:[%s4047_s1 + $0x670] ss:$8 sps:$4 sm:$0xff]   ;;  %v2884_v42 = vld [vmem:[%s4047_s1 + $0x284] ss:$8 sps:$4 sm:$0xff]  }
  0x65   :  { %2098 = vmatprep.subr.bf16.mxu0 %v2791_v43  ;;  %v2887_v43 = vld [vmem:[%s4047_s1 + $0x684] ss:$8 sps:$4 sm:$0xff]  }
  0x67   :  { %1927 = vmatpush1.bf16.msra.mxu1 %v2786_v44  ;;  %v2882_v44 = vld [vmem:[%s4047_s1 + $0x280] ss:$8 sps:$4 sm:$0xff]  }
  0x68   :  { %2099 = vmatpush1.bf16.msra.mxu0 %v2789_v45  ;;  %1928 = vmatprep.subr.bf16.mxu1 %v2794_v46  ;;  %v2885_v45 = vld [vmem:[%s4047_s1 + $0x680] ss:$8 sps:$4 sm:$0xff]   ;;  %v2890_v46 = vld [vmem:[%s4047_s1 + $0x294] ss:$8 sps:$4 sm:$0xff]  }
  0x69   :  { %2100 = vmatprep.subr.bf16.mxu0 %v2797_v47  ;;  %v2893_v47 = vld [vmem:[%s4047_s1 + $0x694] ss:$8 sps:$4 sm:$0xff]  }
  0x6b   :  { %1929 = vmatpush1.bf16.msra.mxu1 %v2792_v48  ;;  %v2888_v48 = vld [vmem:[%s4047_s1 + $0x290] ss:$8 sps:$4 sm:$0xff]  }
  0x6c   :  { %2101 = vmatpush1.bf16.msra.mxu0 %v2795_v49  ;;  %1930 = vmatprep.subr.bf16.mxu1 %v2800_v50  ;;  %v2891_v49 = vld [vmem:[%s4047_s1 + $0x690] ss:$8 sps:$4 sm:$0xff]   ;;  %v2896_v50 = vld [vmem:[%s4047_s1 + $0x2a4] ss:$8 sps:$4 sm:$0xff]  }
  0x6d   :  { %2102 = vmatprep.subr.bf16.mxu0 %v2803_v51  ;;  %v2899_v51 = vld [vmem:[%s4047_s1 + $0x6a4] ss:$8 sps:$4 sm:$0xff]  }
  0x6f   :  { %1931 = vmatpush1.bf16.msra.mxu1 %v2798_v52  ;;  %v2894_v52 = vld [vmem:[%s4047_s1 + $0x2a0] ss:$8 sps:$4 sm:$0xff]  }
  0x70   :  { %2103 = vmatpush1.bf16.msra.mxu0 %v2801_v53  ;;  %1932 = vmatprep.subr.bf16.mxu1 %v2806_v54  ;;  %v2897_v53 = vld [vmem:[%s4047_s1 + $0x6a0] ss:$8 sps:$4 sm:$0xff]   ;;  %v2902_v54 = vld [vmem:[%s4047_s1 + $0x2b4] ss:$8 sps:$4 sm:$0xff]  }
  0x71   :  { %2104 = vmatprep.subr.bf16.mxu0 %v2809_v55  ;;  %v2905_v55 = vld [vmem:[%s4047_s1 + $0x6b4] ss:$8 sps:$4 sm:$0xff]  }
  0x73   :  { %1933 = vmatpush1.bf16.msra.mxu1 %v2804_v56  ;;  %v2900_v56 = vld [vmem:[%s4047_s1 + $0x2b0] ss:$8 sps:$4 sm:$0xff]  }
  0x74   :  { %2105 = vmatpush1.bf16.msra.mxu0 %v2807_v57  ;;  %1934 = vmatprep.subr.bf16.mxu1 %v2812_v58  ;;  %v2903_v57 = vld [vmem:[%s4047_s1 + $0x6b0] ss:$8 sps:$4 sm:$0xff]   ;;  %v2908_v58 = vld [vmem:[%s4047_s1 + $0x2c4] ss:$8 sps:$4 sm:$0xff]  }
  0x75   :  { %2106 = vmatprep.subr.bf16.mxu0 %v2815_v59  ;;  %v2911_v59 = vld [vmem:[%s4047_s1 + $0x6c4] ss:$8 sps:$4 sm:$0xff]  }
  0x77   :  { %1935 = vmatpush1.bf16.msra.mxu1 %v2810_v60  ;;  %v2906_v60 = vld [vmem:[%s4047_s1 + $0x2c0] ss:$8 sps:$4 sm:$0xff]  }
  0x78   :  { %2107 = vmatpush1.bf16.msra.mxu0 %v2813_v61  ;;  %1936 = vmatprep.subr.bf16.mxu1 %v2818_v62  ;;  %v2909_v61 = vld [vmem:[%s4047_s1 + $0x6c0] ss:$8 sps:$4 sm:$0xff]   ;;  %v2914_v62 = vld [vmem:[%s4047_s1 + $0x2d4] ss:$8 sps:$4 sm:$0xff]  }
  0x79   :  { %2108 = vmatprep.subr.bf16.mxu0 %v2821_v63  ;;  %v2917_v63 = vld [vmem:[%s4047_s1 + $0x6d4] ss:$8 sps:$4 sm:$0xff]  }
  0x7b   :  { %1937 = vmatpush1.bf16.msra.mxu1 %v2816_v0  ;;  %v2912_v0 = vld [vmem:[%s4047_s1 + $0x2d0] ss:$8 sps:$4 sm:$0xff]  }
  0x7c   :  { %2109 = vmatpush1.bf16.msra.mxu0 %v2819_v1  ;;  %1938 = vmatprep.subr.bf16.mxu1 %v2824_v2  ;;  %v2915_v1 = vld [vmem:[%s4047_s1 + $0x6d0] ss:$8 sps:$4 sm:$0xff]   ;;  %v2920_v2 = vld [vmem:[%s4047_s1 + $0x2e4] ss:$8 sps:$4 sm:$0xff]  }
  0x7d   :  { %2110 = vmatprep.subr.bf16.mxu0 %v2827_v3  ;;  %v2923_v3 = vld [vmem:[%s4047_s1 + $0x6e4] ss:$8 sps:$4 sm:$0xff]  }
  0x7f   :  { %1939 = vmatpush1.bf16.msra.mxu1 %v2822_v4  ;;  %v2918_v4 = vld [vmem:[%s4047_s1 + $0x2e0] ss:$8 sps:$4 sm:$0xff]  }
  0x80   :  { %2111 = vmatpush1.bf16.msra.mxu0 %v2825_v5  ;;  %1951 = vmatprep.subr.bf16.mxu1 %v2833_v6  ;;  %v2921_v5 = vld [vmem:[%s4047_s1 + $0x6e0] ss:$8 sps:$4 sm:$0xff]   ;;  %v2926_v6 = vld [vmem:[%s4047_s1 + $0x2f4] ss:$8 sps:$4 sm:$0xff]  }
  0x81   :  { %2123 = vmatprep.subr.bf16.mxu0 %v2839_v7  ;;  %v2929_v7 = vld [vmem:[%s4047_s1 + $0x6f4] ss:$8 sps:$4 sm:$0xff]  }
  0x82   :  { %1941 = vmatmul.mubr.bf16.vlgmr.msra.gmra.mrb[0].mxu1 %v2828_v8  ;;  %v2924_v8 = vld [vmem:[%s4047_s1 + $0x2f0] ss:$8 sps:$4 sm:$0xff]  }
  0x83   :  { %2113 = vmatmul.mubr.bf16.vlgmr.msra.gmra.mrb[0].mxu0 %v2834_v10  ;;  %1952 = vmatpush1.bf16.msra.mxu1 %v2831_v9  ;;  %v2927_v9 = vld [vmem:[%s4047_s1 + $0x6f0] ss:$8 sps:$4 sm:$0xff]   ;;  %v2935_v10 = vld [vmem:[%s4047_s1 + $0x304] ss:$8 sps:$4 sm:$0xff]  }
  0x84   :  { %2124 = vmatpush1.bf16.msra.mxu0 %v2837_v11  ;;  %1953 = vmatprep.subr.bf16.mxu1 %v2842_v12  ;;  %v2941_v11 = vld [vmem:[%s4047_s1 + $0x704] ss:$8 sps:$4 sm:$0xff]   ;;  %v2930_v12 = vld [vmem:[%s4048_s0 + $0x10] ss:$72 sps:$4 sm:$0xff]  }
  0x85   :  { %2125 = vmatprep.subr.bf16.mxu0 %v2845_v13  ;;  %1983 = vmatprep.mubr.bf16.mxu1 %v2932_v19  ;;  %v2933_v13 = vld [vmem:[%s4047_s1 + $0x300] ss:$8 sps:$4 sm:$0xff]   ;;  %v3037_v19 = vld [vmem:[%s4048_s0 + $0x3c] ss:$72 sps:$4 sm:$0xff]  }
  0x86   :  { %2155 = vmatprep.mubr.bf16.mxu0 %v2938_v23  ;;  %v2953_v23 = vld [vmem:[%s4047_s1 + $0x724] ss:$8 sps:$4 sm:$0xff]  }
  0x87   :  { %1954 = vmatpush1.bf16.msra.mxu1 %v2840_v14  ;;  %v2936_v14 = vld [vmem:[%s4048_s0 + $0x30] ss:$72 sps:$4 sm:$0xff]  }
  0x88   :  { %2126 = vmatpush1.bf16.msra.mxu0 %v2843_v15  ;;  %1955 = vmatprep.subr.bf16.mxu1 %v2848_v16  ;;  %v2939_v15 = vld [vmem:[%s4047_s1 + $0x700] ss:$8 sps:$4 sm:$0xff]   ;;  %v2944_v16 = vld [vmem:[%s4047_s1 + $0x314] ss:$8 sps:$4 sm:$0xff]  }
  0x89   :  { %2127 = vmatprep.subr.bf16.mxu0 %v2851_v17  ;;  %v2947_v17 = vld [vmem:[%s4047_s1 + $0x714] ss:$8 sps:$4 sm:$0xff]  }
  0x8b   :  { %1956 = vmatpush1.bf16.msra.mxu1 %v2846_v18  ;;  %v3034_v18 = vld [vmem:[%s4048_s0 + $0x1c] ss:$72 sps:$4 sm:$0xff]  }
  0x8c   :  { %2128 = vmatpush1.bf16.msra.mxu0 %v2849_v20  ;;  %1957 = vmatprep.subr.bf16.mxu1 %v2854_v21  ;;  %v2942_v20 = vld [vmem:[%s4047_s1 + $0x310] ss:$8 sps:$4 sm:$0xff]  }
  0x8d   :  { %2129 = vmatprep.subr.bf16.mxu0 %v2857_v22  ;;  %v2945_v21 = vld [vmem:[%s4047_s1 + $0x710] ss:$8 sps:$4 sm:$0xff]   ;;  %v2950_v22 = vld [vmem:[%s4047_s1 + $0x324] ss:$8 sps:$4 sm:$0xff]  }
  0x8f   :  { %1958 = vmatpush1.bf16.msra.mxu1 %v2852_v24  ;;  %v2948_v24 = vld [vmem:[%s4047_s1 + $0x320] ss:$8 sps:$4 sm:$0xff]  }
  0x90   :  { %2130 = vmatpush1.bf16.msra.mxu0 %v2855_v25  ;;  %1959 = vmatprep.subr.bf16.mxu1 %v2860_v26  ;;  %v2951_v25 = vld [vmem:[%s4047_s1 + $0x720] ss:$8 sps:$4 sm:$0xff]   ;;  %v2956_v26 = vld [vmem:[%s4047_s1 + $0x334] ss:$8 sps:$4 sm:$0xff]  }
  0x91   :  { %2131 = vmatprep.subr.bf16.mxu0 %v2863_v27  ;;  %v2959_v27 = vld [vmem:[%s4047_s1 + $0x734] ss:$8 sps:$4 sm:$0xff]  }
  0x93   :  { %1960 = vmatpush1.bf16.msra.mxu1 %v2858_v28  ;;  %v2954_v28 = vld [vmem:[%s4047_s1 + $0x330] ss:$8 sps:$4 sm:$0xff]  }
  0x94   :  { %2132 = vmatpush1.bf16.msra.mxu0 %v2861_v29  ;;  %1961 = vmatprep.subr.bf16.mxu1 %v2866_v30  ;;  %v2957_v29 = vld [vmem:[%s4047_s1 + $0x730] ss:$8 sps:$4 sm:$0xff]   ;;  %v2962_v30 = vld [vmem:[%s4047_s1 + $0x344] ss:$8 sps:$4 sm:$0xff]  }
  0x95   :  { %2133 = vmatprep.subr.bf16.mxu0 %v2869_v31  ;;  %v2965_v31 = vld [vmem:[%s4047_s1 + $0x744] ss:$8 sps:$4 sm:$0xff]  }
  0x97   :  { %1962 = vmatpush1.bf16.msra.mxu1 %v2864_v32  ;;  %v2960_v32 = vld [vmem:[%s4047_s1 + $0x340] ss:$8 sps:$4 sm:$0xff]  }
  0x98   :  { %2134 = vmatpush1.bf16.msra.mxu0 %v2867_v33  ;;  %1963 = vmatprep.subr.bf16.mxu1 %v2872_v34  ;;  %v2963_v33 = vld [vmem:[%s4047_s1 + $0x740] ss:$8 sps:$4 sm:$0xff]   ;;  %v2968_v34 = vld [vmem:[%s4047_s1 + $0x354] ss:$8 sps:$4 sm:$0xff]  }
  0x99   :  { %2135 = vmatprep.subr.bf16.mxu0 %v2875_v35  ;;  %v2971_v35 = vld [vmem:[%s4047_s1 + $0x754] ss:$8 sps:$4 sm:$0xff]  }
  0x9b   :  { %1964 = vmatpush1.bf16.msra.mxu1 %v2870_v36  ;;  %v2966_v36 = vld [vmem:[%s4047_s1 + $0x350] ss:$8 sps:$4 sm:$0xff]  }
  0x9c   :  { %2136 = vmatpush1.bf16.msra.mxu0 %v2873_v37  ;;  %1965 = vmatprep.subr.bf16.mxu1 %v2878_v38  ;;  %v2969_v37 = vld [vmem:[%s4047_s1 + $0x750] ss:$8 sps:$4 sm:$0xff]   ;;  %v2974_v38 = vld [vmem:[%s4047_s1 + $0x364] ss:$8 sps:$4 sm:$0xff]  }
  0x9d   :  { %2137 = vmatprep.subr.bf16.mxu0 %v2881_v39  ;;  %v2977_v39 = vld [vmem:[%s4047_s1 + $0x764] ss:$8 sps:$4 sm:$0xff]  }
  0x9f   :  { %1966 = vmatpush1.bf16.msra.mxu1 %v2876_v40  ;;  %v2972_v40 = vld [vmem:[%s4047_s1 + $0x360] ss:$8 sps:$4 sm:$0xff]  }
  0xa0   :  { %2138 = vmatpush1.bf16.msra.mxu0 %v2879_v41  ;;  %1967 = vmatprep.subr.bf16.mxu1 %v2884_v42  ;;  %v2975_v41 = vld [vmem:[%s4047_s1 + $0x760] ss:$8 sps:$4 sm:$0xff]   ;;  %v2980_v42 = vld [vmem:[%s4047_s1 + $0x374] ss:$8 sps:$4 sm:$0xff]  }
  0xa1   :  { %2139 = vmatprep.subr.bf16.mxu0 %v2887_v43  ;;  %v2983_v43 = vld [vmem:[%s4047_s1 + $0x774] ss:$8 sps:$4 sm:$0xff]  }
  0xa3   :  { %1968 = vmatpush1.bf16.msra.mxu1 %v2882_v44  ;;  %v2978_v44 = vld [vmem:[%s4047_s1 + $0x370] ss:$8 sps:$4 sm:$0xff]  }
  0xa4   :  { %2140 = vmatpush1.bf16.msra.mxu0 %v2885_v45  ;;  %1969 = vmatprep.subr.bf16.mxu1 %v2890_v46  ;;  %v2981_v45 = vld [vmem:[%s4047_s1 + $0x770] ss:$8 sps:$4 sm:$0xff]   ;;  %v2986_v46 = vld [vmem:[%s4047_s1 + $0x384] ss:$8 sps:$4 sm:$0xff]  }
  0xa5   :  { %2141 = vmatprep.subr.bf16.mxu0 %v2893_v47  ;;  %v2989_v47 = vld [vmem:[%s4047_s1 + $0x784] ss:$8 sps:$4 sm:$0xff]  }
  0xa7   :  { %1970 = vmatpush1.bf16.msra.mxu1 %v2888_v48  ;;  %v2984_v48 = vld [vmem:[%s4047_s1 + $0x380] ss:$8 sps:$4 sm:$0xff]  }
  0xa8   :  { %2142 = vmatpush1.bf16.msra.mxu0 %v2891_v49  ;;  %1971 = vmatprep.subr.bf16.mxu1 %v2896_v50  ;;  %v2987_v49 = vld [vmem:[%s4047_s1 + $0x780] ss:$8 sps:$4 sm:$0xff]   ;;  %v2992_v50 = vld [vmem:[%s4047_s1 + $0x394] ss:$8 sps:$4 sm:$0xff]  }
  0xa9   :  { %2143 = vmatprep.subr.bf16.mxu0 %v2899_v51  ;;  %v2995_v51 = vld [vmem:[%s4047_s1 + $0x794] ss:$8 sps:$4 sm:$0xff]  }
  0xab   :  { %1972 = vmatpush1.bf16.msra.mxu1 %v2894_v52  ;;  %v2990_v52 = vld [vmem:[%s4047_s1 + $0x390] ss:$8 sps:$4 sm:$0xff]  }
  0xac   :  { %2144 = vmatpush1.bf16.msra.mxu0 %v2897_v53  ;;  %1973 = vmatprep.subr.bf16.mxu1 %v2902_v54  ;;  %v2993_v53 = vld [vmem:[%s4047_s1 + $0x790] ss:$8 sps:$4 sm:$0xff]   ;;  %v2998_v54 = vld [vmem:[%s4047_s1 + $0x3a4] ss:$8 sps:$4 sm:$0xff]  }
  0xad   :  { %2145 = vmatprep.subr.bf16.mxu0 %v2905_v55  ;;  %v3001_v55 = vld [vmem:[%s4047_s1 + $0x7a4] ss:$8 sps:$4 sm:$0xff]  }
  0xaf   :  { %1974 = vmatpush1.bf16.msra.mxu1 %v2900_v56  ;;  %v2996_v56 = vld [vmem:[%s4047_s1 + $0x3a0] ss:$8 sps:$4 sm:$0xff]  }
  0xb0   :  { %2146 = vmatpush1.bf16.msra.mxu0 %v2903_v57  ;;  %1975 = vmatprep.subr.bf16.mxu1 %v2908_v58  ;;  %v2999_v57 = vld [vmem:[%s4047_s1 + $0x7a0] ss:$8 sps:$4 sm:$0xff]   ;;  %v3004_v58 = vld [vmem:[%s4047_s1 + $0x3b4] ss:$8 sps:$4 sm:$0xff]  }
  0xb1   :  { %2147 = vmatprep.subr.bf16.mxu0 %v2911_v59  ;;  %v3007_v59 = vld [vmem:[%s4047_s1 + $0x7b4] ss:$8 sps:$4 sm:$0xff]  }
  0xb3   :  { %1976 = vmatpush1.bf16.msra.mxu1 %v2906_v60  ;;  %v3002_v60 = vld [vmem:[%s4047_s1 + $0x3b0] ss:$8 sps:$4 sm:$0xff]  }
  0xb4   :  { %2148 = vmatpush1.bf16.msra.mxu0 %v2909_v61  ;;  %1977 = vmatprep.subr.bf16.mxu1 %v2914_v62  ;;  %v3005_v61 = vld [vmem:[%s4047_s1 + $0x7b0] ss:$8 sps:$4 sm:$0xff]   ;;  %v3010_v62 = vld [vmem:[%s4047_s1 + $0x3c4] ss:$8 sps:$4 sm:$0xff]  }
  0xb5   :  { %2149 = vmatprep.subr.bf16.mxu0 %v2917_v63  ;;  %v3013_v63 = vld [vmem:[%s4047_s1 + $0x7c4] ss:$8 sps:$4 sm:$0xff]  }
  0xb7   :  { %1978 = vmatpush1.bf16.msra.mxu1 %v2912_v0  ;;  %v3008_v0 = vld [vmem:[%s4047_s1 + $0x3c0] ss:$8 sps:$4 sm:$0xff]  }
  0xb8   :  { %2150 = vmatpush1.bf16.msra.mxu0 %v2915_v1  ;;  %1979 = vmatprep.subr.bf16.mxu1 %v2920_v2  ;;  %v3011_v1 = vld [vmem:[%s4047_s1 + $0x7c0] ss:$8 sps:$4 sm:$0xff]   ;;  %v3016_v2 = vld [vmem:[%s4047_s1 + $0x3d4] ss:$8 sps:$4 sm:$0xff]  }
  0xb9   :  { %2151 = vmatprep.subr.bf16.mxu0 %v2923_v3  ;;  %v3019_v3 = vld [vmem:[%s4047_s1 + $0x7d4] ss:$8 sps:$4 sm:$0xff]  }
  0xbb   :  { %1980 = vmatpush1.bf16.msra.mxu1 %v2918_v4  ;;  %v3014_v4 = vld [vmem:[%s4047_s1 + $0x3d0] ss:$8 sps:$4 sm:$0xff]  }
  0xbc   :  { %2152 = vmatpush1.bf16.msra.mxu0 %v2921_v5  ;;  %1981 = vmatprep.subr.bf16.mxu1 %v2926_v6  ;;  %v3017_v5 = vld [vmem:[%s4047_s1 + $0x7d0] ss:$8 sps:$4 sm:$0xff]   ;;  %v3022_v6 = vld [vmem:[%s4047_s1 + $0x3e4] ss:$8 sps:$4 sm:$0xff]  }
  0xbd   :  { %2153 = vmatprep.subr.bf16.mxu0 %v2929_v7  ;;  %v3025_v7 = vld [vmem:[%s4047_s1 + $0x7e4] ss:$8 sps:$4 sm:$0xff]  }
  0xbf   :  { %1982 = vmatpush1.bf16.msra.mxu1 %v2924_v8  ;;  %v3020_v8 = vld [vmem:[%s4047_s1 + $0x3e0] ss:$8 sps:$4 sm:$0xff]  }
  0xc0   :  { %2154 = vmatpush1.bf16.msra.mxu0 %v2927_v9  ;;  %1994 = vmatprep.subr.bf16.mxu1 %v2935_v10  ;;  %v3023_v9 = vld [vmem:[%s4047_s1 + $0x7e0] ss:$8 sps:$4 sm:$0xff]   ;;  %v3028_v10 = vld [vmem:[%s4047_s1 + $0x3f4] ss:$8 sps:$4 sm:$0xff]  }
  0xc1   :  { %2166 = vmatprep.subr.bf16.mxu0 %v2941_v11  ;;  %v3031_v11 = vld [vmem:[%s4047_s1 + $0x7f4] ss:$8 sps:$4 sm:$0xff]  }
  0xc2   :  { %1984 = vmatmul.mubr.bf16.vlgmr.msra.gmra.mrb[0].mxu1 %v2930_v12  ;;  %v3026_v12 = vld [vmem:[%s4047_s1 + $0x3f0] ss:$8 sps:$4 sm:$0xff]  }
  0xc3   :  { %2156 = vmatmul.mubr.bf16.vlgmr.msra.gmra.mrb[0].mxu0 %v2936_v14  ;;  %1995 = vmatpush1.bf16.msra.mxu1 %v2933_v13  ;;  %v3029_v13 = vld [vmem:[%s4047_s1 + $0x7f0] ss:$8 sps:$4 sm:$0xff]   ;;  %v3040_v14 = vld [vmem:[%s4047_s1 + $0x804] ss:$8 sps:$4 sm:$0xff]  }
  0xc4   :  { %2167 = vmatpush1.bf16.msra.mxu0 %v2939_v15  ;;  %1996 = vmatprep.subr.bf16.mxu1 %v2944_v16  ;;  %v3032_v15 = vld [vmem:[%s4048_s0 + $0x18] ss:$72 sps:$4 sm:$0xff]  }
  0xc5   :  { %2168 = vmatprep.subr.bf16.mxu0 %v2947_v17  ;;  %2026 = vmatprep.mubr.bf16.mxu1 %v3034_v18  ;;  %v3035_v16 = vld [vmem:[%s4048_s0 + $0x38] ss:$72 sps:$4 sm:$0xff]   ;;  %v3088_v18 = vld [vmem:[%s4048_s0 + $0x44] ss:$72 sps:$4 sm:$0xff]  }
  0xc6   :  { %2198 = vmatprep.mubr.bf16.mxu0 %v3037_v19  ;;  %v3038_v17 = vld [vmem:[%s4047_s1 + $0x800] ss:$8 sps:$4 sm:$0xff]   ;;  %v3043_v19 = vld [vmem:[%s4047_s1 + $0x814] ss:$8 sps:$4 sm:$0xff]  }
  0xc7   :  { %1997 = vmatpush1.bf16.msra.mxu1 %v2942_v20  ;;  %v3041_v20 = vld [vmem:[%s4047_s1 + $0x810] ss:$8 sps:$4 sm:$0xff]  }
  0xc8   :  { %2169 = vmatpush1.bf16.msra.mxu0 %v2945_v21  ;;  %1998 = vmatprep.subr.bf16.mxu1 %v2950_v22  ;;  %v3046_v21 = vld [vmem:[%s4047_s1 + $0x824] ss:$8 sps:$4 sm:$0xff]   ;;  %v3044_v22 = vld [vmem:[%s4047_s1 + $0x820] ss:$8 sps:$4 sm:$0xff]  }
  0xc9   :  { %2170 = vmatprep.subr.bf16.mxu0 %v2953_v23  ;;  %v3049_v23 = vld [vmem:[%s4047_s1 + $0x834] ss:$8 sps:$4 sm:$0xff]  }
  0xcb   :  { %1999 = vmatpush1.bf16.msra.mxu1 %v2948_v24  ;;  %v3047_v24 = vld [vmem:[%s4047_s1 + $0x830] ss:$8 sps:$4 sm:$0xff]  }
  0xcc   :  { %2171 = vmatpush1.bf16.msra.mxu0 %v2951_v25  ;;  %2000 = vmatprep.subr.bf16.mxu1 %v2956_v26  ;;  %v3052_v25 = vld [vmem:[%s4047_s1 + $0x844] ss:$8 sps:$4 sm:$0xff]   ;;  %v3050_v26 = vld [vmem:[%s4047_s1 + $0x840] ss:$8 sps:$4 sm:$0xff]  }
  0xcd   :  { %2172 = vmatprep.subr.bf16.mxu0 %v2959_v27  ;;  %v3055_v27 = vld [vmem:[%s4047_s1 + $0x854] ss:$8 sps:$4 sm:$0xff]  }
  0xcf   :  { %2001 = vmatpush1.bf16.msra.mxu1 %v2954_v28  ;;  %v3053_v28 = vld [vmem:[%s4047_s1 + $0x850] ss:$8 sps:$4 sm:$0xff]  }
  0xd0   :  { %2173 = vmatpush1.bf16.msra.mxu0 %v2957_v29  ;;  %2002 = vmatprep.subr.bf16.mxu1 %v2962_v30  ;;  %v3058_v29 = vld [vmem:[%s4047_s1 + $0x864] ss:$8 sps:$4 sm:$0xff]   ;;  %v3056_v30 = vld [vmem:[%s4047_s1 + $0x860] ss:$8 sps:$4 sm:$0xff]  }
  0xd1   :  { %2174 = vmatprep.subr.bf16.mxu0 %v2965_v31  ;;  %v3061_v31 = vld [vmem:[%s4047_s1 + $0x874] ss:$8 sps:$4 sm:$0xff]  }
  0xd3   :  { %2003 = vmatpush1.bf16.msra.mxu1 %v2960_v32  ;;  %v3059_v32 = vld [vmem:[%s4047_s1 + $0x870] ss:$8 sps:$4 sm:$0xff]  }
  0xd4   :  { %2175 = vmatpush1.bf16.msra.mxu0 %v2963_v33  ;;  %2004 = vmatprep.subr.bf16.mxu1 %v2968_v34  ;;  %v3064_v33 = vld [vmem:[%s4047_s1 + $0x884] ss:$8 sps:$4 sm:$0xff]   ;;  %v3062_v34 = vld [vmem:[%s4047_s1 + $0x880] ss:$8 sps:$4 sm:$0xff]  }
  0xd5   :  { %2176 = vmatprep.subr.bf16.mxu0 %v2971_v35  ;;  %v3067_v35 = vld [vmem:[%s4047_s1 + $0x894] ss:$8 sps:$4 sm:$0xff]  }
  0xd7   :  { %2005 = vmatpush1.bf16.msra.mxu1 %v2966_v36  ;;  %v3065_v36 = vld [vmem:[%s4047_s1 + $0x890] ss:$8 sps:$4 sm:$0xff]  }
  0xd8   :  { %2177 = vmatpush1.bf16.msra.mxu0 %v2969_v37  ;;  %2006 = vmatprep.subr.bf16.mxu1 %v2974_v38  ;;  %v3070_v37 = vld [vmem:[%s4047_s1 + $0x8a4] ss:$8 sps:$4 sm:$0xff]   ;;  %v3068_v38 = vld [vmem:[%s4047_s1 + $0x8a0] ss:$8 sps:$4 sm:$0xff]  }
  0xd9   :  { %2178 = vmatprep.subr.bf16.mxu0 %v2977_v39  ;;  %v3073_v39 = vld [vmem:[%s4047_s1 + $0x8b4] ss:$8 sps:$4 sm:$0xff]  }
  0xdb   :  { %2007 = vmatpush1.bf16.msra.mxu1 %v2972_v40  ;;  %v3071_v40 = vld [vmem:[%s4047_s1 + $0x8b0] ss:$8 sps:$4 sm:$0xff]  }
  0xdc   :  { %2179 = vmatpush1.bf16.msra.mxu0 %v2975_v41  ;;  %2008 = vmatprep.subr.bf16.mxu1 %v2980_v42  ;;  %v3076_v41 = vld [vmem:[%s4047_s1 + $0x8c4] ss:$8 sps:$4 sm:$0xff]   ;;  %v3074_v42 = vld [vmem:[%s4047_s1 + $0x8c0] ss:$8 sps:$4 sm:$0xff]  }
  0xdd   :  { %2180 = vmatprep.subr.bf16.mxu0 %v2983_v43  ;;  %v3079_v43 = vld [vmem:[%s4047_s1 + $0x8d4] ss:$8 sps:$4 sm:$0xff]  }
  0xdf   :  { %2009 = vmatpush1.bf16.msra.mxu1 %v2978_v44  ;;  %v3077_v44 = vld [vmem:[%s4047_s1 + $0x8d0] ss:$8 sps:$4 sm:$0xff]  }
  0xe0   :  { %2181 = vmatpush1.bf16.msra.mxu0 %v2981_v45  ;;  %2010 = vmatprep.subr.bf16.mxu1 %v2986_v46  ;;  %v3082_v45 = vld [vmem:[%s4047_s1 + $0x8e4] ss:$8 sps:$4 sm:$0xff]   ;;  %v3080_v46 = vld [vmem:[%s4047_s1 + $0x8e0] ss:$8 sps:$4 sm:$0xff]  }
  0xe1   :  { %2182 = vmatprep.subr.bf16.mxu0 %v2989_v47  ;;  %v3085_v47 = vld [vmem:[%s4047_s1 + $0x8f4] ss:$8 sps:$4 sm:$0xff]  }
  0xe3   :  { %2011 = vmatpush1.bf16.msra.mxu1 %v2984_v48  ;;  %v3083_v48 = vld [vmem:[%s4047_s1 + $0x8f0] ss:$8 sps:$4 sm:$0xff]  }
  0xe4   :  { %2183 = vmatpush1.bf16.msra.mxu0 %v2987_v49  ;;  %2012 = vmatprep.subr.bf16.mxu1 %v2992_v50  ;;  %v3086_v49 = vld [vmem:[%s4048_s0 + $0x40] ss:$72 sps:$4 sm:$0xff]  }
  0xe5   :  { %2184 = vmatprep.subr.bf16.mxu0 %v2995_v51 }
  0xe7   :  { %2013 = vmatpush1.bf16.msra.mxu1 %v2990_v52 }
  0xe8   :  { %2185 = vmatpush1.bf16.msra.mxu0 %v2993_v53  ;;  %2014 = vmatprep.subr.bf16.mxu1 %v2998_v54  ;;  %v325_v54 = vlaneseq }
  0xe9   :  { %2186 = vmatprep.subr.bf16.mxu0 %v3001_v55 }
  0xea   :  { %v326_v55 = vshrl.u32 %v325_v54, 7 }
  0xeb   :  { %2015 = vmatpush1.bf16.msra.mxu1 %v2996_v56 }
  0xec   :  { %2187 = vmatpush1.bf16.msra.mxu0 %v2999_v57  ;;  %2016 = vmatprep.subr.bf16.mxu1 %v3004_v58  ;;  %v327_v56 = vsub.s32 0, %v326_v55  ;;  %v323_v57 = vld [vmem:[%s4049_s2] sm:$0x3]  ;;  %v331_v58 = vsub.s32 1, %v326_v55 }
  0xed   :  { %2188 = vmatprep.subr.bf16.mxu0 %v3007_v59 }
  0xee   :  { %v328_v59 = vrot.slane %v323_v57, %v327_v56 }
  0xef   :  { %2017 = vmatpush1.bf16.msra.mxu1 %v3002_v60  ;;  %v332_v60 = vrot.slane %v323_v57, %v331_v58 }
  0xf0   :  { %2189 = vmatpush1.bf16.msra.mxu0 %v3005_v61  ;;  %2018 = vmatprep.subr.bf16.mxu1 %v3010_v62  ;;  %v2252_v61 = vld [vmem:[%s4050_s3] sm:$0xff]  ;;  %v2253_v62 = vld [vmem:[%s4050_s3 + $0x8] sm:$0xff] }
  0xf1   :  { %2190 = vmatprep.subr.bf16.mxu0 %v3013_v63 }
  0xf3   :  { %2019 = vmatpush1.bf16.msra.mxu1 %v3008_v0  ;;  %v2254_v0 = vunpack.c.l.bf16 %v2252_v61 }
  0xf4   :  { %2191 = vmatpush1.bf16.msra.mxu0 %v3011_v1  ;;  %2020 = vmatprep.subr.bf16.mxu1 %v3016_v2 }
  0xf5   :  { %2192 = vmatprep.subr.bf16.mxu0 %v3019_v3  ;;  %v2255_v3 = vunpack.c.h.bf16 %v2252_v61 }
  0xf7   :  { %2021 = vmatpush1.bf16.msra.mxu1 %v3014_v4 }
  0xf8   :  { %2193 = vmatpush1.bf16.msra.mxu0 %v3017_v5  ;;  %2022 = vmatprep.subr.bf16.mxu1 %v3022_v6 }
  0xf9   :  { %2194 = vmatprep.subr.bf16.mxu0 %v3025_v7  ;;  %v2256_v7 = vunpack.c.l.bf16 %v2253_v62 }
  0xfb   :  { %2023 = vmatpush1.bf16.msra.mxu1 %v3020_v8 }
  0xfc   :  { %2195 = vmatpush1.bf16.msra.mxu0 %v3023_v9  ;;  %2024 = vmatprep.subr.bf16.mxu1 %v3028_v10 }
  0xfd   :  { %2196 = vmatprep.subr.bf16.mxu0 %v3031_v11  ;;  %v2257_v11 = vunpack.c.h.bf16 %v2253_v62 }
  0xff   :  { %2025 = vmatpush1.bf16.msra.mxu1 %v3026_v12 }
 0x100   :  { %2197 = vmatpush1.bf16.msra.mxu0 %v3029_v13 }
 0x101   :  { %2209 = vmatprep.subr.bf16.mxu0 %v3040_v14 }
 0x102   :  { %2027 = vmatmul.mubr.bf16.vlgmr.msra.gmra.mrb[0].mxu1 %v3032_v15 }
 0x103   :  { %2199 = vmatmul.mubr.bf16.vlgmr.msra.gmra.mrb[0].mxu0 %v3035_v16 }
 0x104   :  { %2210 = vmatpush1.bf16.msra.mxu0 %v3038_v17  ;;  %2241 = vmatprep.mubr.bf16.mxu0 %v3088_v18 }
 0x105   :  { %2211 = vmatprep.subr.bf16.mxu0 %v3043_v19 }
 0x108   :  { %2212 = vmatpush1.bf16.msra.mxu0 %v3041_v20 }
 0x109   :  { %2213 = vmatprep.subr.bf16.mxu0 %v3046_v21 }
 0x10c   :  { %2214 = vmatpush1.bf16.msra.mxu0 %v3044_v22 }
 0x10d   :  { %2215 = vmatprep.subr.bf16.mxu0 %v3049_v23 }
 0x110   :  { %2216 = vmatpush1.bf16.msra.mxu0 %v3047_v24 }
 0x111   :  { %2217 = vmatprep.subr.bf16.mxu0 %v3052_v25 }
 0x114   :  { %2218 = vmatpush1.bf16.msra.mxu0 %v3050_v26 }
 0x115   :  { %2219 = vmatprep.subr.bf16.mxu0 %v3055_v27 }
 0x118   :  { %2220 = vmatpush1.bf16.msra.mxu0 %v3053_v28 }
 0x119   :  { %2221 = vmatprep.subr.bf16.mxu0 %v3058_v29 }
 0x11c   :  { %2222 = vmatpush1.bf16.msra.mxu0 %v3056_v30 }
 0x11d   :  { %2223 = vmatprep.subr.bf16.mxu0 %v3061_v31 }
 0x120   :  { %2224 = vmatpush1.bf16.msra.mxu0 %v3059_v32 }
 0x121   :  { %2225 = vmatprep.subr.bf16.mxu0 %v3064_v33 }
 0x124   :  { %2226 = vmatpush1.bf16.msra.mxu0 %v3062_v34 }
 0x125   :  { %2227 = vmatprep.subr.bf16.mxu0 %v3067_v35 }
 0x128   :  { %2228 = vmatpush1.bf16.msra.mxu0 %v3065_v36 }
 0x129   :  { %2229 = vmatprep.subr.bf16.mxu0 %v3070_v37 }
 0x12c   :  { %2230 = vmatpush1.bf16.msra.mxu0 %v3068_v38 }
 0x12d   :  { %2231 = vmatprep.subr.bf16.mxu0 %v3073_v39 }
 0x130   :  { %2232 = vmatpush1.bf16.msra.mxu0 %v3071_v40 }
 0x131   :  { %2233 = vmatprep.subr.bf16.mxu0 %v3076_v41 }
 0x134   :  { %2234 = vmatpush1.bf16.msra.mxu0 %v3074_v42 }
 0x135   :  { %2235 = vmatprep.subr.bf16.mxu0 %v3079_v43 }
 0x138   :  { %2236 = vmatpush1.bf16.msra.mxu0 %v3077_v44 }
 0x139   :  { %2237 = vmatprep.subr.bf16.mxu0 %v3082_v45 }
 0x13c   :  { %2238 = vmatpush1.bf16.msra.mxu0 %v3080_v46 }
 0x13d   :  { %2239 = vmatprep.subr.bf16.mxu0 %v3085_v47 }
 0x140   :  { %2240 = vmatpush1.bf16.msra.mxu0 %v3083_v48 }
 0x143   :  { %2242 = vmatmul.mubr.bf16.vlgmr.msra.gmra.mrb[0].mxu0 %v3086_v49 }
 0x1d5   :  { %v2028_v50 = vpop.f32.mrb[0].mxu1 }
 0x1d6   :  { %v2030_v51 = vpop.f32.mrb[1].mxu1  ;;  %v2594_v63 = vadd.f32 %v2028_v50, %v328_v59 }
 0x1d7   :  { %v2032_v52 = vpop.f32.mrb[2].mxu1  ;;  %v2596_v1 = vadd.f32 %v2030_v51, %v332_v60 }
 0x1d8   :  { %v2034_v53 = vpop.f32.mrb[3].mxu1  ;;  %v2598_v4 = vadd.f32 %v2032_v52, %v328_v59 }
 0x1d9   :  { %v2600_v8 = vadd.f32 %v2034_v53, %v332_v60 }
 0x216   :  { %v2243_v2 = vpop.f32.mrb[0].mxu0 }
 0x217   :  { %v2595_v5 = vadd.f32 %v2594_v63, %v2243_v2  ;;  %v2245_v6 = vpop.f32.mrb[1].mxu0 }
 0x218   :  { %v2597_v9 = vadd.f32 %v2596_v1, %v2245_v6  ;;  %v2247_v10 = vpop.f32.mrb[2].mxu0 }
 0x219   :  { %v2258_v12 = vadd.f32 %v2595_v5, %v2254_v0  ;;  %v2599_v13 = vadd.f32 %v2598_v4, %v2247_v10  ;;  %v2249_v14 = vpop.f32.mrb[3].mxu0 }
 0x21a   :  { %v2259_v15 = vadd.f32 %v2597_v9, %v2255_v3  ;;  %v2601_v16 = vadd.f32 %v2600_v8, %v2249_v14 }
 0x21b   :  { %v2262_v17 = vmax.f32 %v2258_v12, 0.0  ;;  %v2260_v18 = vadd.f32 %v2599_v13, %v2256_v7 }
 0x21c   :  { %v2263_v19 = vmax.f32 %v2259_v15, 0.0  ;;  %v2261_v20 = vadd.f32 %v2601_v16, %v2257_v11 }
 0x21d   :  { %v2264_v21 = vmax.f32 %v2260_v18, 0.0 }
 0x21e   :  { %v2592_v22 = vpack.c.bf16 %v2263_v19, %v2262_v17  ;;  %v2265_v23 = vmax.f32 %v2261_v20, 0.0 }
 0x220   :  { %2278 = vst [vmem:[%s4051_s4] sm:$0xff] %v2592_v22  ;;  %v2593_v24 = vpack.c.bf16 %v2265_v23, %v2264_v21 }
 0x222   :  { %2279 = vst [vmem:[%s4051_s4 + $0x8] sm:$0xff] %v2593_v24 }

// kernel: forward.30
= control target key start
LH: loop header
LB: loop body
LE: loop exit
PB: predicated region body
PF: predicated region fallthrough
CT: control target
= control target key end

     0   :  { %s4023_s1 = inlined_call_operand.vmem [shape: bf16[2304,256], index: 1, kind: input, shape index: {}]   ;;  %s4024_s0 = inlined_call_operand.vmem [shape: bf16[16,2304], index: 0, kind: input, shape index: {}]   ;;  %s4025_s2 = inlined_call_operand.vmem [shape: f32[1,256], index: 2, kind: input, shape index: {}]   ;;  %s4026_s3 = inlined_call_operand.vmem [shape: bf16[16,256], index: 3, kind: output, shape index: {}]  }
   0x1   :  { %v2617_v0 = vld [vmem:[%s4023_s1 + $0x4] ss:$8 sps:$4 sm:$0xff]   ;;  %v2621_v2 = vld [vmem:[%s4023_s1] ss:$8 sps:$4 sm:$0xff]   ;;  %v2623_v4 = vld [vmem:[%s4023_s1 + $0x14] ss:$8 sps:$4 sm:$0xff]  }
   0x2   :  { %v2619_v1 = vld [vmem:[%s4023_s1 + $0x404] ss:$8 sps:$4 sm:$0xff]   ;;  %1862 = vmatprep.subr.bf16.mxu1 %v2617_v0  ;;  %v2622_v3 = vld [vmem:[%s4023_s1 + $0x400] ss:$8 sps:$4 sm:$0xff]   ;;  %v2625_v5 = vld [vmem:[%s4023_s1 + $0x414] ss:$8 sps:$4 sm:$0xff]  }
   0x3   :  { %2034 = vmatprep.subr.bf16.mxu0 %v2619_v1  ;;  %1863 = vmatpush1.bf16.msra.mxu1 %v2621_v2  ;;  %v2627_v6 = vld [vmem:[%s4023_s1 + $0x10] ss:$8 sps:$4 sm:$0xff]   ;;  %v2629_v8 = vld [vmem:[%s4023_s1 + $0x24] ss:$8 sps:$4 sm:$0xff]   ;;  %v2633_v10 = vld [vmem:[%s4023_s1 + $0x20] ss:$8 sps:$4 sm:$0xff]  }
   0x4   :  { %2035 = vmatpush1.bf16.msra.mxu0 %v2622_v3  ;;  %1864 = vmatprep.subr.bf16.mxu1 %v2623_v4  ;;  %v2628_v7 = vld [vmem:[%s4023_s1 + $0x410] ss:$8 sps:$4 sm:$0xff]   ;;  %v2631_v9 = vld [vmem:[%s4023_s1 + $0x424] ss:$8 sps:$4 sm:$0xff]   ;;  %v2634_v11 = vld [vmem:[%s4023_s1 + $0x420] ss:$8 sps:$4 sm:$0xff]  }
   0x5   :  { %2036 = vmatprep.subr.bf16.mxu0 %v2625_v5  ;;  %v2635_v12 = vld [vmem:[%s4023_s1 + $0x34] ss:$8 sps:$4 sm:$0xff]   ;;  %v2639_v14 = vld [vmem:[%s4023_s1 + $0x30] ss:$8 sps:$4 sm:$0xff]   ;;  %v2641_v16 = vld [vmem:[%s4023_s1 + $0x44] ss:$8 sps:$4 sm:$0xff]  }
   0x6   :  { %v2637_v13 = vld [vmem:[%s4023_s1 + $0x434] ss:$8 sps:$4 sm:$0xff]   ;;  %v2640_v15 = vld [vmem:[%s4023_s1 + $0x430] ss:$8 sps:$4 sm:$0xff]   ;;  %v2643_v17 = vld [vmem:[%s4023_s1 + $0x444] ss:$8 sps:$4 sm:$0xff]  }
   0x7   :  { %1865 = vmatpush1.bf16.msra.mxu1 %v2627_v6  ;;  %v2645_v18 = vld [vmem:[%s4023_s1 + $0x40] ss:$8 sps:$4 sm:$0xff]   ;;  %v2647_v20 = vld [vmem:[%s4023_s1 + $0x54] ss:$8 sps:$4 sm:$0xff]   ;;  %v2651_v22 = vld [vmem:[%s4023_s1 + $0x50] ss:$8 sps:$4 sm:$0xff]  }
   0x8   :  { %2037 = vmatpush1.bf16.msra.mxu0 %v2628_v7  ;;  %1866 = vmatprep.subr.bf16.mxu1 %v2629_v8  ;;  %v2646_v19 = vld [vmem:[%s4023_s1 + $0x440] ss:$8 sps:$4 sm:$0xff]   ;;  %v2649_v21 = vld [vmem:[%s4023_s1 + $0x454] ss:$8 sps:$4 sm:$0xff]   ;;  %v2652_v23 = vld [vmem:[%s4023_s1 + $0x450] ss:$8 sps:$4 sm:$0xff]  }
   0x9   :  { %2038 = vmatprep.subr.bf16.mxu0 %v2631_v9  ;;  %v2653_v24 = vld [vmem:[%s4023_s1 + $0x64] ss:$8 sps:$4 sm:$0xff]   ;;  %v2657_v26 = vld [vmem:[%s4023_s1 + $0x60] ss:$8 sps:$4 sm:$0xff]   ;;  %v2659_v28 = vld [vmem:[%s4023_s1 + $0x74] ss:$8 sps:$4 sm:$0xff]  }
   0xa   :  { %v2655_v25 = vld [vmem:[%s4023_s1 + $0x464] ss:$8 sps:$4 sm:$0xff]   ;;  %v2658_v27 = vld [vmem:[%s4023_s1 + $0x460] ss:$8 sps:$4 sm:$0xff]   ;;  %v2661_v29 = vld [vmem:[%s4023_s1 + $0x474] ss:$8 sps:$4 sm:$0xff]  }
   0xb   :  { %1867 = vmatpush1.bf16.msra.mxu1 %v2633_v10  ;;  %v2663_v30 = vld [vmem:[%s4023_s1 + $0x70] ss:$8 sps:$4 sm:$0xff]   ;;  %v2665_v32 = vld [vmem:[%s4023_s1 + $0x84] ss:$8 sps:$4 sm:$0xff]   ;;  %v2669_v34 = vld [vmem:[%s4023_s1 + $0x80] ss:$8 sps:$4 sm:$0xff]  }
   0xc   :  { %2039 = vmatpush1.bf16.msra.mxu0 %v2634_v11  ;;  %1868 = vmatprep.subr.bf16.mxu1 %v2635_v12  ;;  %v2664_v31 = vld [vmem:[%s4023_s1 + $0x470] ss:$8 sps:$4 sm:$0xff]   ;;  %v2667_v33 = vld [vmem:[%s4023_s1 + $0x484] ss:$8 sps:$4 sm:$0xff]   ;;  %v2670_v35 = vld [vmem:[%s4023_s1 + $0x480] ss:$8 sps:$4 sm:$0xff]  }
   0xd   :  { %2040 = vmatprep.subr.bf16.mxu0 %v2637_v13  ;;  %v2671_v36 = vld [vmem:[%s4023_s1 + $0x94] ss:$8 sps:$4 sm:$0xff]   ;;  %v2675_v38 = vld [vmem:[%s4023_s1 + $0x90] ss:$8 sps:$4 sm:$0xff]   ;;  %v2677_v40 = vld [vmem:[%s4023_s1 + $0xa4] ss:$8 sps:$4 sm:$0xff]  }
   0xe   :  { %v2673_v37 = vld [vmem:[%s4023_s1 + $0x494] ss:$8 sps:$4 sm:$0xff]   ;;  %v2676_v39 = vld [vmem:[%s4023_s1 + $0x490] ss:$8 sps:$4 sm:$0xff]   ;;  %v2679_v41 = vld [vmem:[%s4023_s1 + $0x4a4] ss:$8 sps:$4 sm:$0xff]  }
   0xf   :  { %1869 = vmatpush1.bf16.msra.mxu1 %v2639_v14  ;;  %v2681_v42 = vld [vmem:[%s4023_s1 + $0xa0] ss:$8 sps:$4 sm:$0xff]   ;;  %v2683_v44 = vld [vmem:[%s4023_s1 + $0xb4] ss:$8 sps:$4 sm:$0xff]   ;;  %v2687_v46 = vld [vmem:[%s4023_s1 + $0xb0] ss:$8 sps:$4 sm:$0xff]  }
  0x10   :  { %2041 = vmatpush1.bf16.msra.mxu0 %v2640_v15  ;;  %1870 = vmatprep.subr.bf16.mxu1 %v2641_v16  ;;  %v2682_v43 = vld [vmem:[%s4023_s1 + $0x4a0] ss:$8 sps:$4 sm:$0xff]   ;;  %v2685_v45 = vld [vmem:[%s4023_s1 + $0x4b4] ss:$8 sps:$4 sm:$0xff]   ;;  %v2688_v47 = vld [vmem:[%s4023_s1 + $0x4b0] ss:$8 sps:$4 sm:$0xff]  }
  0x11   :  { %2042 = vmatprep.subr.bf16.mxu0 %v2643_v17  ;;  %v2715_v48 = vld [vmem:[%s4024_s0 + $0x4] ss:$72 sps:$4 sm:$0xff]   ;;  %v2693_v52 = vld [vmem:[%s4023_s1 + $0xc0] ss:$8 sps:$4 sm:$0xff]   ;;  %v2695_v54 = vld [vmem:[%s4023_s1 + $0xd4] ss:$8 sps:$4 sm:$0xff]  }
  0x12   :  { %v2689_v49 = vld [vmem:[%s4023_s1 + $0xc4] ss:$8 sps:$4 sm:$0xff]   ;;  %1894 = vmatprep.mubr.bf16.mxu1 %v2715_v48  ;;  %v2694_v53 = vld [vmem:[%s4023_s1 + $0x4c0] ss:$8 sps:$4 sm:$0xff]   ;;  %v2697_v55 = vld [vmem:[%s4023_s1 + $0x4d4] ss:$8 sps:$4 sm:$0xff]  }
  0x13   :  { %1871 = vmatpush1.bf16.msra.mxu1 %v2645_v18  ;;  %v2691_v50 = vld [vmem:[%s4023_s1 + $0x4c4] ss:$8 sps:$4 sm:$0xff]   ;;  %v2699_v56 = vld [vmem:[%s4023_s1 + $0xd0] ss:$8 sps:$4 sm:$0xff]   ;;  %v2705_v60 = vld [vmem:[%s4023_s1 + $0xe0] ss:$8 sps:$4 sm:$0xff]  }
  0x14   :  { %2043 = vmatpush1.bf16.msra.mxu0 %v2646_v19  ;;  %1872 = vmatprep.subr.bf16.mxu1 %v2647_v20  ;;  %v2721_v51 = vld [vmem:[%s4024_s0 + $0x24] ss:$72 sps:$4 sm:$0xff]   ;;  %v2700_v57 = vld [vmem:[%s4023_s1 + $0x4d0] ss:$8 sps:$4 sm:$0xff]   ;;  %v2706_v61 = vld [vmem:[%s4023_s1 + $0x4e0] ss:$8 sps:$4 sm:$0xff]  }
  0x15   :  { %2044 = vmatprep.subr.bf16.mxu0 %v2649_v21  ;;  %2066 = vmatprep.mubr.bf16.mxu0 %v2721_v51  ;;  %v2701_v58 = vld [vmem:[%s4023_s1 + $0xe4] ss:$8 sps:$4 sm:$0xff]   ;;  %v2707_v62 = vld [vmem:[%s4023_s1 + $0xf4] ss:$8 sps:$4 sm:$0xff]   ;;  %v2711_v0 = vld [vmem:[%s4023_s1 + $0xf0] ss:$8 sps:$4 sm:$0xff]  }
  0x16   :  { %v2703_v59 = vld [vmem:[%s4023_s1 + $0x4e4] ss:$8 sps:$4 sm:$0xff]   ;;  %v2709_v63 = vld [vmem:[%s4023_s1 + $0x4f4] ss:$8 sps:$4 sm:$0xff]   ;;  %v2712_v1 = vld [vmem:[%s4023_s1 + $0x4f0] ss:$8 sps:$4 sm:$0xff]  }
  0x17   :  { %1873 = vmatpush1.bf16.msra.mxu1 %v2651_v22  ;;  %v2718_v2 = vld [vmem:[%s4023_s1 + $0x104] ss:$8 sps:$4 sm:$0xff]   ;;  %v2713_v4 = vld [vmem:[%s4024_s0] ss:$72 sps:$4 sm:$0xff]   ;;  %v2727_v8 = vld [vmem:[%s4023_s1 + $0x114] ss:$8 sps:$4 sm:$0xff]  }
  0x18   :  { %2045 = vmatpush1.bf16.msra.mxu0 %v2652_v23  ;;  %1874 = vmatprep.subr.bf16.mxu1 %v2653_v24  ;;  %v2724_v3 = vld [vmem:[%s4023_s1 + $0x504] ss:$8 sps:$4 sm:$0xff]   ;;  %v2716_v5 = vld [vmem:[%s4023_s1 + $0x100] ss:$8 sps:$4 sm:$0xff]   ;;  %v2730_v9 = vld [vmem:[%s4023_s1 + $0x514] ss:$8 sps:$4 sm:$0xff]  }
  0x19   :  { %2046 = vmatprep.subr.bf16.mxu0 %v2655_v25  ;;  %v2719_v6 = vld [vmem:[%s4024_s0 + $0x20] ss:$72 sps:$4 sm:$0xff]   ;;  %v2725_v10 = vld [vmem:[%s4023_s1 + $0x110] ss:$8 sps:$4 sm:$0xff]   ;;  %v2733_v12 = vld [vmem:[%s4023_s1 + $0x124] ss:$8 sps:$4 sm:$0xff]  }
  0x1a   :  { %v2722_v7 = vld [vmem:[%s4023_s1 + $0x500] ss:$8 sps:$4 sm:$0xff]   ;;  %v2728_v11 = vld [vmem:[%s4023_s1 + $0x510] ss:$8 sps:$4 sm:$0xff]   ;;  %v2736_v13 = vld [vmem:[%s4023_s1 + $0x524] ss:$8 sps:$4 sm:$0xff]  }
  0x1b   :  { %1875 = vmatpush1.bf16.msra.mxu1 %v2657_v26  ;;  %v2731_v14 = vld [vmem:[%s4023_s1 + $0x120] ss:$8 sps:$4 sm:$0xff]   ;;  %v2739_v16 = vld [vmem:[%s4023_s1 + $0x134] ss:$8 sps:$4 sm:$0xff]   ;;  %v2737_v18 = vld [vmem:[%s4023_s1 + $0x130] ss:$8 sps:$4 sm:$0xff]  }
  0x1c   :  { %2047 = vmatpush1.bf16.msra.mxu0 %v2658_v27  ;;  %1876 = vmatprep.subr.bf16.mxu1 %v2659_v28  ;;  %v2734_v15 = vld [vmem:[%s4023_s1 + $0x520] ss:$8 sps:$4 sm:$0xff]   ;;  %v2742_v17 = vld [vmem:[%s4023_s1 + $0x534] ss:$8 sps:$4 sm:$0xff]   ;;  %v2740_v19 = vld [vmem:[%s4023_s1 + $0x530] ss:$8 sps:$4 sm:$0xff]  }
  0x1d   :  { %2048 = vmatprep.subr.bf16.mxu0 %v2661_v29  ;;  %v2745_v20 = vld [vmem:[%s4023_s1 + $0x144] ss:$8 sps:$4 sm:$0xff]   ;;  %v2743_v22 = vld [vmem:[%s4023_s1 + $0x140] ss:$8 sps:$4 sm:$0xff]   ;;  %v2751_v24 = vld [vmem:[%s4023_s1 + $0x154] ss:$8 sps:$4 sm:$0xff]  }
  0x1e   :  { %v2748_v21 = vld [vmem:[%s4023_s1 + $0x544] ss:$8 sps:$4 sm:$0xff]   ;;  %v2746_v23 = vld [vmem:[%s4023_s1 + $0x540] ss:$8 sps:$4 sm:$0xff]   ;;  %v2754_v25 = vld [vmem:[%s4023_s1 + $0x554] ss:$8 sps:$4 sm:$0xff]  }
  0x1f   :  { %1877 = vmatpush1.bf16.msra.mxu1 %v2663_v30  ;;  %v2749_v26 = vld [vmem:[%s4023_s1 + $0x150] ss:$8 sps:$4 sm:$0xff]   ;;  %v2757_v28 = vld [vmem:[%s4023_s1 + $0x164] ss:$8 sps:$4 sm:$0xff]   ;;  %v2755_v30 = vld [vmem:[%s4023_s1 + $0x160] ss:$8 sps:$4 sm:$0xff]  }
  0x20   :  { %2049 = vmatpush1.bf16.msra.mxu0 %v2664_v31  ;;  %1878 = vmatprep.subr.bf16.mxu1 %v2665_v32  ;;  %v2752_v27 = vld [vmem:[%s4023_s1 + $0x550] ss:$8 sps:$4 sm:$0xff]   ;;  %v2760_v29 = vld [vmem:[%s4023_s1 + $0x564] ss:$8 sps:$4 sm:$0xff]   ;;  %v2758_v31 = vld [vmem:[%s4023_s1 + $0x560] ss:$8 sps:$4 sm:$0xff]  }
  0x21   :  { %2050 = vmatprep.subr.bf16.mxu0 %v2667_v33  ;;  %v2763_v32 = vld [vmem:[%s4023_s1 + $0x174] ss:$8 sps:$4 sm:$0xff]   ;;  %v2779_v48 = vld [vmem:[%s4023_s1 + $0x1a0] ss:$8 sps:$4 sm:$0xff]  }
  0x22   :  { %v2766_v33 = vld [vmem:[%s4023_s1 + $0x574] ss:$8 sps:$4 sm:$0xff]  }
  0x23   :  { %1879 = vmatpush1.bf16.msra.mxu1 %v2669_v34  ;;  %v2817_v34 = vld [vmem:[%s4024_s0 + $0xc] ss:$72 sps:$4 sm:$0xff]  }
  0x24   :  { %2051 = vmatpush1.bf16.msra.mxu0 %v2670_v35  ;;  %1880 = vmatprep.subr.bf16.mxu1 %v2671_v36  ;;  %v2761_v35 = vld [vmem:[%s4023_s1 + $0x170] ss:$8 sps:$4 sm:$0xff]   ;;  %v2790_v51 = vld [vmem:[%s4023_s1 + $0x5b4] ss:$8 sps:$4 sm:$0xff]  }
  0x25   :  { %2052 = vmatprep.subr.bf16.mxu0 %v2673_v37  ;;  %v2764_v36 = vld [vmem:[%s4023_s1 + $0x570] ss:$8 sps:$4 sm:$0xff]   ;;  %v2823_v37 = vld [vmem:[%s4024_s0 + $0x2c] ss:$72 sps:$4 sm:$0xff]  }
  0x27   :  { %1881 = vmatpush1.bf16.msra.mxu1 %v2675_v38  ;;  %v2769_v38 = vld [vmem:[%s4023_s1 + $0x184] ss:$8 sps:$4 sm:$0xff]  }
  0x28   :  { %2053 = vmatpush1.bf16.msra.mxu0 %v2676_v39  ;;  %1882 = vmatprep.subr.bf16.mxu1 %v2677_v40  ;;  %v2772_v39 = vld [vmem:[%s4023_s1 + $0x584] ss:$8 sps:$4 sm:$0xff]   ;;  %v2767_v40 = vld [vmem:[%s4023_s1 + $0x180] ss:$8 sps:$4 sm:$0xff]  }
  0x29   :  { %2054 = vmatprep.subr.bf16.mxu0 %v2679_v41  ;;  %v2770_v41 = vld [vmem:[%s4023_s1 + $0x580] ss:$8 sps:$4 sm:$0xff]  }
  0x2b   :  { %1883 = vmatpush1.bf16.msra.mxu1 %v2681_v42  ;;  %v2775_v42 = vld [vmem:[%s4023_s1 + $0x194] ss:$8 sps:$4 sm:$0xff]  }
  0x2c   :  { %2055 = vmatpush1.bf16.msra.mxu0 %v2682_v43  ;;  %1884 = vmatprep.subr.bf16.mxu1 %v2683_v44  ;;  %v2778_v43 = vld [vmem:[%s4023_s1 + $0x594] ss:$8 sps:$4 sm:$0xff]   ;;  %v2773_v44 = vld [vmem:[%s4023_s1 + $0x190] ss:$8 sps:$4 sm:$0xff]  }
  0x2d   :  { %2056 = vmatprep.subr.bf16.mxu0 %v2685_v45  ;;  %v2776_v45 = vld [vmem:[%s4023_s1 + $0x590] ss:$8 sps:$4 sm:$0xff]  }
  0x2f   :  { %1885 = vmatpush1.bf16.msra.mxu1 %v2687_v46  ;;  %v2781_v46 = vld [vmem:[%s4023_s1 + $0x1a4] ss:$8 sps:$4 sm:$0xff]  }
  0x30   :  { %2057 = vmatpush1.bf16.msra.mxu0 %v2688_v47  ;;  %1886 = vmatprep.subr.bf16.mxu1 %v2689_v49  ;;  %v2784_v47 = vld [vmem:[%s4023_s1 + $0x5a4] ss:$8 sps:$4 sm:$0xff]   ;;  %v2782_v49 = vld [vmem:[%s4023_s1 + $0x5a0] ss:$8 sps:$4 sm:$0xff]  }
  0x31   :  { %2058 = vmatprep.subr.bf16.mxu0 %v2691_v50  ;;  %v2787_v50 = vld [vmem:[%s4023_s1 + $0x1b4] ss:$8 sps:$4 sm:$0xff]  }
  0x33   :  { %1887 = vmatpush1.bf16.msra.mxu1 %v2693_v52  ;;  %v2785_v52 = vld [vmem:[%s4023_s1 + $0x1b0] ss:$8 sps:$4 sm:$0xff]  }
  0x34   :  { %2059 = vmatpush1.bf16.msra.mxu0 %v2694_v53  ;;  %1888 = vmatprep.subr.bf16.mxu1 %v2695_v54  ;;  %v2788_v53 = vld [vmem:[%s4023_s1 + $0x5b0] ss:$8 sps:$4 sm:$0xff]   ;;  %v2793_v54 = vld [vmem:[%s4023_s1 + $0x1c4] ss:$8 sps:$4 sm:$0xff]  }
  0x35   :  { %2060 = vmatprep.subr.bf16.mxu0 %v2697_v55  ;;  %v2796_v55 = vld [vmem:[%s4023_s1 + $0x5c4] ss:$8 sps:$4 sm:$0xff]  }
  0x37   :  { %1889 = vmatpush1.bf16.msra.mxu1 %v2699_v56  ;;  %v2791_v56 = vld [vmem:[%s4023_s1 + $0x1c0] ss:$8 sps:$4 sm:$0xff]  }
  0x38   :  { %2061 = vmatpush1.bf16.msra.mxu0 %v2700_v57  ;;  %1890 = vmatprep.subr.bf16.mxu1 %v2701_v58  ;;  %v2794_v57 = vld [vmem:[%s4023_s1 + $0x5c0] ss:$8 sps:$4 sm:$0xff]   ;;  %v2799_v58 = vld [vmem:[%s4023_s1 + $0x1d4] ss:$8 sps:$4 sm:$0xff]  }
  0x39   :  { %2062 = vmatprep.subr.bf16.mxu0 %v2703_v59  ;;  %v2802_v59 = vld [vmem:[%s4023_s1 + $0x5d4] ss:$8 sps:$4 sm:$0xff]  }
  0x3b   :  { %1891 = vmatpush1.bf16.msra.mxu1 %v2705_v60  ;;  %v2797_v60 = vld [vmem:[%s4023_s1 + $0x1d0] ss:$8 sps:$4 sm:$0xff]  }
  0x3c   :  { %2063 = vmatpush1.bf16.msra.mxu0 %v2706_v61  ;;  %1892 = vmatprep.subr.bf16.mxu1 %v2707_v62  ;;  %v2800_v61 = vld [vmem:[%s4023_s1 + $0x5d0] ss:$8 sps:$4 sm:$0xff]   ;;  %v2805_v62 = vld [vmem:[%s4023_s1 + $0x1e4] ss:$8 sps:$4 sm:$0xff]  }
  0x3d   :  { %2064 = vmatprep.subr.bf16.mxu0 %v2709_v63  ;;  %v2808_v63 = vld [vmem:[%s4023_s1 + $0x5e4] ss:$8 sps:$4 sm:$0xff]  }
  0x3f   :  { %1893 = vmatpush1.bf16.msra.mxu1 %v2711_v0  ;;  %v2803_v0 = vld [vmem:[%s4023_s1 + $0x1e0] ss:$8 sps:$4 sm:$0xff]  }
  0x40   :  { %2065 = vmatpush1.bf16.msra.mxu0 %v2712_v1  ;;  %1905 = vmatprep.subr.bf16.mxu1 %v2718_v2  ;;  %v2806_v1 = vld [vmem:[%s4023_s1 + $0x5e0] ss:$8 sps:$4 sm:$0xff]   ;;  %v2811_v2 = vld [vmem:[%s4023_s1 + $0x1f4] ss:$8 sps:$4 sm:$0xff]  }
  0x41   :  { %2077 = vmatprep.subr.bf16.mxu0 %v2724_v3  ;;  %v2814_v3 = vld [vmem:[%s4023_s1 + $0x5f4] ss:$8 sps:$4 sm:$0xff]  }
  0x42   :  { %1895 = vmatmul.mubr.bf16.vlgmr.msra.gmra.mrb[0].mxu1 %v2713_v4  ;;  %v2809_v4 = vld [vmem:[%s4023_s1 + $0x1f0] ss:$8 sps:$4 sm:$0xff]  }
  0x43   :  { %2067 = vmatmul.mubr.bf16.vlgmr.msra.gmra.mrb[0].mxu0 %v2719_v6  ;;  %1906 = vmatpush1.bf16.msra.mxu1 %v2716_v5  ;;  %v2812_v5 = vld [vmem:[%s4023_s1 + $0x5f0] ss:$8 sps:$4 sm:$0xff]   ;;  %v2820_v6 = vld [vmem:[%s4023_s1 + $0x204] ss:$8 sps:$4 sm:$0xff]  }
  0x44   :  { %2078 = vmatpush1.bf16.msra.mxu0 %v2722_v7  ;;  %1907 = vmatprep.subr.bf16.mxu1 %v2727_v8  ;;  %v2826_v7 = vld [vmem:[%s4023_s1 + $0x604] ss:$8 sps:$4 sm:$0xff]   ;;  %v2815_v8 = vld [vmem:[%s4024_s0 + $0x8] ss:$72 sps:$4 sm:$0xff]  }
  0x45   :  { %2079 = vmatprep.subr.bf16.mxu0 %v2730_v9  ;;  %1937 = vmatprep.mubr.bf16.mxu1 %v2817_v34  ;;  %v2818_v9 = vld [vmem:[%s4023_s1 + $0x200] ss:$8 sps:$4 sm:$0xff]   ;;  %v2859_v34 = vld [vmem:[%s4023_s1 + $0x264] ss:$8 sps:$4 sm:$0xff]  }
  0x46   :  { %2109 = vmatprep.mubr.bf16.mxu0 %v2823_v37  ;;  %v2860_v37 = vld [vmem:[%s4023_s1 + $0x660] ss:$8 sps:$4 sm:$0xff]  }
  0x47   :  { %1908 = vmatpush1.bf16.msra.mxu1 %v2725_v10  ;;  %v2821_v10 = vld [vmem:[%s4024_s0 + $0x28] ss:$72 sps:$4 sm:$0xff]  }
  0x48   :  { %2080 = vmatpush1.bf16.msra.mxu0 %v2728_v11  ;;  %1909 = vmatprep.subr.bf16.mxu1 %v2733_v12  ;;  %v2824_v11 = vld [vmem:[%s4023_s1 + $0x600] ss:$8 sps:$4 sm:$0xff]   ;;  %v2829_v12 = vld [vmem:[%s4023_s1 + $0x214] ss:$8 sps:$4 sm:$0xff]  }
  0x49   :  { %2081 = vmatprep.subr.bf16.mxu0 %v2736_v13  ;;  %v2832_v13 = vld [vmem:[%s4023_s1 + $0x614] ss:$8 sps:$4 sm:$0xff]  }
  0x4b   :  { %1910 = vmatpush1.bf16.msra.mxu1 %v2731_v14  ;;  %v2827_v14 = vld [vmem:[%s4023_s1 + $0x210] ss:$8 sps:$4 sm:$0xff]  }
  0x4c   :  { %2082 = vmatpush1.bf16.msra.mxu0 %v2734_v15  ;;  %1911 = vmatprep.subr.bf16.mxu1 %v2739_v16  ;;  %v2830_v15 = vld [vmem:[%s4023_s1 + $0x610] ss:$8 sps:$4 sm:$0xff]   ;;  %v2835_v16 = vld [vmem:[%s4023_s1 + $0x224] ss:$8 sps:$4 sm:$0xff]  }
  0x4d   :  { %2083 = vmatprep.subr.bf16.mxu0 %v2742_v17  ;;  %v2838_v17 = vld [vmem:[%s4023_s1 + $0x624] ss:$8 sps:$4 sm:$0xff]  }
  0x4f   :  { %1912 = vmatpush1.bf16.msra.mxu1 %v2737_v18  ;;  %v2833_v18 = vld [vmem:[%s4023_s1 + $0x220] ss:$8 sps:$4 sm:$0xff]  }
  0x50   :  { %2084 = vmatpush1.bf16.msra.mxu0 %v2740_v19  ;;  %1913 = vmatprep.subr.bf16.mxu1 %v2745_v20  ;;  %v2919_v19 = vld [vmem:[%s4024_s0 + $0x14] ss:$72 sps:$4 sm:$0xff]   ;;  %v2836_v20 = vld [vmem:[%s4023_s1 + $0x620] ss:$8 sps:$4 sm:$0xff]  }
  0x51   :  { %2085 = vmatprep.subr.bf16.mxu0 %v2748_v21  ;;  %v2841_v21 = vld [vmem:[%s4023_s1 + $0x234] ss:$8 sps:$4 sm:$0xff]  }
  0x53   :  { %1914 = vmatpush1.bf16.msra.mxu1 %v2743_v22  ;;  %v2844_v22 = vld [vmem:[%s4023_s1 + $0x634] ss:$8 sps:$4 sm:$0xff]  }
  0x54   :  { %2086 = vmatpush1.bf16.msra.mxu0 %v2746_v23  ;;  %1915 = vmatprep.subr.bf16.mxu1 %v2751_v24  ;;  %v2925_v23 = vld [vmem:[%s4024_s0 + $0x34] ss:$72 sps:$4 sm:$0xff]   ;;  %v2839_v24 = vld [vmem:[%s4023_s1 + $0x230] ss:$8 sps:$4 sm:$0xff]  }
  0x55   :  { %2087 = vmatprep.subr.bf16.mxu0 %v2754_v25  ;;  %v2842_v25 = vld [vmem:[%s4023_s1 + $0x630] ss:$8 sps:$4 sm:$0xff]  }
  0x57   :  { %1916 = vmatpush1.bf16.msra.mxu1 %v2749_v26  ;;  %v2847_v26 = vld [vmem:[%s4023_s1 + $0x244] ss:$8 sps:$4 sm:$0xff]  }
  0x58   :  { %2088 = vmatpush1.bf16.msra.mxu0 %v2752_v27  ;;  %1917 = vmatprep.subr.bf16.mxu1 %v2757_v28  ;;  %v2850_v27 = vld [vmem:[%s4023_s1 + $0x644] ss:$8 sps:$4 sm:$0xff]   ;;  %v2845_v28 = vld [vmem:[%s4023_s1 + $0x240] ss:$8 sps:$4 sm:$0xff]  }
  0x59   :  { %2089 = vmatprep.subr.bf16.mxu0 %v2760_v29  ;;  %v2848_v29 = vld [vmem:[%s4023_s1 + $0x640] ss:$8 sps:$4 sm:$0xff]  }
  0x5b   :  { %1918 = vmatpush1.bf16.msra.mxu1 %v2755_v30  ;;  %v2853_v30 = vld [vmem:[%s4023_s1 + $0x254] ss:$8 sps:$4 sm:$0xff]  }
  0x5c   :  { %2090 = vmatpush1.bf16.msra.mxu0 %v2758_v31  ;;  %1919 = vmatprep.subr.bf16.mxu1 %v2763_v32  ;;  %v2856_v31 = vld [vmem:[%s4023_s1 + $0x654] ss:$8 sps:$4 sm:$0xff]   ;;  %v2851_v32 = vld [vmem:[%s4023_s1 + $0x250] ss:$8 sps:$4 sm:$0xff]  }
  0x5d   :  { %2091 = vmatprep.subr.bf16.mxu0 %v2766_v33  ;;  %v2854_v33 = vld [vmem:[%s4023_s1 + $0x650] ss:$8 sps:$4 sm:$0xff]  }
  0x5f   :  { %1920 = vmatpush1.bf16.msra.mxu1 %v2761_v35  ;;  %v2862_v35 = vld [vmem:[%s4023_s1 + $0x664] ss:$8 sps:$4 sm:$0xff]  }
  0x60   :  { %2092 = vmatpush1.bf16.msra.mxu0 %v2764_v36  ;;  %1921 = vmatprep.subr.bf16.mxu1 %v2769_v38  ;;  %v2857_v36 = vld [vmem:[%s4023_s1 + $0x260] ss:$8 sps:$4 sm:$0xff]   ;;  %v2865_v38 = vld [vmem:[%s4023_s1 + $0x274] ss:$8 sps:$4 sm:$0xff]  }
  0x61   :  { %2093 = vmatprep.subr.bf16.mxu0 %v2772_v39  ;;  %v2868_v39 = vld [vmem:[%s4023_s1 + $0x674] ss:$8 sps:$4 sm:$0xff]  }
  0x63   :  { %1922 = vmatpush1.bf16.msra.mxu1 %v2767_v40  ;;  %v2863_v40 = vld [vmem:[%s4023_s1 + $0x270] ss:$8 sps:$4 sm:$0xff]  }
  0x64   :  { %2094 = vmatpush1.bf16.msra.mxu0 %v2770_v41  ;;  %1923 = vmatprep.subr.bf16.mxu1 %v2775_v42  ;;  %v2866_v41 = vld [vmem:[%s4023_s1 + $0x670] ss:$8 sps:$4 sm:$0xff]   ;;  %v2871_v42 = vld [vmem:[%s4023_s1 + $0x284] ss:$8 sps:$4 sm:$0xff]  }
  0x65   :  { %2095 = vmatprep.subr.bf16.mxu0 %v2778_v43  ;;  %v2874_v43 = vld [vmem:[%s4023_s1 + $0x684] ss:$8 sps:$4 sm:$0xff]  }
  0x67   :  { %1924 = vmatpush1.bf16.msra.mxu1 %v2773_v44  ;;  %v2869_v44 = vld [vmem:[%s4023_s1 + $0x280] ss:$8 sps:$4 sm:$0xff]  }
  0x68   :  { %2096 = vmatpush1.bf16.msra.mxu0 %v2776_v45  ;;  %1925 = vmatprep.subr.bf16.mxu1 %v2781_v46  ;;  %v2872_v45 = vld [vmem:[%s4023_s1 + $0x680] ss:$8 sps:$4 sm:$0xff]   ;;  %v2877_v46 = vld [vmem:[%s4023_s1 + $0x294] ss:$8 sps:$4 sm:$0xff]  }
  0x69   :  { %2097 = vmatprep.subr.bf16.mxu0 %v2784_v47  ;;  %v2880_v47 = vld [vmem:[%s4023_s1 + $0x694] ss:$8 sps:$4 sm:$0xff]  }
  0x6b   :  { %1926 = vmatpush1.bf16.msra.mxu1 %v2779_v48  ;;  %v2875_v48 = vld [vmem:[%s4023_s1 + $0x290] ss:$8 sps:$4 sm:$0xff]  }
  0x6c   :  { %2098 = vmatpush1.bf16.msra.mxu0 %v2782_v49  ;;  %1927 = vmatprep.subr.bf16.mxu1 %v2787_v50  ;;  %v2878_v49 = vld [vmem:[%s4023_s1 + $0x690] ss:$8 sps:$4 sm:$0xff]   ;;  %v2883_v50 = vld [vmem:[%s4023_s1 + $0x2a4] ss:$8 sps:$4 sm:$0xff]  }
  0x6d   :  { %2099 = vmatprep.subr.bf16.mxu0 %v2790_v51  ;;  %v2886_v51 = vld [vmem:[%s4023_s1 + $0x6a4] ss:$8 sps:$4 sm:$0xff]  }
  0x6f   :  { %1928 = vmatpush1.bf16.msra.mxu1 %v2785_v52  ;;  %v2881_v52 = vld [vmem:[%s4023_s1 + $0x2a0] ss:$8 sps:$4 sm:$0xff]  }
  0x70   :  { %2100 = vmatpush1.bf16.msra.mxu0 %v2788_v53  ;;  %1929 = vmatprep.subr.bf16.mxu1 %v2793_v54  ;;  %v2884_v53 = vld [vmem:[%s4023_s1 + $0x6a0] ss:$8 sps:$4 sm:$0xff]   ;;  %v2889_v54 = vld [vmem:[%s4023_s1 + $0x2b4] ss:$8 sps:$4 sm:$0xff]  }
  0x71   :  { %2101 = vmatprep.subr.bf16.mxu0 %v2796_v55  ;;  %v2892_v55 = vld [vmem:[%s4023_s1 + $0x6b4] ss:$8 sps:$4 sm:$0xff]  }
  0x73   :  { %1930 = vmatpush1.bf16.msra.mxu1 %v2791_v56  ;;  %v2887_v56 = vld [vmem:[%s4023_s1 + $0x2b0] ss:$8 sps:$4 sm:$0xff]  }
  0x74   :  { %2102 = vmatpush1.bf16.msra.mxu0 %v2794_v57  ;;  %1931 = vmatprep.subr.bf16.mxu1 %v2799_v58  ;;  %v2890_v57 = vld [vmem:[%s4023_s1 + $0x6b0] ss:$8 sps:$4 sm:$0xff]   ;;  %v2895_v58 = vld [vmem:[%s4023_s1 + $0x2c4] ss:$8 sps:$4 sm:$0xff]  }
  0x75   :  { %2103 = vmatprep.subr.bf16.mxu0 %v2802_v59  ;;  %v2898_v59 = vld [vmem:[%s4023_s1 + $0x6c4] ss:$8 sps:$4 sm:$0xff]  }
  0x77   :  { %1932 = vmatpush1.bf16.msra.mxu1 %v2797_v60  ;;  %v2893_v60 = vld [vmem:[%s4023_s1 + $0x2c0] ss:$8 sps:$4 sm:$0xff]  }
  0x78   :  { %2104 = vmatpush1.bf16.msra.mxu0 %v2800_v61  ;;  %1933 = vmatprep.subr.bf16.mxu1 %v2805_v62  ;;  %v2896_v61 = vld [vmem:[%s4023_s1 + $0x6c0] ss:$8 sps:$4 sm:$0xff]   ;;  %v2901_v62 = vld [vmem:[%s4023_s1 + $0x2d4] ss:$8 sps:$4 sm:$0xff]  }
  0x79   :  { %2105 = vmatprep.subr.bf16.mxu0 %v2808_v63  ;;  %v2904_v63 = vld [vmem:[%s4023_s1 + $0x6d4] ss:$8 sps:$4 sm:$0xff]  }
  0x7b   :  { %1934 = vmatpush1.bf16.msra.mxu1 %v2803_v0  ;;  %v2899_v0 = vld [vmem:[%s4023_s1 + $0x2d0] ss:$8 sps:$4 sm:$0xff]  }
  0x7c   :  { %2106 = vmatpush1.bf16.msra.mxu0 %v2806_v1  ;;  %1935 = vmatprep.subr.bf16.mxu1 %v2811_v2  ;;  %v2902_v1 = vld [vmem:[%s4023_s1 + $0x6d0] ss:$8 sps:$4 sm:$0xff]   ;;  %v2907_v2 = vld [vmem:[%s4023_s1 + $0x2e4] ss:$8 sps:$4 sm:$0xff]  }
  0x7d   :  { %2107 = vmatprep.subr.bf16.mxu0 %v2814_v3  ;;  %v2910_v3 = vld [vmem:[%s4023_s1 + $0x6e4] ss:$8 sps:$4 sm:$0xff]  }
  0x7f   :  { %1936 = vmatpush1.bf16.msra.mxu1 %v2809_v4  ;;  %v2905_v4 = vld [vmem:[%s4023_s1 + $0x2e0] ss:$8 sps:$4 sm:$0xff]  }
  0x80   :  { %2108 = vmatpush1.bf16.msra.mxu0 %v2812_v5  ;;  %1948 = vmatprep.subr.bf16.mxu1 %v2820_v6  ;;  %v2908_v5 = vld [vmem:[%s4023_s1 + $0x6e0] ss:$8 sps:$4 sm:$0xff]   ;;  %v2913_v6 = vld [vmem:[%s4023_s1 + $0x2f4] ss:$8 sps:$4 sm:$0xff]  }
  0x81   :  { %2120 = vmatprep.subr.bf16.mxu0 %v2826_v7  ;;  %v2916_v7 = vld [vmem:[%s4023_s1 + $0x6f4] ss:$8 sps:$4 sm:$0xff]  }
  0x82   :  { %1938 = vmatmul.mubr.bf16.vlgmr.msra.gmra.mrb[0].mxu1 %v2815_v8  ;;  %v2911_v8 = vld [vmem:[%s4023_s1 + $0x2f0] ss:$8 sps:$4 sm:$0xff]  }
  0x83   :  { %2110 = vmatmul.mubr.bf16.vlgmr.msra.gmra.mrb[0].mxu0 %v2821_v10  ;;  %1949 = vmatpush1.bf16.msra.mxu1 %v2818_v9  ;;  %v2914_v9 = vld [vmem:[%s4023_s1 + $0x6f0] ss:$8 sps:$4 sm:$0xff]   ;;  %v2922_v10 = vld [vmem:[%s4023_s1 + $0x304] ss:$8 sps:$4 sm:$0xff]  }
  0x84   :  { %2121 = vmatpush1.bf16.msra.mxu0 %v2824_v11  ;;  %1950 = vmatprep.subr.bf16.mxu1 %v2829_v12  ;;  %v2928_v11 = vld [vmem:[%s4023_s1 + $0x704] ss:$8 sps:$4 sm:$0xff]   ;;  %v2917_v12 = vld [vmem:[%s4024_s0 + $0x10] ss:$72 sps:$4 sm:$0xff]  }
  0x85   :  { %2122 = vmatprep.subr.bf16.mxu0 %v2832_v13  ;;  %1980 = vmatprep.mubr.bf16.mxu1 %v2919_v19  ;;  %v2920_v13 = vld [vmem:[%s4023_s1 + $0x300] ss:$8 sps:$4 sm:$0xff]   ;;  %v3024_v19 = vld [vmem:[%s4024_s0 + $0x3c] ss:$72 sps:$4 sm:$0xff]  }
  0x86   :  { %2152 = vmatprep.mubr.bf16.mxu0 %v2925_v23  ;;  %v2940_v23 = vld [vmem:[%s4023_s1 + $0x724] ss:$8 sps:$4 sm:$0xff]  }
  0x87   :  { %1951 = vmatpush1.bf16.msra.mxu1 %v2827_v14  ;;  %v2923_v14 = vld [vmem:[%s4024_s0 + $0x30] ss:$72 sps:$4 sm:$0xff]  }
  0x88   :  { %2123 = vmatpush1.bf16.msra.mxu0 %v2830_v15  ;;  %1952 = vmatprep.subr.bf16.mxu1 %v2835_v16  ;;  %v2926_v15 = vld [vmem:[%s4023_s1 + $0x700] ss:$8 sps:$4 sm:$0xff]   ;;  %v2931_v16 = vld [vmem:[%s4023_s1 + $0x314] ss:$8 sps:$4 sm:$0xff]  }
  0x89   :  { %2124 = vmatprep.subr.bf16.mxu0 %v2838_v17  ;;  %v2934_v17 = vld [vmem:[%s4023_s1 + $0x714] ss:$8 sps:$4 sm:$0xff]  }
  0x8b   :  { %1953 = vmatpush1.bf16.msra.mxu1 %v2833_v18  ;;  %v3021_v18 = vld [vmem:[%s4024_s0 + $0x1c] ss:$72 sps:$4 sm:$0xff]  }
  0x8c   :  { %2125 = vmatpush1.bf16.msra.mxu0 %v2836_v20  ;;  %1954 = vmatprep.subr.bf16.mxu1 %v2841_v21  ;;  %v2929_v20 = vld [vmem:[%s4023_s1 + $0x310] ss:$8 sps:$4 sm:$0xff]  }
  0x8d   :  { %2126 = vmatprep.subr.bf16.mxu0 %v2844_v22  ;;  %v2932_v21 = vld [vmem:[%s4023_s1 + $0x710] ss:$8 sps:$4 sm:$0xff]   ;;  %v2937_v22 = vld [vmem:[%s4023_s1 + $0x324] ss:$8 sps:$4 sm:$0xff]  }
  0x8f   :  { %1955 = vmatpush1.bf16.msra.mxu1 %v2839_v24  ;;  %v2935_v24 = vld [vmem:[%s4023_s1 + $0x320] ss:$8 sps:$4 sm:$0xff]  }
  0x90   :  { %2127 = vmatpush1.bf16.msra.mxu0 %v2842_v25  ;;  %1956 = vmatprep.subr.bf16.mxu1 %v2847_v26  ;;  %v2938_v25 = vld [vmem:[%s4023_s1 + $0x720] ss:$8 sps:$4 sm:$0xff]   ;;  %v2943_v26 = vld [vmem:[%s4023_s1 + $0x334] ss:$8 sps:$4 sm:$0xff]  }
  0x91   :  { %2128 = vmatprep.subr.bf16.mxu0 %v2850_v27  ;;  %v2946_v27 = vld [vmem:[%s4023_s1 + $0x734] ss:$8 sps:$4 sm:$0xff]  }
  0x93   :  { %1957 = vmatpush1.bf16.msra.mxu1 %v2845_v28  ;;  %v2941_v28 = vld [vmem:[%s4023_s1 + $0x330] ss:$8 sps:$4 sm:$0xff]  }
  0x94   :  { %2129 = vmatpush1.bf16.msra.mxu0 %v2848_v29  ;;  %1958 = vmatprep.subr.bf16.mxu1 %v2853_v30  ;;  %v2944_v29 = vld [vmem:[%s4023_s1 + $0x730] ss:$8 sps:$4 sm:$0xff]   ;;  %v2949_v30 = vld [vmem:[%s4023_s1 + $0x344] ss:$8 sps:$4 sm:$0xff]  }
  0x95   :  { %2130 = vmatprep.subr.bf16.mxu0 %v2856_v31  ;;  %v2952_v31 = vld [vmem:[%s4023_s1 + $0x744] ss:$8 sps:$4 sm:$0xff]  }
  0x97   :  { %1959 = vmatpush1.bf16.msra.mxu1 %v2851_v32  ;;  %v2947_v32 = vld [vmem:[%s4023_s1 + $0x340] ss:$8 sps:$4 sm:$0xff]  }
  0x98   :  { %2131 = vmatpush1.bf16.msra.mxu0 %v2854_v33  ;;  %1960 = vmatprep.subr.bf16.mxu1 %v2859_v34  ;;  %v2950_v33 = vld [vmem:[%s4023_s1 + $0x740] ss:$8 sps:$4 sm:$0xff]   ;;  %v2955_v34 = vld [vmem:[%s4023_s1 + $0x354] ss:$8 sps:$4 sm:$0xff]  }
  0x99   :  { %2132 = vmatprep.subr.bf16.mxu0 %v2862_v35  ;;  %v2958_v35 = vld [vmem:[%s4023_s1 + $0x754] ss:$8 sps:$4 sm:$0xff]  }
  0x9b   :  { %1961 = vmatpush1.bf16.msra.mxu1 %v2857_v36  ;;  %v2953_v36 = vld [vmem:[%s4023_s1 + $0x350] ss:$8 sps:$4 sm:$0xff]  }
  0x9c   :  { %2133 = vmatpush1.bf16.msra.mxu0 %v2860_v37  ;;  %1962 = vmatprep.subr.bf16.mxu1 %v2865_v38  ;;  %v2956_v37 = vld [vmem:[%s4023_s1 + $0x750] ss:$8 sps:$4 sm:$0xff]   ;;  %v2961_v38 = vld [vmem:[%s4023_s1 + $0x364] ss:$8 sps:$4 sm:$0xff]  }
  0x9d   :  { %2134 = vmatprep.subr.bf16.mxu0 %v2868_v39  ;;  %v2964_v39 = vld [vmem:[%s4023_s1 + $0x764] ss:$8 sps:$4 sm:$0xff]  }
  0x9f   :  { %1963 = vmatpush1.bf16.msra.mxu1 %v2863_v40  ;;  %v2959_v40 = vld [vmem:[%s4023_s1 + $0x360] ss:$8 sps:$4 sm:$0xff]  }
  0xa0   :  { %2135 = vmatpush1.bf16.msra.mxu0 %v2866_v41  ;;  %1964 = vmatprep.subr.bf16.mxu1 %v2871_v42  ;;  %v2962_v41 = vld [vmem:[%s4023_s1 + $0x760] ss:$8 sps:$4 sm:$0xff]   ;;  %v2967_v42 = vld [vmem:[%s4023_s1 + $0x374] ss:$8 sps:$4 sm:$0xff]  }
  0xa1   :  { %2136 = vmatprep.subr.bf16.mxu0 %v2874_v43  ;;  %v2970_v43 = vld [vmem:[%s4023_s1 + $0x774] ss:$8 sps:$4 sm:$0xff]  }
  0xa3   :  { %1965 = vmatpush1.bf16.msra.mxu1 %v2869_v44  ;;  %v2965_v44 = vld [vmem:[%s4023_s1 + $0x370] ss:$8 sps:$4 sm:$0xff]  }
  0xa4   :  { %2137 = vmatpush1.bf16.msra.mxu0 %v2872_v45  ;;  %1966 = vmatprep.subr.bf16.mxu1 %v2877_v46  ;;  %v2968_v45 = vld [vmem:[%s4023_s1 + $0x770] ss:$8 sps:$4 sm:$0xff]   ;;  %v2973_v46 = vld [vmem:[%s4023_s1 + $0x384] ss:$8 sps:$4 sm:$0xff]  }
  0xa5   :  { %2138 = vmatprep.subr.bf16.mxu0 %v2880_v47  ;;  %v2976_v47 = vld [vmem:[%s4023_s1 + $0x784] ss:$8 sps:$4 sm:$0xff]  }
  0xa7   :  { %1967 = vmatpush1.bf16.msra.mxu1 %v2875_v48  ;;  %v2971_v48 = vld [vmem:[%s4023_s1 + $0x380] ss:$8 sps:$4 sm:$0xff]  }
  0xa8   :  { %2139 = vmatpush1.bf16.msra.mxu0 %v2878_v49  ;;  %1968 = vmatprep.subr.bf16.mxu1 %v2883_v50  ;;  %v2974_v49 = vld [vmem:[%s4023_s1 + $0x780] ss:$8 sps:$4 sm:$0xff]   ;;  %v2979_v50 = vld [vmem:[%s4023_s1 + $0x394] ss:$8 sps:$4 sm:$0xff]  }
  0xa9   :  { %2140 = vmatprep.subr.bf16.mxu0 %v2886_v51  ;;  %v2982_v51 = vld [vmem:[%s4023_s1 + $0x794] ss:$8 sps:$4 sm:$0xff]  }
  0xab   :  { %1969 = vmatpush1.bf16.msra.mxu1 %v2881_v52  ;;  %v2977_v52 = vld [vmem:[%s4023_s1 + $0x390] ss:$8 sps:$4 sm:$0xff]  }
  0xac   :  { %2141 = vmatpush1.bf16.msra.mxu0 %v2884_v53  ;;  %1970 = vmatprep.subr.bf16.mxu1 %v2889_v54  ;;  %v2980_v53 = vld [vmem:[%s4023_s1 + $0x790] ss:$8 sps:$4 sm:$0xff]   ;;  %v2985_v54 = vld [vmem:[%s4023_s1 + $0x3a4] ss:$8 sps:$4 sm:$0xff]  }
  0xad   :  { %2142 = vmatprep.subr.bf16.mxu0 %v2892_v55  ;;  %v2988_v55 = vld [vmem:[%s4023_s1 + $0x7a4] ss:$8 sps:$4 sm:$0xff]  }
  0xaf   :  { %1971 = vmatpush1.bf16.msra.mxu1 %v2887_v56  ;;  %v2983_v56 = vld [vmem:[%s4023_s1 + $0x3a0] ss:$8 sps:$4 sm:$0xff]  }
  0xb0   :  { %2143 = vmatpush1.bf16.msra.mxu0 %v2890_v57  ;;  %1972 = vmatprep.subr.bf16.mxu1 %v2895_v58  ;;  %v2986_v57 = vld [vmem:[%s4023_s1 + $0x7a0] ss:$8 sps:$4 sm:$0xff]   ;;  %v2991_v58 = vld [vmem:[%s4023_s1 + $0x3b4] ss:$8 sps:$4 sm:$0xff]  }
  0xb1   :  { %2144 = vmatprep.subr.bf16.mxu0 %v2898_v59  ;;  %v2994_v59 = vld [vmem:[%s4023_s1 + $0x7b4] ss:$8 sps:$4 sm:$0xff]  }
  0xb3   :  { %1973 = vmatpush1.bf16.msra.mxu1 %v2893_v60  ;;  %v2989_v60 = vld [vmem:[%s4023_s1 + $0x3b0] ss:$8 sps:$4 sm:$0xff]  }
  0xb4   :  { %2145 = vmatpush1.bf16.msra.mxu0 %v2896_v61  ;;  %1974 = vmatprep.subr.bf16.mxu1 %v2901_v62  ;;  %v2992_v61 = vld [vmem:[%s4023_s1 + $0x7b0] ss:$8 sps:$4 sm:$0xff]   ;;  %v2997_v62 = vld [vmem:[%s4023_s1 + $0x3c4] ss:$8 sps:$4 sm:$0xff]  }
  0xb5   :  { %2146 = vmatprep.subr.bf16.mxu0 %v2904_v63  ;;  %v3000_v63 = vld [vmem:[%s4023_s1 + $0x7c4] ss:$8 sps:$4 sm:$0xff]  }
  0xb7   :  { %1975 = vmatpush1.bf16.msra.mxu1 %v2899_v0  ;;  %v2995_v0 = vld [vmem:[%s4023_s1 + $0x3c0] ss:$8 sps:$4 sm:$0xff]  }
  0xb8   :  { %2147 = vmatpush1.bf16.msra.mxu0 %v2902_v1  ;;  %1976 = vmatprep.subr.bf16.mxu1 %v2907_v2  ;;  %v2998_v1 = vld [vmem:[%s4023_s1 + $0x7c0] ss:$8 sps:$4 sm:$0xff]   ;;  %v3003_v2 = vld [vmem:[%s4023_s1 + $0x3d4] ss:$8 sps:$4 sm:$0xff]  }
  0xb9   :  { %2148 = vmatprep.subr.bf16.mxu0 %v2910_v3  ;;  %v3006_v3 = vld [vmem:[%s4023_s1 + $0x7d4] ss:$8 sps:$4 sm:$0xff]  }
  0xbb   :  { %1977 = vmatpush1.bf16.msra.mxu1 %v2905_v4  ;;  %v3001_v4 = vld [vmem:[%s4023_s1 + $0x3d0] ss:$8 sps:$4 sm:$0xff]  }
  0xbc   :  { %2149 = vmatpush1.bf16.msra.mxu0 %v2908_v5  ;;  %1978 = vmatprep.subr.bf16.mxu1 %v2913_v6  ;;  %v3004_v5 = vld [vmem:[%s4023_s1 + $0x7d0] ss:$8 sps:$4 sm:$0xff]   ;;  %v3009_v6 = vld [vmem:[%s4023_s1 + $0x3e4] ss:$8 sps:$4 sm:$0xff]  }
  0xbd   :  { %2150 = vmatprep.subr.bf16.mxu0 %v2916_v7  ;;  %v3012_v7 = vld [vmem:[%s4023_s1 + $0x7e4] ss:$8 sps:$4 sm:$0xff]  }
  0xbf   :  { %1979 = vmatpush1.bf16.msra.mxu1 %v2911_v8  ;;  %v3007_v8 = vld [vmem:[%s4023_s1 + $0x3e0] ss:$8 sps:$4 sm:$0xff]  }
  0xc0   :  { %2151 = vmatpush1.bf16.msra.mxu0 %v2914_v9  ;;  %1991 = vmatprep.subr.bf16.mxu1 %v2922_v10  ;;  %v3010_v9 = vld [vmem:[%s4023_s1 + $0x7e0] ss:$8 sps:$4 sm:$0xff]   ;;  %v3015_v10 = vld [vmem:[%s4023_s1 + $0x3f4] ss:$8 sps:$4 sm:$0xff]  }
  0xc1   :  { %2163 = vmatprep.subr.bf16.mxu0 %v2928_v11  ;;  %v3018_v11 = vld [vmem:[%s4023_s1 + $0x7f4] ss:$8 sps:$4 sm:$0xff]  }
  0xc2   :  { %1981 = vmatmul.mubr.bf16.vlgmr.msra.gmra.mrb[0].mxu1 %v2917_v12  ;;  %v3013_v12 = vld [vmem:[%s4023_s1 + $0x3f0] ss:$8 sps:$4 sm:$0xff]  }
  0xc3   :  { %2153 = vmatmul.mubr.bf16.vlgmr.msra.gmra.mrb[0].mxu0 %v2923_v14  ;;  %1992 = vmatpush1.bf16.msra.mxu1 %v2920_v13  ;;  %v3016_v13 = vld [vmem:[%s4023_s1 + $0x7f0] ss:$8 sps:$4 sm:$0xff]   ;;  %v3027_v14 = vld [vmem:[%s4023_s1 + $0x804] ss:$8 sps:$4 sm:$0xff]  }
  0xc4   :  { %2164 = vmatpush1.bf16.msra.mxu0 %v2926_v15  ;;  %1993 = vmatprep.subr.bf16.mxu1 %v2931_v16  ;;  %v3019_v15 = vld [vmem:[%s4024_s0 + $0x18] ss:$72 sps:$4 sm:$0xff]  }
  0xc5   :  { %2165 = vmatprep.subr.bf16.mxu0 %v2934_v17  ;;  %2023 = vmatprep.mubr.bf16.mxu1 %v3021_v18  ;;  %v3022_v16 = vld [vmem:[%s4024_s0 + $0x38] ss:$72 sps:$4 sm:$0xff]   ;;  %v3075_v18 = vld [vmem:[%s4024_s0 + $0x44] ss:$72 sps:$4 sm:$0xff]  }
  0xc6   :  { %2195 = vmatprep.mubr.bf16.mxu0 %v3024_v19  ;;  %v3025_v17 = vld [vmem:[%s4023_s1 + $0x800] ss:$8 sps:$4 sm:$0xff]   ;;  %v3030_v19 = vld [vmem:[%s4023_s1 + $0x814] ss:$8 sps:$4 sm:$0xff]  }
  0xc7   :  { %1994 = vmatpush1.bf16.msra.mxu1 %v2929_v20  ;;  %v3028_v20 = vld [vmem:[%s4023_s1 + $0x810] ss:$8 sps:$4 sm:$0xff]  }
  0xc8   :  { %2166 = vmatpush1.bf16.msra.mxu0 %v2932_v21  ;;  %1995 = vmatprep.subr.bf16.mxu1 %v2937_v22  ;;  %v3033_v21 = vld [vmem:[%s4023_s1 + $0x824] ss:$8 sps:$4 sm:$0xff]   ;;  %v3031_v22 = vld [vmem:[%s4023_s1 + $0x820] ss:$8 sps:$4 sm:$0xff]  }
  0xc9   :  { %2167 = vmatprep.subr.bf16.mxu0 %v2940_v23  ;;  %v3036_v23 = vld [vmem:[%s4023_s1 + $0x834] ss:$8 sps:$4 sm:$0xff]  }
  0xcb   :  { %1996 = vmatpush1.bf16.msra.mxu1 %v2935_v24  ;;  %v3034_v24 = vld [vmem:[%s4023_s1 + $0x830] ss:$8 sps:$4 sm:$0xff]  }
  0xcc   :  { %2168 = vmatpush1.bf16.msra.mxu0 %v2938_v25  ;;  %1997 = vmatprep.subr.bf16.mxu1 %v2943_v26  ;;  %v3039_v25 = vld [vmem:[%s4023_s1 + $0x844] ss:$8 sps:$4 sm:$0xff]   ;;  %v3037_v26 = vld [vmem:[%s4023_s1 + $0x840] ss:$8 sps:$4 sm:$0xff]  }
  0xcd   :  { %2169 = vmatprep.subr.bf16.mxu0 %v2946_v27  ;;  %v3042_v27 = vld [vmem:[%s4023_s1 + $0x854] ss:$8 sps:$4 sm:$0xff]  }
  0xcf   :  { %1998 = vmatpush1.bf16.msra.mxu1 %v2941_v28  ;;  %v3040_v28 = vld [vmem:[%s4023_s1 + $0x850] ss:$8 sps:$4 sm:$0xff]  }
  0xd0   :  { %2170 = vmatpush1.bf16.msra.mxu0 %v2944_v29  ;;  %1999 = vmatprep.subr.bf16.mxu1 %v2949_v30  ;;  %v3045_v29 = vld [vmem:[%s4023_s1 + $0x864] ss:$8 sps:$4 sm:$0xff]   ;;  %v3043_v30 = vld [vmem:[%s4023_s1 + $0x860] ss:$8 sps:$4 sm:$0xff]  }
  0xd1   :  { %2171 = vmatprep.subr.bf16.mxu0 %v2952_v31  ;;  %v3048_v31 = vld [vmem:[%s4023_s1 + $0x874] ss:$8 sps:$4 sm:$0xff]  }
  0xd3   :  { %2000 = vmatpush1.bf16.msra.mxu1 %v2947_v32  ;;  %v3046_v32 = vld [vmem:[%s4023_s1 + $0x870] ss:$8 sps:$4 sm:$0xff]  }
  0xd4   :  { %2172 = vmatpush1.bf16.msra.mxu0 %v2950_v33  ;;  %2001 = vmatprep.subr.bf16.mxu1 %v2955_v34  ;;  %v3051_v33 = vld [vmem:[%s4023_s1 + $0x884] ss:$8 sps:$4 sm:$0xff]   ;;  %v3049_v34 = vld [vmem:[%s4023_s1 + $0x880] ss:$8 sps:$4 sm:$0xff]  }
  0xd5   :  { %2173 = vmatprep.subr.bf16.mxu0 %v2958_v35  ;;  %v3054_v35 = vld [vmem:[%s4023_s1 + $0x894] ss:$8 sps:$4 sm:$0xff]  }
  0xd7   :  { %2002 = vmatpush1.bf16.msra.mxu1 %v2953_v36  ;;  %v3052_v36 = vld [vmem:[%s4023_s1 + $0x890] ss:$8 sps:$4 sm:$0xff]  }
  0xd8   :  { %2174 = vmatpush1.bf16.msra.mxu0 %v2956_v37  ;;  %2003 = vmatprep.subr.bf16.mxu1 %v2961_v38  ;;  %v3057_v37 = vld [vmem:[%s4023_s1 + $0x8a4] ss:$8 sps:$4 sm:$0xff]   ;;  %v3055_v38 = vld [vmem:[%s4023_s1 + $0x8a0] ss:$8 sps:$4 sm:$0xff]  }
  0xd9   :  { %2175 = vmatprep.subr.bf16.mxu0 %v2964_v39  ;;  %v3060_v39 = vld [vmem:[%s4023_s1 + $0x8b4] ss:$8 sps:$4 sm:$0xff]  }
  0xdb   :  { %2004 = vmatpush1.bf16.msra.mxu1 %v2959_v40  ;;  %v3058_v40 = vld [vmem:[%s4023_s1 + $0x8b0] ss:$8 sps:$4 sm:$0xff]  }
  0xdc   :  { %2176 = vmatpush1.bf16.msra.mxu0 %v2962_v41  ;;  %2005 = vmatprep.subr.bf16.mxu1 %v2967_v42  ;;  %v3063_v41 = vld [vmem:[%s4023_s1 + $0x8c4] ss:$8 sps:$4 sm:$0xff]   ;;  %v3061_v42 = vld [vmem:[%s4023_s1 + $0x8c0] ss:$8 sps:$4 sm:$0xff]  }
  0xdd   :  { %2177 = vmatprep.subr.bf16.mxu0 %v2970_v43  ;;  %v3066_v43 = vld [vmem:[%s4023_s1 + $0x8d4] ss:$8 sps:$4 sm:$0xff]  }
  0xdf   :  { %2006 = vmatpush1.bf16.msra.mxu1 %v2965_v44  ;;  %v3064_v44 = vld [vmem:[%s4023_s1 + $0x8d0] ss:$8 sps:$4 sm:$0xff]  }
  0xe0   :  { %2178 = vmatpush1.bf16.msra.mxu0 %v2968_v45  ;;  %2007 = vmatprep.subr.bf16.mxu1 %v2973_v46  ;;  %v3069_v45 = vld [vmem:[%s4023_s1 + $0x8e4] ss:$8 sps:$4 sm:$0xff]   ;;  %v3067_v46 = vld [vmem:[%s4023_s1 + $0x8e0] ss:$8 sps:$4 sm:$0xff]  }
  0xe1   :  { %2179 = vmatprep.subr.bf16.mxu0 %v2976_v47  ;;  %v3072_v47 = vld [vmem:[%s4023_s1 + $0x8f4] ss:$8 sps:$4 sm:$0xff]  }
  0xe3   :  { %2008 = vmatpush1.bf16.msra.mxu1 %v2971_v48  ;;  %v3070_v48 = vld [vmem:[%s4023_s1 + $0x8f0] ss:$8 sps:$4 sm:$0xff]  }
  0xe4   :  { %2180 = vmatpush1.bf16.msra.mxu0 %v2974_v49  ;;  %2009 = vmatprep.subr.bf16.mxu1 %v2979_v50  ;;  %v3073_v49 = vld [vmem:[%s4024_s0 + $0x40] ss:$72 sps:$4 sm:$0xff]  }
  0xe5   :  { %2181 = vmatprep.subr.bf16.mxu0 %v2982_v51 }
  0xe7   :  { %2010 = vmatpush1.bf16.msra.mxu1 %v2977_v52 }
  0xe8   :  { %2182 = vmatpush1.bf16.msra.mxu0 %v2980_v53  ;;  %2011 = vmatprep.subr.bf16.mxu1 %v2985_v54  ;;  %v322_v54 = vlaneseq }
  0xe9   :  { %2183 = vmatprep.subr.bf16.mxu0 %v2988_v55 }
  0xea   :  { %v323_v55 = vshrl.u32 %v322_v54, 7 }
  0xeb   :  { %2012 = vmatpush1.bf16.msra.mxu1 %v2983_v56 }
  0xec   :  { %2184 = vmatpush1.bf16.msra.mxu0 %v2986_v57  ;;  %2013 = vmatprep.subr.bf16.mxu1 %v2991_v58  ;;  %v324_v56 = vsub.s32 0, %v323_v55  ;;  %v320_v57 = vld [vmem:[%s4025_s2] sm:$0x3]  ;;  %v328_v58 = vsub.s32 1, %v323_v55 }
  0xed   :  { %2185 = vmatprep.subr.bf16.mxu0 %v2994_v59 }
  0xee   :  { %v325_v59 = vrot.slane %v320_v57, %v324_v56 }
  0xef   :  { %2014 = vmatpush1.bf16.msra.mxu1 %v2989_v60  ;;  %v329_v60 = vrot.slane %v320_v57, %v328_v58 }
  0xf0   :  { %2186 = vmatpush1.bf16.msra.mxu0 %v2992_v61  ;;  %2015 = vmatprep.subr.bf16.mxu1 %v2997_v62 }
  0xf1   :  { %2187 = vmatprep.subr.bf16.mxu0 %v3000_v63 }
  0xf3   :  { %2016 = vmatpush1.bf16.msra.mxu1 %v2995_v0 }
  0xf4   :  { %2188 = vmatpush1.bf16.msra.mxu0 %v2998_v1  ;;  %2017 = vmatprep.subr.bf16.mxu1 %v3003_v2 }
  0xf5   :  { %2189 = vmatprep.subr.bf16.mxu0 %v3006_v3 }
  0xf7   :  { %2018 = vmatpush1.bf16.msra.mxu1 %v3001_v4 }
  0xf8   :  { %2190 = vmatpush1.bf16.msra.mxu0 %v3004_v5  ;;  %2019 = vmatprep.subr.bf16.mxu1 %v3009_v6 }
  0xf9   :  { %2191 = vmatprep.subr.bf16.mxu0 %v3012_v7 }
  0xfb   :  { %2020 = vmatpush1.bf16.msra.mxu1 %v3007_v8 }
  0xfc   :  { %2192 = vmatpush1.bf16.msra.mxu0 %v3010_v9  ;;  %2021 = vmatprep.subr.bf16.mxu1 %v3015_v10 }
  0xfd   :  { %2193 = vmatprep.subr.bf16.mxu0 %v3018_v11 }
  0xff   :  { %2022 = vmatpush1.bf16.msra.mxu1 %v3013_v12 }
 0x100   :  { %2194 = vmatpush1.bf16.msra.mxu0 %v3016_v13 }
 0x101   :  { %2206 = vmatprep.subr.bf16.mxu0 %v3027_v14 }
 0x102   :  { %2024 = vmatmul.mubr.bf16.vlgmr.msra.gmra.mrb[0].mxu1 %v3019_v15 }
 0x103   :  { %2196 = vmatmul.mubr.bf16.vlgmr.msra.gmra.mrb[0].mxu0 %v3022_v16 }
 0x104   :  { %2207 = vmatpush1.bf16.msra.mxu0 %v3025_v17  ;;  %2238 = vmatprep.mubr.bf16.mxu0 %v3075_v18 }
 0x105   :  { %2208 = vmatprep.subr.bf16.mxu0 %v3030_v19 }
 0x108   :  { %2209 = vmatpush1.bf16.msra.mxu0 %v3028_v20 }
 0x109   :  { %2210 = vmatprep.subr.bf16.mxu0 %v3033_v21 }
 0x10c   :  { %2211 = vmatpush1.bf16.msra.mxu0 %v3031_v22 }
 0x10d   :  { %2212 = vmatprep.subr.bf16.mxu0 %v3036_v23 }
 0x110   :  { %2213 = vmatpush1.bf16.msra.mxu0 %v3034_v24 }
 0x111   :  { %2214 = vmatprep.subr.bf16.mxu0 %v3039_v25 }
 0x114   :  { %2215 = vmatpush1.bf16.msra.mxu0 %v3037_v26 }
 0x115   :  { %2216 = vmatprep.subr.bf16.mxu0 %v3042_v27 }
 0x118   :  { %2217 = vmatpush1.bf16.msra.mxu0 %v3040_v28 }
 0x119   :  { %2218 = vmatprep.subr.bf16.mxu0 %v3045_v29 }
 0x11c   :  { %2219 = vmatpush1.bf16.msra.mxu0 %v3043_v30 }
 0x11d   :  { %2220 = vmatprep.subr.bf16.mxu0 %v3048_v31 }
 0x120   :  { %2221 = vmatpush1.bf16.msra.mxu0 %v3046_v32 }
 0x121   :  { %2222 = vmatprep.subr.bf16.mxu0 %v3051_v33 }
 0x124   :  { %2223 = vmatpush1.bf16.msra.mxu0 %v3049_v34 }
 0x125   :  { %2224 = vmatprep.subr.bf16.mxu0 %v3054_v35 }
 0x128   :  { %2225 = vmatpush1.bf16.msra.mxu0 %v3052_v36 }
 0x129   :  { %2226 = vmatprep.subr.bf16.mxu0 %v3057_v37 }
 0x12c   :  { %2227 = vmatpush1.bf16.msra.mxu0 %v3055_v38 }
 0x12d   :  { %2228 = vmatprep.subr.bf16.mxu0 %v3060_v39 }
 0x130   :  { %2229 = vmatpush1.bf16.msra.mxu0 %v3058_v40 }
 0x131   :  { %2230 = vmatprep.subr.bf16.mxu0 %v3063_v41 }
 0x134   :  { %2231 = vmatpush1.bf16.msra.mxu0 %v3061_v42 }
 0x135   :  { %2232 = vmatprep.subr.bf16.mxu0 %v3066_v43 }
 0x138   :  { %2233 = vmatpush1.bf16.msra.mxu0 %v3064_v44 }
 0x139   :  { %2234 = vmatprep.subr.bf16.mxu0 %v3069_v45 }
 0x13c   :  { %2235 = vmatpush1.bf16.msra.mxu0 %v3067_v46 }
 0x13d   :  { %2236 = vmatprep.subr.bf16.mxu0 %v3072_v47 }
 0x140   :  { %2237 = vmatpush1.bf16.msra.mxu0 %v3070_v48 }
 0x143   :  { %2239 = vmatmul.mubr.bf16.vlgmr.msra.gmra.mrb[0].mxu0 %v3073_v49 }
 0x1d5   :  { %v2025_v50 = vpop.f32.mrb[0].mxu1 }
 0x1d6   :  { %v2027_v51 = vpop.f32.mrb[1].mxu1  ;;  %v2581_v61 = vadd.f32 %v2025_v50, %v325_v59 }
 0x1d7   :  { %v2029_v52 = vpop.f32.mrb[2].mxu1  ;;  %v2583_v62 = vadd.f32 %v2027_v51, %v329_v60 }
 0x1d8   :  { %v2031_v53 = vpop.f32.mrb[3].mxu1  ;;  %v2585_v0 = vadd.f32 %v2029_v52, %v325_v59 }
 0x1d9   :  { %v2587_v3 = vadd.f32 %v2031_v53, %v329_v60 }
 0x216   :  { %v2240_v63 = vpop.f32.mrb[0].mxu0 }
 0x217   :  { %v2582_v1 = vadd.f32 %v2581_v61, %v2240_v63  ;;  %v2242_v2 = vpop.f32.mrb[1].mxu0 }
 0x218   :  { %v2584_v4 = vadd.f32 %v2583_v62, %v2242_v2  ;;  %v2244_v5 = vpop.f32.mrb[2].mxu0 }
 0x219   :  { %v2249_v6 = vmax.f32 %v2582_v1, 0.0  ;;  %v2586_v7 = vadd.f32 %v2585_v0, %v2244_v5  ;;  %v2246_v8 = vpop.f32.mrb[3].mxu0 }
 0x21a   :  { %v2250_v9 = vmax.f32 %v2584_v4, 0.0  ;;  %v2588_v10 = vadd.f32 %v2587_v3, %v2246_v8 }
 0x21b   :  { %v2251_v11 = vmax.f32 %v2586_v7, 0.0 }
 0x21c   :  { %v2579_v12 = vpack.c.bf16 %v2250_v9, %v2249_v6  ;;  %v2252_v13 = vmax.f32 %v2588_v10, 0.0 }
 0x21e   :  { %2265 = vst [vmem:[%s4026_s3] sm:$0xff] %v2579_v12  ;;  %v2580_v14 = vpack.c.bf16 %v2252_v13, %v2251_v11 }
 0x220   :  { %2266 = vst [vmem:[%s4026_s3 + $0x8] sm:$0xff] %v2580_v14 }

</bundles_post_ra>
